<compile_context>
chip_gen: v7x
topology: tpu7x:2x2x1
jax: 0.10.0
libtpu: 0.0.40
codegen_flags: <defaults>
</compile_context>

<pallas_src>
import math

import jax
import jax.numpy as jnp
from jax import lax
from jax.experimental import pallas as pl
from jax.experimental.pallas import tpu as pltpu

# ---- hyperparameters (vision-lstm ViLBlock defaults) ----
DIM = 16                      # channels C
EXPAND = 2
INNER = EXPAND * DIM          # 32
DH = 4                        # qkv_block_size (per-head dim)
NH = INNER // DH              # 8 heads
CONV_K = 4                    # causal conv1d kernel size
LN_EPS = 1e-5
GN_EPS = 1e-5
MLSTM_EPS = 1e-6
NEG_INF = -1e30

NUM_HEAD_GROUPS = 2           # process mLSTM heads in groups to bound live SxS tensors
HEADS_PER_GROUP = NH // NUM_HEAD_GROUPS

# ---- packed f32 bias/scale slab layout (rows, 64 lanes each, zero padded) ----
VEC_LANES = 2 * INNER
_R_LN_W, _R_LN_B, _R_B_UP, _R_CONV_B, _R_B_QK, _R_B_V, _R_B_IF = 0, 1, 2, 3, 4, 5, 6
_R_MHN_W, _R_MHN_B, _R_SKIP, _R_B_DOWN, _R_CONV_W = 7, 8, 9, 10, 11
VEC_ROWS = _R_CONV_W + CONV_K          # 15


def _sigmoid(x):
    # 1/(1+exp(-x)) with the divide pushed to the EUP reciprocal slot
    return pl.reciprocal(1.0 + jnp.exp(-x), approx=True)


def _silu(x):
    return x * _sigmoid(x)


def _log_sigmoid(x):
    # numerically stable logsigmoid, kept in f32 (log-space gate math)
    return jnp.minimum(x, 0.0) - jnp.log(1.0 + jnp.exp(-jnp.abs(x)))


def _make_vil_kernel(S, chunk_b):
    """Fused ViLBlock kernel for one grid step holding `chunk_b` independent
    sequences of length S (token slab T = chunk_b * S, channel-major I/O)."""
    T = chunk_b * S
    inv_sqrt_dh = 1.0 / math.sqrt(DH)

    def kernel(x_ref, w_a_ref, w_b_ref, w_g_ref, vec_ref, out_ref):
        # ---------- unpack packed parameter slabs (static slices, done once) ----------
        w_a = w_a_ref[...]                          # (DIM+INNER, 2*INNER) bf16
        w_up = w_a[:DIM]                            # (16, 64)
        w_qk = w_a[DIM:]                            # (32, 64)   [wq | wk]
        w_bm = w_b_ref[...]                         # (2*INNER, INNER) bf16
        w_v = w_bm[:INNER]                          # (32, 32)
        w_down = w_bm[INNER:]                       # (32, 32), lanes >= DIM are zero
        w_g = w_g_ref[...]                          # (3*INNER, 2*NH) f32  [wi | wf]
        w_if_qk = w_g[:2 * INNER]                   # acts on [q | k]
        w_if_v = w_g[2 * INNER:]                    # acts on v
        vec = vec_ref[...]                          # (VEC_ROWS, 64) f32
        ln_w = vec[_R_LN_W:_R_LN_W + 1, :DIM]
        ln_b = vec[_R_LN_B:_R_LN_B + 1, :DIM]
        b_up = vec[_R_B_UP:_R_B_UP + 1, :]
        conv_b = vec[_R_CONV_B:_R_CONV_B + 1, :INNER]
        b_qk = vec[_R_B_QK:_R_B_QK + 1, :]
        b_v = vec[_R_B_V:_R_B_V + 1, :INNER]
        b_if = vec[_R_B_IF:_R_B_IF + 1, :2 * NH]
        mhn_w = vec[_R_MHN_W:_R_MHN_W + 1, :INNER]
        mhn_b = vec[_R_MHN_B:_R_MHN_B + 1, :INNER]
        skip_w = vec[_R_SKIP:_R_SKIP + 1, :INNER]
        b_down = vec[_R_B_DOWN:_R_B_DOWN + 1, :INNER]   # lanes >= DIM are zero
        conv_w = vec[_R_CONV_W:_R_CONV_W + CONV_K, :INNER]

        # ---------- gather the folded (T, C) token slab from the channel-major input ----------
        x_cs = [x_ref[0, b] for b in range(chunk_b)]           # each (C, S), lane-dense
        x = jnp.concatenate([jnp.transpose(xc) for xc in x_cs], axis=0)   # (T, C)

        # ---------- pre-norm (LayerNorm over channels) ----------
        mu = jnp.mean(x, axis=-1, keepdims=True)
        var = jnp.mean((x - mu) ** 2, axis=-1, keepdims=True)
        xn = (x - mu) * lax.rsqrt(var + LN_EPS) * ln_w + ln_b

        # ---------- up projection (bf16 MXU operands, f32 accumulate) ----------
        x_inner = jnp.dot(xn.astype(jnp.bfloat16), w_up,
                          preferred_element_type=jnp.float32) + b_up      # (T, 2*INNER)
        x_mlstm = x_inner[:, :INNER]
        z = x_inner[:, INNER:]

        # ---------- causal depthwise conv1d (k=4): explicit zero-pad shift ----------
        # y[s] = sum_t conv_w[K-1-t] * x[s-t], restarted at every sequence start.
        if chunk_b > 1:
            pos = lax.broadcasted_iota(jnp.int32, (T, 1), 0) % S
        conv = x_mlstm * conv_w[CONV_K - 1:CONV_K, :]                     # t = 0 term
        for t in range(1, CONV_K):
            shifted = jnp.concatenate(
                [jnp.zeros((t, INNER), jnp.float32), x_mlstm[:T - t, :]], axis=0)
            if chunk_b > 1:
                shifted = jnp.where(pos >= t, shifted, 0.0)   # kill cross-sequence leakage
            conv = conv + shifted * conv_w[CONV_K - 1 - t:CONV_K - t, :]
        conv_act = _silu(conv + conv_b)                                   # (T, INNER)

        # ---------- fused q|k from conv_act, v from pre-conv ----------
        qk = jnp.dot(conv_act.astype(jnp.bfloat16), w_qk,
                     preferred_element_type=jnp.float32) + b_qk           # (T, 2*INNER)
        v = jnp.dot(x_mlstm.astype(jnp.bfloat16), w_v,
                    preferred_element_type=jnp.float32) + b_v             # (T, INNER)
        q = qk[:, :INNER]
        k = qk[:, INNER:]

        # ---------- input|forget gate pre-activations (f32, feeds log-space math) ----------
        gates = (jnp.dot(qk, w_if_qk, preferred_element_type=jnp.float32)
                 + jnp.dot(v, w_if_v, preferred_element_type=jnp.float32) + b_if)
        ig = gates[:, :NH]                                                # (T, NH)
        logf = _log_sigmoid(gates[:, NH:])                                # (T, NH) f32

        # ---------- per-sequence stabilized mLSTM (quadratic stage at (., S, S)) ----------
        ri = lax.broadcasted_iota(jnp.int32, (S, S), 0)
        ci = lax.broadcasted_iota(jnp.int32, (S, S), 1)
        causal = ri >= ci                                                 # (S, S) bool
        causal_f = causal.astype(jnp.float32)

        h_seq = []
        for b in range(chunk_b):
            sl = slice(b * S, (b + 1) * S)
            q_b, k_b, v_b = q[sl], k[sl], v[sl]                           # (S, INNER)
            # inclusive per-sequence cumsum of log forget gate (masked matmul, f32)
            cs_b = jnp.dot(causal_f, logf[sl],
                           preferred_element_type=jnp.float32)            # (S, NH)
            csT = jnp.transpose(cs_b)                                     # (NH, S)
            igT = jnp.transpose(ig[sl])                                   # (NH, S)

            h_parts = []
            for g in range(NUM_HEAD_GROUPS):
                h0 = g * HEADS_PER_GROUP
                cs_g = csT[h0:h0 + HEADS_PER_GROUP]                       # (HPG, S)
                ig_g = igT[h0:h0 + HEADS_PER_GROUP]                       # (HPG, S)

                # log decay matrix (f32 log-space, per-row max stabilization)
                log_d = cs_g[:, :, None] - cs_g[:, None, :] + ig_g[:, None, :]
                log_d = jnp.where(causal[None], log_d, NEG_INF)
                m = jnp.max(log_d, axis=-1, keepdims=True)                # (HPG, S, 1)

                # per-head q/k/v of this group (bf16 MXU operands)
                qh = jnp.stack([q_b[:, (h0 + hh) * DH:(h0 + hh + 1) * DH]
                                for hh in range(HEADS_PER_GROUP)], 0).astype(jnp.bfloat16)
                kh = jnp.stack([k_b[:, (h0 + hh) * DH:(h0 + hh + 1) * DH]
                                for hh in range(HEADS_PER_GROUP)], 0).astype(jnp.bfloat16)
                vh = jnp.stack([v_b[:, (h0 + hh) * DH:(h0 + hh + 1) * DH]
                                for hh in range(HEADS_PER_GROUP)], 0).astype(jnp.bfloat16)

                qk_s = jnp.einsum('hid,hjd->hij', qh, kh,
                                  preferred_element_type=jnp.float32) * inv_sqrt_dh
                # fused: masked entries give exp(NEG_INF - m) == 0, no separate D tensor
                c = qk_s * jnp.exp(log_d - m)                             # (HPG, S, S)
                norm = jnp.maximum(jnp.abs(jnp.sum(c, axis=-1, keepdims=True)),
                                   jnp.exp(-m))
                c_n = c * pl.reciprocal(norm + MLSTM_EPS, approx=True)
                hg = jnp.einsum('hij,hjd->hid', c_n.astype(jnp.bfloat16), vh,
                                preferred_element_type=jnp.float32)       # (HPG, S, DH)

                # multi-head norm: normalize each head's DH features
                g_mu = jnp.mean(hg, axis=-1, keepdims=True)
                g_var = jnp.mean((hg - g_mu) ** 2, axis=-1, keepdims=True)
                hg = (hg - g_mu) * lax.rsqrt(g_var + GN_EPS)
                h_parts.extend([hg[hh] for hh in range(HEADS_PER_GROUP)])

            h_seq.append(jnp.concatenate(h_parts, axis=-1))               # (S, INNER)

        h_flat = jnp.concatenate(h_seq, axis=0) if chunk_b > 1 else h_seq[0]
        h_flat = h_flat * mhn_w + mhn_b                                   # (T, INNER)

        # ---------- learnable skip, output gate, down projection ----------
        h_state = (h_flat + skip_w * conv_act) * _silu(z)                 # (T, INNER)
        y = jnp.dot(h_state.astype(jnp.bfloat16), w_down,
                    preferred_element_type=jnp.float32) + b_down          # (T, INNER); lanes>=DIM are 0

        # ---------- residual add + lane-dense (channel-major) store ----------
        for b in range(chunk_b):
            y_t = jnp.transpose(y[b * S:(b + 1) * S, :])                  # (INNER, S)
            out_ref[0, b] = x_cs[b] + y_t[:DIM, :]                        # (C, S)

    return kernel


def _pick_chunk_batches(B, S):
    """Batch elements folded into one grid step (token rows per step = chunk_b*S).
    Keep >=2 grid steps whenever B >= 2 (both v7x TensorCores busy); among those,
    fold batch up to ~256 token rows so v5e/v6e still fill MXU sublanes."""
    best = 1
    for d in range(1, B + 1):
        if B % d == 0 and (B // d) >= 2 and d * S <= 256:
            best = d
    return best


def make_params(key):
    ks = jax.random.split(key, 24)

    def rn(k, shape, scale=0.1):
        return (scale * jax.random.normal(k, shape)).astype(jnp.float32)

    def block_diag_headwise(k, scale=0.2):
        # LinearHeadwiseExpand embedded as a dense block-diagonal (in, out) matrix
        blocks = rn(k, (NH, DH, DH), scale)
        w = jnp.zeros((INNER, INNER), jnp.float32)
        for h in range(NH):
            w = w.at[h * DH:(h + 1) * DH, h * DH:(h + 1) * DH].set(
                jnp.transpose(blocks[h]))
        return w

    return dict(
        ln_w=1.0 + rn(ks[0], (1, DIM)), ln_b=rn(ks[1], (1, DIM)),
        w_up=rn(ks[2], (DIM, 2 * INNER)), b_up=rn(ks[3], (1, 2 * INNER)),
        conv_w=rn(ks[4], (CONV_K, INNER)), conv_b=rn(ks[5], (1, INNER)),
        wq=block_diag_headwise(ks[6]), bq=rn(ks[7], (1, INNER)),
        wk=block_diag_headwise(ks[8]), bk=rn(ks[9], (1, INNER)),
        wv=block_diag_headwise(ks[10]), bv=rn(ks[11], (1, INNER)),
        wi=rn(ks[12], (3 * INNER, NH)), bi=rn(ks[13], (1, NH)),
        wf=rn(ks[14], (3 * INNER, NH)), bf=3.0 + rn(ks[15], (1, NH)),
        mhn_w=1.0 + rn(ks[16], (1, INNER)), mhn_b=rn(ks[17], (1, INNER)),
        skip_w=1.0 + rn(ks[18], (1, INNER)),
        w_down=rn(ks[19], (INNER, DIM)), b_down=rn(ks[20], (1, DIM)),
    )


def _pack_params(params):
    """Semantics-preserving parameter packing into 4 slabs (done once, outside kernel)."""
    def pad_lanes(a, width):
        return jnp.pad(a, ((0, 0), (0, width - a.shape[-1])))

    w_a = jnp.concatenate(
        [params["w_up"],
         jnp.concatenate([params["wq"], params["wk"]], axis=1)],
        axis=0).astype(jnp.bfloat16)                                     # (48, 64)
    w_b = jnp.concatenate(
        [params["wv"], pad_lanes(params["w_down"], INNER)],
        axis=0).astype(jnp.bfloat16)                                     # (64, 32)
    w_g = jnp.concatenate([params["wi"], params["wf"]],
                          axis=1).astype(jnp.float32)                    # (96, 16)

    rows = [None] * _R_CONV_W
    rows[_R_LN_W] = params["ln_w"]
    rows[_R_LN_B] = params["ln_b"]
    rows[_R_B_UP] = params["b_up"]
    rows[_R_CONV_B] = params["conv_b"]
    rows[_R_B_QK] = jnp.concatenate([params["bq"], params["bk"]], axis=1)
    rows[_R_B_V] = params["bv"]
    rows[_R_B_IF] = jnp.concatenate([params["bi"], params["bf"]], axis=1)
    rows[_R_MHN_W] = params["mhn_w"]
    rows[_R_MHN_B] = params["mhn_b"]
    rows[_R_SKIP] = params["skip_w"]
    rows[_R_B_DOWN] = params["b_down"]
    vec_list = [pad_lanes(r.astype(jnp.float32), VEC_LANES) for r in rows]
    vec_list.append(pad_lanes(params["conv_w"].astype(jnp.float32), VEC_LANES))
    vecs = jnp.concatenate(vec_list, axis=0)                             # (15, 64)
    return w_a, w_b, w_g, vecs


def vil_layer(x_nchw, params):
    """x_nchw: (B, C, H, W) float32 -> (B, C, H, W) float32."""
    B, C, H, W = x_nchw.shape
    assert C == DIM
    S = H * W
    chunk_b = _pick_chunk_batches(B, S)
    n_chunks = B // chunk_b

    # lane-dense channel-major I/O: NCHW -> (n_chunks, chunk_b, C, S); free reshapes
    x_cs = x_nchw.reshape(n_chunks, chunk_b, C, S).astype(jnp.float32)

    slabs = _pack_params(params)

    in_specs = [pl.BlockSpec((1, chunk_b, C, S), lambda c: (c, 0, 0, 0))]
    for p in slabs:
        in_specs.append(pl.BlockSpec(p.shape, lambda c: (0, 0)))

    out = pl.pallas_call(
        _make_vil_kernel(S=S, chunk_b=chunk_b),
        out_shape=jax.ShapeDtypeStruct((n_chunks, chunk_b, C, S), jnp.float32),
        grid_spec=pltpu.PrefetchScalarGridSpec(
            num_scalar_prefetch=0,
            grid=(n_chunks,),
            in_specs=in_specs,
            out_specs=pl.BlockSpec((1, chunk_b, C, S), lambda c: (c, 0, 0, 0)),
        ),
        input_output_aliases={0: 0},
        compiler_params=pltpu.CompilerParams(dimension_semantics=("parallel",)),
    )(x_cs, *slabs)

    # (n_chunks, chunk_b, C, S) -> (B, C, H, W): contiguity-preserving (free) reshape
    return out.reshape(B, C, H, W)


if __name__ == "__main__":
    key = jax.random.PRNGKey(0)
    kx, kp = jax.random.split(key)
    x = jax.random.normal(kx, (2, DIM, 8, 8), dtype=jnp.float32)   # B=2, C=16, 8x8
    params = make_params(kp)

    y = jax.jit(lambda xx: vil_layer(xx, params))(x)
    y = jax.block_until_ready(y)
    assert y.shape == x.shape and y.dtype == jnp.float32
    assert bool(jnp.all(jnp.isfinite(y)))
    print("KERNEL_OK")
</pallas_src>

<mosaic_0001>
module attributes {stable_mosaic.version = 11 : i64} {
  func.func @kernel(%arg0: i32, %arg1: memref<1x1x16x64xf32, #tpu.memory_space<vmem>>, %arg2: memref<48x64xbf16, #tpu.memory_space<vmem>>, %arg3: memref<64x32xbf16, #tpu.memory_space<vmem>>, %arg4: memref<96x16xf32, #tpu.memory_space<vmem>>, %arg5: memref<15x64xf32, #tpu.memory_space<vmem>>, %arg6: memref<1x1x16x64xf32, #tpu.memory_space<vmem>>) attributes {dimension_semantics = [#tpu.dimension_semantics<parallel>], iteration_bounds = array<i64: 2>, scalar_prefetch = 0 : i64, scratch_operands = 0 : i64, tpu.core_type = #tpu.core_type<tc>, window_params = [{transform_indices = @transform_0, window_bounds = array<i64: 1, 1, 16, 64>}, {pipeline_mode = #tpu.pipeline_mode<synchronous>, transform_indices = @transform_1, window_bounds = array<i64: 48, 64>}, {pipeline_mode = #tpu.pipeline_mode<synchronous>, transform_indices = @transform_2, window_bounds = array<i64: 64, 32>}, {pipeline_mode = #tpu.pipeline_mode<synchronous>, transform_indices = @transform_3, window_bounds = array<i64: 96, 16>}, {pipeline_mode = #tpu.pipeline_mode<synchronous>, transform_indices = @transform_4, window_bounds = array<i64: 15, 64>}, {transform_indices = @transform_5, window_bounds = array<i64: 1, 1, 16, 64>}]} {
    %c0 = arith.constant 0 : index
    %c0_0 = arith.constant 0 : index
    %0 = vector.load %arg2[%c0, %c0_0] : memref<48x64xbf16, #tpu.memory_space<vmem>>, vector<48x64xbf16>
    %1 = vector.extract_strided_slice %0 {offsets = [0, 0], sizes = [16, 64], strides = [1, 1]} : vector<48x64xbf16> to vector<16x64xbf16>
    %2 = vector.extract_strided_slice %0 {offsets = [16, 0], sizes = [32, 64], strides = [1, 1]} : vector<48x64xbf16> to vector<32x64xbf16>
    %c0_1 = arith.constant 0 : index
    %c0_2 = arith.constant 0 : index
    %3 = vector.load %arg3[%c0_1, %c0_2] : memref<64x32xbf16, #tpu.memory_space<vmem>>, vector<64x32xbf16>
    %4 = vector.extract_strided_slice %3 {offsets = [0, 0], sizes = [32, 32], strides = [1, 1]} : vector<64x32xbf16> to vector<32x32xbf16>
    %5 = vector.extract_strided_slice %3 {offsets = [32, 0], sizes = [32, 32], strides = [1, 1]} : vector<64x32xbf16> to vector<32x32xbf16>
    %c0_3 = arith.constant 0 : index
    %c0_4 = arith.constant 0 : index
    %6 = vector.load %arg4[%c0_3, %c0_4] : memref<96x16xf32, #tpu.memory_space<vmem>>, vector<96x16xf32>
    %7 = vector.extract_strided_slice %6 {offsets = [0, 0], sizes = [64, 16], strides = [1, 1]} : vector<96x16xf32> to vector<64x16xf32>
    %8 = vector.extract_strided_slice %6 {offsets = [64, 0], sizes = [32, 16], strides = [1, 1]} : vector<96x16xf32> to vector<32x16xf32>
    %c0_5 = arith.constant 0 : index
    %c0_6 = arith.constant 0 : index
    %9 = vector.load %arg5[%c0_5, %c0_6] : memref<15x64xf32, #tpu.memory_space<vmem>>, vector<15x64xf32>
    %10 = vector.extract_strided_slice %9 {offsets = [0, 0], sizes = [1, 16], strides = [1, 1]} : vector<15x64xf32> to vector<1x16xf32>
    %11 = vector.extract_strided_slice %9 {offsets = [1, 0], sizes = [1, 16], strides = [1, 1]} : vector<15x64xf32> to vector<1x16xf32>
    %12 = vector.extract_strided_slice %9 {offsets = [2, 0], sizes = [1, 64], strides = [1, 1]} : vector<15x64xf32> to vector<1x64xf32>
    %13 = vector.extract_strided_slice %9 {offsets = [3, 0], sizes = [1, 32], strides = [1, 1]} : vector<15x64xf32> to vector<1x32xf32>
    %14 = vector.extract_strided_slice %9 {offsets = [4, 0], sizes = [1, 64], strides = [1, 1]} : vector<15x64xf32> to vector<1x64xf32>
    %15 = vector.extract_strided_slice %9 {offsets = [5, 0], sizes = [1, 32], strides = [1, 1]} : vector<15x64xf32> to vector<1x32xf32>
    %16 = vector.extract_strided_slice %9 {offsets = [6, 0], sizes = [1, 16], strides = [1, 1]} : vector<15x64xf32> to vector<1x16xf32>
    %17 = vector.extract_strided_slice %9 {offsets = [7, 0], sizes = [1, 32], strides = [1, 1]} : vector<15x64xf32> to vector<1x32xf32>
    %18 = vector.extract_strided_slice %9 {offsets = [8, 0], sizes = [1, 32], strides = [1, 1]} : vector<15x64xf32> to vector<1x32xf32>
    %19 = vector.extract_strided_slice %9 {offsets = [9, 0], sizes = [1, 32], strides = [1, 1]} : vector<15x64xf32> to vector<1x32xf32>
    %20 = vector.extract_strided_slice %9 {offsets = [10, 0], sizes = [1, 32], strides = [1, 1]} : vector<15x64xf32> to vector<1x32xf32>
    %21 = vector.extract_strided_slice %9 {offsets = [11, 0], sizes = [4, 32], strides = [1, 1]} : vector<15x64xf32> to vector<4x32xf32>
    %c0_7 = arith.constant 0 : index
    %c0_8 = arith.constant 0 : index
    %c0_9 = arith.constant 0 : index
    %c0_10 = arith.constant 0 : index
    %22 = vector.load %arg1[%c0_7, %c0_8, %c0_9, %c0_10] : memref<1x1x16x64xf32, #tpu.memory_space<vmem>>, vector<1x1x16x64xf32>
    %23 = vector.shape_cast %22 : vector<1x1x16x64xf32> to vector<16x64xf32>
    %24 = tpu.transpose %23, [1, 0] : vector<16x64xf32> -> vector<64x16xf32>
    %cst = arith.constant dense<0.000000e+00> : vector<64xf32>
    %25 = vector.multi_reduction <add>, %24, %cst [1] : vector<64x16xf32> to vector<64xf32>
    %26 = vector.shape_cast %25 : vector<64xf32> to vector<64x1xf32>
    %cst_11 = arith.constant 1.600000e+01 : f32
    %27 = vector.broadcast %cst_11 : f32 to vector<64x1xf32>
    %28 = arith.divf %26, %27 : vector<64x1xf32>
    %29 = vector.broadcast %28 : vector<64x1xf32> to vector<64x16xf32>
    %30 = arith.subf %24, %29 : vector<64x16xf32>
    %31 = arith.mulf %30, %30 : vector<64x16xf32>
    %cst_12 = arith.constant dense<0.000000e+00> : vector<64xf32>
    %32 = vector.multi_reduction <add>, %31, %cst_12 [1] : vector<64x16xf32> to vector<64xf32>
    %33 = vector.shape_cast %32 : vector<64xf32> to vector<64x1xf32>
    %cst_13 = arith.constant 1.600000e+01 : f32
    %34 = vector.broadcast %cst_13 : f32 to vector<64x1xf32>
    %35 = arith.divf %33, %34 : vector<64x1xf32>
    %36 = vector.broadcast %28 : vector<64x1xf32> to vector<64x16xf32>
    %37 = arith.subf %24, %36 : vector<64x16xf32>
    %cst_14 = arith.constant 9.99999974E-6 : f32
    %38 = vector.broadcast %cst_14 : f32 to vector<64x1xf32>
    %39 = arith.addf %35, %38 : vector<64x1xf32>
    %40 = math.rsqrt %39 : vector<64x1xf32>
    %41 = vector.broadcast %40 : vector<64x1xf32> to vector<64x16xf32>
    %42 = arith.mulf %37, %41 : vector<64x16xf32>
    %43 = vector.broadcast %10 : vector<1x16xf32> to vector<64x16xf32>
    %44 = arith.mulf %42, %43 : vector<64x16xf32>
    %45 = vector.broadcast %11 : vector<1x16xf32> to vector<64x16xf32>
    %46 = arith.addf %44, %45 : vector<64x16xf32>
    %47 = arith.truncf %46 : vector<64x16xf32> to vector<64x16xbf16>
    %cst_15 = arith.constant dense<0.000000e+00> : vector<64x64xf32>
    %48 = tpu.matmul %47, %1, %cst_15 {dimension_numbers = #tpu.dot_dimension_numbers<[1], [0], [0], [1], [0, 0, 1, 1], [], []>} : vector<64x16xbf16>, vector<16x64xbf16>, vector<64x64xf32> -> vector<64x64xf32>
    %49 = vector.broadcast %12 : vector<1x64xf32> to vector<64x64xf32>
    %50 = arith.addf %48, %49 : vector<64x64xf32>
    %51 = vector.extract_strided_slice %50 {offsets = [0, 0], sizes = [64, 32], strides = [1, 1]} : vector<64x64xf32> to vector<64x32xf32>
    %52 = vector.extract_strided_slice %50 {offsets = [0, 32], sizes = [64, 32], strides = [1, 1]} : vector<64x64xf32> to vector<64x32xf32>
    %53 = vector.extract_strided_slice %21 {offsets = [3, 0], sizes = [1, 32], strides = [1, 1]} : vector<4x32xf32> to vector<1x32xf32>
    %54 = vector.broadcast %53 : vector<1x32xf32> to vector<64x32xf32>
    %55 = arith.mulf %51, %54 : vector<64x32xf32>
    %cst_16 = arith.constant 0.000000e+00 : f32
    %56 = vector.broadcast %cst_16 : f32 to vector<1x32xf32>
    %57 = vector.extract_strided_slice %51 {offsets = [0, 0], sizes = [63, 32], strides = [1, 1]} : vector<64x32xf32> to vector<63x32xf32>
    %58 = tpu.concatenate %56, %57 in 0 : vector<1x32xf32>, vector<63x32xf32> -> vector<64x32xf32>
    %59 = vector.extract_strided_slice %21 {offsets = [2, 0], sizes = [1, 32], strides = [1, 1]} : vector<4x32xf32> to vector<1x32xf32>
    %60 = vector.broadcast %59 : vector<1x32xf32> to vector<64x32xf32>
    %61 = arith.mulf %58, %60 : vector<64x32xf32>
    %62 = arith.addf %55, %61 : vector<64x32xf32>
    %cst_17 = arith.constant 0.000000e+00 : f32
    %63 = vector.broadcast %cst_17 : f32 to vector<2x32xf32>
    %64 = vector.extract_strided_slice %51 {offsets = [0, 0], sizes = [62, 32], strides = [1, 1]} : vector<64x32xf32> to vector<62x32xf32>
    %65 = tpu.concatenate %63, %64 in 0 : vector<2x32xf32>, vector<62x32xf32> -> vector<64x32xf32>
    %66 = vector.extract_strided_slice %21 {offsets = [1, 0], sizes = [1, 32], strides = [1, 1]} : vector<4x32xf32> to vector<1x32xf32>
    %67 = vector.broadcast %66 : vector<1x32xf32> to vector<64x32xf32>
    %68 = arith.mulf %65, %67 : vector<64x32xf32>
    %69 = arith.addf %62, %68 : vector<64x32xf32>
    %cst_18 = arith.constant 0.000000e+00 : f32
    %70 = vector.broadcast %cst_18 : f32 to vector<3x32xf32>
    %71 = vector.extract_strided_slice %51 {offsets = [0, 0], sizes = [61, 32], strides = [1, 1]} : vector<64x32xf32> to vector<61x32xf32>
    %72 = tpu.concatenate %70, %71 in 0 : vector<3x32xf32>, vector<61x32xf32> -> vector<64x32xf32>
    %73 = vector.extract_strided_slice %21 {offsets = [0, 0], sizes = [1, 32], strides = [1, 1]} : vector<4x32xf32> to vector<1x32xf32>
    %74 = vector.broadcast %73 : vector<1x32xf32> to vector<64x32xf32>
    %75 = arith.mulf %72, %74 : vector<64x32xf32>
    %76 = arith.addf %69, %75 : vector<64x32xf32>
    %77 = vector.broadcast %13 : vector<1x32xf32> to vector<64x32xf32>
    %78 = arith.addf %76, %77 : vector<64x32xf32>
    %cst_19 = arith.constant 0.000000e+00 : f32
    %79 = vector.broadcast %cst_19 : f32 to vector<64x32xf32>
    %80 = arith.subf %79, %78 : vector<64x32xf32>
    %81 = math.exp %80 : vector<64x32xf32>
    %cst_20 = arith.constant 1.000000e+00 : f32
    %82 = vector.broadcast %cst_20 : f32 to vector<64x32xf32>
    %83 = arith.addf %82, %81 : vector<64x32xf32>
    %84 = tpu.reciprocal %83 {approx = true} : vector<64x32xf32> -> vector<64x32xf32>
    %85 = arith.mulf %78, %84 : vector<64x32xf32>
    %86 = arith.truncf %85 : vector<64x32xf32> to vector<64x32xbf16>
    %cst_21 = arith.constant dense<0.000000e+00> : vector<64x64xf32>
    %87 = tpu.matmul %86, %2, %cst_21 {dimension_numbers = #tpu.dot_dimension_numbers<[1], [0], [0], [1], [0, 0, 1, 1], [], []>} : vector<64x32xbf16>, vector<32x64xbf16>, vector<64x64xf32> -> vector<64x64xf32>
    %88 = vector.broadcast %14 : vector<1x64xf32> to vector<64x64xf32>
    %89 = arith.addf %87, %88 : vector<64x64xf32>
    %90 = arith.truncf %51 : vector<64x32xf32> to vector<64x32xbf16>
    %cst_22 = arith.constant dense<0.000000e+00> : vector<64x32xf32>
    %91 = tpu.matmul %90, %4, %cst_22 {dimension_numbers = #tpu.dot_dimension_numbers<[1], [0], [0], [1], [0, 0, 1, 1], [], []>} : vector<64x32xbf16>, vector<32x32xbf16>, vector<64x32xf32> -> vector<64x32xf32>
    %92 = vector.broadcast %15 : vector<1x32xf32> to vector<64x32xf32>
    %93 = arith.addf %91, %92 : vector<64x32xf32>
    %94 = vector.extract_strided_slice %89 {offsets = [0, 0], sizes = [64, 32], strides = [1, 1]} : vector<64x64xf32> to vector<64x32xf32>
    %95 = vector.extract_strided_slice %89 {offsets = [0, 32], sizes = [64, 32], strides = [1, 1]} : vector<64x64xf32> to vector<64x32xf32>
    %cst_23 = arith.constant dense<0.000000e+00> : vector<64x16xf32>
    %96 = tpu.matmul %89, %7, %cst_23 {dimension_numbers = #tpu.dot_dimension_numbers<[1], [0], [0], [1], [0, 0, 1, 1], [], []>} : vector<64x64xf32>, vector<64x16xf32>, vector<64x16xf32> -> vector<64x16xf32>
    %cst_24 = arith.constant dense<0.000000e+00> : vector<64x16xf32>
    %97 = tpu.matmul %93, %8, %cst_24 {dimension_numbers = #tpu.dot_dimension_numbers<[1], [0], [0], [1], [0, 0, 1, 1], [], []>} : vector<64x32xf32>, vector<32x16xf32>, vector<64x16xf32> -> vector<64x16xf32>
    %98 = arith.addf %96, %97 : vector<64x16xf32>
    %99 = vector.broadcast %16 : vector<1x16xf32> to vector<64x16xf32>
    %100 = arith.addf %98, %99 : vector<64x16xf32>
    %101 = vector.extract_strided_slice %100 {offsets = [0, 0], sizes = [64, 8], strides = [1, 1]} : vector<64x16xf32> to vector<64x8xf32>
    %102 = vector.extract_strided_slice %100 {offsets = [0, 8], sizes = [64, 8], strides = [1, 1]} : vector<64x16xf32> to vector<64x8xf32>
    %cst_25 = arith.constant 0.000000e+00 : f32
    %103 = vector.broadcast %cst_25 : f32 to vector<64x8xf32>
    %104 = arith.minimumf %102, %103 : vector<64x8xf32>
    %105 = math.absf %102 : vector<64x8xf32>
    %cst_26 = arith.constant 0.000000e+00 : f32
    %106 = vector.broadcast %cst_26 : f32 to vector<64x8xf32>
    %107 = arith.subf %106, %105 : vector<64x8xf32>
    %108 = math.exp %107 : vector<64x8xf32>
    %cst_27 = arith.constant 1.000000e+00 : f32
    %109 = vector.broadcast %cst_27 : f32 to vector<64x8xf32>
    %110 = arith.addf %109, %108 : vector<64x8xf32>
    %111 = math.log %110 : vector<64x8xf32>
    %112 = arith.subf %104, %111 : vector<64x8xf32>
    %113 = tpu.iota {dimensions = array<i32: 0>} : vector<64x64xi32>
    %114 = tpu.iota {dimensions = array<i32: 1>} : vector<64x64xi32>
    %115 = arith.cmpi sge, %113, %114 : vector<64x64xi32>
    %116 = arith.extui %115 : vector<64x64xi1> to vector<64x64xi32>
    %117 = arith.sitofp %116 : vector<64x64xi32> to vector<64x64xf32>
    %cst_28 = arith.constant dense<0.000000e+00> : vector<64x8xf32>
    %118 = tpu.matmul %117, %112, %cst_28 {dimension_numbers = #tpu.dot_dimension_numbers<[1], [0], [0], [1], [0, 0, 1, 1], [], []>} : vector<64x64xf32>, vector<64x8xf32>, vector<64x8xf32> -> vector<64x8xf32>
    %119 = tpu.transpose %118, [1, 0] : vector<64x8xf32> -> vector<8x64xf32>
    %120 = tpu.transpose %101, [1, 0] : vector<64x8xf32> -> vector<8x64xf32>
    %121 = vector.extract_strided_slice %119 {offsets = [0, 0], sizes = [4, 64], strides = [1, 1]} : vector<8x64xf32> to vector<4x64xf32>
    %122 = vector.extract_strided_slice %120 {offsets = [0, 0], sizes = [4, 64], strides = [1, 1]} : vector<8x64xf32> to vector<4x64xf32>
    %123 = vector.shape_cast %121 : vector<4x64xf32> to vector<4x64x1xf32>
    %124 = vector.shape_cast %121 : vector<4x64xf32> to vector<4x1x64xf32>
    %125 = vector.broadcast %123 : vector<4x64x1xf32> to vector<4x64x64xf32>
    %126 = vector.broadcast %124 : vector<4x1x64xf32> to vector<4x64x64xf32>
    %127 = arith.subf %125, %126 : vector<4x64x64xf32>
    %128 = vector.shape_cast %122 : vector<4x64xf32> to vector<4x1x64xf32>
    %129 = vector.broadcast %128 : vector<4x1x64xf32> to vector<4x64x64xf32>
    %130 = arith.addf %127, %129 : vector<4x64x64xf32>
    %131 = vector.shape_cast %115 : vector<64x64xi1> to vector<1x64x64xi1>
    %cst_29 = arith.constant -1.000000e+30 : f32
    %132 = vector.shape_cast %131 : vector<1x64x64xi1> to vector<1x64x64xi1>
    %133 = vector.broadcast %132 : vector<1x64x64xi1> to vector<4x64x64xi1>
    %134 = vector.broadcast %cst_29 : f32 to vector<4x64x64xf32>
    %135 = arith.select %133, %130, %134 : vector<4x64x64xi1>, vector<4x64x64xf32>
    %cst_30 = arith.constant dense<0xFF800000> : vector<4x64xf32>
    %136 = vector.multi_reduction <maximumf>, %135, %cst_30 [2] : vector<4x64x64xf32> to vector<4x64xf32>
    %137 = vector.shape_cast %136 : vector<4x64xf32> to vector<4x64x1xf32>
    %138 = vector.extract_strided_slice %94 {offsets = [0, 0], sizes = [64, 4], strides = [1, 1]} : vector<64x32xf32> to vector<64x4xf32>
    %139 = vector.extract_strided_slice %94 {offsets = [0, 4], sizes = [64, 4], strides = [1, 1]} : vector<64x32xf32> to vector<64x4xf32>
    %140 = vector.extract_strided_slice %94 {offsets = [0, 8], sizes = [64, 4], strides = [1, 1]} : vector<64x32xf32> to vector<64x4xf32>
    %141 = vector.extract_strided_slice %94 {offsets = [0, 12], sizes = [64, 4], strides = [1, 1]} : vector<64x32xf32> to vector<64x4xf32>
    %142 = vector.shape_cast %138 : vector<64x4xf32> to vector<1x64x4xf32>
    %143 = vector.shape_cast %139 : vector<64x4xf32> to vector<1x64x4xf32>
    %144 = vector.shape_cast %140 : vector<64x4xf32> to vector<1x64x4xf32>
    %145 = vector.shape_cast %141 : vector<64x4xf32> to vector<1x64x4xf32>
    %146 = tpu.concatenate %142, %143, %144, %145 in 0 : vector<1x64x4xf32>, vector<1x64x4xf32>, vector<1x64x4xf32>, vector<1x64x4xf32> -> vector<4x64x4xf32>
    %147 = arith.truncf %146 : vector<4x64x4xf32> to vector<4x64x4xbf16>
    %148 = vector.extract_strided_slice %95 {offsets = [0, 0], sizes = [64, 4], strides = [1, 1]} : vector<64x32xf32> to vector<64x4xf32>
    %149 = vector.extract_strided_slice %95 {offsets = [0, 4], sizes = [64, 4], strides = [1, 1]} : vector<64x32xf32> to vector<64x4xf32>
    %150 = vector.extract_strided_slice %95 {offsets = [0, 8], sizes = [64, 4], strides = [1, 1]} : vector<64x32xf32> to vector<64x4xf32>
    %151 = vector.extract_strided_slice %95 {offsets = [0, 12], sizes = [64, 4], strides = [1, 1]} : vector<64x32xf32> to vector<64x4xf32>
    %152 = vector.shape_cast %148 : vector<64x4xf32> to vector<1x64x4xf32>
    %153 = vector.shape_cast %149 : vector<64x4xf32> to vector<1x64x4xf32>
    %154 = vector.shape_cast %150 : vector<64x4xf32> to vector<1x64x4xf32>
    %155 = vector.shape_cast %151 : vector<64x4xf32> to vector<1x64x4xf32>
    %156 = tpu.concatenate %152, %153, %154, %155 in 0 : vector<1x64x4xf32>, vector<1x64x4xf32>, vector<1x64x4xf32>, vector<1x64x4xf32> -> vector<4x64x4xf32>
    %157 = arith.truncf %156 : vector<4x64x4xf32> to vector<4x64x4xbf16>
    %158 = vector.extract_strided_slice %93 {offsets = [0, 0], sizes = [64, 4], strides = [1, 1]} : vector<64x32xf32> to vector<64x4xf32>
    %159 = vector.extract_strided_slice %93 {offsets = [0, 4], sizes = [64, 4], strides = [1, 1]} : vector<64x32xf32> to vector<64x4xf32>
    %160 = vector.extract_strided_slice %93 {offsets = [0, 8], sizes = [64, 4], strides = [1, 1]} : vector<64x32xf32> to vector<64x4xf32>
    %161 = vector.extract_strided_slice %93 {offsets = [0, 12], sizes = [64, 4], strides = [1, 1]} : vector<64x32xf32> to vector<64x4xf32>
    %162 = vector.shape_cast %158 : vector<64x4xf32> to vector<1x64x4xf32>
    %163 = vector.shape_cast %159 : vector<64x4xf32> to vector<1x64x4xf32>
    %164 = vector.shape_cast %160 : vector<64x4xf32> to vector<1x64x4xf32>
    %165 = vector.shape_cast %161 : vector<64x4xf32> to vector<1x64x4xf32>
    %166 = tpu.concatenate %162, %163, %164, %165 in 0 : vector<1x64x4xf32>, vector<1x64x4xf32>, vector<1x64x4xf32>, vector<1x64x4xf32> -> vector<4x64x4xf32>
    %167 = arith.truncf %166 : vector<4x64x4xf32> to vector<4x64x4xbf16>
    "tpu.trace_start"() <{level = 10 : i32, message = "hid,hjd->hij"}> : () -> ()
    %cst_31 = arith.constant dense<0.000000e+00> : vector<4x64x64xf32>
    %168 = tpu.matmul %147, %157, %cst_31 {dimension_numbers = #tpu.dot_dimension_numbers<[2], [2], [1], [1], [0, 0, 0, 1, 1, 1], [0], [0]>} : vector<4x64x4xbf16>, vector<4x64x4xbf16>, vector<4x64x64xf32> -> vector<4x64x64xf32>
    "tpu.trace_stop"() : () -> ()
    %cst_32 = arith.constant 5.000000e-01 : f32
    %169 = vector.broadcast %cst_32 : f32 to vector<4x64x64xf32>
    %170 = arith.mulf %168, %169 : vector<4x64x64xf32>
    %171 = vector.broadcast %137 : vector<4x64x1xf32> to vector<4x64x64xf32>
    %172 = arith.subf %135, %171 : vector<4x64x64xf32>
    %173 = math.exp %172 : vector<4x64x64xf32>
    %174 = arith.mulf %170, %173 : vector<4x64x64xf32>
    %cst_33 = arith.constant dense<0.000000e+00> : vector<4x64xf32>
    %175 = vector.multi_reduction <add>, %174, %cst_33 [2] : vector<4x64x64xf32> to vector<4x64xf32>
    %176 = vector.shape_cast %175 : vector<4x64xf32> to vector<4x64x1xf32>
    %177 = math.absf %176 : vector<4x64x1xf32>
    %cst_34 = arith.constant 0.000000e+00 : f32
    %178 = vector.broadcast %cst_34 : f32 to vector<4x64x1xf32>
    %179 = arith.subf %178, %137 : vector<4x64x1xf32>
    %180 = math.exp %179 : vector<4x64x1xf32>
    %181 = arith.maximumf %177, %180 : vector<4x64x1xf32>
    %cst_35 = arith.constant 9.99999997E-7 : f32
    %182 = vector.broadcast %cst_35 : f32 to vector<4x64x1xf32>
    %183 = arith.addf %181, %182 : vector<4x64x1xf32>
    %184 = tpu.reciprocal %183 {approx = true} : vector<4x64x1xf32> -> vector<4x64x1xf32>
    %185 = vector.broadcast %184 : vector<4x64x1xf32> to vector<4x64x64xf32>
    %186 = arith.mulf %174, %185 : vector<4x64x64xf32>
    %187 = arith.truncf %186 : vector<4x64x64xf32> to vector<4x64x64xbf16>
    "tpu.trace_start"() <{level = 10 : i32, message = "hij,hjd->hid"}> : () -> ()
    %cst_36 = arith.constant dense<0.000000e+00> : vector<4x64x4xf32>
    %188 = tpu.matmul %187, %167, %cst_36 {dimension_numbers = #tpu.dot_dimension_numbers<[2], [1], [1], [2], [0, 0, 0, 1, 1, 2], [0], [0]>} : vector<4x64x64xbf16>, vector<4x64x4xbf16>, vector<4x64x4xf32> -> vector<4x64x4xf32>
    "tpu.trace_stop"() : () -> ()
    %cst_37 = arith.constant dense<0.000000e+00> : vector<4x64xf32>
    %189 = vector.multi_reduction <add>, %188, %cst_37 [2] : vector<4x64x4xf32> to vector<4x64xf32>
    %190 = vector.shape_cast %189 : vector<4x64xf32> to vector<4x64x1xf32>
    %cst_38 = arith.constant 4.000000e+00 : f32
    %191 = vector.broadcast %cst_38 : f32 to vector<4x64x1xf32>
    %192 = arith.divf %190, %191 : vector<4x64x1xf32>
    %193 = vector.broadcast %192 : vector<4x64x1xf32> to vector<4x64x4xf32>
    %194 = arith.subf %188, %193 : vector<4x64x4xf32>
    %195 = arith.mulf %194, %194 : vector<4x64x4xf32>
    %cst_39 = arith.constant dense<0.000000e+00> : vector<4x64xf32>
    %196 = vector.multi_reduction <add>, %195, %cst_39 [2] : vector<4x64x4xf32> to vector<4x64xf32>
    %197 = vector.shape_cast %196 : vector<4x64xf32> to vector<4x64x1xf32>
    %cst_40 = arith.constant 4.000000e+00 : f32
    %198 = vector.broadcast %cst_40 : f32 to vector<4x64x1xf32>
    %199 = arith.divf %197, %198 : vector<4x64x1xf32>
    %200 = vector.broadcast %192 : vector<4x64x1xf32> to vector<4x64x4xf32>
    %201 = arith.subf %188, %200 : vector<4x64x4xf32>
    %cst_41 = arith.constant 9.99999974E-6 : f32
    %202 = vector.broadcast %cst_41 : f32 to vector<4x64x1xf32>
    %203 = arith.addf %199, %202 : vector<4x64x1xf32>
    %204 = math.rsqrt %203 : vector<4x64x1xf32>
    %205 = vector.broadcast %204 : vector<4x64x1xf32> to vector<4x64x4xf32>
    %206 = arith.mulf %201, %205 : vector<4x64x4xf32>
    %207 = vector.extract_strided_slice %206 {offsets = [0, 0, 0], sizes = [1, 64, 4], strides = [1, 1, 1]} : vector<4x64x4xf32> to vector<1x64x4xf32>
    %208 = vector.shape_cast %207 : vector<1x64x4xf32> to vector<64x4xf32>
    %209 = vector.extract_strided_slice %206 {offsets = [1, 0, 0], sizes = [1, 64, 4], strides = [1, 1, 1]} : vector<4x64x4xf32> to vector<1x64x4xf32>
    %210 = vector.shape_cast %209 : vector<1x64x4xf32> to vector<64x4xf32>
    %211 = vector.extract_strided_slice %206 {offsets = [2, 0, 0], sizes = [1, 64, 4], strides = [1, 1, 1]} : vector<4x64x4xf32> to vector<1x64x4xf32>
    %212 = vector.shape_cast %211 : vector<1x64x4xf32> to vector<64x4xf32>
    %213 = vector.extract_strided_slice %206 {offsets = [3, 0, 0], sizes = [1, 64, 4], strides = [1, 1, 1]} : vector<4x64x4xf32> to vector<1x64x4xf32>
    %214 = vector.shape_cast %213 : vector<1x64x4xf32> to vector<64x4xf32>
    %215 = vector.extract_strided_slice %119 {offsets = [4, 0], sizes = [4, 64], strides = [1, 1]} : vector<8x64xf32> to vector<4x64xf32>
    %216 = vector.extract_strided_slice %120 {offsets = [4, 0], sizes = [4, 64], strides = [1, 1]} : vector<8x64xf32> to vector<4x64xf32>
    %217 = vector.shape_cast %215 : vector<4x64xf32> to vector<4x64x1xf32>
    %218 = vector.shape_cast %215 : vector<4x64xf32> to vector<4x1x64xf32>
    %219 = vector.broadcast %217 : vector<4x64x1xf32> to vector<4x64x64xf32>
    %220 = vector.broadcast %218 : vector<4x1x64xf32> to vector<4x64x64xf32>
    %221 = arith.subf %219, %220 : vector<4x64x64xf32>
    %222 = vector.shape_cast %216 : vector<4x64xf32> to vector<4x1x64xf32>
    %223 = vector.broadcast %222 : vector<4x1x64xf32> to vector<4x64x64xf32>
    %224 = arith.addf %221, %223 : vector<4x64x64xf32>
    %225 = vector.shape_cast %115 : vector<64x64xi1> to vector<1x64x64xi1>
    %cst_42 = arith.constant -1.000000e+30 : f32
    %226 = vector.shape_cast %225 : vector<1x64x64xi1> to vector<1x64x64xi1>
    %227 = vector.broadcast %226 : vector<1x64x64xi1> to vector<4x64x64xi1>
    %228 = vector.broadcast %cst_42 : f32 to vector<4x64x64xf32>
    %229 = arith.select %227, %224, %228 : vector<4x64x64xi1>, vector<4x64x64xf32>
    %cst_43 = arith.constant dense<0xFF800000> : vector<4x64xf32>
    %230 = vector.multi_reduction <maximumf>, %229, %cst_43 [2] : vector<4x64x64xf32> to vector<4x64xf32>
    %231 = vector.shape_cast %230 : vector<4x64xf32> to vector<4x64x1xf32>
    %232 = vector.extract_strided_slice %94 {offsets = [0, 16], sizes = [64, 4], strides = [1, 1]} : vector<64x32xf32> to vector<64x4xf32>
    %233 = vector.extract_strided_slice %94 {offsets = [0, 20], sizes = [64, 4], strides = [1, 1]} : vector<64x32xf32> to vector<64x4xf32>
    %234 = vector.extract_strided_slice %94 {offsets = [0, 24], sizes = [64, 4], strides = [1, 1]} : vector<64x32xf32> to vector<64x4xf32>
    %235 = vector.extract_strided_slice %94 {offsets = [0, 28], sizes = [64, 4], strides = [1, 1]} : vector<64x32xf32> to vector<64x4xf32>
    %236 = vector.shape_cast %232 : vector<64x4xf32> to vector<1x64x4xf32>
    %237 = vector.shape_cast %233 : vector<64x4xf32> to vector<1x64x4xf32>
    %238 = vector.shape_cast %234 : vector<64x4xf32> to vector<1x64x4xf32>
    %239 = vector.shape_cast %235 : vector<64x4xf32> to vector<1x64x4xf32>
    %240 = tpu.concatenate %236, %237, %238, %239 in 0 : vector<1x64x4xf32>, vector<1x64x4xf32>, vector<1x64x4xf32>, vector<1x64x4xf32> -> vector<4x64x4xf32>
    %241 = arith.truncf %240 : vector<4x64x4xf32> to vector<4x64x4xbf16>
    %242 = vector.extract_strided_slice %95 {offsets = [0, 16], sizes = [64, 4], strides = [1, 1]} : vector<64x32xf32> to vector<64x4xf32>
    %243 = vector.extract_strided_slice %95 {offsets = [0, 20], sizes = [64, 4], strides = [1, 1]} : vector<64x32xf32> to vector<64x4xf32>
    %244 = vector.extract_strided_slice %95 {offsets = [0, 24], sizes = [64, 4], strides = [1, 1]} : vector<64x32xf32> to vector<64x4xf32>
    %245 = vector.extract_strided_slice %95 {offsets = [0, 28], sizes = [64, 4], strides = [1, 1]} : vector<64x32xf32> to vector<64x4xf32>
    %246 = vector.shape_cast %242 : vector<64x4xf32> to vector<1x64x4xf32>
    %247 = vector.shape_cast %243 : vector<64x4xf32> to vector<1x64x4xf32>
    %248 = vector.shape_cast %244 : vector<64x4xf32> to vector<1x64x4xf32>
    %249 = vector.shape_cast %245 : vector<64x4xf32> to vector<1x64x4xf32>
    %250 = tpu.concatenate %246, %247, %248, %249 in 0 : vector<1x64x4xf32>, vector<1x64x4xf32>, vector<1x64x4xf32>, vector<1x64x4xf32> -> vector<4x64x4xf32>
    %251 = arith.truncf %250 : vector<4x64x4xf32> to vector<4x64x4xbf16>
    %252 = vector.extract_strided_slice %93 {offsets = [0, 16], sizes = [64, 4], strides = [1, 1]} : vector<64x32xf32> to vector<64x4xf32>
    %253 = vector.extract_strided_slice %93 {offsets = [0, 20], sizes = [64, 4], strides = [1, 1]} : vector<64x32xf32> to vector<64x4xf32>
    %254 = vector.extract_strided_slice %93 {offsets = [0, 24], sizes = [64, 4], strides = [1, 1]} : vector<64x32xf32> to vector<64x4xf32>
    %255 = vector.extract_strided_slice %93 {offsets = [0, 28], sizes = [64, 4], strides = [1, 1]} : vector<64x32xf32> to vector<64x4xf32>
    %256 = vector.shape_cast %252 : vector<64x4xf32> to vector<1x64x4xf32>
    %257 = vector.shape_cast %253 : vector<64x4xf32> to vector<1x64x4xf32>
    %258 = vector.shape_cast %254 : vector<64x4xf32> to vector<1x64x4xf32>
    %259 = vector.shape_cast %255 : vector<64x4xf32> to vector<1x64x4xf32>
    %260 = tpu.concatenate %256, %257, %258, %259 in 0 : vector<1x64x4xf32>, vector<1x64x4xf32>, vector<1x64x4xf32>, vector<1x64x4xf32> -> vector<4x64x4xf32>
    %261 = arith.truncf %260 : vector<4x64x4xf32> to vector<4x64x4xbf16>
    "tpu.trace_start"() <{level = 10 : i32, message = "hid,hjd->hij"}> : () -> ()
    %cst_44 = arith.constant dense<0.000000e+00> : vector<4x64x64xf32>
    %262 = tpu.matmul %241, %251, %cst_44 {dimension_numbers = #tpu.dot_dimension_numbers<[2], [2], [1], [1], [0, 0, 0, 1, 1, 1], [0], [0]>} : vector<4x64x4xbf16>, vector<4x64x4xbf16>, vector<4x64x64xf32> -> vector<4x64x64xf32>
    "tpu.trace_stop"() : () -> ()
    %cst_45 = arith.constant 5.000000e-01 : f32
    %263 = vector.broadcast %cst_45 : f32 to vector<4x64x64xf32>
    %264 = arith.mulf %262, %263 : vector<4x64x64xf32>
    %265 = vector.broadcast %231 : vector<4x64x1xf32> to vector<4x64x64xf32>
    %266 = arith.subf %229, %265 : vector<4x64x64xf32>
    %267 = math.exp %266 : vector<4x64x64xf32>
    %268 = arith.mulf %264, %267 : vector<4x64x64xf32>
    %cst_46 = arith.constant dense<0.000000e+00> : vector<4x64xf32>
    %269 = vector.multi_reduction <add>, %268, %cst_46 [2] : vector<4x64x64xf32> to vector<4x64xf32>
    %270 = vector.shape_cast %269 : vector<4x64xf32> to vector<4x64x1xf32>
    %271 = math.absf %270 : vector<4x64x1xf32>
    %cst_47 = arith.constant 0.000000e+00 : f32
    %272 = vector.broadcast %cst_47 : f32 to vector<4x64x1xf32>
    %273 = arith.subf %272, %231 : vector<4x64x1xf32>
    %274 = math.exp %273 : vector<4x64x1xf32>
    %275 = arith.maximumf %271, %274 : vector<4x64x1xf32>
    %cst_48 = arith.constant 9.99999997E-7 : f32
    %276 = vector.broadcast %cst_48 : f32 to vector<4x64x1xf32>
    %277 = arith.addf %275, %276 : vector<4x64x1xf32>
    %278 = tpu.reciprocal %277 {approx = true} : vector<4x64x1xf32> -> vector<4x64x1xf32>
    %279 = vector.broadcast %278 : vector<4x64x1xf32> to vector<4x64x64xf32>
    %280 = arith.mulf %268, %279 : vector<4x64x64xf32>
    %281 = arith.truncf %280 : vector<4x64x64xf32> to vector<4x64x64xbf16>
    "tpu.trace_start"() <{level = 10 : i32, message = "hij,hjd->hid"}> : () -> ()
    %cst_49 = arith.constant dense<0.000000e+00> : vector<4x64x4xf32>
    %282 = tpu.matmul %281, %261, %cst_49 {dimension_numbers = #tpu.dot_dimension_numbers<[2], [1], [1], [2], [0, 0, 0, 1, 1, 2], [0], [0]>} : vector<4x64x64xbf16>, vector<4x64x4xbf16>, vector<4x64x4xf32> -> vector<4x64x4xf32>
    "tpu.trace_stop"() : () -> ()
    %cst_50 = arith.constant dense<0.000000e+00> : vector<4x64xf32>
    %283 = vector.multi_reduction <add>, %282, %cst_50 [2] : vector<4x64x4xf32> to vector<4x64xf32>
    %284 = vector.shape_cast %283 : vector<4x64xf32> to vector<4x64x1xf32>
    %cst_51 = arith.constant 4.000000e+00 : f32
    %285 = vector.broadcast %cst_51 : f32 to vector<4x64x1xf32>
    %286 = arith.divf %284, %285 : vector<4x64x1xf32>
    %287 = vector.broadcast %286 : vector<4x64x1xf32> to vector<4x64x4xf32>
    %288 = arith.subf %282, %287 : vector<4x64x4xf32>
    %289 = arith.mulf %288, %288 : vector<4x64x4xf32>
    %cst_52 = arith.constant dense<0.000000e+00> : vector<4x64xf32>
    %290 = vector.multi_reduction <add>, %289, %cst_52 [2] : vector<4x64x4xf32> to vector<4x64xf32>
    %291 = vector.shape_cast %290 : vector<4x64xf32> to vector<4x64x1xf32>
    %cst_53 = arith.constant 4.000000e+00 : f32
    %292 = vector.broadcast %cst_53 : f32 to vector<4x64x1xf32>
    %293 = arith.divf %291, %292 : vector<4x64x1xf32>
    %294 = vector.broadcast %286 : vector<4x64x1xf32> to vector<4x64x4xf32>
    %295 = arith.subf %282, %294 : vector<4x64x4xf32>
    %cst_54 = arith.constant 9.99999974E-6 : f32
    %296 = vector.broadcast %cst_54 : f32 to vector<4x64x1xf32>
    %297 = arith.addf %293, %296 : vector<4x64x1xf32>
    %298 = math.rsqrt %297 : vector<4x64x1xf32>
    %299 = vector.broadcast %298 : vector<4x64x1xf32> to vector<4x64x4xf32>
    %300 = arith.mulf %295, %299 : vector<4x64x4xf32>
    %301 = vector.extract_strided_slice %300 {offsets = [0, 0, 0], sizes = [1, 64, 4], strides = [1, 1, 1]} : vector<4x64x4xf32> to vector<1x64x4xf32>
    %302 = vector.shape_cast %301 : vector<1x64x4xf32> to vector<64x4xf32>
    %303 = vector.extract_strided_slice %300 {offsets = [1, 0, 0], sizes = [1, 64, 4], strides = [1, 1, 1]} : vector<4x64x4xf32> to vector<1x64x4xf32>
    %304 = vector.shape_cast %303 : vector<1x64x4xf32> to vector<64x4xf32>
    %305 = vector.extract_strided_slice %300 {offsets = [2, 0, 0], sizes = [1, 64, 4], strides = [1, 1, 1]} : vector<4x64x4xf32> to vector<1x64x4xf32>
    %306 = vector.shape_cast %305 : vector<1x64x4xf32> to vector<64x4xf32>
    %307 = vector.extract_strided_slice %300 {offsets = [3, 0, 0], sizes = [1, 64, 4], strides = [1, 1, 1]} : vector<4x64x4xf32> to vector<1x64x4xf32>
    %308 = vector.shape_cast %307 : vector<1x64x4xf32> to vector<64x4xf32>
    %309 = tpu.concatenate %208, %210, %212, %214, %302, %304, %306, %308 in 1 : vector<64x4xf32>, vector<64x4xf32>, vector<64x4xf32>, vector<64x4xf32>, vector<64x4xf32>, vector<64x4xf32>, vector<64x4xf32>, vector<64x4xf32> -> vector<64x32xf32>
    %310 = vector.broadcast %17 : vector<1x32xf32> to vector<64x32xf32>
    %311 = arith.mulf %309, %310 : vector<64x32xf32>
    %312 = vector.broadcast %18 : vector<1x32xf32> to vector<64x32xf32>
    %313 = arith.addf %311, %312 : vector<64x32xf32>
    %314 = vector.broadcast %19 : vector<1x32xf32> to vector<64x32xf32>
    %315 = arith.mulf %314, %85 : vector<64x32xf32>
    %316 = arith.addf %313, %315 : vector<64x32xf32>
    %cst_55 = arith.constant 0.000000e+00 : f32
    %317 = vector.broadcast %cst_55 : f32 to vector<64x32xf32>
    %318 = arith.subf %317, %52 : vector<64x32xf32>
    %319 = math.exp %318 : vector<64x32xf32>
    %cst_56 = arith.constant 1.000000e+00 : f32
    %320 = vector.broadcast %cst_56 : f32 to vector<64x32xf32>
    %321 = arith.addf %320, %319 : vector<64x32xf32>
    %322 = tpu.reciprocal %321 {approx = true} : vector<64x32xf32> -> vector<64x32xf32>
    %323 = arith.mulf %52, %322 : vector<64x32xf32>
    %324 = arith.mulf %316, %323 : vector<64x32xf32>
    %325 = arith.truncf %324 : vector<64x32xf32> to vector<64x32xbf16>
    %cst_57 = arith.constant dense<0.000000e+00> : vector<64x32xf32>
    %326 = tpu.matmul %325, %5, %cst_57 {dimension_numbers = #tpu.dot_dimension_numbers<[1], [0], [0], [1], [0, 0, 1, 1], [], []>} : vector<64x32xbf16>, vector<32x32xbf16>, vector<64x32xf32> -> vector<64x32xf32>
    %327 = vector.broadcast %20 : vector<1x32xf32> to vector<64x32xf32>
    %328 = arith.addf %326, %327 : vector<64x32xf32>
    %329 = tpu.transpose %328, [1, 0] : vector<64x32xf32> -> vector<32x64xf32>
    %330 = vector.extract_strided_slice %329 {offsets = [0, 0], sizes = [16, 64], strides = [1, 1]} : vector<32x64xf32> to vector<16x64xf32>
    %331 = arith.addf %23, %330 : vector<16x64xf32>
    %c0_58 = arith.constant 0 : index
    %c0_59 = arith.constant 0 : index
    %c0_60 = arith.constant 0 : index
    %c0_61 = arith.constant 0 : index
    %332 = vector.load %arg6[%c0_58, %c0_59, %c0_60, %c0_61] : memref<1x1x16x64xf32, #tpu.memory_space<vmem>>, vector<1x1x16x64xf32>
    %333 = vector.shape_cast %332 : vector<1x1x16x64xf32> to vector<16x64xf32>
    %334 = vector.shape_cast %331 : vector<16x64xf32> to vector<1x1x16x64xf32>
    tpu.vector_store %arg6[%c0_58, %c0_59, %c0_60, %c0_61], %334 {strides = array<i32>} : memref<1x1x16x64xf32, #tpu.memory_space<vmem>>, vector<1x1x16x64xf32>,
    return
  }
  func.func @transform_0(%arg0: i32) -> (i32, i32, i32, i32) {
    %c0_i32 = arith.constant 0 : i32
    %c0_i32_0 = arith.constant 0 : i32
    %c0_i32_1 = arith.constant 0 : i32
    %c0_i32_2 = arith.constant 0 : i32
    return %arg0, %c0_i32, %c0_i32_0, %c0_i32_1 : i32, i32, i32, i32
  }
  func.func @transform_1(%arg0: i32) -> (i32, i32) {
    %c0_i32 = arith.constant 0 : i32
    %c0_i32_0 = arith.constant 0 : i32
    %c0_i32_1 = arith.constant 0 : i32
    return %c0_i32, %c0_i32_0 : i32, i32
  }
  func.func @transform_2(%arg0: i32) -> (i32, i32) {
    %c0_i32 = arith.constant 0 : i32
    %c0_i32_0 = arith.constant 0 : i32
    %c0_i32_1 = arith.constant 0 : i32
    return %c0_i32, %c0_i32_0 : i32, i32
  }
  func.func @transform_3(%arg0: i32) -> (i32, i32) {
    %c0_i32 = arith.constant 0 : i32
    %c0_i32_0 = arith.constant 0 : i32
    %c0_i32_1 = arith.constant 0 : i32
    return %c0_i32, %c0_i32_0 : i32, i32
  }
  func.func @transform_4(%arg0: i32) -> (i32, i32) {
    %c0_i32 = arith.constant 0 : i32
    %c0_i32_0 = arith.constant 0 : i32
    %c0_i32_1 = arith.constant 0 : i32
    return %c0_i32, %c0_i32_0 : i32, i32
  }
  func.func @transform_5(%arg0: i32) -> (i32, i32, i32, i32) {
    %c0_i32 = arith.constant 0 : i32
    %c0_i32_0 = arith.constant 0 : i32
    %c0_i32_1 = arith.constant 0 : i32
    %c0_i32_2 = arith.constant 0 : i32
    return %arg0, %c0_i32, %c0_i32_0, %c0_i32_1 : i32, i32, i32, i32
  }
}

</mosaic_0001>

<bundles_post_ra>
// kernel: _lambda_.1
= control target key start
LH: loop header
LB: loop body
LE: loop exit
PB: predicated region body
PF: predicated region fallthrough
CT: control target
= control target key end

     0   :  { %s8186_s18 = smov 0   ;;  %s11974_s0 = inlined_call_operand.vmem [shape: f32[2,1,16,64], index: 0, kind: input, shape index: {}, may-alias: {0,5}]   ;;  %s11975_s1 = inlined_call_operand.vmem [shape: bf16[48,64], index: 1, kind: input, shape index: {}]   ;;  %s11976_s2 = inlined_call_operand.vmem [shape: bf16[64,32], index: 2, kind: input, shape index: {}]   ;;  %s11977_s3 = inlined_call_operand.vmem [shape: f32[96,16], index: 3, kind: input, shape index: {}]   ;;  %s11978_s4 = inlined_call_operand.vmem [shape: f32[15,64], index: 4, kind: input, shape index: {}]   ;;  %s11979_s5 = inlined_call_operand.vmem [shape: f32[2,1,16,64], index: 5, kind: output, shape index: {}, may-alias: {0,5}]  }
   0x1 LB: > { %s6549_s19 = sadd.s32 4294967295, %s8139_s18   ;;  %p6553_p0 = scmp.ge.s32.totalorder %s8139_s18, 1  ;;  %s8139_s18 = sphi %s8186_s18, %s15_s18  }
   0x2   : > { %p187_p1 = scmp.lt.s32.totalorder %s8139_s18, 3 }
   0x4   : > { %p188_p2 = pnand %p6553_p0, %p187_p1 }
   0x6   : > { %191 = sbr.rel (%p188_p2) target bundleno = 3801 (0xed9), region = 40 }
   0xd   : > { %p215_p3 = scmp.lt.s32.totalorder %s6549_s19, 1  ;;  %vm288_vm0 = vcmask 130048   ;;  %v7499_v58 = vld [vmem:[%s11975_s1] sm:$0xff]   ;;  %v11980_v63 = vlaneseq  ;;  %vm744_vm1 = vcmask 261120   ;;  %vm529_vm2 = vcmask 1040384   ;;  %s8141_s16 = smov 120  }
   0xe   : > { %6876 = vmatprep.subr.bf16.mxu0 %v7499_v58  ;;  %7294 = vmatprep.subr.bf16.mxu1 %v7499_v58  ;;  %vm574_vm3 = vcmask 1041408   ;;  %vm619_vm4 = vcmask 1042432   ;;  %vm1048_vm5 = vcmask 523264   ;;  %s8143_s17 = smov 96   ;;  %s8144_s21 = smov 124   ;;  %vm2140_vm9 = vcmask 31744  }
   0xf   : > { %s12682_s19 = smov (!%p215_p3, %s6549_s19), 1  ;;  %6877 = vmatpush3.bf16.msra.mxu0 %v7499_v58  ;;  %7295 = vmatpush3.bf16.msra.mxu1 %v7499_v58  ;;  %s8145_s22 = smov 116   ;;  %vm6176_vm15 = vcmask 64512  }
  0x10   : > { %s6679_s20 = sshll.u32 %s12682_s19, 4  ;;  %s8146_s24 = smov 80  }
  0x11   : > { %s8202_s23 = scalar_lea.vmem %s11974_s0, %s6679_s20  ;;  %s8147_s25 = smov 112  }
  0x12   : > { %v254_v0 = vld [vmem:[%s8202_s23] sm:$0xff]  ;;  %v8206_v1 = vld [vmem:[%s8202_s23 + $0x8] sm:$0xff]  ;;  %s8149_s26 = smov 4   ;;  %s8150_s27 = smov 8  }
  0x13   : > { %256 = vxpose.xlu0.b32.start [1/2] (short) (narrow) %v254_v0, 64  ;;  %12176 = vst [vmem:[#allocation2_spill] sm:$0xff] %v8206_v1  ;;  %s8151_s28 = smov 12   ;;  %s8152_s29 = smov 16  }
  0x14   : > { %s8153_s30 = smov 20   ;;  %s8154_s6 = smov 24  }
  0x15   : > { %s8155_s7 = smov 28  }
  0x17   : > { %257 = vxpose.xlu0.b32.end [2/2] (short) (narrow) %v8206_v1, 64 }
  0x93   : > { %v272_v2 = vpop.trf.xlu0 }
  0x94   : > { %v289_v3 = vsel %vm288_vm0, %v272_v2, 0.0 }
  0x95   : > { %290 = vadd.xlane.f32.xlu1 %v289_v3 }
  0x97   : > { %v273_v4 = vpop.trf.xlu0 }
  0x98   : > { %v292_v5 = vsel %vm288_vm0, %v273_v4, 0.0 }
  0x99   : > { %293 = vadd.xlane.f32.xlu1 %v292_v5 }
  0x9b   : > { %v274_v6 = vpop.trf.xlu0 }
  0x9c   : > { %v295_v7 = vsel %vm288_vm0, %v274_v6, 0.0 }
  0x9d   : > { %296 = vadd.xlane.f32.xlu0 %v295_v7 }
  0x9f   : > { %v275_v8 = vpop.trf.xlu0 }
  0xa0   : > { %v298_v9 = vsel %vm288_vm0, %v275_v8, 0.0 }
  0xa1   : > { %299 = vadd.xlane.f32.xlu1 %v298_v9 }
  0xa3   : > { %v276_v10 = vpop.trf.xlu0 }
  0xa4   : > { %v301_v11 = vsel %vm288_vm0, %v276_v10, 0.0 }
  0xa5   : > { %302 = vadd.xlane.f32.xlu1 %v301_v11 }
  0xa7   : > { %v277_v12 = vpop.trf.xlu0 }
  0xa8   : > { %v304_v13 = vsel %vm288_vm0, %v277_v12, 0.0 }
  0xa9   : > { %305 = vadd.xlane.f32.xlu1 %v304_v13 }
  0xab   : > { %v278_v14 = vpop.trf.xlu0 }
  0xac   : > { %v307_v15 = vsel %vm288_vm0, %v278_v14, 0.0 }
  0xad   : > { %308 = vadd.xlane.f32.xlu1 %v307_v15 }
  0xaf   : > { %v279_v16 = vpop.trf.xlu0 }
  0xb0   : > { %v310_v17 = vsel %vm288_vm0, %v279_v16, 0.0 }
  0xb1   : > { %311 = vadd.xlane.f32.xlu1 %v310_v17 }
 0x122   : > { %v291_v18 = vpop.xlane.xlu1 %290 }
 0x123   : > { %v314_v19 = vmul.f32 0.0625, %v291_v18 }
 0x125   : > { %v8217_v20 = vsub.f32 %v272_v2, %v314_v19 }
 0x126   : > { %v294_v21 = vpop.xlane.xlu1 %293 }
 0x127   : > { %v315_v22 = vmul.f32 0.0625, %v294_v21  ;;  %v330_v23 = vmul.f32 %v8217_v20, %v8217_v20 }
 0x129   : > { %v8221_v24 = vsub.f32 %v273_v4, %v315_v22  ;;  %v338_v25 = vsel %vm288_vm0, %v330_v23, 0.0  ;;  %v8261_v4 = vshrl.u32 %v11980_v63, 7 }
 0x12a   : > { %339 = vadd.xlane.f32.xlu1 %v338_v25  ;;  %v297_v26 = vpop.xlane.xlu0 %296 }
 0x12b   : > { %v316_v27 = vmul.f32 0.0625, %v297_v26  ;;  %v331_v28 = vmul.f32 %v8221_v24, %v8221_v24  ;;  %12177 = vst [vmem:[#allocation3_spill] sm:$0xff] %v8261_v4 }
 0x12d   : > { %v8226_v29 = vsub.f32 %v274_v6, %v316_v27  ;;  %v341_v30 = vsel %vm288_vm0, %v331_v28, 0.0 }
 0x12e   : > { %v300_v31 = vpop.xlane.xlu1 %299  ;;  %342 = vadd.xlane.f32.xlu1 %v341_v30 }
 0x12f   : > { %v317_v32 = vmul.f32 0.0625, %v300_v31  ;;  %v332_v33 = vmul.f32 %v8226_v29, %v8226_v29 }
 0x131   : > { %v8231_v34 = vsub.f32 %v275_v8, %v317_v32  ;;  %v344_v35 = vsel %vm288_vm0, %v332_v33, 0.0  ;;  %v8264_v8 = vsub.s32 0, %v8261_v4 }
 0x132   : > { %v303_v36 = vpop.xlane.xlu1 %302  ;;  %345 = vadd.xlane.f32.xlu1 %v344_v35 }
 0x133   : > { %v318_v37 = vmul.f32 0.0625, %v303_v36  ;;  %v333_v38 = vmul.f32 %v8231_v34, %v8231_v34  ;;  %12178 = vst [vmem:[#allocation4_spill] sm:$0xff] %v8264_v8 }
 0x135   : > { %v8236_v39 = vsub.f32 %v276_v10, %v318_v37  ;;  %v347_v40 = vsel %vm288_vm0, %v333_v38, 0.0  ;;  %v8269_v10 = vld [vmem:[%s11978_s4] sm:$0xff] }
 0x136   : > { %v306_v41 = vpop.xlane.xlu1 %305  ;;  %348 = vadd.xlane.f32.xlu1 %v347_v40  ;;  %v397_v15 = vrot.slane %v8269_v10, %v8264_v8 }
 0x137   : > { %v319_v42 = vmul.f32 0.0625, %v306_v41  ;;  %v334_v43 = vmul.f32 %v8236_v39, %v8236_v39 }
 0x139   : > { %v8241_v44 = vsub.f32 %v277_v12, %v319_v42  ;;  %v350_v45 = vsel %vm288_vm0, %v334_v43, 0.0 }
 0x13a   : > { %v309_v46 = vpop.xlane.xlu1 %308  ;;  %351 = vadd.xlane.f32.xlu1 %v350_v45 }
 0x13b   : > { %v320_v47 = vmul.f32 0.0625, %v309_v46  ;;  %v335_v48 = vmul.f32 %v8241_v44, %v8241_v44 }
 0x13d   : > { %v8246_v49 = vsub.f32 %v278_v14, %v320_v47  ;;  %v353_v50 = vsel %vm288_vm0, %v335_v48, 0.0 }
 0x13e   : > { %v312_v51 = vpop.xlane.xlu1 %311  ;;  %354 = vadd.xlane.f32.xlu1 %v353_v50 }
 0x13f   : > { %v321_v52 = vmul.f32 0.0625, %v312_v51  ;;  %v336_v53 = vmul.f32 %v8246_v49, %v8246_v49 }
 0x141   : > { %v8251_v54 = vsub.f32 %v279_v16, %v321_v52  ;;  %v356_v55 = vsel %vm288_vm0, %v336_v53, 0.0  ;;  %v8275_v16 = vsub.s32 1, %v8261_v4 }
 0x142   : > { %357 = vadd.xlane.f32.xlu1 %v356_v55 }
 0x143   : > { %v337_v56 = vmul.f32 %v8251_v54, %v8251_v54  ;;  %12179 = vst [vmem:[#allocation5_spill] sm:$0xff] %v8275_v16  ;;  %v409_v25 = vrot.slane %v8269_v10, %v8275_v16 }
 0x145   : > { %v359_v57 = vsel %vm288_vm0, %v337_v56, 0.0 }
 0x146   : > { %360 = vadd.xlane.f32.xlu1 %v359_v57 }
 0x1b7   : > { %v340_v59 = vpop.xlane.xlu1 %339 }
 0x1b8   : > { %v362_v60 = vmul.f32 0.0625, %v340_v59 }
 0x1ba   : > { %v370_v61 = vadd.f32 1e-05, %v362_v60 }
 0x1bb   : > { %v343_v62 = vpop.xlane.xlu1 %342 }
 0x1bc   : > { %7506 = vrsqrt.f32 %v370_v61  ;;  %v363_v0 = vmul.f32 0.0625, %v343_v62 }
 0x1be   : > { %v371_v2 = vadd.f32 1e-05, %v363_v0 }
 0x1bf   : > { %v346_v3 = vpop.xlane.xlu1 %345 }
 0x1c0   : > { %7508 = vrsqrt.f32 %v371_v2  ;;  %v364_v5 = vmul.f32 0.0625, %v346_v3 }
 0x1c2   : > { %v372_v6 = vadd.f32 1e-05, %v364_v5  ;;  %v7503_v5 = vld [vmem:[%s11975_s1 + $0x10] sm:$0xff]  }
 0x1c3   : > { %v349_v7 = vpop.xlane.xlu1 %348 }
 0x1c4   : > { %7510 = vrsqrt.f32 %v372_v6  ;;  %v365_v9 = vmul.f32 0.0625, %v349_v7  ;;  %v248_v6 = vld [vmem:[%s11977_s3 + $0x40] sm:$0xff]  ;;  %v249_v7 = vld [vmem:[%s11977_s3 + $0x48] sm:$0xff] }
 0x1c6   : > { %v7507_v11 = vpop.eup %7506  ;;  %v373_v12 = vadd.f32 1e-05, %v365_v9  ;;  %v8308_v9 = vpack.c.bf16 %v249_v7, %v248_v6 }
 0x1c7   : > { %v352_v13 = vpop.xlane.xlu1 %351  ;;  %v386_v14 = vmul.f32 %v7507_v11, %v8217_v20  ;;  %v8312_v11 = vsub.s32 2, %v8261_v4 }
 0x1c8   : > { %7512 = vrsqrt.f32 %v373_v12  ;;  %v366_v17 = vmul.f32 0.0625, %v352_v13  ;;  %v8315_v12 = vsub.s32 6, %v8261_v4 }
 0x1c9   : > { %v398_v23 = vmul.f32 %v397_v15, %v386_v14  ;;  %12180 = vst [vmem:[#allocation6_spill] sm:$0xff] %v8312_v11  ;;  %v8319_v13 = vrot.slane %v8269_v10, %v8312_v11  ;;  %v253_v14 = vld [vmem:[%s11978_s4 + $0x8] sm:$0x7f] }
 0x1ca   : > { %v7509_v18 = vpop.eup %7508  ;;  %v374_v19 = vadd.f32 1e-05, %v366_v17  ;;  %12181 = vst [vmem:[#allocation7_spill] sm:$0xff] %v8315_v12  ;;  %v8328_v17 = vsub.s32 4, %v8261_v4 }
 0x1cb   : > { %v355_v21 = vpop.xlane.xlu1 %354  ;;  %v387_v22 = vmul.f32 %v7509_v18, %v8221_v24  ;;  %v410_v31 = vadd.f32 %v409_v25, %v398_v23  ;;  %v8331_v18 = vsub.s32 3, %v8261_v4 }
 0x1cc   : > { %7514 = vrsqrt.f32 %v374_v19  ;;  %v367_v26 = vmul.f32 0.0625, %v355_v21  ;;  %v8334_v21 = vrot.slane %v253_v14, %v8315_v12 }
 0x1cd   : > { %v399_v20 = vmul.f32 %v397_v15, %v387_v22 }
 0x1ce   : > { %v7511_v27 = vpop.eup %7510  ;;  %v375_v28 = vadd.f32 1e-05, %v367_v26 }
 0x1cf   : > { %v358_v30 = vpop.xlane.xlu1 %357  ;;  %v411_v32 = vadd.f32 %v409_v25, %v399_v20  ;;  %v388_v33 = vmul.f32 %v7511_v27, %v8226_v29  ;;  %v8346_v27 = vrot.slane %v253_v14, %v8328_v17 }
 0x1d0   : > { %7516 = vrsqrt.f32 %v375_v28  ;;  %v368_v35 = vmul.f32 0.0625, %v358_v30  ;;  %v8349_v28 = vrot.slane %v253_v14, %v8331_v18 }
 0x1d1   : > { %v418_v36 = vpack.c.bf16 %v411_v32, %v410_v31  ;;  %v400_v41 = vmul.f32 %v397_v15, %v388_v33 }
 0x1d2   : > { %v7513_v37 = vpop.eup %7512  ;;  %v376_v38 = vadd.f32 1e-05, %v368_v35  ;;  %v8358_v35 = vrot.slane %v8269_v10, %v8331_v18 }
 0x1d3   : > { %6878 = vmatprep.mubr.msk.bf16.mxu0 %vm288_vm0, %v418_v36  ;;  %v361_v24 = vpop.xlane.xlu1 %360  ;;  %v389_v40 = vmul.f32 %v7513_v37, %v8231_v34  ;;  %v412_v47 = vadd.f32 %v409_v25, %v400_v41 }
 0x1d4   : > { %7518 = vrsqrt.f32 %v376_v38  ;;  %v369_v42 = vmul.f32 0.0625, %v361_v24 }
 0x1d5   : > { %v401_v43 = vmul.f32 %v397_v15, %v389_v40 }
 0x1d6   : > { %v7515_v45 = vpop.eup %7514  ;;  %v377_v46 = vadd.f32 1e-05, %v369_v42 }
 0x1d7   : > { %v413_v48 = vadd.f32 %v409_v25, %v401_v43  ;;  %v390_v29 = vmul.f32 %v7515_v45, %v8236_v39 }
 0x1d8   : > { %7520 = vrsqrt.f32 %v377_v46 }
 0x1d9   : > { %v419_v50 = vpack.c.bf16 %v413_v48, %v412_v47  ;;  %v402_v53 = vmul.f32 %v397_v15, %v390_v29 }
 0x1da   : > { %v7517_v51 = vpop.eup %7516 }
 0x1db   : > { %6879 = vmatmul.mubr.msk.bf16.vlgmr.msra.gmra.mrb[0].mxu0 %vm288_vm0, %v419_v50  ;;  %v391_v52 = vmul.f32 %v7517_v51, %v8241_v44  ;;  %v414_v56 = vadd.f32 %v409_v25, %v402_v53  ;;  %v7500_v44 = vld [vmem:[%s11976_s2] sm:$0xff]  }
 0x1dc   : > { %6898 = vmatprep.subr.bf16.mxu0 %v7500_v44 }
 0x1dd   : > { %v403_v55 = vmul.f32 %v397_v15, %v391_v52  ;;  %6899 = vmatpush3.bf16.msra.mxu0 %v7500_v44 }
 0x1de   : > { %v7519_v34 = vpop.eup %7518 }
 0x1df   : > { %v415_v57 = vadd.f32 %v409_v25, %v403_v55  ;;  %v392_v58 = vmul.f32 %v7519_v34, %v8246_v49  ;;  %v7501_v49 = vld [vmem:[%s11976_s2 + $0x8] sm:$0xff]  }
 0x1e0   : > { %6900 = vmatprep.subr.bf16.mxu0 %v7501_v49 }
 0x1e1   : > { %v420_v59 = vpack.c.bf16 %v415_v57, %v414_v56  ;;  %v404_v61 = vmul.f32 %v397_v15, %v392_v58  ;;  %6901 = vmatpush3.bf16.msra.mxu0 %v7501_v49 }
 0x1e2   : > { %v7521_v60 = vpop.eup %7520 }
 0x1e3   : > { %6882 = vmatprep.mubr.msk.bf16.mxu1 %vm288_vm0, %v420_v59  ;;  %v393_v39 = vmul.f32 %v7521_v60, %v8251_v54  ;;  %v416_v0 = vadd.f32 %v409_v25, %v404_v61  ;;  %v7502_v54 = vld [vmem:[%s11975_s1 + $0x8] sm:$0xff]  }
 0x1e4   : > { %6886 = vmatprep.subr.bf16.mxu1 %v7502_v54 }
 0x1e5   : > { %v405_v62 = vmul.f32 %v397_v15, %v393_v39  ;;  %v8325_v15 = vsub.s32 5, %v8261_v4 }
 0x1e7   : > { %v417_v2 = vadd.f32 %v409_v25, %v405_v62  ;;  %v8340_v25 = vrot.slane %v253_v14, %v8325_v15 }
 0x1e9   : > { %v421_v3 = vpack.c.bf16 %v417_v2, %v416_v0 }
 0x1eb   : > { %6883 = vmatmul.mubr.msk.bf16.vlgmr.msra.gmra.mrb[0].mxu1 %vm288_vm0, %v421_v3 }
 0x1ec   : > { %6887 = vmatpush3.bf16.msra.mxu1 %v7502_v54 }
 0x1ed   : > { %6888 = vmatprep.subr.bf16.mxu1 %v7503_v5 }
 0x1f0   : > { %6889 = vmatpush3.bf16.msra.mxu1 %v7503_v5 }
 0x1f1   : > { %7255 = vmatprep.subr.bf16.mxu1 %v8308_v9 }
 0x2ae   : > { %v6880_v19 = vpop.f32.mrb[0].mxu0 }
 0x2af   : > { %v8337_v22 = vadd.f32 %v6880_v19, %v8319_v13  ;;  %v478_v23 = vpop.f32.mrb[1].mxu0 }
 0x2b0   : > { %v8343_v26 = vadd.f32 %v478_v23, %v8319_v13  ;;  %v6881_v20 = vpop.f32.mrb[2].mxu0 }
 0x2b1   : > { %12182 = vst [vmem:[#allocation8_spill] sm:$0xff] %v8337_v22  ;;  %v533_v30 = vrot.slane %v8337_v22, 7  ;;  %v578_v31 = vrot.slane %v8337_v22, 6  ;;  %v8354_v32 = vadd.f32 %v6881_v20, %v8319_v13  ;;  %v481_v33 = vpop.f32.mrb[3].mxu0  ;;  %v623_v36 = vrot.slane %v8337_v22, 5 }
 0x2b2   : > { %12183 = vst [vmem:[#allocation9_spill] sm:$0xff] %v8343_v26  ;;  %v8362_v37 = vadd.f32 %v481_v33, %v8319_v13  ;;  %v530_v38 = vrot.slane %v8343_v26, 7  ;;  %v575_v24 = vrot.slane %v8343_v26, 6  ;;  %v513_v43 = vmul.f32 %v8334_v21, %v8343_v26 }
 0x2b3   : > { %12184 = vst [vmem:[#allocation10_spill] sm:$0xff] %v8354_v32  ;;  %v535_v40 = vrot.slane %v8354_v32, 7  ;;  %v580_v41 = vrot.slane %v8354_v32, 6  ;;  %v625_v42 = vrot.slane %v8354_v32, 5  ;;  %v823_v46 = vpack.c.bf16 %v8354_v32, %v8337_v22 }
 0x2b4   : > { %12185 = vst [vmem:[#allocation11_spill] sm:$0xff] %v8362_v37  ;;  %v822_v45 = vpack.c.bf16 %v8362_v37, %v8343_v26  ;;  %v531_v47 = vrot.slane %v8362_v37, 7  ;;  %v553_v48 = vsel %vm529_vm2, 0.0, %v530_v38  ;;  %v576_v50 = vrot.slane %v8362_v37, 6 }
 0x2b5   : > { %v558_v29 = vmul.f32 %v8340_v25, %v553_v48  ;;  %v598_v51 = vsel %vm574_vm3, 0.0, %v575_v24  ;;  %v620_v52 = vrot.slane %v8343_v26, 5  ;;  %v514_v53 = vmul.f32 %v8334_v21, %v8362_v37 }
 0x2b6   : > { %6902 = vmatprep.mubr.msk.bf16.mxu0 %vm744_vm1, %v822_v45  ;;  %v532_v55 = vsel %vm529_vm2, %v530_v38, %v531_v47  ;;  %v603_v34 = vmul.f32 %v8346_v27, %v598_v51  ;;  %v621_v56 = vrot.slane %v8362_v37, 5  ;;  %v577_v59 = vsel %vm574_vm3, %v575_v24, %v576_v50 }
 0x2b7   : > { %6903 = vmatmul.mubr.msk.bf16.vlgmr.msra.gmra.mrb[4].mxu0 %vm744_vm1, %v823_v46  ;;  %v559_v57 = vmul.f32 %v8340_v25, %v532_v55  ;;  %v566_v58 = vadd.f32 %v558_v29, %v513_v43  ;;  %v643_v60 = vsel %vm619_vm4, 0.0, %v620_v52  ;;  %v604_v39 = vmul.f32 %v8346_v27, %v577_v59 }
 0x2b8   : > { %v622_v61 = vsel %vm619_vm4, %v620_v52, %v621_v56  ;;  %v648_v62 = vmul.f32 %v8349_v28, %v643_v60  ;;  %v515_v0 = vmul.f32 %v8334_v21, %v8337_v22  ;;  %v516_v44 = vmul.f32 %v8334_v21, %v8354_v32 }
 0x2b9   : > { %v567_v2 = vadd.f32 %v559_v57, %v514_v53  ;;  %v611_v3 = vadd.f32 %v603_v34, %v566_v58  ;;  %v534_v49 = vsel %vm529_vm2, %v531_v47, %v533_v30  ;;  %v536_v54 = vsel %vm529_vm2, %v533_v30, %v535_v40 }
 0x2ba   : > { %v560_v5 = vmul.f32 %v8340_v25, %v534_v49  ;;  %v579_v6 = vsel %vm574_vm3, %v576_v50, %v578_v31  ;;  %v581_v7 = vsel %vm574_vm3, %v578_v31, %v580_v41  ;;  %v649_v19 = vmul.f32 %v8349_v28, %v622_v61 }
 0x2bb   : > { %v612_v14 = vadd.f32 %v604_v39, %v567_v2  ;;  %v656_v23 = vadd.f32 %v648_v62, %v611_v3  ;;  %v561_v20 = vmul.f32 %v8340_v25, %v536_v54  ;;  %v605_v38 = vmul.f32 %v8346_v27, %v579_v6 }
 0x2bc   : > { %v568_v33 = vadd.f32 %v560_v5, %v515_v0  ;;  %v624_v24 = vsel %vm619_vm4, %v621_v56, %v623_v36  ;;  %v626_v30 = vsel %vm619_vm4, %v623_v36, %v625_v42  ;;  %v606_v46 = vmul.f32 %v8346_v27, %v581_v7 }
 0x2bd   : > { %v657_v43 = vadd.f32 %v649_v19, %v612_v14  ;;  %v8415_v45 = vadd.f32 %v8358_v35, %v656_v23  ;;  %v569_v31 = vadd.f32 %v561_v20, %v516_v44  ;;  %v650_v29 = vmul.f32 %v8349_v28, %v624_v24 }
 0x2be   : > { %v6884_v47 = vpop.f32.mrb[0].mxu1  ;;  %v613_v48 = vadd.f32 %v605_v38, %v568_v33  ;;  %v651_v36 = vmul.f32 %v8349_v28, %v626_v30 }
 0x2bf   : > { %v494_v50 = vpop.f32.mrb[1].mxu1  ;;  %v8420_v51 = vadd.f32 %v8358_v35, %v657_v43  ;;  %v676_v52 = vsub.f32 0.0, %v8415_v45  ;;  %v614_v53 = vadd.f32 %v606_v46, %v569_v31  ;;  %v8425_v55 = vadd.f32 %v6884_v47, %v8319_v13 }
 0x2c0   : > { %v8428_v34 = vadd.f32 %v494_v50, %v8319_v13  ;;  %v6885_v56 = vpop.f32.mrb[2].mxu1  ;;  %v658_v57 = vadd.f32 %v650_v29, %v613_v48 }
 0x2c1   : > { %12186 = vst [vmem:[#allocation12_spill] sm:$0xff] %v8425_v55  ;;  %v8431_v58 = vadd.f32 %v6885_v56, %v8319_v13  ;;  %v497_v59 = vpop.f32.mrb[3].mxu1  ;;  %v677_v60 = vsub.f32 0.0, %v8420_v51  ;;  %v684_v39 = vmul.f32 1.442695, %v676_v52  ;;  %v659_v61 = vadd.f32 %v651_v36, %v614_v53 }
 0x2c2   : > { %12187 = vst [vmem:[#allocation13_spill] sm:$0xff] %v8428_v34  ;;  %v8435_v62 = vadd.f32 %v497_v59, %v8319_v13  ;;  %v8438_v0 = vadd.f32 %v8358_v35, %v658_v57  ;;  %v517_v2 = vmul.f32 %v8334_v21, %v8428_v34  ;;  %v537_v3 = vrot.slane %v8428_v34, 7 }
 0x2c3   : > { %12188 = vst [vmem:[#allocation14_spill] sm:$0xff] %v8431_v58  ;;  %v825_v44 = vpack.c.bf16 %v8431_v58, %v8425_v55  ;;  %7522 = vpow2.f32 %v684_v39  ;;  %v686_v49 = vmul.f32 1.442695, %v677_v60  ;;  %v8446_v54 = vadd.f32 %v8358_v35, %v659_v61 }
 0x2c4   : > { %12189 = vst [vmem:[#allocation15_spill] sm:$0xff] %v8435_v62  ;;  %v824_v13 = vpack.c.bf16 %v8435_v62, %v8428_v34  ;;  %v678_v5 = vsub.f32 0.0, %v8438_v0  ;;  %v518_v6 = vmul.f32 %v8334_v21, %v8435_v62  ;;  %v538_v7 = vsel %vm529_vm2, %v535_v40, %v537_v3 }
 0x2c5   : > { %7524 = vpow2.f32 %v686_v49  ;;  %v679_v14 = vsub.f32 0.0, %v8446_v54  ;;  %v539_v19 = vrot.slane %v8435_v62, 7  ;;  %v562_v23 = vmul.f32 %v8340_v25, %v538_v7 }
 0x2c6   : > { %6906 = vmatprep.mubr.msk.bf16.mxu0 %vm744_vm1, %v824_v13  ;;  %v688_v20 = vmul.f32 1.442695, %v678_v5  ;;  %v582_v33 = vrot.slane %v8428_v34, 6  ;;  %v584_v38 = vrot.slane %v8435_v62, 6  ;;  %v627_v24 = vrot.slane %v8428_v34, 5 }
 0x2c7   : > { %6907 = vmatmul.mubr.msk.bf16.gmra.mrb[8].mxu0 %vm744_vm1, %v825_v44  ;;  %v690_v30 = vmul.f32 1.442695, %v679_v14  ;;  %v540_v40 = vsel %vm529_vm2, %v537_v3, %v539_v19  ;;  %v570_v43 = vadd.f32 %v562_v23, %v517_v2  ;;  %v629_v31 = vrot.slane %v8435_v62, 5 }
 0x2c8   : > { %7526 = vpow2.f32 %v688_v20  ;;  %v563_v46 = vmul.f32 %v8340_v25, %v540_v40  ;;  %v583_v47 = vsel %vm574_vm3, %v580_v41, %v582_v33  ;;  %v585_v48 = vsel %vm574_vm3, %v582_v33, %v584_v38 }
 0x2c9   : > { %7528 = vpow2.f32 %v690_v30  ;;  %v607_v29 = vmul.f32 %v8346_v27, %v583_v47  ;;  %v608_v50 = vmul.f32 %v8346_v27, %v585_v48  ;;  %v628_v52 = vsel %vm619_vm4, %v625_v42, %v627_v24 }
 0x2ca   : > { %v571_v53 = vadd.f32 %v563_v46, %v518_v6  ;;  %v630_v36 = vsel %vm619_vm4, %v627_v24, %v629_v31  ;;  %v652_v56 = vmul.f32 %v8349_v28, %v628_v52  ;;  %v519_v57 = vmul.f32 %v8334_v21, %v8425_v55 }
 0x2cb   : > { %v615_v41 = vadd.f32 %v607_v29, %v570_v43  ;;  %v653_v59 = vmul.f32 %v8349_v28, %v630_v36  ;;  %v520_v60 = vmul.f32 %v8334_v21, %v8431_v58  ;;  %v541_v39 = vrot.slane %v8425_v55, 7 }
 0x2cc   : > { %v616_v61 = vadd.f32 %v608_v50, %v571_v53  ;;  %v543_v2 = vrot.slane %v8431_v58, 7  ;;  %v586_v42 = vrot.slane %v8425_v55, 6  ;;  %v588_v3 = vrot.slane %v8431_v58, 6 }
 0x2cd   : > { %v7523_v44 = vpop.eup %7522  ;;  %v660_v49 = vadd.f32 %v652_v56, %v615_v41  ;;  %v542_v13 = vsel %vm529_vm2, %v539_v19, %v541_v39  ;;  %v631_v5 = vrot.slane %v8425_v55, 5  ;;  %v633_v6 = vrot.slane %v8431_v58, 5 }
 0x2ce   : > { %v700_v7 = vadd.f32 1.0, %v7523_v44  ;;  %v661_v14 = vadd.f32 %v653_v59, %v616_v61  ;;  %v544_v21 = vsel %vm529_vm2, %v541_v39, %v543_v2  ;;  %v564_v23 = vmul.f32 %v8340_v25, %v542_v13 }
 0x2cf   : > { %v7525_v20 = vpop.eup %7524  ;;  %v8493_v33 = vadd.f32 %v8358_v35, %v660_v49  ;;  %v565_v24 = vmul.f32 %v8340_v25, %v544_v21  ;;  %v587_v30 = vsel %vm574_vm3, %v584_v38, %v586_v42  ;;  %v589_v19 = vsel %vm574_vm3, %v586_v42, %v588_v3 }
 0x2d0   : > { %v701_v40 = vadd.f32 1.0, %v7525_v20  ;;  %7530 = vrcp.f32 %v700_v7  ;;  %v673_v43 = vadd.f32 %v8358_v35, %v661_v14  ;;  %v572_v46 = vadd.f32 %v564_v23, %v519_v57 }
 0x2d1   : > { %v680_v47 = vsub.f32 0.0, %v8493_v33  ;;  %v573_v48 = vadd.f32 %v565_v24, %v520_v60  ;;  %v609_v29 = vmul.f32 %v8346_v27, %v587_v30  ;;  %v610_v50 = vmul.f32 %v8346_v27, %v589_v19 }
 0x2d2   : > { %v7527_v52 = vpop.eup %7526  ;;  %7532 = vrcp.f32 %v701_v40  ;;  %v681_v53 = vsub.f32 0.0, %v673_v43  ;;  %v632_v25 = vsel %vm619_vm4, %v629_v31, %v631_v5  ;;  %v634_v38 = vsel %vm619_vm4, %v631_v5, %v633_v6 }
 0x2d3   : > { %v7529_v36 = vpop.eup %7528  ;;  %v702_v56 = vadd.f32 1.0, %v7527_v52  ;;  %v692_v41 = vmul.f32 1.442695, %v680_v47  ;;  %v617_v59 = vadd.f32 %v609_v29, %v572_v46  ;;  %v618_v39 = vadd.f32 %v610_v50, %v573_v48 }
 0x2d4   : > { %v703_v57 = vadd.f32 1.0, %v7529_v36  ;;  %v694_v61 = vmul.f32 1.442695, %v681_v53  ;;  %v654_v60 = vmul.f32 %v8349_v28, %v632_v25  ;;  %v655_v2 = vmul.f32 %v8349_v28, %v634_v38 }
 0x2d5   : > { %7534 = vrcp.f32 %v702_v56  ;;  %vm6185_vm2 = vcmask 97280   ;;  %vm6202_vm3 = vcmask 162816   ;;  %vm6211_vm4 = vcmask 195584  }
 0x2d6   : > { %7536 = vrcp.f32 %v703_v57  ;;  %v662_v27 = vadd.f32 %v654_v60, %v617_v59  ;;  %v663_v42 = vadd.f32 %v655_v2, %v618_v39  ;;  %v240_v59 = vld [vmem:[%s11977_s3] sm:$0xff]  ;;  %v241_v39 = vld [vmem:[%s11977_s3 + $0x8] sm:$0xff] }
 0x2d7   : > { %7538 = vpow2.f32 %v692_v41  ;;  %v7262_v57 = vpack.c.bf16 %v241_v39, %v240_v59  ;;  %v731_v59 = vrot.slane %v8269_v10, %v8328_v17 }
 0x2d8   : > { %7540 = vpow2.f32 %v694_v61  ;;  %v674_v31 = vadd.f32 %v8358_v35, %v662_v27  ;;  %v675_v3 = vadd.f32 %v8358_v35, %v663_v42  ;;  %v829_v61 = vrot.slane %v8269_v10, %v8325_v15  ;;  %v242_v27 = vld [vmem:[%s11977_s3 + $0x10] sm:$0xff]  ;;  %v243_v42 = vld [vmem:[%s11977_s3 + $0x18] sm:$0xff] }
 0x2da   : > { %v7531_v44 = vpop.eup %7530  ;;  %v682_v49 = vsub.f32 0.0, %v674_v31  ;;  %v683_v13 = vsub.f32 0.0, %v675_v3 }
 0x2db   : > { %v8509_v14 = vmul.f32 %v7531_v44, %v8415_v45 }
 0x2dc   : > { %v7533_v5 = vpop.eup %7532  ;;  %v696_v6 = vmul.f32 1.442695, %v682_v49  ;;  %v698_v7 = vmul.f32 1.442695, %v683_v13 }
 0x2dd   : > { %12190 = vst [vmem:[#allocation16_spill] sm:$0xff] %v8509_v14  ;;  %v8512_v28 = vmul.f32 %v7533_v5, %v8420_v51 }
 0x2de   : > { %7542 = vpow2.f32 %v696_v6  ;;  %v7266_v6 = vpack.c.bf16 %v243_v42, %v242_v27 }
 0x2df   : > { %12191 = vst [vmem:[#allocation17_spill] sm:$0xff] %v8512_v28  ;;  %v7535_v21 = vpop.eup %7534  ;;  %v724_v23 = vpack.c.bf16 %v8512_v28, %v8509_v14  ;;  %7544 = vpow2.f32 %v698_v7  ;;  %v244_v7 = vld [vmem:[%s11977_s3 + $0x20] sm:$0xff] }
 0x2e0   : > { %v7537_v20 = vpop.eup %7536  ;;  %v8517_v35 = vmul.f32 %v7535_v21, %v8438_v0  ;;  %v245_v21 = vld [vmem:[%s11977_s3 + $0x28] sm:$0xff] }
 0x2e1   : > { %v7539_v24 = vpop.eup %7538  ;;  %6890 = vmatprep.mubr.msk.bf16.mxu1 %vm744_vm1, %v724_v23  ;;  %v8521_v30 = vmul.f32 %v7537_v20, %v8446_v54 }
 0x2e2   : > { %12192 = vst [vmem:[#allocation18_spill] sm:$0xff] %v8517_v35  ;;  %v7541_v45 = vpop.eup %7540  ;;  %v704_v19 = vadd.f32 1.0, %v7539_v24 }
 0x2e3   : > { %12193 = vst [vmem:[#allocation19_spill] sm:$0xff] %v8521_v30  ;;  %v725_v51 = vpack.c.bf16 %v8521_v30, %v8517_v35  ;;  %v705_v40 = vadd.f32 1.0, %v7541_v45 }
 0x2e4   : > { %7546 = vrcp.f32 %v704_v19  ;;  %v7270_v19 = vpack.c.bf16 %v245_v21, %v244_v7 }
 0x2e5   : > { %6891 = vmatmul.mubr.msk.bf16.vlgmr.msra.gmra.mrb[4].mxu1 %vm744_vm1, %v725_v51  ;;  %7548 = vrcp.f32 %v705_v40  ;;  %v246_v51 = vld [vmem:[%s11977_s3 + $0x30] sm:$0xff]  ;;  %v247_v40 = vld [vmem:[%s11977_s3 + $0x38] sm:$0xff] }
 0x2e6   : > { %7257 = vmatpush3.bf16.msra.mxu1 %v8308_v9 }
 0x2e8   : > { %v7543_v0 = vpop.eup %7542 }
 0x2e9   : > { %v7545_v46 = vpop.eup %7544  ;;  %v706_v47 = vadd.f32 1.0, %v7543_v0  ;;  %v7274_v0 = vpack.c.bf16 %v247_v40, %v246_v51 }
 0x2ea   : > { %v707_v48 = vadd.f32 1.0, %v7545_v46 }
 0x2eb   : > { %7550 = vrcp.f32 %v706_v47 }
 0x2ec   : > { %7552 = vrcp.f32 %v707_v48 }
 0x2ee   : > { %v7547_v54 = vpop.eup %7546 }
 0x2ef   : > { %v7549_v29 = vpop.eup %7548  ;;  %v8528_v50 = vmul.f32 %v7547_v54, %v8493_v33  ;;  %v250_v33 = vld [vmem:[%s11977_s3 + $0x50] sm:$0xff] }
 0x2f0   : > { %v8530_v52 = vmul.f32 %v7549_v29, %v673_v43  ;;  %v251_v43 = vld [vmem:[%s11977_s3 + $0x58] sm:$0xff] }
 0x2f1   : > { %12194 = vst [vmem:[#allocation20_spill] sm:$0xff] %v8528_v50  ;;  %v7258_v41 = vpack.c.bf16 %v251_v43, %v250_v33 }
 0x2f2   : > { %12195 = vst [vmem:[#allocation21_spill] sm:$0xff] %v8530_v52  ;;  %v726_v53 = vpack.c.bf16 %v8530_v52, %v8528_v50 }
 0x2f3   : > { %7259 = vmatprep.subr.bf16.mxu1 %v7258_v41 }
 0x2f4   : > { %6894 = vmatprep.mubr.msk.bf16.mxu1 %vm744_vm1, %v726_v53  ;;  %7261 = vmatpush3.bf16.msra.mxu1 %v7258_v41 }
 0x2f5   : > { %v7551_v25 = vpop.eup %7550  ;;  %7263 = vmatprep.subr.bf16.mxu1 %v7262_v57 }
 0x2f6   : > { %v7553_v9 = vpop.eup %7552  ;;  %v8535_v38 = vmul.f32 %v7551_v25, %v674_v31 }
 0x2f7   : > { %v8537_v36 = vmul.f32 %v7553_v9, %v675_v3 }
 0x2f8   : > { %12196 = vst [vmem:[#allocation22_spill] sm:$0xff] %v8535_v38 }
 0x2f9   : > { %12197 = vst [vmem:[#allocation23_spill] sm:$0xff] %v8537_v36  ;;  %v727_v56 = vpack.c.bf16 %v8537_v36, %v8535_v38 }
 0x2fb   : > { %6895 = vmatmul.mubr.msk.bf16.gmra.mrb[8].mxu1 %vm744_vm1, %v727_v56 }
 0x38a   : > { %v6904_v60 = vpop.f32.mrb[4].mxu0 }
 0x38b   : > { %v888_v2 = vpop.f32.mrb[5].mxu0  ;;  %v897_v44 = vadd.f32 %v6904_v60, %v829_v61 }
 0x38c   : > { %v889_v31 = vadd.f32 %v888_v2, %v829_v61  ;;  %v6905_v3 = vpop.f32.mrb[6].mxu0 }
 0x38d   : > { %v900_v49 = vadd.f32 %v6905_v3, %v829_v61  ;;  %v891_v13 = vpop.f32.mrb[7].mxu0 }
 0x38e   : > { %v892_v5 = vadd.f32 %v891_v13, %v829_v61  ;;  %6918 = vmatprep.mubr.msk.f32.mxu1 %vm744_vm1, %v889_v31 }
 0x38f   : > { %v8569_v23 = vpack.i.bf16 %v900_v49, %v897_v44  ;;  %v8571_v20 = vpack.c.bf16 %v900_v49, %v897_v44 }
 0x390   : > { %6919 = vmatmul.mubr.msk.f32.vlgmr.msra.gmra.mrb[12].mxu1 %vm744_vm1, %v892_v5  ;;  %v8574_v24 = vpack.c.bf16 %v892_v5, %v889_v31  ;;  %v8576_v45 = vpack.i.bf16 %v892_v5, %v889_v31 }
 0x391   : > { %12198 = vst [vmem:[#allocation24_spill] sm:$0xff] %v8571_v20  ;;  %6921 = vmatprep.mubr.msk.f32.mxu1 %vm744_vm1, %v897_v44  ;;  %7265 = vmatpush3.bf16.msra.mxu1 %v7262_v57 }
 0x392   : > { %12199 = vst [vmem:[#allocation25_spill] sm:$0xff] %v8574_v24  ;;  %7267 = vmatprep.subr.bf16.mxu1 %v7266_v6 }
 0x394   : > { %6922 = vmatmul.mubr.msk.f32.gmra.mrb[14].mxu1 %vm744_vm1, %v900_v49 }
 0x395   : > { %7269 = vmatpush3.bf16.msra.mxu1 %v7266_v6 }
 0x396   : > { %7271 = vmatprep.subr.bf16.mxu1 %v7270_v19 }
 0x399   : > { %7273 = vmatpush3.bf16.msra.mxu1 %v7270_v19 }
 0x39a   : > { %v6908_v46 = vpop.f32.mrb[8].mxu0  ;;  %7275 = vmatprep.subr.bf16.mxu1 %v7274_v0 }
 0x39b   : > { %v904_v47 = vpop.f32.mrb[9].mxu0  ;;  %v913_v29 = vadd.f32 %v6908_v46, %v829_v61 }
 0x39c   : > { %v905_v48 = vadd.f32 %v904_v47, %v829_v61  ;;  %v6909_v54 = vpop.f32.mrb[10].mxu0 }
 0x39d   : > { %v916_v53 = vadd.f32 %v6909_v54, %v829_v61  ;;  %v907_v25 = vpop.f32.mrb[11].mxu0  ;;  %7277 = vmatpush3.bf16.msra.mxu1 %v7274_v0 }
 0x39e   : > { %v908_v9 = vadd.f32 %v907_v25, %v829_v61  ;;  %6924 = vmatprep.mubr.msk.f32.mxu1 %vm744_vm1, %v905_v48 }
 0x39f   : > { %v8587_v56 = vpack.i.bf16 %v916_v53, %v913_v29  ;;  %v8589_v33 = vpack.c.bf16 %v916_v53, %v913_v29 }
 0x3a0   : > { %6925 = vmatmul.mubr.msk.f32.gmra.mrb[16].mxu1 %vm744_vm1, %v908_v9  ;;  %v8592_v43 = vpack.i.bf16 %v908_v9, %v905_v48  ;;  %v8594_v41 = vpack.c.bf16 %v908_v9, %v905_v48 }
 0x3a1   : > { %12200 = vst [vmem:[#allocation26_spill] sm:$0xff] %v8589_v33  ;;  %6927 = vmatprep.mubr.msk.f32.mxu1 %vm744_vm1, %v913_v29  ;;  %v1181_v29 = vrot.slane %v8269_v10, %v8315_v12 }
 0x3a2   : > { %12201 = vst [vmem:[#allocation27_spill] sm:$0xff] %v8594_v41 }
 0x3a4   : > { %6928 = vmatmul.mubr.msk.f32.gmra.mrb[18].mxu1 %vm744_vm1, %v916_v53 }
 0x3b8   : > { %v6892_v39 = vpop.f32.mrb[4].mxu1 }
 0x3b9   : > { %v791_v57 = vpop.f32.mrb[5].mxu1  ;;  %v800_v2 = vadd.f32 %v6892_v39, %v731_v59 }
 0x3ba   : > { %v792_v61 = vadd.f32 %v791_v57, %v731_v59  ;;  %v6893_v60 = vpop.f32.mrb[6].mxu1 }
 0x3bb   : > { %v803_v27 = vadd.f32 %v6893_v60, %v731_v59  ;;  %v794_v42 = vpop.f32.mrb[7].mxu1 }
 0x3bc   : > { %v795_v31 = vadd.f32 %v794_v42, %v731_v59  ;;  %6946 = vmatprep.mubr.msk.f32.mxu1 %vm1048_vm5, %v792_v61 }
 0x3bd   : > { %v8601_v3 = vpack.i.bf16 %v803_v27, %v800_v2  ;;  %v8603_v44 = vpack.c.bf16 %v803_v27, %v800_v2 }
 0x3be   : > { %6947 = vmatmul.mubr.msk.f32.vlgmr.msra.gmra.mrb[12].mxu1 %vm1048_vm5, %v795_v31  ;;  %v8606_v49 = vpack.i.bf16 %v795_v31, %v792_v61  ;;  %v8608_v13 = vpack.c.bf16 %v795_v31, %v792_v61 }
 0x3bf   : > { %6949 = vmatprep.mubr.msk.f32.mxu1 %vm1048_vm5, %v800_v2 }
 0x3c2   : > { %6950 = vmatmul.mubr.msk.f32.gmra.mrb[14].mxu1 %vm1048_vm5, %v803_v27 }
 0x3ce   : > { %v6896_v5 = vpop.f32.mrb[8].mxu1 }
 0x3cf   : > { %v807_v6 = vpop.f32.mrb[9].mxu1  ;;  %v816_v19 = vadd.f32 %v6896_v5, %v731_v59 }
 0x3d0   : > { %v808_v7 = vadd.f32 %v807_v6, %v731_v59  ;;  %v6897_v21 = vpop.f32.mrb[10].mxu1 }
 0x3d1   : > { %v819_v51 = vadd.f32 %v6897_v21, %v731_v59  ;;  %v810_v40 = vpop.f32.mrb[11].mxu1 }
 0x3d2   : > { %v811_v0 = vadd.f32 %v810_v40, %v731_v59  ;;  %6952 = vmatprep.mubr.msk.f32.mxu1 %vm1048_vm5, %v808_v7 }
 0x3d3   : > { %v8613_v46 = vpack.i.bf16 %v819_v51, %v816_v19  ;;  %v8615_v47 = vpack.c.bf16 %v819_v51, %v816_v19 }
 0x3d4   : > { %6953 = vmatmul.mubr.msk.f32.gmra.mrb[16].mxu1 %vm1048_vm5, %v811_v0  ;;  %v8618_v48 = vpack.i.bf16 %v811_v0, %v808_v7  ;;  %v8620_v54 = vpack.c.bf16 %v811_v0, %v808_v7 }
 0x3d5   : > { %6955 = vmatprep.mubr.msk.f32.mxu1 %vm1048_vm5, %v816_v19 }
 0x3d8   : > { %6956 = vmatmul.mubr.msk.f32.gmra.mrb[18].mxu1 %vm1048_vm5, %v819_v51 }
 0x491   : > { %v6948_v53 = vpop.f32.mrb[12].mxu1 }
 0x492   : > { %v8626_v25 = vadd.f32 %v6948_v53, %v1181_v29  ;;  %v1139_v9 = vpop.f32.mrb[13].mxu1 }
 0x493   : > { %v8628_v59 = vadd.f32 %v1181_v29, %v1139_v9 }
 0x494   : > { %v1199_v39 = vand.u32 2147483647, %v8626_v25 }
 0x495   : > { %v1198_v57 = vand.u32 2147483647, %v8628_v59  ;;  %v6951_v61 = vpop.f32.mrb[14].mxu1 }
 0x496   : > { %v1207_v60 = vsub.f32 0.0, %v1199_v39  ;;  %v8632_v2 = vadd.f32 %v6951_v61, %v1181_v29  ;;  %v1149_v27 = vpop.f32.mrb[15].mxu1 }
 0x497   : > { %v1206_v42 = vsub.f32 0.0, %v1198_v57  ;;  %v8634_v31 = vadd.f32 %v1181_v29, %v1149_v27 }
 0x498   : > { %v1216_v5 = vmul.f32 1.442695, %v1207_v60  ;;  %v1201_v10 = vand.u32 2147483647, %v8632_v2 }
 0x499   : > { %v1214_v6 = vmul.f32 1.442695, %v1206_v42  ;;  %v1200_v7 = vand.u32 2147483647, %v8634_v31 }
 0x49a   : > { %7554 = vpow2.f32 %v1216_v5  ;;  %v1209_v21 = vsub.f32 0.0, %v1201_v10 }
 0x49b   : > { %7556 = vpow2.f32 %v1214_v6  ;;  %v1208_v19 = vsub.f32 0.0, %v1200_v7 }
 0x49c   : > { %v1220_v51 = vmul.f32 1.442695, %v1209_v21 }
 0x49d   : > { %v1218_v40 = vmul.f32 1.442695, %v1208_v19 }
 0x49e   : > { %7558 = vpow2.f32 %v1220_v51 }
 0x49f   : > { %7560 = vpow2.f32 %v1218_v40 }
 0x4a4   : > { %v7555_v0 = vpop.eup %7554 }
 0x4a5   : > { %v7557_v53 = vpop.eup %7556  ;;  %v1231_v9 = vadd.f32 1.0, %v7555_v0 }
 0x4a6   : > { %v1230_v39 = vadd.f32 1.0, %v7557_v53 }
 0x4a7   : > { %7562 = vlog2.f32 %v1231_v9  ;;  %v6954_v57 = vpop.f32.mrb[16].mxu1 }
 0x4a8   : > { %v7559_v61 = vpop.eup %7558  ;;  %7564 = vlog2.f32 %v1230_v39  ;;  %v8638_v60 = vadd.f32 %v6954_v57, %v1181_v29  ;;  %v1159_v27 = vpop.f32.mrb[17].mxu1 }
 0x4a9   : > { %v7561_v42 = vpop.eup %7560  ;;  %v1233_v5 = vadd.f32 1.0, %v7559_v61  ;;  %v8640_v10 = vadd.f32 %v1181_v29, %v1159_v27 }
 0x4aa   : > { %v1232_v6 = vadd.f32 1.0, %v7561_v42  ;;  %v1203_v7 = vand.u32 2147483647, %v8638_v60 }
 0x4ab   : > { %7566 = vlog2.f32 %v1233_v5  ;;  %v1202_v21 = vand.u32 2147483647, %v8640_v10  ;;  %v6957_v19 = vpop.f32.mrb[18].mxu1 }
 0x4ac   : > { %7568 = vlog2.f32 %v1232_v6  ;;  %v1211_v51 = vsub.f32 0.0, %v1203_v7  ;;  %v8644_v40 = vadd.f32 %v6957_v19, %v1181_v29  ;;  %v1169_v0 = vpop.f32.mrb[19].mxu1  ;;  %v1191_v6 = vmin.f32 %v8626_v25, 0.0 }
 0x4ad   : > { %v1210_v53 = vsub.f32 0.0, %v1202_v21  ;;  %v8646_v9 = vadd.f32 %v1181_v29, %v1169_v0  ;;  %v1190_v21 = vmin.f32 %v8628_v59, 0.0 }
 0x4ae   : > { %v1224_v39 = vmul.f32 1.442695, %v1211_v51  ;;  %v1205_v57 = vand.u32 2147483647, %v8644_v40 }
 0x4af   : > { %v1222_v61 = vmul.f32 1.442695, %v1210_v53  ;;  %v1204_v27 = vand.u32 2147483647, %v8646_v9 }
 0x4b0   : > { %7570 = vpow2.f32 %v1224_v39  ;;  %v1213_v42 = vsub.f32 0.0, %v1205_v57  ;;  %v1193_v39 = vmin.f32 %v8632_v2, 0.0 }
 0x4b1   : > { %v7563_v5 = vpop.eup %7562  ;;  %7572 = vpow2.f32 %v1222_v61  ;;  %v1212_v63 = vsub.f32 0.0, %v1204_v27  ;;  %v1192_v61 = vmin.f32 %v8634_v31, 0.0 }
 0x4b2   : > { %v7565_v1 = vpop.eup %7564  ;;  %v1228_v7 = vmul.f32 1.442695, %v1213_v42  ;;  %v1241_v19 = vmul.f32 0.6931472, %v7563_v5 }
 0x4b3   : > { %v1226_v29 = vmul.f32 1.442695, %v1212_v63  ;;  %v1239_v0 = vmul.f32 0.6931472, %v7565_v1 }
 0x4b4   : > { %7574 = vpow2.f32 %v1228_v7  ;;  %v1255_v51 = vsub.f32 %v1191_v6, %v1241_v19 }
 0x4b5   : > { %v7567_v38 = vpop.eup %7566  ;;  %7576 = vpow2.f32 %v1226_v29  ;;  %v1254_v53 = vsub.f32 %v1190_v21, %v1239_v0 }
 0x4b6   : > { %v7569_v36 = vpop.eup %7568  ;;  %v1245_v57 = vmul.f32 0.6931472, %v7567_v38 }
 0x4b7   : > { %v7359_v27 = vpack.i.bf16 %v1255_v51, %v1254_v53  ;;  %v1243_v50 = vmul.f32 0.6931472, %v7569_v36  ;;  %v1194_v51 = vmin.f32 %v8640_v10, 0.0 }
 0x4b8   : > { %v1257_v52 = vsub.f32 %v1193_v39, %v1245_v57 }
 0x4b9   : > { %7360 = vrot.lane.b32.xlu1 %v7359_v27, %s8141_s16  ;;  %v1256_v42 = vsub.f32 %v1192_v61, %v1243_v50 }
 0x4ba   : > { %v7571_v63 = vpop.eup %7570 }
 0x4bb   : > { %v7573_v1 = vpop.eup %7572  ;;  %v1235_v5 = vadd.f32 1.0, %v7571_v63  ;;  %v7364_v6 = vpack.i.bf16 %v1257_v52, %v1256_v42  ;;  %v1195_v52 = vmin.f32 %v8638_v60, 0.0  ;;  %v1197_v42 = vmin.f32 %v8644_v40, 0.0 }
 0x4bc   : > { %v1234_v7 = vadd.f32 1.0, %v7573_v1  ;;  %v12202_v1 = vlaneseq }
 0x4bd   : > { %7578 = vlog2.f32 %v1235_v5  ;;  %7365 = vrot.lane.b32.xlu0 %v7364_v6, %s8141_s16  ;;  %v1196_v6 = vmin.f32 %v8646_v9, 0.0 }
 0x4be   : > { %v7575_v19 = vpop.eup %7574  ;;  %7580 = vlog2.f32 %v1234_v7  ;;  %v8666_v5 = vand.u32 127, %v12202_v1 }
 0x4bf   : > { %v7577_v38 = vpop.eup %7576  ;;  %v1237_v21 = vadd.f32 1.0, %v7575_v19 }
 0x4c0   : > { %v1236_v29 = vadd.f32 1.0, %v7577_v38  ;;  %vm8673_vm6 = vcmp.ge.s32.totalorder %v8261_v4, %v8666_v5 }
 0x4c1   : > { %7582 = vlog2.f32 %v1237_v21  ;;  %7370 = vrot.lane.b32.xlu0 %v8606_v49, %s8141_s16  ;;  %v12203_v21 = vmov 0 }
 0x4c2   : > { %7584 = vlog2.f32 %v1236_v29  ;;  %v12204_v21 = vsel %vm8673_vm6, 4294967295, %v12203_v21 }
 0x4c3   : > { %12205 = vst [vmem:[#allocation28_spill] sm:$0xff] %v12204_v21 }
 0x4c5   : > { %7375 = vrot.lane.b32.xlu0 %v8601_v3, %s8141_s16 }
 0x4c7   : > { %v7579_v50 = vpop.eup %7578 }
 0x4c8   : > { %v7581_v36 = vpop.eup %7580  ;;  %v1249_v0 = vmul.f32 0.6931472, %v7579_v50  ;;  %v8142_v50 = vmov 0.0  }
 0x4c9   : > { %7380 = vrot.lane.b32.xlu0 %v8618_v48, %s8141_s16  ;;  %v1247_v53 = vmul.f32 0.6931472, %v7581_v36  ;;  %v6591_v36 = vsel %vm8673_vm6, 1.0, %v8142_v50 }
 0x4ca   : > { %v1259_v39 = vsub.f32 %v1195_v52, %v1249_v0  ;;  %6974 = vmatprep.mubr.msk.f32.mxu0 %vm1048_vm5, %v6591_v36 }
 0x4cb   : > { %v7583_v57 = vpop.eup %7582  ;;  %v1258_v61 = vsub.f32 %v1194_v51, %v1247_v53 }
 0x4cc   : > { %v7585_v27 = vpop.eup %7584  ;;  %v1253_v63 = vmul.f32 0.6931472, %v7583_v57 }
 0x4cd   : > { %v7389_v7 = vpack.i.bf16 %v1259_v39, %v1258_v61  ;;  %7385 = vrot.lane.b32.xlu0 %v8613_v46, %s8141_s16  ;;  %v1251_v19 = vmul.f32 0.6931472, %v7585_v27 }
 0x4ce   : > { %v1261_v38 = vsub.f32 %v1197_v42, %v1253_v63 }
 0x4cf   : > { %7390 = vrot.lane.b32.xlu1 %v7389_v7, %s8141_s16  ;;  %v1260_v29 = vsub.f32 %v1196_v6, %v1251_v19 }
 0x4d1   : > { %v7394_v52 = vpack.i.bf16 %v1261_v38, %v1260_v29  ;;  %2132 = vrot.lane.b32.xlu0 %v8608_v13, %s8143_s17 }
 0x4d3   : > { %7395 = vrot.lane.b32.xlu1 %v7394_v52, %s8141_s16 }
 0x4d5   : > { %2134 = vrot.lane.b32.xlu0 %v8603_v44, %s8143_s17 }
 0x4d9   : > { %2136 = vrot.lane.b32.xlu0 %v8620_v54, %s8143_s17 }
 0x4dd   : > { %2138 = vrot.lane.b32.xlu0 %v8615_v47, %s8143_s17 }
 0x4fc   : > { %1490 = vxpose.xlu1.b32.start [1/8] (short) (narrow) %v8628_v59, 8 }
 0x500   : > { %1491 = vxpose.xlu1.b32.cont [2/8] (short) (narrow) %v8626_v25, 8 }
 0x504   : > { %1492 = vxpose.xlu1.b32.cont [3/8] (short) (narrow) %v8634_v31, 8 }
 0x508   : > { %1493 = vxpose.xlu1.b32.cont [4/8] (short) (narrow) %v8632_v2, 8 }
 0x50c   : > { %1494 = vxpose.xlu1.b32.cont [5/8] (short) (narrow) %v8640_v10, 8 }
 0x510   : > { %1495 = vxpose.xlu1.b32.cont [6/8] (short) (narrow) %v8638_v60, 8 }
 0x514   : > { %1496 = vxpose.xlu1.b32.cont [7/8] (short) (narrow) %v8646_v9, 8 }
 0x518   : > { %1497 = vxpose.xlu1.b32.end [8/8] (short) (narrow) %v8644_v40, 8 }
 0x52b   : > { %v7361_v0 = vpop.permute.xlu1 %7360 }
 0x52c   : > { %v7363_v51 = vunpack.i.h.bf16 %v7361_v0  ;;  %v7362_v53 = vunpack.i.l.bf16 %v7361_v0 }
 0x52e   : > { %v7278_v39 = vpack.c.bf16 %v7363_v51, %v7362_v53 }
 0x52f   : > { %v7366_v57 = vpop.permute.xlu0 %7365 }
 0x530   : > { %v7368_v59 = vunpack.i.h.bf16 %v7366_v57  ;;  %v7367_v61 = vunpack.i.l.bf16 %v7366_v57  ;;  %7279 = vmatprep.subr.bf16.mxu0 %v7278_v39 }
 0x531   : > { %7281 = vmatpush3.bf16.msra.mxu0 %v7278_v39  ;;  %v1264_v39 = vadd.s32 8, %v8261_v4 }
 0x532   : > { %v7282_v25 = vpack.c.bf16 %v7368_v59, %v7367_v61  ;;  %v1265_v59 = vadd.s32 16, %v8261_v4 }
 0x533   : > { %v7371_v31 = vpop.permute.xlu0 %7370  ;;  %vm8730_vm7 = vcmp.ge.s32.totalorder %v1264_v39, %v8666_v5 }
 0x534   : > { %v7373_v2 = vunpack.i.h.bf16 %v7371_v31  ;;  %v7372_v27 = vunpack.i.l.bf16 %v7371_v31  ;;  %7283 = vmatprep.subr.bf16.mxu0 %v7282_v25  ;;  %vm8736_vm8 = vcmp.ge.s32.totalorder %v1265_v59, %v8666_v5 }
 0x535   : > { %7285 = vmatpush3.bf16.msra.mxu0 %v7282_v25 }
 0x536   : > { %7400 = vrot.lane.b32.xlu1 %v8606_v49, %s8144_s21  ;;  %v8701_v60 = vpack.c.bf16 %v7373_v2, %v7372_v27  ;;  %v12206_v2 = vmov 0  ;;  %v1266_v27 = vadd.s32 24, %v8261_v4 }
 0x537   : > { %v7376_v10 = vpop.permute.xlu0 %7375  ;;  %v12207_v2 = vsel %vm8730_vm7, 4294967295, %v12206_v2 }
 0x538   : > { %v7378_v40 = vunpack.i.h.bf16 %v7376_v10  ;;  %v7377_v9 = vunpack.i.l.bf16 %v7376_v10  ;;  %2335 = vrot.lane.b32.xlu0 %v8701_v60, %s8143_s17  ;;  %12208 = vst [vmem:[#allocation29_spill] sm:$0xff] %v12207_v2  ;;  %v12209_v10 = vmov 0  ;;  %vm8753_vm10 = vcmp.ge.s32.totalorder %v1266_v27, %v8666_v5 }
 0x539   : > { %v12210_v10 = vsel %vm8736_vm8, 4294967295, %v12209_v10 }
 0x53a   : > { %7405 = vrot.lane.b32.xlu1 %v8601_v3, %s8144_s21  ;;  %v8707_v42 = vpack.c.bf16 %v7378_v40, %v7377_v9  ;;  %12211 = vst [vmem:[#allocation30_spill] sm:$0xff] %v12210_v10  ;;  %v1267_v40 = vadd.s32 32, %v8261_v4  ;;  %v6592_v9 = vsel %vm8730_vm7, 1.0, %v8142_v50 }
 0x53b   : > { %v7381_v63 = vpop.permute.xlu0 %7380 }
 0x53c   : > { %v7383_v1 = vunpack.i.h.bf16 %v7381_v63  ;;  %v7382_v6 = vunpack.i.l.bf16 %v7381_v63  ;;  %2337 = vrot.lane.b32.xlu0 %v8707_v42, %s8143_s17  ;;  %v6593_v63 = vsel %vm8736_vm8, 1.0, %v8142_v50  ;;  %vm8759_vm11 = vcmp.ge.s32.totalorder %v1267_v40, %v8666_v5 }
 0x53e   : > { %7410 = vrot.lane.b32.xlu1 %v8618_v48, %s8144_s21  ;;  %v8713_v7 = vpack.c.bf16 %v7383_v1, %v7382_v6  ;;  %v1268_v1 = vadd.s32 40, %v8261_v4  ;;  %v12215_v6 = vmov 0 }
 0x53f   : > { %v7386_v19 = vpop.permute.xlu0 %7385  ;;  %v12216_v6 = vsel %vm8759_vm11, 4294967295, %v12215_v6 }
 0x540   : > { %v7388_v38 = vunpack.i.h.bf16 %v7386_v19  ;;  %v7387_v29 = vunpack.i.l.bf16 %v7386_v19  ;;  %2339 = vrot.lane.b32.xlu0 %v8713_v7, %s8143_s17  ;;  %12217 = vst [vmem:[#allocation32_spill] sm:$0xff] %v12216_v6  ;;  %v1269_v19 = vadd.s32 48, %v8261_v4  ;;  %vm8777_vm12 = vcmp.ge.s32.totalorder %v1268_v1, %v8666_v5 }
 0x541   : > { %v7391_v36 = vpop.permute.xlu1 %7390 }
 0x542   : > { %v7393_v52 = vunpack.i.h.bf16 %v7391_v36  ;;  %v7392_v0 = vunpack.i.l.bf16 %v7391_v36  ;;  %7415 = vrot.lane.b32.xlu1 %v8613_v46, %s8144_s21  ;;  %v8719_v51 = vpack.c.bf16 %v7388_v38, %v7387_v29  ;;  %v6594_v38 = vsel %vm8753_vm10, 1.0, %v8142_v50 }
 0x543   : > { %v6595_v29 = vsel %vm8759_vm11, 1.0, %v8142_v50  ;;  %v12218_v36 = vmov 0  ;;  %vm8783_vm13 = vcmp.ge.s32.totalorder %v1269_v19, %v8666_v5 }
 0x544   : > { %v7286_v53 = vpack.c.bf16 %v7393_v52, %v7392_v0  ;;  %2341 = vrot.lane.b32.xlu0 %v8719_v51, %s8143_s17  ;;  %v12219_v36 = vsel %vm8777_vm12, 4294967295, %v12218_v36  ;;  %v12221_v52 = vmov 0 }
 0x545   : > { %v7396_v57 = vpop.permute.xlu1 %7395  ;;  %12220 = vst [vmem:[#allocation33_spill] sm:$0xff] %v12219_v36  ;;  %v12222_v52 = vsel %vm8783_vm13, 4294967295, %v12221_v52 }
 0x546   : > { %v7398_v61 = vunpack.i.h.bf16 %v7396_v57  ;;  %v7397_v25 = vunpack.i.l.bf16 %v7396_v57  ;;  %7287 = vmatprep.subr.bf16.mxu0 %v7286_v53  ;;  %7420 = vrot.lane.b32.xlu1 %v8606_v49, %s8145_s22  ;;  %v2133_v49 = vpop.permute.xlu0 %2132  ;;  %12223 = vst [vmem:[#allocation34_spill] sm:$0xff] %v12222_v52  ;;  %v6597_v57 = vsel %vm8783_vm13, 1.0, %v8142_v50 }
 0x547   : > { %7289 = vmatpush3.bf16.msra.mxu0 %v7286_v53  ;;  %v2154_v0 = vsel %vm2140_vm9, %v2133_v49, 0  ;;  %v6596_v53 = vsel %vm8777_vm12, 1.0, %v8142_v50 }
 0x548   : > { %v7290_v31 = vpack.c.bf16 %v7398_v61, %v7397_v25  ;;  %7445 = vrot.lane.b32.xlu0 %v8569_v23, %s8144_s21 }
 0x54a   : > { %7425 = vrot.lane.b32.xlu1 %v8601_v3, %s8145_s22  ;;  %7291 = vmatprep.subr.bf16.mxu0 %v7290_v31  ;;  %v12212_v3 = vmov 0  ;;  %v2135_v39 = vpop.permute.xlu0 %2134 }
 0x54b   : > { %7293 = vmatpush3.bf16.msra.mxu0 %v7290_v31  ;;  %v12213_v3 = vsel %vm8753_vm10, 4294967295, %v12212_v3 }
 0x54c   : > { %7304 = vmatprep.subr.msk.bf16.mxu0 %vm2140_vm9, %v2133_v49  ;;  %7455 = vrot.lane.b32.xlu0 %v8587_v56, %s8144_s21  ;;  %12214 = vst [vmem:[#allocation31_spill] sm:$0xff] %v12213_v3 }
 0x54e   : > { %7430 = vrot.lane.b32.xlu1 %v8618_v48, %s8145_s22  ;;  %6975 = vmatmul.mubr.msk.f32.vlgmr.msra.gmra.mrb[12].mxu0 %vm1048_vm5, %v6592_v9  ;;  %v1270_v48 = vadd.s32 56, %v8261_v4  ;;  %v2137_v61 = vpop.permute.xlu0 %2136 }
 0x54f   : > { %6977 = vmatprep.mubr.msk.f32.mxu0 %vm1048_vm5, %v6593_v63  ;;  %v2160_v25 = vsel %vm2140_vm9, %v2137_v61, 0 }
 0x550   : > { %7470 = vrot.lane.b32.xlu0 %v8569_v23, %s8141_s16  ;;  %vm8801_vm14 = vcmp.ge.s32.totalorder %v1270_v48, %v8666_v5  ;;  %v2157_v5 = vsel %vm2140_vm9, %v2135_v39, 0 }
 0x551   : > { %v6598_v59 = vsel %vm8801_vm14, 1.0, %v8142_v50 }
 0x552   : > { %7435 = vrot.lane.b32.xlu1 %v8613_v46, %s8145_s22  ;;  %6978 = vmatmul.mubr.msk.f32.gmra.mrb[14].mxu0 %vm1048_vm5, %v6594_v38  ;;  %v12224_v46 = vmov 0  ;;  %v2139_v50 = vpop.permute.xlu0 %2138 }
 0x553   : > { %6980 = vmatprep.mubr.msk.f32.mxu0 %vm1048_vm5, %v6595_v29  ;;  %v12225_v46 = vsel %vm8801_vm14, 4294967295, %v12224_v46  ;;  %v2163_v31 = vsel %vm2140_vm9, %v2139_v50, 0 }
 0x554   : > { %6987 = vmatpush3.bf16.xpose.msra.mxu0 %v2154_v0  ;;  %7480 = vrot.lane.b32.xlu0 %v8592_v43, %s8141_s16  ;;  %12226 = vst [vmem:[#allocation35_spill] sm:$0xff] %v12225_v46 }
 0x555   : > { %7305 = vmatprep.subr.msk.bf16.mxu0 %vm2140_vm9, %v2135_v39 }
 0x556   : > { %6981 = vmatmul.mubr.msk.f32.gmra.mrb[16].mxu0 %vm1048_vm5, %v6596_v53 }
 0x557   : > { %6983 = vmatprep.mubr.msk.f32.mxu0 %vm1048_vm5, %v6597_v57 }
 0x558   : > { %7490 = vrot.lane.b32.xlu0 %v8587_v56, %s8141_s16 }
 0x55a   : > { %6984 = vmatmul.mubr.msk.f32.gmra.mrb[18].mxu0 %vm1048_vm5, %v6598_v59 }
 0x55b   : > { %6994 = vmatprep.mubr.msk.bf16.mxu0 %vm2140_vm9, %v8608_v13 }
 0x55c   : > { %6989 = vmatpush3.bf16.xpose.msra.mxu0 %v2157_v5  ;;  %7495 = vrot.lane.b32.xlu0 %v8587_v56, %s8145_s22 }
 0x55d   : > { %7306 = vmatprep.subr.msk.bf16.mxu0 %vm2140_vm9, %v2137_v61 }
 0x564   : > { %6991 = vmatpush3.bf16.xpose.msra.mxu0 %v2160_v25 }
 0x565   : > { %7307 = vmatprep.subr.msk.bf16.mxu0 %vm2140_vm9, %v2139_v50 }
 0x56c   : > { %6993 = vmatpush3.bf16.xpose.msra.mxu0 %v2163_v31 }
 0x573   : > { %6995 = vmatmul.mubr.msk.bf16.vlgmr.msra.gmra.mrb[20].mxu0 %vm2140_vm9, %v8603_v44 }
 0x574   : > { %6998 = vmatprep.mubr.msk.bf16.mxu0 %vm2140_vm9, %v8620_v54 }
 0x57b   : > { %6999 = vmatmul.mubr.msk.bf16.gmra.mrb[24].mxu0 %vm2140_vm9, %v8615_v47 }
 0x57c   : > { %7026 = vmatprep.mubr.msk.bf16.mxu0 %vm2140_vm9, %v8701_v60  ;;  %v8831_v56 = vpop.trf.xlu1 }
 0x57d   : > { %12227 = vst [vmem:[#allocation36_spill] sm:$0xff] %v8831_v56 }
 0x5a8   : > { %v7401_v27 = vpop.permute.xlu1 %7400 }
 0x5a9   : > { %v7403_v40 = vunpack.i.h.bf16 %v7401_v27  ;;  %v7402_v49 = vunpack.i.l.bf16 %v7401_v27 }
 0x5aa   : > { %v2336_v9 = vpop.permute.xlu0 %2335 }
 0x5ab   : > { %v8833_v63 = vpack.c.bf16 %v7403_v40, %v7402_v49  ;;  %7312 = vmatprep.subr.msk.bf16.mxu0 %vm2140_vm9, %v2336_v9  ;;  %v2356_v1 = vsel %vm2140_vm9, %v2336_v9, 0 }
 0x5ac   : > { %v7406_v19 = vpop.permute.xlu1 %7405  ;;  %7019 = vmatpush3.bf16.xpose.msra.mxu0 %v2356_v1 }
 0x5ad   : > { %v7408_v38 = vunpack.i.h.bf16 %v7406_v19  ;;  %v7407_v29 = vunpack.i.l.bf16 %v7406_v19  ;;  %2234 = vrot.lane.b32.xlu1 %v8833_v63, %s8143_s17  ;;  %7010 = vmatprep.mubr.msk.bf16.mxu1 %vm2140_vm9, %v8833_v63 }
 0x5ae   : > { %v2338_v48 = vpop.permute.xlu0 %2337 }
 0x5af   : > { %v8841_v0 = vpack.c.bf16 %v7408_v38, %v7407_v29  ;;  %7313 = vmatprep.subr.msk.bf16.mxu0 %vm2140_vm9, %v2338_v48  ;;  %v2359_v5 = vsel %vm2140_vm9, %v2338_v48, 0 }
 0x5b0   : > { %v7411_v53 = vpop.permute.xlu1 %7410 }
 0x5b1   : > { %v7413_v39 = vunpack.i.h.bf16 %v7411_v53  ;;  %v7412_v57 = vunpack.i.l.bf16 %v7411_v53  ;;  %2236 = vrot.lane.b32.xlu1 %v8841_v0, %s8143_s17 }
 0x5b2   : > { %v2340_v31 = vpop.permute.xlu0 %2339 }
 0x5b3   : > { %v8846_v59 = vpack.c.bf16 %v7413_v39, %v7412_v57  ;;  %v2362_v19 = vsel %vm2140_vm9, %v2340_v31, 0 }
 0x5b4   : > { %v7416_v61 = vpop.permute.xlu1 %7415  ;;  %7021 = vmatpush3.bf16.xpose.msra.mxu0 %v2359_v5 }
 0x5b5   : > { %v7418_v25 = vunpack.i.h.bf16 %v7416_v61  ;;  %v7417_v50 = vunpack.i.l.bf16 %v7416_v61  ;;  %4325 = vrot.lane.b32.xlu0 %v8846_v59, %s8146_s24  ;;  %2238 = vrot.lane.b32.xlu1 %v8846_v59, %s8143_s17 }
 0x5b6   : > { %7314 = vmatprep.subr.msk.bf16.mxu0 %vm2140_vm9, %v2340_v31  ;;  %v2342_v29 = vpop.permute.xlu0 %2341 }
 0x5b7   : > { %v8854_v27 = vpack.c.bf16 %v7418_v25, %v7417_v50  ;;  %v2365_v50 = vsel %vm2140_vm9, %v2342_v29, 0 }
 0x5b8   : > { %v7421_v40 = vpop.permute.xlu1 %7420 }
 0x5b9   : > { %v7423_v49 = vunpack.i.h.bf16 %v7421_v40  ;;  %v7422_v9 = vunpack.i.l.bf16 %v7421_v40  ;;  %4313 = vrot.lane.b32.xlu0 %v8833_v63, %s8147_s25  ;;  %2240 = vrot.lane.b32.xlu1 %v8854_v27, %s8143_s17 }
 0x5bb   : > { %v8860_v1 = vpack.c.bf16 %v7423_v49, %v7422_v9 }
 0x5bc   : > { %v7426_v38 = vpop.permute.xlu1 %7425  ;;  %7023 = vmatpush3.bf16.xpose.msra.mxu0 %v2362_v19 }
 0x5bd   : > { %v7428_v48 = vunpack.i.h.bf16 %v7426_v38  ;;  %v7427_v53 = vunpack.i.l.bf16 %v7426_v38  ;;  %4315 = vrot.lane.b32.xlu0 %v8841_v0, %s8147_s25  ;;  %2436 = vrot.lane.b32.xlu1 %v8860_v1, %s8143_s17 }
 0x5be   : > { %7315 = vmatprep.subr.msk.bf16.mxu0 %vm2140_vm9, %v2342_v29 }
 0x5bf   : > { %v8868_v39 = vpack.c.bf16 %v7428_v48, %v7427_v53 }
 0x5c0   : > { %v7431_v57 = vpop.permute.xlu1 %7430 }
 0x5c1   : > { %v7433_v5 = vunpack.i.h.bf16 %v7431_v57  ;;  %v7432_v61 = vunpack.i.l.bf16 %v7431_v57  ;;  %4533 = vrot.lane.b32.xlu0 %v8868_v39, %s8146_s24  ;;  %2438 = vrot.lane.b32.xlu1 %v8868_v39, %s8143_s17 }
 0x5c3   : > { %v8874_v25 = vpack.c.bf16 %v7433_v5, %v7432_v61 }
 0x5c4   : > { %v7436_v31 = vpop.permute.xlu1 %7435  ;;  %7025 = vmatpush3.bf16.xpose.msra.mxu0 %v2365_v50 }
 0x5c5   : > { %v7438_v40 = vunpack.i.h.bf16 %v7436_v31  ;;  %v7437_v49 = vunpack.i.l.bf16 %v7436_v31  ;;  %4535 = vrot.lane.b32.xlu0 %v8874_v25, %s8146_s24  ;;  %2440 = vrot.lane.b32.xlu1 %v8874_v25, %s8143_s17 }
 0x5c6   : > { %7050 = vmatprep.subr.bf16.mxu0 %v8574_v24 }
 0x5c7   : > { %v8882_v9 = vpack.c.bf16 %v7438_v40, %v7437_v49 }
 0x5c9   : > { %4214 = vrot.lane.b32.xlu0 %v8615_v47, %s8147_s25  ;;  %2442 = vrot.lane.b32.xlu1 %v8882_v9, %s8143_s17 }
 0x5cb   : > { %7027 = vmatmul.mubr.msk.bf16.vlgmr.msra.gmra.mrb[28].mxu0 %vm2140_vm9, %v8707_v42 }
 0x5cc   : > { %7030 = vmatprep.mubr.msk.bf16.mxu0 %vm2140_vm9, %v8713_v7  ;;  %7051 = vmatpush3.bf16.msra.mxu0 %v8574_v24 }
 0x5cd   : > { %4432 = vrot.lane.b32.xlu0 %v8719_v51, %s8146_s24  ;;  %7440 = vrot.lane.b32.xlu1 %v8576_v45, %s8144_s21 }
 0x5ce   : > { %7052 = vmatprep.subr.bf16.mxu0 %v8571_v20 }
 0x5d0   : > { %7053 = vmatpush3.bf16.msra.mxu0 %v8571_v20 }
 0x5d1   : > { %4537 = vrot.lane.b32.xlu0 %v8882_v9, %s8146_s24  ;;  %7450 = vrot.lane.b32.xlu1 %v8592_v43, %s8144_s21  ;;  %s224_s21 = scalar_lea.vmem %s11979_s5, %s6679_s20 }
 0x5d2   : > { %7054 = vmatprep.subr.bf16.mxu0 %v8594_v41 }
 0x5d3   : > { %7031 = vmatmul.mubr.msk.bf16.gmra.mrb[32].mxu0 %vm2140_vm9, %v8719_v51 }
 0x5d4   : > { %7055 = vmatpush3.bf16.msra.mxu0 %v8594_v41 }
 0x5d5   : > { %4420 = vrot.lane.b32.xlu0 %v8707_v42, %s8147_s25  ;;  %7460 = vrot.lane.b32.xlu1 %v8576_v45, %s8141_s16 }
 0x5d6   : > { %7056 = vmatprep.subr.bf16.mxu0 %v8589_v33 }
 0x5d8   : > { %7057 = vmatpush3.bf16.msra.mxu0 %v8589_v33 }
 0x5d9   : > { %4525 = vrot.lane.b32.xlu0 %v8868_v39, %s8147_s25  ;;  %7465 = vrot.lane.b32.xlu1 %v8576_v45, %s8145_s22 }
 0x5dd   : > { %4424 = vrot.lane.b32.xlu0 %v8719_v51, %s8147_s25  ;;  %7475 = vrot.lane.b32.xlu1 %v8569_v23, %s8145_s22 }
 0x5e1   : > { %4529 = vrot.lane.b32.xlu0 %v8882_v9, %s8147_s25  ;;  %7485 = vrot.lane.b32.xlu1 %v8592_v43, %s8145_s22 }
 0x5e5   : > { %4216 = vrot.lane.b32.xlu1 %v8608_v13, %s8146_s24 }
 0x5e9   : > { %4321 = vrot.lane.b32.xlu1 %v8833_v63, %s8146_s24 }
 0x5ed   : > { %4218 = vrot.lane.b32.xlu1 %v8603_v44, %s8146_s24 }
 0x5f1   : > { %4323 = vrot.lane.b32.xlu1 %v8841_v0, %s8146_s24 }
 0x5f5   : > { %4220 = vrot.lane.b32.xlu1 %v8620_v54, %s8146_s24 }
 0x5f9   : > { %4222 = vrot.lane.b32.xlu1 %v8615_v47, %s8146_s24 }
 0x5fd   : > { %4327 = vrot.lane.b32.xlu1 %v8854_v27, %s8146_s24 }
 0x601   : > { %4208 = vrot.lane.b32.xlu1 %v8608_v13, %s8147_s25 }
 0x605   : > { %4426 = vrot.lane.b32.xlu1 %v8701_v60, %s8146_s24 }
 0x609   : > { %4210 = vrot.lane.b32.xlu1 %v8603_v44, %s8147_s25 }
 0x60d   : > { %4531 = vrot.lane.b32.xlu1 %v8860_v1, %s8146_s24 }
 0x611   : > { %4428 = vrot.lane.b32.xlu1 %v8707_v42, %s8146_s24 }
 0x615   : > { %4430 = vrot.lane.b32.xlu1 %v8713_v7, %s8146_s24 }
 0x619   : > { %4212 = vrot.lane.b32.xlu1 %v8620_v54, %s8147_s25 }
 0x61d   : > { %4317 = vrot.lane.b32.xlu1 %v8846_v59, %s8147_s25 }
 0x61f   : > { %v2235_v23 = vpop.permute.xlu1 %2234 }
 0x620   : > { %7308 = vmatprep.subr.msk.bf16.mxu1 %vm2140_vm9, %v2235_v23  ;;  %v2255_v45 = vsel %vm2140_vm9, %v2235_v23, 0 }
 0x621   : > { %4319 = vrot.lane.b32.xlu1 %v8854_v27, %s8147_s25  ;;  %v6976_v43 = vpop.f32.mrb[12].mxu0  ;;  %7003 = vmatpush3.bf16.xpose.msra.mxu1 %v2255_v45 }
 0x622   : > { %v1419_v44 = vpop.f32.mrb[13].mxu0 }
 0x623   : > { %v2237_v13 = vpop.permute.xlu1 %2236  ;;  %1458 = vxpose.xlu0.b32.start [1/8] (short) (narrow) %v1419_v44, 8 }
 0x624   : > { %7309 = vmatprep.subr.msk.bf16.mxu1 %vm2140_vm9, %v2237_v13  ;;  %v2258_v51 = vsel %vm2140_vm9, %v2237_v13, 0 }
 0x625   : > { %4418 = vrot.lane.b32.xlu1 %v8701_v60, %s8147_s25  ;;  %v6979_v47 = vpop.f32.mrb[14].mxu0 }
 0x626   : > { %v1429_v54 = vpop.f32.mrb[15].mxu0 }
 0x627   : > { %v2239_v42 = vpop.permute.xlu1 %2238  ;;  %1459 = vxpose.xlu0.b32.cont [2/8] (short) (narrow) %v6976_v43, 8 }
 0x628   : > { %v2261_v53 = vsel %vm2140_vm9, %v2239_v42, 0 }
 0x629   : > { %4523 = vrot.lane.b32.xlu1 %v8860_v1, %s8147_s25  ;;  %7005 = vmatpush3.bf16.xpose.msra.mxu1 %v2258_v51  ;;  %v6982_v63 = vpop.f32.mrb[16].mxu0 }
 0x62a   : > { %7310 = vmatprep.subr.msk.bf16.mxu1 %vm2140_vm9, %v2239_v42  ;;  %v1439_v19 = vpop.f32.mrb[17].mxu0 }
 0x62b   : > { %v2241_v38 = vpop.permute.xlu1 %2240  ;;  %1460 = vxpose.xlu0.b32.cont [3/8] (short) (narrow) %v1429_v54, 8 }
 0x62c   : > { %v2264_v61 = vsel %vm2140_vm9, %v2241_v38, 0 }
 0x62d   : > { %4422 = vrot.lane.b32.xlu1 %v8713_v7, %s8147_s25  ;;  %v6985_v60 = vpop.f32.mrb[18].mxu0  ;;  %v7446_v7 = vpop.permute.xlu0 %7445 }
 0x62e   : > { %v1449_v29 = vpop.f32.mrb[19].mxu0 }
 0x62f   : > { %v2437_v48 = vpop.permute.xlu1 %2436  ;;  %1461 = vxpose.xlu0.b32.cont [4/8] (short) (narrow) %v6979_v47, 8 }
 0x630   : > { %v2457_v40 = vsel %vm2140_vm9, %v2437_v48, 0 }
 0x631   : > { %4527 = vrot.lane.b32.xlu1 %v8874_v25, %s8147_s25  ;;  %7007 = vmatpush3.bf16.xpose.msra.mxu1 %v2261_v53  ;;  %v7456_v49 = vpop.permute.xlu0 %7455 }
 0x632   : > { %7311 = vmatprep.subr.msk.bf16.mxu1 %vm2140_vm9, %v2241_v38 }
 0x633   : > { %v2439_v57 = vpop.permute.xlu1 %2438  ;;  %1462 = vxpose.xlu0.b32.cont [5/8] (short) (narrow) %v1439_v19, 8 }
 0x635   : > { %v8982_v43 = vpop.permute.xlu0 %7470 }
 0x636   : > { %12228 = vst [vmem:[#allocation37_spill] sm:$0xff] %v8982_v43 }
 0x637   : > { %v2441_v5 = vpop.permute.xlu1 %2440  ;;  %1463 = vxpose.xlu0.b32.cont [6/8] (short) (narrow) %v6982_v63, 8 }
 0x638   : > { %v2463_v38 = vsel %vm2140_vm9, %v2441_v5, 0 }
 0x639   : > { %7009 = vmatpush3.bf16.xpose.msra.mxu1 %v2264_v61  ;;  %v8999_v63 = vpop.permute.xlu0 %7480 }
 0x63a   : > { %7316 = vmatprep.subr.msk.bf16.mxu1 %vm2140_vm9, %v2437_v48  ;;  %12230 = vst [vmem:[#allocation39_spill] sm:$0xff] %v8999_v63 }
 0x63b   : > { %v2443_v50 = vpop.permute.xlu1 %2442  ;;  %1464 = vxpose.xlu0.b32.cont [7/8] (short) (narrow) %v1449_v29, 8 }
 0x63d   : > { %v9011_v29 = vpop.permute.xlu0 %7490 }
 0x63e   : > { %12231 = vst [vmem:[#allocation40_spill] sm:$0xff] %v9011_v29 }
 0x63f   : > { %v7441_v31 = vpop.permute.xlu1 %7440  ;;  %1465 = vxpose.xlu0.b32.end [8/8] (short) (narrow) %v6985_v60, 8 }
 0x640   : > { %7011 = vmatmul.mubr.msk.bf16.vlgmr.msra.gmra.mrb[20].mxu1 %vm2140_vm9, %v8841_v0  ;;  %v2460_v0 = vsel %vm2140_vm9, %v2439_v57, 0  ;;  %v7443_v48 = vunpack.i.h.bf16 %v7441_v31  ;;  %v7442_v53 = vunpack.i.l.bf16 %v7441_v31  ;;  %v7458_v31 = vunpack.i.h.bf16 %v7456_v49 }
 0x641   : > { %7014 = vmatprep.mubr.msk.bf16.mxu1 %vm2140_vm9, %v8846_v59  ;;  %7035 = vmatpush3.bf16.xpose.msra.mxu1 %v2457_v40  ;;  %v9016_v40 = vpop.permute.xlu0 %7495 }
 0x642   : > { %7317 = vmatprep.subr.msk.bf16.mxu1 %vm2140_vm9, %v2439_v57  ;;  %v2466_v57 = vsel %vm2140_vm9, %v2443_v50, 0  ;;  %v9014_v61 = vpack.c.bf16 %v7443_v48, %v7442_v53  ;;  %12233 = vst [vmem:[#allocation42_spill] sm:$0xff] %v9016_v40 }
 0x643   : > { %v7451_v23 = vpop.permute.xlu1 %7450 }
 0x644   : > { %12232 = vst [vmem:[#allocation41_spill] sm:$0xff] %v9014_v61 }
 0x646   : > { %v8980_v45 = vpop.f32.mrb[20].mxu0 }
 0x647   : > { %v7461_v44 = vpop.permute.xlu1 %7460  ;;  %v8984_v54 = vpop.f32.mrb[21].mxu0 }
 0x648   : > { %v7463_v13 = vunpack.i.h.bf16 %v7461_v44  ;;  %v7462_v47 = vunpack.i.l.bf16 %v7461_v44  ;;  %7015 = vmatmul.mubr.msk.bf16.gmra.mrb[24].mxu1 %vm2140_vm9, %v8854_v27  ;;  %v8989_v42 = vpop.f32.mrb[22].mxu0  ;;  %v7447_v44 = vunpack.i.l.bf16 %v7446_v7  ;;  %v2533_v36 = vmul.f32 0.5, %v8984_v54 }
 0x649   : > { %7037 = vmatpush3.bf16.xpose.msra.mxu1 %v2460_v0  ;;  %7042 = vmatprep.mubr.msk.bf16.mxu1 %vm2140_vm9, %v8860_v1  ;;  %v8993_v59 = vpop.f32.mrb[23].mxu0  ;;  %v7452_v0 = vunpack.i.l.bf16 %v7451_v23 }
 0x64a   : > { %7318 = vmatprep.subr.msk.bf16.mxu1 %vm2140_vm9, %v2441_v5  ;;  %v8996_v51 = vpack.c.bf16 %v7463_v13, %v7462_v47  ;;  %v7448_v5 = vunpack.i.h.bf16 %v7446_v7  ;;  %v9019_v13 = vpop.permute.xlu0 %4325  ;;  %v7453_v47 = vunpack.i.h.bf16 %v7451_v23  ;;  %v7457_v7 = vunpack.i.l.bf16 %v7456_v49 }
 0x64b   : > { %12234 = vst [vmem:[#allocation43_spill] sm:$0xff] %v9019_v13  ;;  %v7466_v53 = vpop.permute.xlu1 %7465 }
 0x64c   : > { %12229 = vst [vmem:[#allocation38_spill] sm:$0xff] %v8996_v51  ;;  %7082 = vmatprep.subr.bf16.mxu0 %v8996_v51  ;;  %v9031_v48 = vpack.c.bf16 %v7453_v47, %v7452_v0  ;;  %v7467_v23 = vunpack.i.l.bf16 %v7466_v53 }
 0x64e   : > { %v9001_v19 = vpop.f32.mrb[24].mxu0  ;;  %12237 = vst [vmem:[#allocation46_spill] sm:$0xff] %v9031_v48 }
 0x64f   : > { %v9003_v27 = vpop.f32.mrb[25].mxu0 }
 0x650   : > { %v9006_v60 = vpop.f32.mrb[26].mxu0 }
 0x651   : > { %7039 = vmatpush3.bf16.xpose.msra.mxu1 %v2463_v38  ;;  %v9008_v1 = vpop.f32.mrb[27].mxu0  ;;  %v9023_v38 = vpack.c.bf16 %v7448_v5, %v7447_v44 }
 0x652   : > { %7319 = vmatprep.subr.msk.bf16.mxu1 %vm2140_vm9, %v2443_v50  ;;  %v9029_v50 = vpop.permute.xlu0 %4313 }
 0x653   : > { %12235 = vst [vmem:[#allocation44_spill] sm:$0xff] %v9023_v38  ;;  %12236 = vst [vmem:[#allocation45_spill] sm:$0xff] %v9029_v50 }
 0x659   : > { %7041 = vmatpush3.bf16.xpose.msra.mxu1 %v2466_v57  ;;  %v9039_v57 = vpop.permute.xlu0 %4315 }
 0x65a   : > { %7066 = vmatprep.subr.bf16.mxu1 %v9014_v61  ;;  %12239 = vst [vmem:[#allocation48_spill] sm:$0xff] %v9039_v57 }
 0x65d   : > { %v9047_v5 = vpop.permute.xlu0 %4533 }
 0x65e   : > { %12241 = vst [vmem:[#allocation50_spill] sm:$0xff] %v9047_v5 }
 0x660   : > { %7043 = vmatmul.mubr.msk.bf16.vlgmr.msra.gmra.mrb[28].mxu1 %vm2140_vm9, %v8868_v39  ;;  %v7468_v39 = vunpack.i.h.bf16 %v7466_v53  ;;  %v9061_v53 = vpop.permute.xlu1 %7475 }
 0x661   : > { %7046 = vmatprep.mubr.msk.bf16.mxu1 %vm2140_vm9, %v8874_v25  ;;  %7067 = vmatpush3.bf16.msra.mxu1 %v9014_v61  ;;  %v9037_v25 = vpack.c.bf16 %v7458_v31, %v7457_v7  ;;  %v9049_v44 = vpop.permute.xlu0 %4535  ;;  %12248 = vst [vmem:[#allocation57_spill] sm:$0xff] %v9061_v53 }
 0x662   : > { %7068 = vmatprep.subr.bf16.mxu1 %v9023_v38  ;;  %v9043_v49 = vpack.c.bf16 %v7468_v39, %v7467_v23  ;;  %12242 = vst [vmem:[#allocation51_spill] sm:$0xff] %v9049_v44  ;;  %v8148_v44 = vmov 1966171168  }
 0x663   : > { %12238 = vst [vmem:[#allocation47_spill] sm:$0xff] %v9037_v25 }
 0x664   : > { %12240 = vst [vmem:[#allocation49_spill] sm:$0xff] %v9043_v49  ;;  %v9065_v23 = vpop.permute.xlu1 %7485 }
 0x665   : > { %7069 = vmatpush3.bf16.msra.mxu1 %v9023_v38  ;;  %v9051_v47 = vpop.permute.xlu0 %4214  ;;  %12250 = vst [vmem:[#allocation59_spill] sm:$0xff] %v9065_v23 }
 0x666   : > { %7070 = vmatprep.subr.bf16.mxu1 %v9031_v48  ;;  %12243 = vst [vmem:[#allocation52_spill] sm:$0xff] %v9051_v47 }
 0x668   : > { %7047 = vmatmul.mubr.msk.bf16.gmra.mrb[32].mxu1 %vm2140_vm9, %v8882_v9  ;;  %v9077_v34 = vpop.permute.xlu1 %4216 }
 0x669   : > { %7071 = vmatpush3.bf16.msra.mxu1 %v9031_v48  ;;  %v9053_v9 = vpop.permute.xlu0 %4432  ;;  %12256 = vst [vmem:[#allocation65_spill] sm:$0xff] %v9077_v34 }
 0x66a   : > { %7072 = vmatprep.subr.bf16.mxu1 %v9037_v25  ;;  %12244 = vst [vmem:[#allocation53_spill] sm:$0xff] %v9053_v9  ;;  %v1664_v9 = vunpack.c.l.s4 %v8148_v44 }
 0x66c   : > { %v9089_v37 = vpop.permute.xlu1 %4321  ;;  %v1665_v57 = vunpack.c.0.s8 %v1664_v9 }
 0x66d   : > { %7073 = vmatpush3.bf16.msra.mxu1 %v9037_v25  ;;  %v9055_v0 = vpop.permute.xlu0 %4537  ;;  %12260 = vst [vmem:[#allocation69_spill] sm:$0xff] %v9089_v37 }
 0x66e   : > { %7098 = vmatprep.subr.bf16.mxu1 %v9043_v49  ;;  %12245 = vst [vmem:[#allocation54_spill] sm:$0xff] %v9055_v0 }
 0x671   : > { %v9057_v31 = vpop.permute.xlu0 %4420 }
 0x672   : > { %12246 = vst [vmem:[#allocation55_spill] sm:$0xff] %v9057_v31 }
 0x675   : > { %v9059_v7 = vpop.permute.xlu0 %4525 }
 0x676   : > { %12247 = vst [vmem:[#allocation56_spill] sm:$0xff] %v9059_v7 }
 0x679   : > { %v9063_v39 = vpop.permute.xlu0 %4424 }
 0x67a   : > { %12249 = vst [vmem:[#allocation58_spill] sm:$0xff] %v9063_v39 }
 0x67d   : > { %v9069_v28 = vpop.permute.xlu0 %4529 }
 0x67e   : > { %12252 = vst [vmem:[#allocation61_spill] sm:$0xff] %v9069_v28 }
 0x69e   : > { %v9067_v14 = vpop.f32.mrb[28].mxu0 }
 0x69f   : > { %12251 = vst [vmem:[#allocation60_spill] sm:$0xff] %v9067_v14  ;;  %v9071_v35 = vpop.f32.mrb[29].mxu0 }
 0x6a0   : > { %12253 = vst [vmem:[#allocation62_spill] sm:$0xff] %v9071_v35  ;;  %v9073_v30 = vpop.f32.mrb[30].mxu0 }
 0x6a1   : > { %12254 = vst [vmem:[#allocation63_spill] sm:$0xff] %v9073_v30  ;;  %v9075_v55 = vpop.f32.mrb[31].mxu0 }
 0x6a2   : > { %12255 = vst [vmem:[#allocation64_spill] sm:$0xff] %v9075_v55 }
 0x6a3   : > { %v9079_v58 = vpop.trf.xlu0 }
 0x6a4   : > { %12257 = vst [vmem:[#allocation66_spill] sm:$0xff] %v9079_v58  ;;  %v1560_v62 = vrot.slane %v9079_v58, %v8275_v16  ;;  %v1525_v32 = vrot.slane %v9079_v58, %v8264_v8  ;;  %v1595_v25 = vrot.slane %v9079_v58, %v8312_v11  ;;  %v9097_v16 = vpop.permute.xlu1 %4218  ;;  %v1630_v24 = vrot.slane %v9079_v58, %v8331_v18 }
 0x6a5   : > { %12263 = vst [vmem:[#allocation72_spill] sm:$0xff] %v9097_v16  ;;  %v9121_v31 = vrot.slane %v9079_v58, %v8328_v17 }
 0x6a6   : > { %1586 = vbcast.lane.b32.xlu0 %v1560_v62, 304  ;;  %1527 = vbcast.lane.b32.xlu1 %v1525_v32, 256  ;;  %v9085_v22 = vpop.f32.mrb[32].mxu0 }
 0x6a7   : > { %12258 = vst [vmem:[#allocation67_spill] sm:$0xff] %v9085_v22  ;;  %v9087_v26 = vpop.f32.mrb[33].mxu0  ;;  %12273 = vst [vmem:[#allocation82_spill] sm:$0xff] %v9121_v31 }
 0x6a8   : > { %12259 = vst [vmem:[#allocation68_spill] sm:$0xff] %v9087_v26  ;;  %v9093_v33 = vpop.f32.mrb[34].mxu0  ;;  %v9099_v20 = vpop.permute.xlu1 %4323 }
 0x6a9   : > { %12261 = vst [vmem:[#allocation70_spill] sm:$0xff] %v9093_v33  ;;  %v9095_v41 = vpop.f32.mrb[35].mxu0  ;;  %12264 = vst [vmem:[#allocation73_spill] sm:$0xff] %v9099_v20 }
 0x6aa   : > { %12262 = vst [vmem:[#allocation71_spill] sm:$0xff] %v9095_v41  ;;  %1597 = vbcast.lane.b32.xlu0 %v1595_v25, 256  ;;  %1531 = vbcast.lane.b32.xlu1 %v1525_v32, 264 }
 0x6ac   : > { %v9103_v11 = vpop.permute.xlu1 %4220 }
 0x6ad   : > { %12265 = vst [vmem:[#allocation74_spill] sm:$0xff] %v9103_v11 }
 0x6ae   : > { %1601 = vbcast.lane.b32.xlu0 %v1595_v25, 264  ;;  %1535 = vbcast.lane.b32.xlu1 %v1525_v32, 272 }
 0x6b0   : > { %v9105_v28 = vpop.permute.xlu1 %4222 }
 0x6b1   : > { %12266 = vst [vmem:[#allocation75_spill] sm:$0xff] %v9105_v28 }
 0x6b2   : > { %1605 = vbcast.lane.b32.xlu0 %v1595_v25, 272  ;;  %1539 = vbcast.lane.b32.xlu1 %v1525_v32, 280 }
 0x6b4   : > { %v9107_v48 = vpop.permute.xlu1 %4327 }
 0x6b5   : > { %12267 = vst [vmem:[#allocation76_spill] sm:$0xff] %v9107_v48 }
 0x6b6   : > { %1609 = vbcast.lane.b32.xlu0 %v1595_v25, 280  ;;  %1562 = vbcast.lane.b32.xlu1 %v1560_v62, 256 }
 0x6b8   : > { %v9109_v38 = vpop.permute.xlu1 %4208 }
 0x6b9   : > { %12268 = vst [vmem:[#allocation77_spill] sm:$0xff] %v9109_v38 }
 0x6ba   : > { %1632 = vbcast.lane.b32.xlu0 %v1630_v24, 256  ;;  %1566 = vbcast.lane.b32.xlu1 %v1560_v62, 264 }
 0x6bc   : > { %v9111_v18 = vpop.permute.xlu1 %4426 }
 0x6bd   : > { %12269 = vst [vmem:[#allocation78_spill] sm:$0xff] %v9111_v18 }
 0x6be   : > { %1636 = vbcast.lane.b32.xlu0 %v1630_v24, 264  ;;  %1570 = vbcast.lane.b32.xlu1 %v1560_v62, 272 }
 0x6c0   : > { %v9113_v7 = vpop.permute.xlu1 %4210 }
 0x6c1   : > { %12270 = vst [vmem:[#allocation79_spill] sm:$0xff] %v9113_v7 }
 0x6c2   : > { %1640 = vbcast.lane.b32.xlu0 %v1630_v24, 272  ;;  %1574 = vbcast.lane.b32.xlu1 %v1560_v62, 280 }
 0x6c4   : > { %v9115_v61 = vpop.permute.xlu1 %4531 }
 0x6c5   : > { %12271 = vst [vmem:[#allocation80_spill] sm:$0xff] %v9115_v61 }
 0x6c6   : > { %1644 = vbcast.lane.b32.xlu0 %v1630_v24, 280  ;;  %1543 = vbcast.lane.b32.xlu1 %v1525_v32, 288 }
 0x6c8   : > { %v9117_v39 = vpop.permute.xlu1 %4428 }
 0x6c9   : > { %12272 = vst [vmem:[#allocation81_spill] sm:$0xff] %v9117_v39 }
 0x6ca   : > { %1613 = vbcast.lane.b32.xlu0 %v1595_v25, 288  ;;  %1547 = vbcast.lane.b32.xlu1 %v1525_v32, 296 }
 0x6ce   : > { %1621 = vbcast.lane.b32.xlu0 %v1595_v25, 304  ;;  %1551 = vbcast.lane.b32.xlu1 %v1525_v32, 304 }
 0x6d2   : > { %1625 = vbcast.lane.b32.xlu0 %v1595_v25, 312  ;;  %1555 = vbcast.lane.b32.xlu1 %v1525_v32, 312  ;;  %v9125_v32 = vpop.permute.xlu1 %4430 }
 0x6d3   : > { %12274 = vst [vmem:[#allocation83_spill] sm:$0xff] %v9125_v32  ;;  %v9145_v32 = vsub.s32 %v1665_v57, %v8261_v4 }
 0x6d5   : > { %12281 = vst [vmem:[#allocation90_spill] sm:$0xff] %v9145_v32  ;;  %v1669_v47 = vrot.slane %v9079_v58, %v9145_v32 }
 0x6d6   : > { %1648 = vbcast.lane.b32.xlu0 %v1630_v24, 288  ;;  %1578 = vbcast.lane.b32.xlu1 %v1560_v62, 288 }
 0x6da   : > { %1652 = vbcast.lane.b32.xlu0 %v1630_v24, 296  ;;  %1582 = vbcast.lane.b32.xlu1 %v1560_v62, 296 }
 0x6de   : > { %1656 = vbcast.lane.b32.xlu0 %v1630_v24, 304  ;;  %1590 = vbcast.lane.b32.xlu1 %v1560_v62, 312  ;;  %v9131_v62 = vrot.slane %v9079_v58, %v8325_v15 }
 0x6e0   : > { %12275 = vst [vmem:[#allocation84_spill] sm:$0xff] %v9131_v62 }
 0x6e2   : > { %1660 = vbcast.lane.b32.xlu0 %v1630_v24, 312  ;;  %1617 = vbcast.lane.b32.xlu1 %v1595_v25, 296  ;;  %v9134_v24 = vpop.permute.xlu1 %4212 }
 0x6e3   : > { %12276 = vst [vmem:[#allocation85_spill] sm:$0xff] %v9134_v24 }
 0x6e6   : > { %3795 = vbcast.lane.b32.xlu0 %v9121_v31, 264  ;;  %3791 = vbcast.lane.b32.xlu1 %v9121_v31, 256  ;;  %v9136_v17 = vpop.permute.xlu1 %4317 }
 0x6e7   : > { %12277 = vst [vmem:[#allocation86_spill] sm:$0xff] %v9136_v17  ;;  %v1746_v17 = vrot.slane %v8831_v56, %v9145_v32 }
 0x6e9   : > { %v9163_v57 = vrot.slane %v1746_v17, %v9145_v32  ;;  %v1747_v40 = vcombine.high %v1746_v17, %v1746_v17 }
 0x6ea   : > { %3803 = vbcast.lane.b32.xlu0 %v9121_v31, 280  ;;  %3799 = vbcast.lane.b32.xlu1 %v9121_v31, 272  ;;  %v9138_v25 = vpop.permute.xlu1 %4319 }
 0x6eb   : > { %12278 = vst [vmem:[#allocation87_spill] sm:$0xff] %v9138_v25  ;;  %v9156_v25 = vrot.slane %v1669_v47, %v9145_v32  ;;  %v9177_v7 = vrot.slane %v9163_v57, %v8264_v8  ;;  %v9215_v17 = vrot.slane %v1747_v40, %v9145_v32  ;;  %v1762_v14 = vcombine.high %v9163_v57, %v9163_v57 }
 0x6ee   : > { %3826 = vbcast.lane.b32.xlu1 %v9131_v62, 256  ;;  %v9140_v0 = vpop.permute.xlu1 %4418 }
 0x6ef   : > { %12279 = vst [vmem:[#allocation88_spill] sm:$0xff] %v9140_v0  ;;  %v9171_v0 = vrot.slane %v9156_v25, %v8264_v8 }
 0x6f2   : > { %v9142_v5 = vpop.permute.xlu1 %4523 }
 0x6f3   : > { %12280 = vst [vmem:[#allocation89_spill] sm:$0xff] %v9142_v5 }
 0x6f6   : > { %v9147_v15 = vpop.permute.xlu1 %4422 }
 0x6f7   : > { %12282 = vst [vmem:[#allocation91_spill] sm:$0xff] %v9147_v15 }
 0x6fa   : > { %v9158_v44 = vpop.permute.xlu1 %4527 }
 0x6fb   : > { %12283 = vst [vmem:[#allocation92_spill] sm:$0xff] %v9158_v44 }
 0x713   : > { %v9153_v50 = vpop.f32.mrb[20].mxu1 }
 0x714   : > { %v9160_v5 = vpop.f32.mrb[21].mxu1 }
 0x715   : > { %v9165_v9 = vpop.f32.mrb[22].mxu1 }
 0x716   : > { %v9167_v15 = vpop.f32.mrb[23].mxu1 }
 0x718   : > { %v9173_v39 = vpop.permute.xlu0 %1586  ;;  %v1528_v24 = vpop.permute.xlu1 %1527 }
 0x719   : > { %v1707_v44 = vsub.f32 %v1528_v24, %v9171_v0 }
 0x71b   : > { %v1784_v38 = vadd.f32 %v9177_v7, %v1707_v44  ;;  %v9181_v61 = vpop.f32.mrb[24].mxu1  ;;  %v1670_v44 = vcombine.high %v1669_v47, %v1669_v47 }
 0x71c   : > { %12284 = vst [vmem:[#allocation93_spill] sm:$0xff] %v9181_v61  ;;  %v9183_v18 = vpop.f32.mrb[25].mxu1  ;;  %v9185_v48 = vpop.permute.xlu0 %1597 }
 0x71d   : > { %v1532_v28 = vpop.permute.xlu1 %1531  ;;  %v9187_v13 = vpop.f32.mrb[26].mxu1  ;;  %v9191_v11 = vsel %vm8673_vm6, %v1784_v38, -1e+30  ;;  %v9209_v23 = vrot.slane %v1670_v44, %v9145_v32 }
 0x71e   : > { %12285 = vst [vmem:[#allocation94_spill] sm:$0xff] %v9187_v13  ;;  %v1708_v20 = vsub.f32 %v1532_v28, %v9171_v0  ;;  %v9194_v16 = vpop.f32.mrb[27].mxu1  ;;  %v1856_v24 = vsel %vm1048_vm5, %v9191_v11, -inf }
 0x71f   : > { %1857 = vmax.xlane.f32.xlu0 %v1856_v24  ;;  %v9226_v44 = vrot.slane %v9209_v23, %v8264_v8 }
 0x720   : > { %v1785_v37 = vadd.f32 %v9177_v7, %v1708_v20  ;;  %v9199_v56 = vpop.permute.xlu0 %1601 }
 0x721   : > { %v1536_v49 = vpop.permute.xlu1 %1535  ;;  %v1721_v55 = vsub.f32 %v9173_v39, %v9226_v44 }
 0x722   : > { %v1709_v34 = vsub.f32 %v1536_v49, %v9171_v0  ;;  %v9204_v38 = vsel %vm8730_vm7, %v1785_v37, -1e+30 }
 0x723   : > { %v1859_v28 = vsel %vm1048_vm5, %v9204_v38, -inf }
 0x724   : > { %v1786_v47 = vadd.f32 %v9177_v7, %v1709_v34  ;;  %1860 = vmax.xlane.f32.xlu1 %v1859_v28  ;;  %v9212_v20 = vpop.permute.xlu0 %1605 }
 0x725   : > { %v1540_v24 = vpop.permute.xlu1 %1539 }
 0x726   : > { %v1710_v49 = vsub.f32 %v1540_v24, %v9171_v0  ;;  %v9220_v37 = vsel %vm8736_vm8, %v1786_v47, -1e+30  ;;  %v9233_v24 = vrot.slane %v9215_v17, %v8264_v8 }
 0x727   : > { %v1862_v53 = vsel %vm1048_vm5, %v9220_v37, -inf }
 0x728   : > { %v1787_v34 = vadd.f32 %v9177_v7, %v1710_v49  ;;  %1863 = vmax.xlane.f32.xlu0 %v1862_v53  ;;  %v9229_v28 = vpop.permute.xlu0 %1609 }
 0x729   : > { %v1563_v40 = vpop.permute.xlu1 %1562 }
 0x72a   : > { %v1715_v47 = vsub.f32 %v1563_v40, %v9226_v44  ;;  %v9238_v32 = vsel %vm8753_vm10, %v1787_v34, -1e+30 }
 0x72b   : > { %v1865_v29 = vsel %vm1048_vm5, %v9238_v32, -inf }
 0x72c   : > { %v1792_v51 = vadd.f32 %v9233_v24, %v1715_v47  ;;  %1866 = vmax.xlane.f32.xlu0 %v1865_v29  ;;  %v9243_v53 = vpop.permute.xlu0 %1632 }
 0x72d   : > { %v1567_v49 = vpop.permute.xlu1 %1566 }
 0x72e   : > { %v1716_v4 = vsub.f32 %v1567_v49, %v9226_v44  ;;  %v9248_v63 = vsel %vm8673_vm6, %v1792_v51, -1e+30 }
 0x72f   : > { %v1880_v40 = vsel %vm1048_vm5, %v9248_v63, -inf }
 0x730   : > { %v1793_v34 = vadd.f32 %v9233_v24, %v1716_v4  ;;  %1881 = vmax.xlane.f32.xlu1 %v1880_v40  ;;  %v9258_v47 = vpop.permute.xlu0 %1636 }
 0x731   : > { %v1571_v43 = vpop.permute.xlu1 %1570 }
 0x732   : > { %v1717_v58 = vsub.f32 %v1571_v43, %v9226_v44  ;;  %v9256_v29 = vsel %vm8730_vm7, %v1793_v34, -1e+30 }
 0x733   : > { %v9260_v49 = vpop.f32.mrb[28].mxu1  ;;  %v1883_v51 = vsel %vm1048_vm5, %v9256_v29, -inf }
 0x734   : > { %12286 = vst [vmem:[#allocation95_spill] sm:$0xff] %v9260_v49  ;;  %v1794_v12 = vadd.f32 %v9233_v24, %v1717_v58  ;;  %1884 = vmax.xlane.f32.xlu0 %v1883_v51  ;;  %v9265_v31 = vpop.f32.mrb[29].mxu1  ;;  %v9279_v58 = vpop.permute.xlu0 %1640 }
 0x735   : > { %12287 = vst [vmem:[#allocation96_spill] sm:$0xff] %v9265_v31  ;;  %v1575_v4 = vpop.permute.xlu1 %1574  ;;  %v9267_v40 = vpop.f32.mrb[30].mxu1 }
 0x736   : > { %12288 = vst [vmem:[#allocation97_spill] sm:$0xff] %v9267_v40  ;;  %v1718_v43 = vsub.f32 %v1575_v4, %v9226_v44  ;;  %v9270_v33 = vpop.f32.mrb[31].mxu1  ;;  %v9274_v34 = vsel %vm8736_vm8, %v1794_v12, -1e+30 }
 0x737   : > { %12289 = vst [vmem:[#allocation98_spill] sm:$0xff] %v9270_v33  ;;  %v1886_v22 = vsel %vm1048_vm5, %v9274_v34, -inf }
 0x738   : > { %v1795_v26 = vadd.f32 %v9233_v24, %v1718_v43  ;;  %1887 = vmax.xlane.f32.xlu1 %v1886_v22 }
 0x739   : > { %v1544_v51 = vpop.permute.xlu1 %1543 }
 0x73a   : > { %v1711_v41 = vsub.f32 %v1544_v51, %v9171_v0  ;;  %v9284_v4 = vsel %vm8753_vm10, %v1795_v26, -1e+30 }
 0x73b   : > { %v9286_v62 = vpop.f32.mrb[32].mxu1  ;;  %v1889_v12 = vsel %vm1048_vm5, %v9284_v4, -inf }
 0x73c   : > { %12290 = vst [vmem:[#allocation99_spill] sm:$0xff] %v9286_v62  ;;  %v1788_v40 = vadd.f32 %v9177_v7, %v1711_v41  ;;  %1890 = vmax.xlane.f32.xlu0 %v1889_v12  ;;  %v9291_v49 = vpop.f32.mrb[33].mxu1  ;;  %v9302_v62 = vpop.permute.xlu0 %1644 }
 0x73d   : > { %12291 = vst [vmem:[#allocation100_spill] sm:$0xff] %v9291_v49  ;;  %v1548_v22 = vpop.permute.xlu1 %1547  ;;  %v9293_v43 = vpop.f32.mrb[34].mxu1 }
 0x73e   : > { %12292 = vst [vmem:[#allocation101_spill] sm:$0xff] %v9293_v43  ;;  %v1712_v33 = vsub.f32 %v1548_v22, %v9171_v0  ;;  %v9296_v51 = vpop.f32.mrb[35].mxu1  ;;  %v9300_v26 = vsel %vm8759_vm11, %v1788_v40, -1e+30 }
 0x73f   : > { %12293 = vst [vmem:[#allocation102_spill] sm:$0xff] %v9296_v51  ;;  %v1868_v31 = vsel %vm1048_vm5, %v9300_v26, -inf }
 0x740   : > { %v1789_v41 = vadd.f32 %v9177_v7, %v1712_v33  ;;  %1869 = vmax.xlane.f32.xlu1 %v1868_v31  ;;  %v9315_v43 = vpop.permute.xlu0 %1613  ;;  %v1685_v33 = vcombine.high %v9156_v25, %v9156_v25 }
 0x741   : > { %v1552_v12 = vpop.permute.xlu1 %1551 }
 0x742   : > { %v1713_v49 = vsub.f32 %v1552_v12, %v9171_v0  ;;  %v9310_v22 = vsel %vm8777_vm12, %v1789_v41, -1e+30  ;;  %v9332_v25 = vrot.slane %v1685_v33, %v8264_v8 }
 0x743   : > { %v1871_v51 = vsel %vm1048_vm5, %v9310_v22, -inf }
 0x744   : > { %v1790_v40 = vadd.f32 %v9177_v7, %v1713_v49  ;;  %1872 = vmax.xlane.f32.xlu0 %v1871_v51 }
 0x745   : > { %v1556_v30 = vpop.permute.xlu1 %1555 }
 0x746   : > { %v1714_v31 = vsub.f32 %v1556_v30, %v9171_v0  ;;  %v9322_v12 = vsel %vm8783_vm13, %v1790_v40, -1e+30  ;;  %v9339_v40 = vpop.permute.xlu0 %1621 }
 0x747   : > { %v1874_v41 = vsel %vm1048_vm5, %v9322_v12, -inf }
 0x748   : > { %v1791_v49 = vadd.f32 %v9177_v7, %v1714_v31  ;;  %1875 = vmax.xlane.f32.xlu1 %v1874_v41  ;;  %v1798_v7 = vadd.f32 %v9233_v24, %v1721_v55  ;;  %v1723_v31 = vsub.f32 %v9185_v48, %v9332_v25  ;;  %v9348_v41 = vrot.slane %v1762_v14, %v8264_v8 }
 0x749   : > { %v1579_v51 = vpop.permute.xlu1 %1578  ;;  %v1724_v55 = vsub.f32 %v9199_v56, %v9332_v25  ;;  %v1725_v14 = vsub.f32 %v9212_v20, %v9332_v25  ;;  %v1763_v56 = vcombine.high %v9215_v17, %v9215_v17 }
 0x74a   : > { %v1719_v30 = vsub.f32 %v1579_v51, %v9226_v44  ;;  %v9337_v0 = vsel %vm8801_vm14, %v1791_v49, -1e+30  ;;  %v1686_v49 = vcombine.high %v9209_v23, %v9209_v23  ;;  %v9367_v23 = vsel %vm8783_vm13, %v1798_v7, -1e+30 }
 0x74b   : > { %v1877_v39 = vsel %vm1048_vm5, %v9337_v0, -inf  ;;  %v1726_v7 = vsub.f32 %v9229_v28, %v9332_v25  ;;  %v9397_v28 = vrot.slane %v1763_v56, %v8264_v8 }
 0x74c   : > { %v1796_v57 = vadd.f32 %v9233_v24, %v1719_v30  ;;  %1878 = vmax.xlane.f32.xlu0 %v1877_v39  ;;  %v1800_v30 = vadd.f32 %v9348_v41, %v1723_v31  ;;  %v9374_v13 = vrot.slane %v1686_v49, %v8264_v8  ;;  %v1802_v49 = vadd.f32 %v9348_v41, %v1725_v14 }
 0x74d   : > { %v1583_v33 = vpop.permute.xlu1 %1582  ;;  %v1803_v14 = vadd.f32 %v9348_v41, %v1726_v7 }
 0x74e   : > { %v1720_v51 = vsub.f32 %v1583_v33, %v9226_v44  ;;  %v9355_v35 = vsel %vm8759_vm11, %v1796_v57, -1e+30  ;;  %v9369_v57 = vpop.permute.xlu0 %1625  ;;  %v1733_v56 = vsub.f32 %v9279_v58, %v9374_v13  ;;  %v9415_v7 = vsel %vm8736_vm8, %v1802_v49, -1e+30 }
 0x74f   : > { %v1892_v48 = vsel %vm1048_vm5, %v9355_v35, -inf  ;;  %v9428_v58 = vsel %vm8753_vm10, %v1803_v14, -1e+30  ;;  %v1734_v49 = vsub.f32 %v9302_v62, %v9374_v13  ;;  %v1729_v14 = vsub.f32 %v9339_v40, %v9332_v25 }
 0x750   : > { %v1797_v39 = vadd.f32 %v9233_v24, %v1720_v51  ;;  %1893 = vmax.xlane.f32.xlu1 %v1892_v48  ;;  %v1801_v51 = vadd.f32 %v9348_v41, %v1724_v55  ;;  %v1898_v48 = vsel %vm1048_vm5, %v9367_v23, -inf  ;;  %v9394_v55 = vsel %vm8673_vm6, %v1800_v30, -1e+30 }
 0x751   : > { %v1591_v33 = vpop.permute.xlu1 %1590  ;;  %v1913_v62 = vsel %vm1048_vm5, %v9428_v58, -inf  ;;  %v1806_v21 = vadd.f32 %v9348_v41, %v1729_v14  ;;  %v1730_v8 = vsub.f32 %v9369_v57, %v9332_v25 }
 0x752   : > { %v1722_v31 = vsub.f32 %v1591_v33, %v9226_v44  ;;  %v9379_v20 = vsel %vm8777_vm12, %v1797_v39, -1e+30  ;;  %v1731_v44 = vsub.f32 %v9243_v53, %v9374_v13  ;;  %v1732_v53 = vsub.f32 %v9258_v47, %v9374_v13  ;;  %v1649_v61 = vpop.permute.xlu0 %1648 }
 0x753   : > { %v1895_v17 = vsel %vm1048_vm5, %v9379_v20, -inf  ;;  %v9419_v47 = vsel %vm8730_vm7, %v1801_v51, -1e+30  ;;  %v1727_v51 = vsub.f32 %v9315_v43, %v9332_v25  ;;  %v1807_v57 = vadd.f32 %v9348_v41, %v1730_v8 }
 0x754   : > { %v1799_v33 = vadd.f32 %v9233_v24, %v1722_v31  ;;  %1899 = vmax.xlane.f32.xlu1 %v1898_v48  ;;  %1896 = vmax.xlane.f32.xlu0 %v1895_v17  ;;  %v1904_v24 = vsel %vm1048_vm5, %v9394_v55, -inf  ;;  %v1808_v31 = vadd.f32 %v9397_v28, %v1731_v44  ;;  %v1809_v48 = vadd.f32 %v9397_v28, %v1732_v53 }
 0x755   : > { %v1910_v17 = vsel %vm1048_vm5, %v9415_v7, -inf  ;;  %v1907_v44 = vsel %vm1048_vm5, %v9419_v47, -inf }
 0x756   : > { %v9401_v39 = vsel %vm8801_vm14, %v1799_v33, -1e+30  ;;  %v1810_v33 = vadd.f32 %v9397_v28, %v1733_v56  ;;  %v9437_v53 = vsel %vm8673_vm6, %v1808_v31, -1e+30  ;;  %v9447_v43 = vsel %vm8730_vm7, %v1809_v48, -1e+30 }
 0x757   : > { %v1901_v30 = vsel %vm1048_vm5, %v9401_v39, -inf  ;;  %v1928_v56 = vsel %vm1048_vm5, %v9437_v53, -inf  ;;  %v1804_v31 = vadd.f32 %v9348_v41, %v1727_v51  ;;  %v1735_v51 = vsub.f32 %v1649_v61, %v9374_v13 }
 0x758   : > { %1905 = vmax.xlane.f32.xlu1 %v1904_v24  ;;  %1902 = vmax.xlane.f32.xlu0 %v1901_v30  ;;  %v1653_v24 = vpop.permute.xlu0 %1652  ;;  %v1618_v30 = vpop.permute.xlu1 %1617  ;;  %v9454_v40 = vsel %vm8736_vm8, %v1810_v33, -1e+30 }
 0x759   : > { %v1934_v48 = vsel %vm1048_vm5, %v9454_v40, -inf  ;;  %v9467_v33 = vsel %vm8759_vm11, %v1804_v31, -1e+30  ;;  %v1736_v31 = vsub.f32 %v1653_v24, %v9374_v13 }
 0x75a   : > { %v1916_v14 = vsel %vm1048_vm5, %v9467_v33, -inf }
 0x75b   : > { %v1813_v24 = vadd.f32 %v9397_v28, %v1736_v31 }
 0x75c   : > { %1911 = vmax.xlane.f32.xlu1 %v1910_v17  ;;  %1908 = vmax.xlane.f32.xlu0 %v1907_v44  ;;  %v1811_v17 = vadd.f32 %v9397_v28, %v1734_v49  ;;  %v1728_v44 = vsub.f32 %v1618_v30, %v9332_v25  ;;  %v1657_v2 = vpop.permute.xlu0 %1656  ;;  %v1931_v49 = vsel %vm1048_vm5, %v9447_v43, -inf }
 0x75e   : > { %v1805_v30 = vadd.f32 %v9348_v41, %v1728_v44  ;;  %v9471_v25 = vsel %vm8753_vm10, %v1811_v17, -1e+30  ;;  %v1737_v44 = vsub.f32 %v1657_v2, %v9374_v13 }
 0x75f   : > { %v1937_v61 = vsel %vm1048_vm5, %v9471_v25, -inf }
 0x760   : > { %1929 = vmax.xlane.f32.xlu1 %v1928_v56  ;;  %1914 = vmax.xlane.f32.xlu0 %v1913_v62  ;;  %v9480_v56 = vsel %vm8783_vm13, %v1806_v21, -1e+30  ;;  %v1812_v62 = vadd.f32 %v9397_v28, %v1735_v51  ;;  %v9487_v8 = vsel %vm8777_vm12, %v1805_v30, -1e+30  ;;  %v1661_v41 = vpop.permute.xlu0 %1660  ;;  %v1814_v2 = vadd.f32 %v9397_v28, %v1737_v44 }
 0x761   : > { %v1922_v17 = vsel %vm1048_vm5, %v9480_v56, -inf  ;;  %v1919_v21 = vsel %vm1048_vm5, %v9487_v8, -inf }
 0x762   : > { %v9502_v51 = vsel %vm8759_vm11, %v1812_v62, -1e+30 }
 0x763   : > { %v1940_v30 = vsel %vm1048_vm5, %v9502_v51, -inf }
 0x764   : > { %1935 = vmax.xlane.f32.xlu1 %v1934_v48  ;;  %1932 = vmax.xlane.f32.xlu0 %v1931_v49  ;;  %v9495_v48 = vsel %vm8801_vm14, %v1807_v57, -1e+30  ;;  %v1738_v49 = vsub.f32 %v1661_v41, %v9374_v13  ;;  %v9515_v13 = vsel %vm8777_vm12, %v1813_v24, -1e+30  ;;  %v9527_v41 = vpop.permute.xlu1 %3791 }
 0x765   : > { %v1943_v31 = vsel %vm1048_vm5, %v9515_v13, -inf  ;;  %12294 = vst [vmem:[#allocation103_spill] sm:$0xff] %v9527_v41 }
 0x766   : > { %v1815_v57 = vadd.f32 %v9397_v28, %v1738_v49 }
 0x768   : > { %1917 = vmax.xlane.f32.xlu1 %v1916_v14  ;;  %1938 = vmax.xlane.f32.xlu0 %v1937_v61  ;;  %v1925_v14 = vsel %vm1048_vm5, %v9495_v48, -inf  ;;  %v9511_v61 = vsel %vm8783_vm13, %v1814_v2, -1e+30  ;;  %v9523_v28 = vsel %vm8801_vm14, %v1815_v57, -1e+30 }
 0x769   : > { %v1946_v62 = vsel %vm1048_vm5, %v9511_v61, -inf  ;;  %v1949_v44 = vsel %vm1048_vm5, %v9523_v28, -inf }
 0x76c   : > { %1923 = vmax.xlane.f32.xlu1 %v1922_v17  ;;  %1920 = vmax.xlane.f32.xlu0 %v1919_v21  ;;  %v9529_v17 = vpop.permute.xlu0 %3795  ;;  %v9531_v21 = vpop.permute.xlu1 %3799 }
 0x76d   : > { %12295 = vst [vmem:[#allocation104_spill] sm:$0xff] %v9529_v17  ;;  %12296 = vst [vmem:[#allocation105_spill] sm:$0xff] %v9531_v21  ;;  %v12305_v17 = vld [vmem:[#allocation64_spill] sm:$0xff] }
 0x770   : > { %1941 = vmax.xlane.f32.xlu1 %v1940_v30  ;;  %1926 = vmax.xlane.f32.xlu0 %v1925_v14  ;;  %v9533_v24 = vpop.permute.xlu0 %3803  ;;  %v9537_v49 = vpop.permute.xlu1 %3826 }
 0x771   : > { %12297 = vst [vmem:[#allocation106_spill] sm:$0xff] %v9533_v24  ;;  %12298 = vst [vmem:[#allocation107_spill] sm:$0xff] %v9537_v49 }
 0x774   : > { %1947 = vmax.xlane.f32.xlu1 %v1946_v62  ;;  %1944 = vmax.xlane.f32.xlu0 %v1943_v31 }
 0x778   : > { %1950 = vmax.xlane.f32.xlu0 %v1949_v44 }
 0x7ac   : > { %v9535_v2 = vpop.xlane.xlu0 %1857 }
 0x7ad   : > { %v2565_v30 = vsub.f32 %v9191_v11, %v9535_v2 }
 0x7af   : > { %v2597_v14 = vmul.f32 1.442695, %v2565_v30 }
 0x7b1   : > { %7586 = vpow2.f32 %v2597_v14  ;;  %v9541_v57 = vpop.xlane.xlu1 %1860 }
 0x7b2   : > { %v2566_v62 = vsub.f32 %v9204_v38, %v9541_v57 }
 0x7b4   : > { %v2599_v31 = vmul.f32 1.442695, %v2566_v62 }
 0x7b5   : > { %v9545_v44 = vpop.xlane.xlu0 %1863 }
 0x7b6   : > { %7588 = vpow2.f32 %v2599_v31  ;;  %v2567_v52 = vsub.f32 %v9220_v37, %v9545_v44  ;;  %v2534_v37 = vmul.f32 0.5, %v8993_v59 }
 0x7b8   : > { %v2601_v6 = vmul.f32 1.442695, %v2567_v52 }
 0x7b9   : > { %v9549_v46 = vpop.xlane.xlu0 %1866 }
 0x7ba   : > { %7590 = vpow2.f32 %v2601_v6  ;;  %v2568_v11 = vsub.f32 %v9238_v32, %v9549_v46 }
 0x7bb   : > { %v7587_v30 = vpop.eup %7586 }
 0x7bc   : > { %v2603_v14 = vmul.f32 1.442695, %v2568_v11  ;;  %v9554_v3 = vmul.f32 %v7587_v30, %v2533_v36  ;;  %v2535_v11 = vmul.f32 0.5, %v8980_v45 }
 0x7bd   : > { %v9556_v38 = vpop.xlane.xlu1 %1881 }
 0x7be   : > { %7592 = vpow2.f32 %v2603_v14  ;;  %v2573_v62 = vsub.f32 %v9248_v63, %v9556_v38  ;;  %v2693_v52 = vsel %vm1048_vm5, %v9554_v3, 0.0 }
 0x7bf   : > { %2694 = vadd.xlane.f32.xlu1 %v2693_v52 }
 0x7c0   : > { %v7589_v6 = vpop.eup %7588  ;;  %v2613_v54 = vmul.f32 1.442695, %v2573_v62 }
 0x7c1   : > { %v9563_v31 = vpop.xlane.xlu0 %1884  ;;  %v9565_v32 = vmul.f32 %v7589_v6, %v2534_v37  ;;  %v2536_v37 = vmul.f32 0.5, %v8989_v42 }
 0x7c2   : > { %7594 = vpow2.f32 %v2613_v54  ;;  %v2574_v36 = vsub.f32 %v9256_v29, %v9563_v31 }
 0x7c3   : > { %v2696_v63 = vsel %vm1048_vm5, %v9565_v32, 0.0 }
 0x7c4   : > { %v7591_v30 = vpop.eup %7590  ;;  %v2615_v14 = vmul.f32 1.442695, %v2574_v36  ;;  %2697 = vadd.xlane.f32.xlu0 %v2696_v63  ;;  %v2541_v63 = vmul.f32 0.5, %v9160_v5 }
 0x7c5   : > { %v9572_v59 = vpop.xlane.xlu1 %1887  ;;  %v9574_v52 = vmul.f32 %v7591_v30, %v2535_v11 }
 0x7c6   : > { %7596 = vpow2.f32 %v2615_v14  ;;  %v2575_v62 = vsub.f32 %v9274_v34, %v9572_v59 }
 0x7c7   : > { %v2699_v29 = vsel %vm1048_vm5, %v9574_v52, 0.0 }
 0x7c8   : > { %v7593_v45 = vpop.eup %7592  ;;  %v2617_v6 = vmul.f32 1.442695, %v2575_v62  ;;  %2700 = vadd.xlane.f32.xlu1 %v2699_v29  ;;  %v2542_v29 = vmul.f32 0.5, %v9167_v15 }
 0x7c9   : > { %v9581_v54 = vpop.xlane.xlu0 %1890  ;;  %v9583_v36 = vmul.f32 %v7593_v45, %v2536_v37 }
 0x7ca   : > { %7598 = vpow2.f32 %v2617_v6  ;;  %v2576_v11 = vsub.f32 %v9284_v4, %v9581_v54 }
 0x7cb   : > { %v2702_v34 = vsel %vm1048_vm5, %v9583_v36, 0.0 }
 0x7cc   : > { %v7595_v42 = vpop.eup %7594  ;;  %v2619_v30 = vmul.f32 1.442695, %v2576_v11  ;;  %2703 = vadd.xlane.f32.xlu0 %v2702_v34  ;;  %v2543_v34 = vmul.f32 0.5, %v9153_v50 }
 0x7cd   : > { %v9590_v14 = vpop.xlane.xlu1 %1869  ;;  %v9592_v62 = vmul.f32 %v7595_v42, %v2541_v63 }
 0x7ce   : > { %7600 = vpow2.f32 %v2619_v30  ;;  %v2569_v37 = vsub.f32 %v9300_v26, %v9590_v14 }
 0x7cf   : > { %v2717_v4 = vsel %vm1048_vm5, %v9592_v62, 0.0 }
 0x7d0   : > { %v7597_v5 = vpop.eup %7596  ;;  %v2605_v45 = vmul.f32 1.442695, %v2569_v37  ;;  %2718 = vadd.xlane.f32.xlu1 %v2717_v4  ;;  %v2544_v4 = vmul.f32 0.5, %v9165_v9 }
 0x7d1   : > { %v9599_v6 = vpop.xlane.xlu0 %1872  ;;  %v9601_v11 = vmul.f32 %v7597_v5, %v2542_v29 }
 0x7d2   : > { %7602 = vpow2.f32 %v2605_v45  ;;  %v2570_v63 = vsub.f32 %v9310_v22, %v9599_v6 }
 0x7d3   : > { %v2720_v26 = vsel %vm1048_vm5, %v9601_v11, 0.0 }
 0x7d4   : > { %v7599_v15 = vpop.eup %7598  ;;  %v2607_v42 = vmul.f32 1.442695, %v2570_v63  ;;  %2721 = vadd.xlane.f32.xlu0 %v2720_v26  ;;  %v2537_v26 = vmul.f32 0.5, %v9003_v27 }
 0x7d5   : > { %v9608_v30 = vpop.xlane.xlu1 %1875  ;;  %v9610_v37 = vmul.f32 %v7599_v15, %v2543_v34 }
 0x7d6   : > { %7604 = vpow2.f32 %v2607_v42  ;;  %v2571_v29 = vsub.f32 %v9322_v12, %v9608_v30 }
 0x7d7   : > { %v2723_v22 = vsel %vm1048_vm5, %v9610_v37, 0.0 }
 0x7d8   : > { %v7601_v50 = vpop.eup %7600  ;;  %v2609_v5 = vmul.f32 1.442695, %v2571_v29  ;;  %2724 = vadd.xlane.f32.xlu1 %v2723_v22  ;;  %v2538_v22 = vmul.f32 0.5, %v9008_v1  ;;  %v2539_v1 = vmul.f32 0.5, %v9001_v19 }
 0x7d9   : > { %v9617_v45 = vpop.xlane.xlu0 %1878  ;;  %v9619_v63 = vmul.f32 %v7601_v50, %v2544_v4 }
 0x7da   : > { %7606 = vpow2.f32 %v2609_v5  ;;  %v2572_v34 = vsub.f32 %v9337_v0, %v9617_v45 }
 0x7db   : > { %v2726_v12 = vsel %vm1048_vm5, %v9619_v63, 0.0 }
 0x7dc   : > { %v7603_v9 = vpop.eup %7602  ;;  %v2611_v15 = vmul.f32 1.442695, %v2572_v34  ;;  %2727 = vadd.xlane.f32.xlu0 %v2726_v12 }
 0x7dd   : > { %v9626_v42 = vpop.xlane.xlu1 %1893  ;;  %v9628_v29 = vmul.f32 %v7603_v9, %v2537_v26 }
 0x7de   : > { %7608 = vpow2.f32 %v2611_v15  ;;  %v2577_v4 = vsub.f32 %v9355_v35, %v9626_v42 }
 0x7df   : > { %v2705_v0 = vsel %vm1048_vm5, %v9628_v29, 0.0 }
 0x7e0   : > { %v7605_v27 = vpop.eup %7604  ;;  %v2621_v50 = vmul.f32 1.442695, %v2577_v4  ;;  %2706 = vadd.xlane.f32.xlu1 %v2705_v0 }
 0x7e1   : > { %v9635_v5 = vpop.xlane.xlu0 %1896  ;;  %v9637_v34 = vpop.xlane.xlu1 %1899  ;;  %v9639_v12 = vmul.f32 %v7605_v27, %v2538_v22 }
 0x7e2   : > { %7610 = vpow2.f32 %v2621_v50  ;;  %v2578_v26 = vsub.f32 %v9379_v20, %v9635_v5  ;;  %v2579_v35 = vsub.f32 %v9367_v23, %v9637_v34  ;;  %v2540_v23 = vmul.f32 0.5, %v9006_v60 }
 0x7e3   : > { %v2708_v9 = vsel %vm1048_vm5, %v9639_v12, 0.0 }
 0x7e4   : > { %v7607_v15 = vpop.eup %7606  ;;  %v2623_v4 = vmul.f32 1.442695, %v2578_v26  ;;  %v2625_v0 = vmul.f32 1.442695, %v2579_v35  ;;  %2709 = vadd.xlane.f32.xlu0 %v2708_v9 }
 0x7e5   : > { %v9648_v24 = vpop.xlane.xlu0 %1902  ;;  %v9650_v22 = vpop.xlane.xlu1 %1905  ;;  %v9652_v27 = vmul.f32 %v7607_v15, %v2539_v1 }
 0x7e6   : > { %7612 = vpow2.f32 %v2623_v4  ;;  %v2580_v20 = vsub.f32 %v9401_v39, %v9648_v24  ;;  %v2581_v19 = vsub.f32 %v9394_v55, %v9650_v22  ;;  %v2545_v39 = vmul.f32 0.5, %v9183_v18 }
 0x7e7   : > { %v2711_v50 = vsel %vm1048_vm5, %v9652_v27, 0.0  ;;  %7614 = vpow2.f32 %v2625_v0 }
 0x7e8   : > { %v7609_v26 = vpop.eup %7608  ;;  %v2627_v35 = vmul.f32 1.442695, %v2580_v20  ;;  %v2629_v9 = vmul.f32 1.442695, %v2581_v19  ;;  %2712 = vadd.xlane.f32.xlu1 %v2711_v50 }
 0x7e9   : > { %v9661_v41 = vpop.xlane.xlu0 %1908  ;;  %v9663_v1 = vpop.xlane.xlu1 %1911  ;;  %v9665_v15 = vmul.f32 %v7609_v26, %v2540_v23 }
 0x7ea   : > { %7616 = vpow2.f32 %v2627_v35  ;;  %v2582_v55 = vsub.f32 %v9419_v47, %v9661_v41  ;;  %v2583_v60 = vsub.f32 %v9415_v7, %v9663_v1  ;;  %v2546_v47 = vmul.f32 0.5, %v9194_v16 }
 0x7eb   : > { %v2714_v4 = vsel %vm1048_vm5, %v9665_v15, 0.0  ;;  %7618 = vpow2.f32 %v2629_v9 }
 0x7ec   : > { %v7611_v0 = vpop.eup %7610  ;;  %v2631_v20 = vmul.f32 1.442695, %v2582_v55  ;;  %v2633_v19 = vmul.f32 1.442695, %v2583_v60  ;;  %2715 = vadd.xlane.f32.xlu0 %v2714_v4  ;;  %v12299_v4 = vld [vmem:[#allocation93_spill] sm:$0xff] }
 0x7ed   : > { %v9674_v50 = vpop.xlane.xlu0 %1914  ;;  %v9676_v23 = vpop.xlane.xlu1 %1929  ;;  %v9678_v26 = vmul.f32 %v7611_v0, %v2545_v39  ;;  %v2547_v39 = vmul.f32 0.5, %v12299_v4 }
 0x7ee   : > { %7620 = vpow2.f32 %v2631_v20  ;;  %v2584_v7 = vsub.f32 %v9428_v58, %v9674_v50  ;;  %v2589_v18 = vsub.f32 %v9437_v53, %v9676_v23 }
 0x7ef   : > { %v2729_v35 = vsel %vm1048_vm5, %v9678_v26, 0.0  ;;  %7622 = vpow2.f32 %v2633_v19  ;;  %v12300_v19 = vld [vmem:[#allocation94_spill] sm:$0xff] }
 0x7f0   : > { %v7613_v9 = vpop.eup %7612  ;;  %v2635_v55 = vmul.f32 1.442695, %v2584_v7  ;;  %v2645_v60 = vmul.f32 1.442695, %v2589_v18  ;;  %2730 = vadd.xlane.f32.xlu1 %v2729_v35  ;;  %v2548_v7 = vmul.f32 0.5, %v12300_v19 }
 0x7f1   : > { %v9688_v0 = vpop.xlane.xlu0 %1932  ;;  %v9690_v20 = vpop.xlane.xlu1 %1935  ;;  %v9692_v58 = vmul.f32 %v7613_v9, %v2546_v47  ;;  %v12301_v9 = vld [vmem:[#allocation62_spill] sm:$0xff] }
 0x7f2   : > { %v7615_v10 = vpop.eup %7614  ;;  %7624 = vpow2.f32 %v2635_v55  ;;  %v2590_v16 = vsub.f32 %v9447_v43, %v9688_v0  ;;  %v2591_v53 = vsub.f32 %v9454_v40, %v9690_v20  ;;  %v2549_v55 = vmul.f32 0.5, %v12301_v9 }
 0x7f3   : > { %v9699_v18 = vmul.f32 %v7615_v10, %v2547_v39  ;;  %v2732_v35 = vsel %vm1048_vm5, %v9692_v58, 0.0  ;;  %7626 = vpow2.f32 %v2645_v60 }
 0x7f4   : > { %v7617_v4 = vpop.eup %7616  ;;  %v2647_v49 = vmul.f32 1.442695, %v2590_v16  ;;  %v2649_v47 = vmul.f32 1.442695, %v2591_v53  ;;  %2733 = vadd.xlane.f32.xlu0 %v2732_v35  ;;  %v12304_v35 = vld [vmem:[#allocation60_spill] sm:$0xff] }
 0x7f5   : > { %v2735_v43 = vsel %vm1048_vm5, %v9699_v18, 0.0  ;;  %v9706_v21 = vpop.xlane.xlu0 %1938  ;;  %v9708_v40 = vmul.f32 %v7617_v4, %v2548_v7  ;;  %v7619_v19 = vpop.eup %7618  ;;  %v2551_v9 = vmul.f32 0.5, %v12304_v35  ;;  %v2550_v7 = vmul.f32 0.5, %v12305_v17  ;;  %v12309_v17 = vld [vmem:[#allocation98_spill] sm:$0xff] }
 0x7f6   : > { %7628 = vpow2.f32 %v2647_v49  ;;  %2736 = vadd.xlane.f32.xlu1 %v2735_v43  ;;  %v2592_v10 = vsub.f32 %v9471_v25, %v9706_v21  ;;  %v9714_v39 = vmul.f32 %v7619_v19, %v2549_v55  ;;  %v12307_v55 = vld [vmem:[#allocation63_spill] sm:$0xff] }
 0x7f7   : > { %12302 = vst [vmem:[#allocation93_spill] sm:$0xff] %v9708_v40  ;;  %v2738_v60 = vsel %vm1048_vm5, %v9708_v40, 0.0  ;;  %7630 = vpow2.f32 %v2649_v47  ;;  %v2552_v19 = vmul.f32 0.5, %v12307_v55  ;;  %v12308_v47 = vld [vmem:[#allocation96_spill] sm:$0xff] }
 0x7f8   : > { %12303 = vst [vmem:[#allocation94_spill] sm:$0xff] %v9714_v39  ;;  %v7621_v16 = vpop.eup %7620  ;;  %v2651_v53 = vmul.f32 1.442695, %v2592_v10  ;;  %2739 = vadd.xlane.f32.xlu0 %v2738_v60  ;;  %v2741_v25 = vsel %vm1048_vm5, %v9714_v39, 0.0  ;;  %v2557_v10 = vmul.f32 0.5, %v12308_v47  ;;  %v12313_v39 = vld [vmem:[#allocation97_spill] sm:$0xff] }
 0x7f9   : > { %v7623_v4 = vpop.eup %7622  ;;  %v9722_v43 = vmul.f32 %v7621_v16, %v2550_v7 }
 0x7fa   : > { %7632 = vpow2.f32 %v2651_v53  ;;  %v9718_v49 = vmul.f32 %v7623_v4, %v2551_v9  ;;  %v2558_v53 = vmul.f32 0.5, %v12309_v17  ;;  %v2560_v17 = vmul.f32 0.5, %v12313_v39 }
 0x7fb   : > { %v2744_v4 = vsel %vm1048_vm5, %v9722_v43, 0.0 }
 0x7fc   : > { %12306 = vst [vmem:[#allocation62_spill] sm:$0xff] %v9718_v49  ;;  %v7625_v40 = vpop.eup %7624  ;;  %2742 = vadd.xlane.f32.xlu0 %v2741_v25  ;;  %v2747_v60 = vsel %vm1048_vm5, %v9718_v49, 0.0  ;;  %v12312_v49 = vld [vmem:[#allocation95_spill] sm:$0xff] }
 0x7fd   : > { %v7627_v35 = vpop.eup %7626  ;;  %2748 = vadd.xlane.f32.xlu1 %v2747_v60  ;;  %v9733_v16 = vmul.f32 %v7625_v40, %v2552_v19  ;;  %v2559_v60 = vmul.f32 0.5, %v12312_v49  ;;  %v9753_v49 = vpop.xlane.xlu0 %1920 }
 0x7fe   : > { %v9729_v9 = vmul.f32 %v7627_v35, %v2557_v10  ;;  %12316 = vst [vmem:[#allocation98_spill] sm:$0xff] %v9753_v49 }
 0x7ff   : > { %v2750_v40 = vsel %vm1048_vm5, %v9733_v16, 0.0 }
 0x800   : > { %12310 = vst [vmem:[#allocation60_spill] sm:$0xff] %v9729_v9  ;;  %v7629_v7 = vpop.eup %7628  ;;  %2745 = vadd.xlane.f32.xlu0 %v2744_v4  ;;  %v2765_v25 = vsel %vm1048_vm5, %v9729_v9, 0.0 }
 0x801   : > { %v9737_v55 = vmul.f32 %v7629_v7, %v2558_v53  ;;  %v7631_v47 = vpop.eup %7630  ;;  %2766 = vadd.xlane.f32.xlu1 %v2765_v25  ;;  %v9755_v7 = vpop.xlane.xlu0 %1926  ;;  %v12318_v25 = vld [vmem:[#allocation84_spill] sm:$0xff] }
 0x802   : > { %v9745_v35 = vmul.f32 %v7631_v47, %v2559_v60  ;;  %12317 = vst [vmem:[#allocation95_spill] sm:$0xff] %v9755_v7  ;;  %v9761_v47 = vpop.xlane.xlu1 %1917  ;;  %v2586_v60 = vsub.f32 %v9487_v8, %v9753_v49  ;;  %v2588_v8 = vsub.f32 %v9495_v48, %v9755_v7  ;;  %v12323_v48 = vld [vmem:[#allocation68_spill] sm:$0xff] }
 0x803   : > { %12311 = vst [vmem:[#allocation64_spill] sm:$0xff] %v9737_v55  ;;  %v2768_v10 = vsel %vm1048_vm5, %v9737_v55, 0.0 }
 0x804   : > { %v7633_v19 = vpop.eup %7632  ;;  %2751 = vadd.xlane.f32.xlu0 %v2750_v40  ;;  %12314 = vst [vmem:[#allocation63_spill] sm:$0xff] %v9745_v35  ;;  %v2771_v39 = vsel %vm1048_vm5, %v9745_v35, 0.0 }
 0x805   : > { %v9747_v4 = vmul.f32 %v7633_v19, %v2560_v17  ;;  %2769 = vadd.xlane.f32.xlu1 %v2768_v10  ;;  %v9758_v40 = vpop.xlane.xlu0 %1944  ;;  %v2585_v10 = vsub.f32 %v9467_v33, %v9761_v47  ;;  %v2643_v33 = vmul.f32 1.442695, %v2588_v8  ;;  %v12324_v8 = vld [vmem:[#allocation101_spill] sm:$0xff] }
 0x806   : > { %12319 = vst [vmem:[#allocation97_spill] sm:$0xff] %v9758_v40  ;;  %v9769_v19 = vpop.xlane.xlu1 %1923 }
 0x807   : > { %12315 = vst [vmem:[#allocation96_spill] sm:$0xff] %v9747_v4  ;;  %v2774_v53 = vsel %vm1048_vm5, %v9747_v4, 0.0  ;;  %v2637_v35 = vmul.f32 1.442695, %v2585_v10  ;;  %v2587_v4 = vsub.f32 %v9480_v56, %v9769_v19  ;;  %v2594_v56 = vsub.f32 %v9515_v13, %v9758_v40  ;;  %v12325_v40 = vld [vmem:[#allocation67_spill] sm:$0xff] }
 0x808   : > { %2775 = vadd.xlane.f32.xlu0 %v2774_v53  ;;  %v2639_v53 = vmul.f32 1.442695, %v2586_v60 }
 0x809   : > { %2772 = vadd.xlane.f32.xlu1 %v2771_v39  ;;  %v9765_v17 = vpop.xlane.xlu0 %1950  ;;  %v2641_v9 = vmul.f32 1.442695, %v2587_v4 }
 0x80a   : > { %12320 = vst [vmem:[#allocation84_spill] sm:$0xff] %v9765_v17  ;;  %v2596_v39 = vsub.f32 %v9523_v28, %v9765_v17  ;;  %7634 = vpow2.f32 %v2639_v53  ;;  %v9777_v49 = vpop.xlane.xlu1 %1941  ;;  %v12322_v53 = vld [vmem:[#allocation71_spill] sm:$0xff]  ;;  %v2553_v17 = vmul.f32 0.5, %v12323_v48 }
 0x80b   : > { %7636 = vpow2.f32 %v2637_v35  ;;  %12321 = vst [vmem:[#allocation108_spill] sm:$0xff] %v9777_v49  ;;  %v2593_v60 = vsub.f32 %v9502_v51, %v9777_v49  ;;  %v2554_v35 = vmul.f32 0.5, %v12322_v53  ;;  %v2555_v53 = vmul.f32 0.5, %v12325_v40 }
 0x80c   : > { %v2659_v55 = vmul.f32 1.442695, %v2596_v39  ;;  %v2821_v49 = vsub.f32 0.0, %v9535_v2 }
 0x80d   : > { %v2653_v10 = vmul.f32 1.442695, %v2593_v60 }
 0x80e   : > { %7638 = vpow2.f32 %v2659_v55  ;;  %v9784_v4 = vpop.xlane.xlu1 %1947  ;;  %v2655_v55 = vmul.f32 1.442695, %v2594_v56  ;;  %v2853_v40 = vmul.f32 1.442695, %v2821_v49  ;;  %v2823_v49 = vsub.f32 0.0, %v9545_v44  ;;  %v12330_v44 = vld [vmem:[#allocation99_spill] sm:$0xff] }
 0x80f   : > { %7640 = vpow2.f32 %v2641_v9  ;;  %v2595_v51 = vsub.f32 %v9511_v61, %v9784_v4 }
 0x810   : > { %7642 = vpow2.f32 %v2643_v33  ;;  %v2564_v33 = vmul.f32 0.5, %v12324_v8  ;;  %v2822_v8 = vsub.f32 0.0, %v9541_v57 }
 0x811   : > { %7644 = vpow2.f32 %v2653_v10  ;;  %v2657_v10 = vmul.f32 1.442695, %v2595_v51 }
 0x812   : > { %7646 = vpow2.f32 %v2655_v55 }
 0x813   : > { %7648 = vpow2.f32 %v2657_v10  ;;  %v12329_v10 = vld [vmem:[#allocation102_spill] sm:$0xff] }
 0x814   : > { %v7635_v28 = vpop.eup %7634  ;;  %7650 = vpow2.f32 %v2853_v40 }
 0x815   : > { %v7637_v39 = vpop.eup %7636  ;;  %v9787_v7 = vmul.f32 %v7635_v28, %v2554_v35  ;;  %v12327_v35 = vld [vmem:[#allocation70_spill] sm:$0xff] }
 0x816   : > { %v9792_v60 = vmul.f32 %v7637_v39, %v2553_v17  ;;  %v2556_v39 = vmul.f32 0.5, %v12327_v35  ;;  %v2562_v35 = vmul.f32 0.5, %v12329_v10 }
 0x817   : > { %v2756_v48 = vsel %vm1048_vm5, %v9787_v7, 0.0 }
 0x818   : > { %v7639_v9 = vpop.eup %7638  ;;  %v2753_v61 = vsel %vm1048_vm5, %v9792_v60, 0.0 }
 0x819   : > { %v7641_v13 = vpop.eup %7640  ;;  %v9798_v28 = vmul.f32 %v7639_v9, %v2564_v33  ;;  %v12328_v33 = vld [vmem:[#allocation100_spill] sm:$0xff] }
 0x81a   : > { %3834 = vbcast.lane.b32.xlu1 %v12318_v25, 272  ;;  %v9802_v56 = vmul.f32 %v7641_v13, %v2555_v53  ;;  %v7643_v17 = vpop.eup %7642  ;;  %v2561_v13 = vmul.f32 0.5, %v12328_v33  ;;  %v2855_v53 = vmul.f32 1.442695, %v2822_v8 }
 0x81b   : > { %12326 = vst [vmem:[#allocation71_spill] sm:$0xff] %v9798_v28  ;;  %v2786_v2 = vsel %vm1048_vm5, %v9798_v28, 0.0  ;;  %v9810_v55 = vmul.f32 %v7643_v17, %v2556_v39  ;;  %v7645_v51 = vpop.eup %7644  ;;  %v2857_v17 = vmul.f32 1.442695, %v2823_v49  ;;  %v2824_v39 = vsub.f32 0.0, %v9549_v46 }
 0x81c   : > { %v2759_v9 = vsel %vm1048_vm5, %v9802_v56, 0.0  ;;  %v7647_v57 = vpop.eup %7646  ;;  %7652 = vpow2.f32 %v2855_v53 }
 0x81d   : > { %v9822_v40 = vmul.f32 %v7647_v57, %v2562_v35  ;;  %v7649_v8 = vpop.eup %7648  ;;  %7654 = vpow2.f32 %v2857_v17  ;;  %v2830_v35 = vsub.f32 0.0, %v9563_v31 }
 0x81e   : > { %3830 = vbcast.lane.b32.xlu0 %v12318_v25, 264  ;;  %v7651_v10 = vpop.eup %7650 }
 0x81f   : > { %v2780_v53 = vsel %vm1048_vm5, %v9822_v40, 0.0 }
 0x83d   : > { %2757 = vadd.xlane.f32.xlu0 %v2756_v48  ;;  %v2762_v48 = vsel %vm1048_vm5, %v9810_v55, 0.0 }
 0x83e   : > { %2754 = vadd.xlane.f32.xlu1 %v2753_v61  ;;  %v9816_v61 = vmul.f32 %v7645_v51, %v2561_v13  ;;  %v2859_v51 = vmul.f32 1.442695, %v2824_v39  ;;  %v2829_v13 = vsub.f32 0.0, %v9556_v38  ;;  %v7653_v38 = vpop.eup %7652 }
 0x840   : > { %7656 = vpow2.f32 %v2859_v51  ;;  %v2869_v57 = vmul.f32 1.442695, %v2829_v13  ;;  %v7655_v13 = vpop.eup %7654 }
 0x841   : > { %2787 = vadd.xlane.f32.xlu0 %v2786_v2  ;;  %v2777_v2 = vsel %vm1048_vm5, %v9816_v61, 0.0 }
 0x842   : > { %2760 = vadd.xlane.f32.xlu1 %v2759_v9  ;;  %v2563_v9 = vmul.f32 0.5, %v12330_v44  ;;  %7658 = vpow2.f32 %v2869_v57 }
 0x844   : > { %v9828_v46 = vmul.f32 %v7649_v8, %v2563_v9  ;;  %v2831_v8 = vsub.f32 0.0, %v9572_v59 }
 0x846   : > { %2763 = vadd.xlane.f32.xlu1 %v2762_v48  ;;  %v2783_v17 = vsel %vm1048_vm5, %v9828_v46, 0.0 }
 0x84a   : > { %2778 = vadd.xlane.f32.xlu1 %v2777_v2  ;;  %v7657_v57 = vpop.eup %7656 }
 0x84c   : > { %v2695_v33 = vpop.xlane.xlu1 %2694 }
 0x84d   : > { %v2789_v48 = vand.u32 2147483647, %v2695_v33  ;;  %v2871_v33 = vmul.f32 1.442695, %v2830_v35  ;;  %v12331_v35 = vld [vmem:[#allocation82_spill] sm:$0xff] }
 0x84e   : > { %2781 = vadd.xlane.f32.xlu1 %v2780_v53  ;;  %v2832_v53 = vsub.f32 0.0, %v9581_v54 }
 0x84f   : > { %v2917_v49 = vmax.f32 %v2789_v48, %v7651_v10  ;;  %v2873_v10 = vmul.f32 1.442695, %v2831_v8 }
 0x851   : > { %v2698_v2 = vpop.xlane.xlu0 %2697  ;;  %v2949_v44 = vadd.f32 1e-06, %v2917_v49 }
 0x852   : > { %v2790_v28 = vand.u32 2147483647, %v2698_v2  ;;  %2784 = vadd.xlane.f32.xlu1 %v2783_v17  ;;  %v2825_v17 = vsub.f32 0.0, %v9590_v14 }
 0x853   : > { %7660 = vrcp.f32 %v2949_v44  ;;  %v2875_v44 = vmul.f32 1.442695, %v2832_v53 }
 0x854   : > { %v2918_v39 = vmax.f32 %v2790_v28, %v7653_v38  ;;  %v2861_v8 = vmul.f32 1.442695, %v2825_v17 }
 0x855   : > { %v2701_v9 = vpop.xlane.xlu1 %2700 }
 0x856   : > { %v2950_v48 = vadd.f32 1e-06, %v2918_v39  ;;  %v2791_v51 = vand.u32 2147483647, %v2701_v9 }
 0x857   : > { %3838 = vbcast.lane.b32.xlu0 %v12318_v25, 280 }
 0x858   : > { %7662 = vrcp.f32 %v2950_v48  ;;  %v2919_v31 = vmax.f32 %v2791_v51, %v7655_v13  ;;  %v7659_v48 = vpop.eup %7658  ;;  %v2826_v51 = vsub.f32 0.0, %v9599_v6 }
 0x859   : > { %7664 = vpow2.f32 %v2871_v33  ;;  %v2704_v49 = vpop.xlane.xlu0 %2703 }
 0x85a   : > { %v2951_v2 = vadd.f32 1e-06, %v2919_v31  ;;  %v2792_v28 = vand.u32 2147483647, %v2704_v49  ;;  %7666 = vpow2.f32 %v2873_v10 }
 0x85b   : > { %3811 = vbcast.lane.b32.xlu0 %v12331_v35, 296 }
 0x85c   : > { %v2920_v59 = vmax.f32 %v2792_v28, %v7657_v57  ;;  %7668 = vrcp.f32 %v2951_v2  ;;  %v2863_v57 = vmul.f32 1.442695, %v2826_v51 }
 0x85d   : > { %v2719_v38 = vpop.xlane.xlu1 %2718  ;;  %v7661_v33 = vpop.eup %7660 }
 0x85e   : > { %v2952_v39 = vadd.f32 1e-06, %v2920_v59  ;;  %v2797_v9 = vand.u32 2147483647, %v2719_v38  ;;  %v3013_v14 = vmul.f32 %v7661_v33, %v9554_v3  ;;  %v2827_v59 = vsub.f32 0.0, %v9608_v30  ;;  %v12332_v33 = vld [vmem:[#allocation7_spill] sm:$0xff] }
 0x85f   : > { %3819 = vbcast.lane.b32.xlu0 %v12331_v35, 312 }
 0x860   : > { %7670 = vrcp.f32 %v2952_v39  ;;  %v2925_v54 = vmax.f32 %v2797_v9, %v7659_v48  ;;  %v2865_v9 = vmul.f32 1.442695, %v2827_v59  ;;  %v2828_v48 = vsub.f32 0.0, %v9617_v45  ;;  %v12335_v45 = vld [vmem:[#allocation39_spill] sm:$0xff] }
 0x861   : > { %7672 = vpow2.f32 %v2875_v44  ;;  %v2722_v13 = vpop.xlane.xlu0 %2721  ;;  %v12336_v59 = vld [vmem:[#allocation3_spill] sm:$0xff] }
 0x862   : > { %v7663_v31 = vpop.eup %7662  ;;  %v2957_v10 = vadd.f32 1e-06, %v2925_v54  ;;  %v2798_v53 = vand.u32 2147483647, %v2722_v13  ;;  %7674 = vpow2.f32 %v2861_v8  ;;  %v12333_v54 = vld [vmem:[#allocation66_spill] sm:$0xff] }
 0x863   : > { %v7665_v49 = vpop.eup %7664  ;;  %3846 = vbcast.lane.b32.xlu0 %v12318_v25, 296  ;;  %v3014_v2 = vmul.f32 %v7663_v31, %v9565_v32  ;;  %3807 = vbcast.lane.b32.xlu1 %v12331_v35, 288  ;;  %v9851_v8 = vrot.slane %v12333_v54, %v12332_v33 }
 0x864   : > { %v2926_v28 = vmax.f32 %v2798_v53, %v7665_v49  ;;  %7676 = vrcp.f32 %v2957_v10  ;;  %v7667_v39 = vpop.eup %7666  ;;  %v12334_v53 = vld [vmem:[#allocation37_spill] sm:$0xff] }
 0x865   : > { %v2725_v44 = vpop.xlane.xlu1 %2724  ;;  %v3045_v6 = vpack.c.bf16 %v3014_v2, %v3013_v14  ;;  %v7473_v49 = vunpack.i.h.bf16 %v12334_v53  ;;  %v7472_v14 = vunpack.i.l.bf16 %v12334_v53  ;;  %v12338_v53 = vld [vmem:[#allocation40_spill] sm:$0xff] }
 0x866   : > { %v2958_v17 = vadd.f32 1e-06, %v2926_v28  ;;  %v2799_v38 = vand.u32 2147483647, %v2725_v44  ;;  %v7669_v3 = vpop.eup %7668  ;;  %v7483_v28 = vunpack.i.h.bf16 %v12335_v45  ;;  %v12085_v44 = vsub.s32 7, %v12336_v59 }
 0x867   : > { %7058 = vmatprep.mubr.msk.bf16.mxu0 %vm1048_vm5, %v3045_v6  ;;  %3854 = vbcast.lane.b32.xlu0 %v12318_v25, 312  ;;  %v3015_v2 = vmul.f32 %v7669_v3, %v9574_v52  ;;  %v2867_v6 = vmul.f32 1.442695, %v2828_v48 }
 0x868   : > { %7678 = vrcp.f32 %v2958_v17  ;;  %v2927_v32 = vmax.f32 %v2799_v38, %v7667_v39  ;;  %3815 = vbcast.lane.b32.xlu1 %v12331_v35, 304  ;;  %v2833_v17 = vsub.f32 0.0, %v9626_v42  ;;  %v12337_v42 = vld [vmem:[#allocation38_spill] sm:$0xff] }
 0x869   : > { %7680 = vpow2.f32 %v2863_v57  ;;  %v2728_v30 = vpop.xlane.xlu0 %2727 }
 0x86a   : > { %v7671_v51 = vpop.eup %7670  ;;  %v2959_v13 = vadd.f32 1e-06, %v2927_v32  ;;  %v2800_v31 = vand.u32 2147483647, %v2728_v30  ;;  %7682 = vpow2.f32 %v2865_v9  ;;  %v7482_v32 = vunpack.i.l.bf16 %v12335_v45 }
 0x86b   : > { %v7673_v10 = vpop.eup %7672  ;;  %v3016_v35 = vmul.f32 %v7671_v51, %v9583_v36  ;;  %3865 = vbcast.lane.b32.xlu0 %v9851_v8, 264  ;;  %v9865_v30 = vpack.c.bf16 %v7473_v49, %v7472_v14  ;;  %v2877_v48 = vmul.f32 1.442695, %v2833_v17  ;;  %v2834_v51 = vsub.f32 0.0, %v9635_v5 }
 0x86c   : > { %v2928_v57 = vmax.f32 %v2800_v31, %v7673_v10  ;;  %3842 = vbcast.lane.b32.xlu1 %v12318_v25, 288  ;;  %7684 = vrcp.f32 %v2959_v13  ;;  %v7675_v3 = vpop.eup %7674  ;;  %v9874_v31 = vrot.slane %v12333_v54, %v12085_v44  ;;  %v7493_v49 = vunpack.i.h.bf16 %v12338_v53 }
 0x86d   : > { %v2707_v38 = vpop.xlane.xlu1 %2706  ;;  %v3046_v39 = vpack.c.bf16 %v3016_v35, %v3015_v2  ;;  %v7492_v45 = vunpack.i.l.bf16 %v12338_v53  ;;  %v2835_v5 = vsub.f32 0.0, %v9637_v34  ;;  %v2839_v53 = vsub.f32 0.0, %v9663_v1 }
 0x86e   : > { %v2960_v52 = vadd.f32 1e-06, %v2928_v57  ;;  %v2793_v36 = vand.u32 2147483647, %v2707_v38  ;;  %v7677_v33 = vpop.eup %7676  ;;  %v2879_v38 = vmul.f32 1.442695, %v2834_v51 }
 0x86f   : > { %7059 = vmatmul.mubr.msk.bf16.vlgmr.msra.gmra.mrb[36].mxu0 %vm1048_vm5, %v3046_v39  ;;  %3873 = vbcast.lane.b32.xlu0 %v9851_v8, 280  ;;  %v3021_v57 = vmul.f32 %v7677_v33, %v9592_v62  ;;  %v2881_v62 = vmul.f32 1.442695, %v2835_v5 }
 0x870   : > { %7686 = vrcp.f32 %v2960_v52  ;;  %v2921_v9 = vmax.f32 %v2793_v36, %v7675_v3  ;;  %3850 = vbcast.lane.b32.xlu1 %v12318_v25, 304  ;;  %7083 = vmatpush3.bf16.msra.mxu0 %v12337_v42  ;;  %v9877_v25 = vpack.c.bf16 %v7483_v28, %v7482_v32  ;;  %v2836_v28 = vsub.f32 0.0, %v9648_v24 }
 0x871   : > { %7688 = vpow2.f32 %v2867_v6  ;;  %7084 = vmatprep.subr.bf16.mxu0 %v9865_v30  ;;  %v2710_v13 = vpop.xlane.xlu0 %2709 }
 0x872   : > { %v7679_v10 = vpop.eup %7678  ;;  %v2953_v14 = vadd.f32 1e-06, %v2921_v9  ;;  %v2794_v2 = vand.u32 2147483647, %v2710_v13  ;;  %7690 = vpow2.f32 %v2877_v48  ;;  %v2883_v24 = vmul.f32 1.442695, %v2836_v28 }
 0x873   : > { %v7681_v35 = vpop.eup %7680  ;;  %3900 = vbcast.lane.b32.xlu0 %v9874_v31, 264  ;;  %v3022_v6 = vmul.f32 %v7679_v10, %v9601_v11  ;;  %v9890_v11 = vpack.c.bf16 %v7493_v49, %v7492_v45  ;;  %v2837_v9 = vsub.f32 0.0, %v9650_v22  ;;  %v12339_v13 = vld [vmem:[#allocation57_spill] sm:$0xff]  ;;  %v12340_v22 = vld [vmem:[#allocation59_spill] sm:$0xff] }
 0x874   : > { %v2922_v17 = vmax.f32 %v2794_v2, %v7681_v35  ;;  %3861 = vbcast.lane.b32.xlu1 %v9851_v8, 256  ;;  %7085 = vmatpush3.bf16.msra.mxu0 %v9865_v30  ;;  %7692 = vrcp.f32 %v2953_v14  ;;  %v7683_v36 = vpop.eup %7682  ;;  %v7478_v10 = vunpack.i.h.bf16 %v12339_v13  ;;  %v7477_v35 = vunpack.i.l.bf16 %v12339_v13  ;;  %v12341_v28 = vld [vmem:[#allocation65_spill] sm:$0xff] }
 0x875   : > { %7086 = vmatprep.subr.bf16.mxu0 %v9877_v25  ;;  %v2713_v39 = vpop.xlane.xlu1 %2712  ;;  %v3049_v32 = vpack.c.bf16 %v3022_v6, %v3021_v57  ;;  %v7488_v57 = vunpack.i.h.bf16 %v12340_v22  ;;  %v7487_v6 = vunpack.i.l.bf16 %v12340_v22  ;;  %v2885_v1 = vmul.f32 1.442695, %v2837_v9  ;;  %v12343_v9 = vld [vmem:[#allocation49_spill] sm:$0xff] }
 0x876   : > { %v2954_v34 = vadd.f32 1e-06, %v2922_v17  ;;  %v2795_v52 = vand.u32 2147483647, %v2713_v39  ;;  %v7685_v3 = vpop.eup %7684  ;;  %v2889_v39 = vmul.f32 1.442695, %v2839_v53 }
 0x877   : > { %7074 = vmatprep.mubr.msk.bf16.mxu1 %vm1048_vm5, %v3049_v32  ;;  %3908 = vbcast.lane.b32.xlu0 %v9874_v31, 280  ;;  %v3023_v45 = vmul.f32 %v7685_v3, %v9610_v37 }
 0x878   : > { %7694 = vrcp.f32 %v2954_v34  ;;  %v2923_v33 = vmax.f32 %v2795_v52, %v7683_v36  ;;  %3869 = vbcast.lane.b32.xlu1 %v9851_v8, 272  ;;  %7087 = vmatpush3.bf16.msra.mxu0 %v9877_v25  ;;  %v2845_v36 = vsub.f32 0.0, %v9676_v23  ;;  %v2840_v23 = vsub.f32 0.0, %v9674_v50 }
 0x879   : > { %7696 = vpow2.f32 %v2879_v38  ;;  %7088 = vmatprep.subr.bf16.mxu0 %v9890_v11  ;;  %v2716_v48 = vpop.xlane.xlu0 %2715  ;;  %v2838_v38 = vsub.f32 0.0, %v9661_v41  ;;  %v12342_v41 = vld [vmem:[#allocation42_spill] sm:$0xff] }
 0x87a   : > { %v7687_v51 = vpop.eup %7686  ;;  %v2955_v49 = vadd.f32 1e-06, %v2923_v33  ;;  %v2796_v14 = vand.u32 2147483647, %v2716_v48  ;;  %7698 = vpow2.f32 %v2881_v62  ;;  %v9912_v62 = vpack.c.bf16 %v7478_v10, %v7477_v35 }
 0x87b   : > { %v7689_v2 = vpop.eup %7688  ;;  %v3024_v5 = vmul.f32 %v7687_v51, %v9619_v63  ;;  %3881 = vbcast.lane.b32.xlu0 %v9851_v8, 296  ;;  %7700 = vpow2.f32 %v2883_v24  ;;  %v7498_v33 = vunpack.i.h.bf16 %v12342_v41  ;;  %v7497_v48 = vunpack.i.l.bf16 %v12342_v41 }
 0x87c   : > { %v2924_v17 = vmax.f32 %v2796_v14, %v7689_v2  ;;  %3896 = vbcast.lane.b32.xlu1 %v9874_v31, 256  ;;  %7089 = vmatpush3.bf16.msra.mxu0 %v9890_v11  ;;  %7702 = vrcp.f32 %v2955_v49  ;;  %v7691_v52 = vpop.eup %7690  ;;  %v2887_v51 = vmul.f32 1.442695, %v2838_v38  ;;  %v9920_v14 = vpack.c.bf16 %v7488_v57, %v7487_v6 }
 0x87d   : > { %7320 = vmatprep.subr.msk.bf16.mxu0 %vm2140_vm9, %v12341_v28  ;;  %v2731_v37 = vpop.xlane.xlu1 %2730  ;;  %v3050_v63 = vpack.c.bf16 %v3024_v5, %v3023_v45  ;;  %v2901_v35 = vmul.f32 1.442695, %v2845_v36  ;;  %v2846_v45 = vsub.f32 0.0, %v9688_v0  ;;  %v2891_v57 = vmul.f32 1.442695, %v2840_v23 }
 0x87e   : > { %v2956_v32 = vadd.f32 1e-06, %v2924_v17  ;;  %v2801_v34 = vand.u32 2147483647, %v2731_v37  ;;  %v7693_v3 = vpop.eup %7692  ;;  %v2848_v6 = vsub.f32 0.0, %v9706_v21 }
 0x87f   : > { %7075 = vmatmul.mubr.msk.bf16.vlgmr.msra.gmra.mrb[36].mxu1 %vm1048_vm5, %v3050_v63  ;;  %3889 = vbcast.lane.b32.xlu0 %v9851_v8, 312  ;;  %v3017_v22 = vmul.f32 %v7693_v3, %v9628_v29 }
 0x880   : > { %7704 = vrcp.f32 %v2956_v32  ;;  %v2929_v24 = vmax.f32 %v2801_v34, %v7691_v52  ;;  %3904 = vbcast.lane.b32.xlu1 %v9874_v31, 272  ;;  %7099 = vmatpush3.bf16.msra.mxu1 %v12343_v9  ;;  %v2903_v32 = vmul.f32 1.442695, %v2846_v45  ;;  %v2847_v34 = vsub.f32 0.0, %v9690_v20 }
 0x881   : > { %7706 = vpow2.f32 %v2885_v1  ;;  %7100 = vmatprep.subr.bf16.mxu1 %v9912_v62  ;;  %v2734_v13 = vpop.xlane.xlu0 %2733  ;;  %v9933_v52 = vpack.c.bf16 %v7498_v33, %v7497_v48  ;;  %v2907_v41 = vmul.f32 1.442695, %v2848_v6 }
 0x882   : > { %v7695_v10 = vpop.eup %7694  ;;  %7708 = vpow2.f32 %v2889_v39  ;;  %v2961_v53 = vadd.f32 1e-06, %v2929_v24  ;;  %v2802_v49 = vand.u32 2147483647, %v2734_v13  ;;  %v2905_v13 = vmul.f32 1.442695, %v2847_v34 }
 0x883   : > { %v7697_v2 = vpop.eup %7696  ;;  %v2737_v5 = vpop.xlane.xlu1 %2736  ;;  %3916 = vbcast.lane.b32.xlu0 %v9874_v31, 296  ;;  %v3018_v50 = vmul.f32 %v7695_v10, %v9639_v12  ;;  %7710 = vpow2.f32 %v2887_v51  ;;  %v3926_v51 = vcombine.high %v12333_v54, %v12333_v54  ;;  %v12344_v54 = vld [vmem:[#allocation36_spill] sm:$0xff] }
 0x884   : > { %v2803_v17 = vand.u32 2147483647, %v2737_v5  ;;  %v2930_v1 = vmax.f32 %v2802_v49, %v7697_v2  ;;  %3877 = vbcast.lane.b32.xlu1 %v9851_v8, 288  ;;  %7101 = vmatpush3.bf16.msra.mxu1 %v9912_v62  ;;  %v7699_v38 = vpop.eup %7698  ;;  %7712 = vrcp.f32 %v2961_v53  ;;  %v4003_v45 = vcombine.high %v12344_v54, %v12344_v54  ;;  %v12345_v5 = vld [vmem:[#allocation69_spill] sm:$0xff] }
 0x885   : > { %7102 = vmatprep.subr.bf16.mxu1 %v9920_v14  ;;  %v2740_v0 = vpop.xlane.xlu0 %2739  ;;  %v3047_v37 = vpack.c.bf16 %v3018_v50, %v3017_v22  ;;  %v7701_v12 = vpop.eup %7700  ;;  %7714 = vpow2.f32 %v2901_v35 }
 0x886   : > { %v2931_v63 = vmax.f32 %v2803_v17, %v7699_v38  ;;  %v2962_v29 = vadd.f32 1e-06, %v2930_v1  ;;  %v2804_v39 = vand.u32 2147483647, %v2740_v0  ;;  %v7703_v21 = vpop.eup %7702  ;;  %v12346_v38 = vld [vmem:[#allocation90_spill] sm:$0xff] }
 0x887   : > { %7062 = vmatprep.mubr.msk.bf16.mxu0 %vm1048_vm5, %v3047_v37  ;;  %3924 = vbcast.lane.b32.xlu0 %v9874_v31, 312 }
 0x888   : > { %v2963_v36 = vadd.f32 1e-06, %v2931_v63  ;;  %7716 = vrcp.f32 %v2962_v29  ;;  %v2932_v3 = vmax.f32 %v2804_v39, %v7701_v12  ;;  %3885 = vbcast.lane.b32.xlu1 %v9851_v8, 304  ;;  %7103 = vmatpush3.bf16.msra.mxu1 %v9920_v14  ;;  %v3019_v8 = vmul.f32 %v7703_v21, %v9652_v27 }
 0x889   : > { %7718 = vpow2.f32 %v2891_v57  ;;  %7104 = vmatprep.subr.bf16.mxu1 %v9933_v52  ;;  %v2743_v24 = vpop.xlane.xlu0 %2742  ;;  %v3933_v57 = vrot.slane %v3926_v51, %v12346_v38  ;;  %v4010_v39 = vrot.slane %v4003_v45, %v12346_v38 }
 0x88a   : > { %v7705_v20 = vpop.eup %7704  ;;  %7720 = vrcp.f32 %v2963_v36  ;;  %v2964_v33 = vadd.f32 1e-06, %v2932_v3  ;;  %v2805_v48 = vand.u32 2147483647, %v2743_v24  ;;  %v2749_v10 = vpop.xlane.xlu1 %2748 }
 0x88b   : > { %v7707_v23 = vpop.eup %7706  ;;  %7722 = vpow2.f32 %v2903_v32  ;;  %v3020_v53 = vmul.f32 %v7705_v20, %v9665_v15  ;;  %v2807_v2 = vand.u32 2147483647, %v2749_v10  ;;  %v9953_v24 = vrot.slane %v3933_v57, %v12346_v38 }
 0x88c   : > { %v7709_v49 = vpop.eup %7708  ;;  %7724 = vrcp.f32 %v2964_v33  ;;  %v2933_v35 = vmax.f32 %v2805_v48, %v7707_v23  ;;  %3912 = vbcast.lane.b32.xlu1 %v9874_v31, 288  ;;  %7105 = vmatpush3.bf16.msra.mxu1 %v9933_v52 }
 0x88d   : > { %7726 = vpow2.f32 %v2907_v41  ;;  %7324 = vmatprep.subr.msk.bf16.mxu1 %vm2140_vm9, %v12345_v5  ;;  %v2746_v22 = vpop.xlane.xlu0 %2745  ;;  %v3048_v50 = vpack.c.bf16 %v3020_v53, %v3019_v8  ;;  %v2935_v27 = vmax.f32 %v2807_v2, %v7709_v49  ;;  %v7711_v1 = vpop.eup %7710  ;;  %v9958_v8 = vrot.slane %v4010_v39, %v12346_v38 }
 0x88e   : > { %v2965_v17 = vadd.f32 1e-06, %v2933_v35  ;;  %v2806_v15 = vand.u32 2147483647, %v2746_v22  ;;  %7728 = vpow2.f32 %v2905_v13  ;;  %v2767_v6 = vpop.xlane.xlu1 %2766  ;;  %v7713_v0 = vpop.eup %7712  ;;  %v3934_v53 = vcombine.high %v3933_v57, %v3933_v57 }
 0x88f   : > { %7063 = vmatmul.mubr.msk.bf16.gmra.mrb[40].mxu0 %vm1048_vm5, %v3048_v50  ;;  %v2813_v37 = vand.u32 2147483647, %v2767_v6  ;;  %v7715_v29 = vpop.eup %7714  ;;  %v2967_v12 = vadd.f32 1e-06, %v2935_v27  ;;  %v3025_v51 = vmul.f32 %v7713_v0, %v9678_v26  ;;  %v12347_v50 = vld [vmem:[#allocation4_spill] sm:$0xff] }
 0x890   : > { %v2934_v63 = vmax.f32 %v2806_v15, %v7711_v1  ;;  %3920 = vbcast.lane.b32.xlu1 %v9874_v31, 304  ;;  %7730 = vrcp.f32 %v2965_v17  ;;  %v12348_v15 = vld [vmem:[#allocation93_spill] sm:$0xff] }
 0x891   : > { %v2752_v32 = vpop.xlane.xlu0 %2751  ;;  %v2941_v21 = vmax.f32 %v2813_v37, %v7715_v29  ;;  %v12349_v29 = vld [vmem:[#allocation104_spill] sm:$0xff] }
 0x892   : > { %v7717_v34 = vpop.eup %7716  ;;  %v2966_v36 = vadd.f32 1e-06, %v2934_v63  ;;  %v2808_v3 = vand.u32 2147483647, %v2752_v32  ;;  %v2770_v20 = vpop.xlane.xlu1 %2769 }
 0x893   : > { %v7719_v41 = vpop.eup %7718  ;;  %v3026_v33 = vmul.f32 %v7717_v34, %v9692_v58  ;;  %v2973_v48 = vadd.f32 1e-06, %v2941_v21  ;;  %v2814_v23 = vand.u32 2147483647, %v2770_v20  ;;  %v9962_v58 = vrot.slane %v9953_v24, %v12347_v50 }
 0x894   : > { %v7721_v31 = vpop.eup %7720  ;;  %7732 = vrcp.f32 %v2966_v36  ;;  %v2936_v13 = vmax.f32 %v2808_v3, %v7719_v41  ;;  %v4011_v21 = vcombine.high %v4010_v39, %v4010_v39  ;;  %v9975_v3 = vrot.slane %v3934_v53, %v12346_v38  ;;  %v12351_v39 = vld [vmem:[#allocation94_spill] sm:$0xff] }
 0x895   : > { %v7723_v10 = vpop.eup %7722  ;;  %v2776_v49 = vpop.xlane.xlu0 %2775  ;;  %v3051_v2 = vpack.c.bf16 %v3026_v33, %v3025_v51  ;;  %7734 = vrcp.f32 %v2967_v12  ;;  %v3027_v17 = vmul.f32 %v7721_v31, %v9699_v18  ;;  %v3972_v12 = vsub.f32 %v12349_v29, %v9962_v58  ;;  %v12350_v33 = vld [vmem:[#allocation105_spill] sm:$0xff]  ;;  %v12356_v29 = vld [vmem:[#allocation64_spill] sm:$0xff] }
 0x896   : > { %v7725_v35 = vpop.eup %7724  ;;  %v2942_v54 = vmax.f32 %v2814_v23, %v7723_v10  ;;  %v2968_v45 = vadd.f32 1e-06, %v2936_v13  ;;  %v2816_v22 = vand.u32 2147483647, %v2776_v49  ;;  %7736 = vrcp.f32 %v2973_v48  ;;  %v2773_v27 = vpop.xlane.xlu1 %2772 }
 0x897   : > { %v7727_v26 = vpop.eup %7726  ;;  %7078 = vmatprep.mubr.msk.bf16.mxu1 %vm1048_vm5, %v3051_v2  ;;  %v3028_v1 = vmul.f32 %v7725_v35, %v12348_v15  ;;  %v2815_v6 = vand.u32 2147483647, %v2773_v27  ;;  %v9972_v18 = vrot.slane %v9958_v8, %v12347_v50  ;;  %v3973_v31 = vsub.f32 %v12350_v33, %v9962_v58 }
 0x898   : > { %v2974_v57 = vadd.f32 1e-06, %v2942_v54  ;;  %7738 = vrcp.f32 %v2968_v45  ;;  %v2944_v0 = vmax.f32 %v2816_v22, %v7727_v26  ;;  %v7729_v37 = vpop.eup %7728  ;;  %v9983_v10 = vrot.slane %v4011_v21, %v12346_v38  ;;  %v12352_v45 = vld [vmem:[#allocation107_spill] sm:$0xff] }
 0x899   : > { %v3052_v63 = vpack.c.bf16 %v3028_v1, %v3027_v17  ;;  %v2943_v32 = vmax.f32 %v2815_v6, %v7729_v37  ;;  %v4049_v51 = vadd.f32 %v9972_v18, %v3972_v12  ;;  %v9987_v53 = vrot.slane %v9975_v3, %v12347_v50  ;;  %v12355_v37 = vld [vmem:[#allocation60_spill] sm:$0xff]  ;;  %v12399_v21 = vld [vmem:[#allocation51_spill] sm:$0xff] }
 0x89a   : > { %7740 = vrcp.f32 %v2974_v57  ;;  %v2976_v34 = vadd.f32 1e-06, %v2944_v0  ;;  %v7731_v36 = vpop.eup %7730  ;;  %v4050_v54 = vadd.f32 %v9972_v18, %v3973_v31  ;;  %v3835_v15 = vpop.permute.xlu1 %3834  ;;  %v10001_v57 = vrot.slane %v9983_v10, %v12347_v50 }
 0x89b   : > { %7079 = vmatmul.mubr.msk.bf16.gmra.mrb[40].mxu1 %vm1048_vm5, %v3052_v63  ;;  %v2975_v41 = vadd.f32 1e-06, %v2943_v32  ;;  %v3029_v48 = vmul.f32 %v7731_v36, %v12351_v39  ;;  %v3979_v22 = vsub.f32 %v12352_v45, %v9987_v53  ;;  %v9994_v27 = vsel %vm8730_vm7, %v4049_v51, -1e+30  ;;  %v12359_v39 = vld [vmem:[#allocation103_spill] sm:$0xff] }
 0x89c   : > { %7742 = vrcp.f32 %v2976_v34  ;;  %v4115_v6 = vsel %vm1048_vm5, %v9994_v27, -inf  ;;  %v10011_v36 = vsel %vm8736_vm8, %v4050_v54, -1e+30  ;;  %v4237_v33 = vsel %vm2140_vm9, %v12341_v28, 0  ;;  %v12396_v54 = vld [vmem:[#allocation53_spill] sm:$0xff] }
 0x89d   : > { %7744 = vrcp.f32 %v2975_v41  ;;  %v4056_v34 = vadd.f32 %v10001_v57, %v3979_v22  ;;  %v12358_v41 = vld [vmem:[#allocation96_spill] sm:$0xff] }
 0x89e   : > { %v7733_v20 = vpop.eup %7732 }
 0x89f   : > { %v3030_v23 = vmul.f32 %v7733_v20, %v9722_v43  ;;  %v7735_v13 = vpop.eup %7734  ;;  %v12354_v43 = vld [vmem:[#allocation62_spill] sm:$0xff]  ;;  %v10028_v28 = vsel %vm8673_vm6, %v4056_v34, -1e+30 }
 0x8a0   : > { %v7737_v49 = vpop.eup %7736  ;;  %v3031_v17 = vmul.f32 %v7735_v13, %v12354_v43  ;;  %v12363_v43 = vld [vmem:[#allocation106_spill] sm:$0xff] }
 0x8a1   : > { %v3053_v2 = vpack.c.bf16 %v3030_v23, %v3029_v48  ;;  %v3037_v63 = vmul.f32 %v7737_v49, %v12355_v37  ;;  %v3971_v48 = vsub.f32 %v12359_v39, %v9962_v58  ;;  %v12360_v23 = vld [vmem:[#allocation63_spill] sm:$0xff]  ;;  %v12361_v49 = vld [vmem:[#allocation72_spill] sm:$0xff] }
 0x8a2   : > { %v7739_v35 = vpop.eup %7738  ;;  %v4240_v37 = vsel %vm2140_vm9, %v12361_v49, 0 }
 0x8a3   : > { %v3032_v38 = vmul.f32 %v7739_v35, %v9733_v16  ;;  %7090 = vmatprep.mubr.msk.bf16.mxu0 %vm1048_vm5, %v3053_v2  ;;  %v3981_v16 = vsub.f32 %v3835_v15, %v9987_v53  ;;  %v4118_v2 = vsel %vm1048_vm5, %v10011_v36, -inf  ;;  %v4048_v22 = vadd.f32 %v9972_v18, %v3971_v48 }
 0x8a4   : > { %v7741_v1 = vpop.eup %7740  ;;  %v4342_v15 = vsel %vm2140_vm9, %v12345_v5, 0 }
 0x8a5   : > { %v3054_v0 = vpack.c.bf16 %v3032_v38, %v3031_v17  ;;  %v3038_v12 = vmul.f32 %v7741_v1, %v12356_v29  ;;  %v4058_v35 = vadd.f32 %v10001_v57, %v3981_v16  ;;  %v3974_v17 = vsub.f32 %v12363_v43, %v9962_v58  ;;  %v3831_v38 = vpop.permute.xlu0 %3830  ;;  %v12370_v43 = vld [vmem:[#allocation76_spill] sm:$0xff] }
 0x8a6   : > { %v7743_v32 = vpop.eup %7742  ;;  %4116 = vmax.xlane.f32.xlu0 %v4115_v6  ;;  %v4136_v1 = vsel %vm1048_vm5, %v10028_v28, -inf  ;;  %v3980_v29 = vsub.f32 %v3831_v38, %v9987_v53  ;;  %v10050_v5 = vsel %vm8673_vm6, %v4048_v22, -1e+30 }
 0x8a7   : > { %v3040_v20 = vmul.f32 %v7743_v32, %v12358_v41  ;;  %7091 = vmatmul.mubr.msk.bf16.vlgmr.msra.gmra.mrb[44].mxu0 %vm1048_vm5, %v3054_v0  ;;  %v3057_v51 = vpack.c.bf16 %v3038_v12, %v3037_v63  ;;  %v7745_v31 = vpop.eup %7744  ;;  %v10040_v6 = vsel %vm8736_vm8, %v4058_v35, -1e+30  ;;  %v12364_v0 = vld [vmem:[#allocation73_spill] sm:$0xff]  ;;  %v4051_v63 = vadd.f32 %v9972_v18, %v3974_v17  ;;  %v12365_v12 = vld [vmem:[#allocation74_spill] sm:$0xff] }
 0x8a8   : > { %7115 = vmatpush3.bf16.xpose.msra.mxu0 %v4237_v33  ;;  %v3039_v13 = vmul.f32 %v7745_v31, %v12360_v23  ;;  %v4142_v32 = vsel %vm1048_vm5, %v10040_v6, -inf  ;;  %v4112_v34 = vsel %vm1048_vm5, %v10050_v5, -inf  ;;  %v4057_v16 = vadd.f32 %v10001_v57, %v3980_v29  ;;  %v12367_v33 = vld [vmem:[#allocation43_spill] sm:$0xff]  ;;  %v12373_v29 = vld [vmem:[#allocation108_spill] sm:$0xff] }
 0x8a9   : > { %7106 = vmatprep.mubr.msk.bf16.mxu1 %vm1048_vm5, %v3057_v51  ;;  %7321 = vmatprep.subr.msk.bf16.mxu0 %vm2140_vm9, %v12361_v49  ;;  %v4345_v51 = vsel %vm2140_vm9, %v12364_v0, 0  ;;  %v4243_v39 = vsel %vm2140_vm9, %v12365_v12, 0  ;;  %v12368_v23 = vld [vmem:[#allocation75_spill] sm:$0xff]  ;;  %v2841_v35 = vsub.f32 0.0, %v9761_v47 }
 0x8aa   : > { %4119 = vmax.xlane.f32.xlu0 %v4118_v2  ;;  %v3058_v45 = vpack.c.bf16 %v3040_v20, %v3039_v13  ;;  %v10061_v20 = vsel %vm8753_vm10, %v4051_v63, -1e+30  ;;  %v10073_v48 = vsel %vm8730_vm7, %v4057_v16, -1e+30  ;;  %v12369_v13 = vld [vmem:[#allocation98_spill] sm:$0xff]  ;;  %v4246_v17 = vsel %vm2140_vm9, %v12368_v23, 0 }
 0x8ab   : > { %v4121_v31 = vsel %vm1048_vm5, %v10061_v20, -inf  ;;  %v2842_v49 = vsub.f32 0.0, %v12369_v13  ;;  %v4139_v2 = vsel %vm1048_vm5, %v10073_v48, -inf  ;;  %v2893_v38 = vmul.f32 1.442695, %v2841_v35 }
 0x8ac   : > { %7107 = vmatmul.mubr.msk.bf16.vlgmr.msra.gmra.mrb[44].mxu1 %vm1048_vm5, %v3058_v45  ;;  %v4348_v45 = vsel %vm2140_vm9, %v12367_v33, 0  ;;  %v4351_v63 = vsel %vm2140_vm9, %v12370_v43, 0 }
 0x8ad   : > { %7131 = vmatpush3.bf16.xpose.msra.mxu1 %v4342_v15  ;;  %v2895_v22 = vmul.f32 1.442695, %v2842_v49  ;;  %v2843_v15 = vsub.f32 0.0, %v9769_v19 }
 0x8ae   : > { %4137 = vmax.xlane.f32.xlu0 %v4136_v1  ;;  %7325 = vmatprep.subr.msk.bf16.mxu1 %vm2140_vm9, %v12364_v0  ;;  %v12371_v1 = vld [vmem:[#allocation78_spill] sm:$0xff]  ;;  %v12372_v0 = vld [vmem:[#allocation95_spill] sm:$0xff] }
 0x8af   : > { %7746 = vpow2.f32 %v2895_v22  ;;  %v2897_v47 = vmul.f32 1.442695, %v2843_v15 }
 0x8b0   : > { %7117 = vmatpush3.bf16.xpose.msra.mxu0 %v4240_v37  ;;  %7748 = vpow2.f32 %v2893_v38  ;;  %v2844_v37 = vsub.f32 0.0, %v12372_v0 }
 0x8b1   : > { %7322 = vmatprep.subr.msk.bf16.mxu0 %vm2140_vm9, %v12365_v12  ;;  %v2849_v12 = vsub.f32 0.0, %v12373_v29  ;;  %7750 = vpow2.f32 %v2897_v47  ;;  %v2851_v47 = vsub.f32 0.0, %v9784_v4 }
 0x8b2   : > { %4143 = vmax.xlane.f32.xlu0 %v4142_v32  ;;  %v12374_v32 = vld [vmem:[#allocation80_spill] sm:$0xff]  ;;  %v2899_v19 = vmul.f32 1.442695, %v2844_v37 }
 0x8b4   : > { %4113 = vmax.xlane.f32.xlu1 %v4112_v34  ;;  %v12375_v34 = vld [vmem:[#allocation84_spill] sm:$0xff]  ;;  %7752 = vpow2.f32 %v2899_v19 }
 0x8b5   : > { %7133 = vmatpush3.bf16.xpose.msra.mxu1 %v4345_v51  ;;  %v2852_v16 = vsub.f32 0.0, %v12375_v34 }
 0x8b6   : > { %7326 = vmatprep.subr.msk.bf16.mxu1 %vm2140_vm9, %v12367_v33  ;;  %v2909_v33 = vmul.f32 1.442695, %v2849_v12 }
 0x8b7   : > { %v2915_v49 = vmul.f32 1.442695, %v2852_v16  ;;  %v2913_v16 = vmul.f32 1.442695, %v2851_v47 }
 0x8b8   : > { %4122 = vmax.xlane.f32.xlu1 %v4121_v31  ;;  %7119 = vmatpush3.bf16.xpose.msra.mxu0 %v4243_v39  ;;  %7754 = vpow2.f32 %v2909_v33 }
 0x8b9   : > { %7323 = vmatprep.subr.msk.bf16.mxu0 %vm2140_vm9, %v12368_v23  ;;  %v7747_v39 = vpop.eup %7746  ;;  %v12376_v23 = vld [vmem:[#allocation97_spill] sm:$0xff]  ;;  %7756 = vpow2.f32 %v2915_v49 }
 0x8ba   : > { %v2850_v13 = vsub.f32 0.0, %v12376_v23  ;;  %v7749_v22 = vpop.eup %7748 }
 0x8bb   : > { %v7751_v29 = vpop.eup %7750 }
 0x8bc   : > { %4140 = vmax.xlane.f32.xlu1 %v4139_v2  ;;  %v2911_v15 = vmul.f32 1.442695, %v2850_v13 }
 0x8bd   : > { %7135 = vmatpush3.bf16.xpose.msra.mxu1 %v4348_v45 }
 0x8be   : > { %7327 = vmatprep.subr.msk.bf16.mxu1 %vm2140_vm9, %v12370_v43  ;;  %v7753_v23 = vpop.eup %7752 }
 0x8c0   : > { %7121 = vmatpush3.bf16.xpose.msra.mxu0 %v4246_v17 }
 0x8c1   : > { %7328 = vmatprep.subr.msk.bf16.mxu0 %vm2140_vm9, %v12371_v1 }
 0x8c5   : > { %7137 = vmatpush3.bf16.xpose.msra.mxu1 %v4351_v63 }
 0x8c6   : > { %7332 = vmatprep.subr.msk.bf16.mxu1 %vm2140_vm9, %v12374_v32 }
 0x8ca   : > { %v2758_v51 = vpop.xlane.xlu0 %2757 }
 0x8cb   : > { %v2810_v31 = vand.u32 2147483647, %v2758_v51  ;;  %v2755_v2 = vpop.xlane.xlu1 %2754 }
 0x8cc   : > { %v2809_v35 = vand.u32 2147483647, %v2755_v2 }
 0x8cd   : > { %v2938_v45 = vmax.f32 %v2810_v31, %v7747_v39 }
 0x8ce   : > { %v2788_v43 = vpop.xlane.xlu0 %2787  ;;  %v2937_v17 = vmax.f32 %v2809_v35, %v7749_v22 }
 0x8cf   : > { %v2970_v38 = vadd.f32 1e-06, %v2938_v45  ;;  %v2761_v0 = vpop.xlane.xlu1 %2760  ;;  %v2820_v35 = vand.u32 2147483647, %v2788_v43 }
 0x8d0   : > { %v2969_v37 = vadd.f32 1e-06, %v2937_v17  ;;  %v2811_v63 = vand.u32 2147483647, %v2761_v0  ;;  %v7755_v17 = vpop.eup %7754 }
 0x8d1   : > { %7758 = vrcp.f32 %v2970_v38  ;;  %v7757_v0 = vpop.eup %7756 }
 0x8d2   : > { %v3839_v12 = vpop.permute.xlu0 %3838  ;;  %7760 = vrcp.f32 %v2969_v37  ;;  %v2939_v19 = vmax.f32 %v2811_v63, %v7751_v29 }
 0x8d3   : > { %v3982_v34 = vsub.f32 %v3839_v12, %v9987_v53  ;;  %7762 = vpow2.f32 %v2911_v15  ;;  %v2764_v51 = vpop.xlane.xlu1 %2763 }
 0x8d4   : > { %v2971_v33 = vadd.f32 1e-06, %v2939_v19  ;;  %v2812_v31 = vand.u32 2147483647, %v2764_v51  ;;  %7764 = vpow2.f32 %v2913_v16 }
 0x8d5   : > { %v4059_v39 = vadd.f32 %v10001_v57, %v3982_v34  ;;  %v2948_v34 = vmax.f32 %v2820_v35, %v7757_v0  ;;  %v4456_v35 = vsel %vm2140_vm9, %v12396_v54, 0 }
 0x8d6   : > { %v3812_v4 = vpop.permute.xlu0 %3811  ;;  %v2940_v13 = vmax.f32 %v2812_v31, %v7753_v23  ;;  %7766 = vrcp.f32 %v2971_v33 }
 0x8d7   : > { %v3976_v49 = vsub.f32 %v3812_v4, %v9962_v58  ;;  %v10104_v2 = vsel %vm8753_vm10, %v4059_v39, -1e+30  ;;  %v2779_v45 = vpop.xlane.xlu1 %2778 }
 0x8d8   : > { %v4145_v22 = vsel %vm1048_vm5, %v10104_v2, -inf  ;;  %v2972_v38 = vadd.f32 1e-06, %v2940_v13  ;;  %v2817_v15 = vand.u32 2147483647, %v2779_v45 }
 0x8d9   : > { %v4053_v47 = vadd.f32 %v9972_v18, %v3976_v49  ;;  %4146 = vmax.xlane.f32.xlu1 %v4145_v22 }
 0x8da   : > { %v3820_v37 = vpop.permute.xlu0 %3819  ;;  %7768 = vrcp.f32 %v2972_v38  ;;  %v2945_v29 = vmax.f32 %v2817_v15, %v7755_v17  ;;  %v2980_v15 = vadd.f32 1e-06, %v2948_v34 }
 0x8db   : > { %v7759_v63 = vpop.eup %7758  ;;  %v3978_v12 = vsub.f32 %v3820_v37, %v9962_v58  ;;  %v10112_v43 = vsel %vm8777_vm12, %v4053_v47, -1e+30  ;;  %v2782_v16 = vpop.xlane.xlu1 %2781  ;;  %v3949_v37 = vcombine.high %v9953_v24, %v9953_v24 }
 0x8dc   : > { %v4127_v51 = vsel %vm1048_vm5, %v10112_v43, -inf  ;;  %v3034_v33 = vmul.f32 %v7759_v63, %v9787_v7  ;;  %v7761_v31 = vpop.eup %7760  ;;  %v2977_v39 = vadd.f32 1e-06, %v2945_v29  ;;  %v2818_v23 = vand.u32 2147483647, %v2782_v16 }
 0x8dd   : > { %v4055_v4 = vadd.f32 %v9972_v18, %v3978_v12  ;;  %4128 = vmax.xlane.f32.xlu1 %v4127_v51  ;;  %v7763_v13 = vpop.eup %7762  ;;  %v3033_v45 = vmul.f32 %v7761_v31, %v9792_v60  ;;  %v4026_v16 = vcombine.high %v9958_v8, %v9958_v8 }
 0x8de   : > { %v3847_v49 = vpop.permute.xlu0 %3846  ;;  %v2946_v22 = vmax.f32 %v2818_v23, %v7763_v13  ;;  %7770 = vrcp.f32 %v2977_v39  ;;  %v7765_v12 = vpop.eup %7764 }
 0x8df   : > { %v3984_v17 = vsub.f32 %v3847_v49, %v9987_v53  ;;  %v10122_v38 = vsel %vm8801_vm14, %v4055_v4, -1e+30  ;;  %v2785_v47 = vpop.xlane.xlu1 %2784  ;;  %v3055_v7 = vpack.c.bf16 %v3034_v33, %v3033_v45  ;;  %v10140_v4 = vrot.slane %v3949_v37, %v12347_v50 }
 0x8e0   : > { %v4133_v0 = vsel %vm1048_vm5, %v10122_v38, -inf  ;;  %v2978_v63 = vadd.f32 1e-06, %v2946_v22  ;;  %v2819_v29 = vand.u32 2147483647, %v2785_v47  ;;  %v7767_v51 = vpop.eup %7766  ;;  %v10145_v22 = vrot.slane %v4026_v16, %v12347_v50 }
 0x8e1   : > { %v4061_v60 = vadd.f32 %v10001_v57, %v3984_v17  ;;  %4134 = vmax.xlane.f32.xlu1 %v4133_v0  ;;  %7094 = vmatprep.mubr.msk.bf16.mxu0 %vm1048_vm5, %v3055_v7  ;;  %v3035_v47 = vmul.f32 %v7767_v51, %v9802_v56 }
 0x8e2   : > { %v3855_v34 = vpop.permute.xlu0 %3854  ;;  %7772 = vrcp.f32 %v2978_v63  ;;  %v2947_v33 = vmax.f32 %v2819_v29, %v7765_v12 }
 0x8e3   : > { %v3986_v31 = vsub.f32 %v3855_v34, %v9987_v53  ;;  %v10135_v24 = vsel %vm8777_vm12, %v4061_v60, -1e+30  ;;  %v3808_v39 = vpop.permute.xlu1 %3807  ;;  %7774 = vrcp.f32 %v2980_v15  ;;  %v3950_v34 = vcombine.high %v9975_v3, %v9975_v3 }
 0x8e4   : > { %v4151_v23 = vsel %vm1048_vm5, %v10135_v24, -inf  ;;  %v7769_v8 = vpop.eup %7768  ;;  %v2979_v13 = vadd.f32 1e-06, %v2947_v33  ;;  %v3975_v49 = vsub.f32 %v3808_v39, %v9962_v58 }
 0x8e5   : > { %v4063_v45 = vadd.f32 %v10001_v57, %v3986_v31  ;;  %4152 = vmax.xlane.f32.xlu1 %v4151_v23  ;;  %v3036_v7 = vmul.f32 %v7769_v8, %v9810_v55  ;;  %v12380_v23 = vld [vmem:[#allocation77_spill] sm:$0xff] }
 0x8e6   : > { %v3866_v17 = vpop.permute.xlu0 %3865  ;;  %7776 = vrcp.f32 %v2979_v13  ;;  %v4052_v0 = vadd.f32 %v9972_v18, %v3975_v49 }
 0x8e7   : > { %v3988_v37 = vsub.f32 %v3866_v17, %v10140_v4  ;;  %v10153_v15 = vsel %vm8801_vm14, %v4063_v45, -1e+30  ;;  %v3816_v63 = vpop.permute.xlu1 %3815  ;;  %v3056_v29 = vpack.c.bf16 %v3036_v7, %v3035_v47  ;;  %v10187_v7 = vrot.slane %v3950_v34, %v12347_v50 }
 0x8e8   : > { %v4157_v60 = vsel %vm1048_vm5, %v10153_v15, -inf  ;;  %v3977_v12 = vsub.f32 %v3816_v63, %v9962_v58  ;;  %v10161_v55 = vsel %vm8759_vm11, %v4052_v0, -1e+30  ;;  %v7771_v31 = vpop.eup %7770  ;;  %v4027_v58 = vcombine.high %v9983_v10, %v9983_v10 }
 0x8e9   : > { %v4065_v56 = vadd.f32 %v10145_v22, %v3988_v37  ;;  %4158 = vmax.xlane.f32.xlu1 %v4157_v60  ;;  %7095 = vmatmul.mubr.msk.bf16.gmra.mrb[48].mxu0 %vm1048_vm5, %v3056_v29  ;;  %v4124_v51 = vsel %vm1048_vm5, %v10161_v55, -inf  ;;  %v3041_v63 = vmul.f32 %v7771_v31, %v9816_v61 }
 0x8ea   : > { %v3874_v33 = vpop.permute.xlu0 %3873  ;;  %v4054_v39 = vadd.f32 %v9972_v18, %v3977_v12  ;;  %4125 = vmax.xlane.f32.xlu0 %v4124_v51  ;;  %7122 = vmatprep.mubr.msk.bf16.mxu0 %vm2140_vm9, %v12380_v23  ;;  %v10194_v12 = vrot.slane %v4027_v58, %v12347_v50  ;;  %v12410_v18 = vld [vmem:[#allocation44_spill] sm:$0xff] }
 0x8eb   : > { %v3990_v8 = vsub.f32 %v3874_v33, %v10140_v4  ;;  %v10176_v3 = vsel %vm8730_vm7, %v4065_v56, -1e+30  ;;  %v3843_v13 = vpop.permute.xlu1 %3842 }
 0x8ec   : > { %v4163_v49 = vsel %vm1048_vm5, %v10176_v3, -inf  ;;  %v7773_v45 = vpop.eup %7772  ;;  %v3983_v17 = vsub.f32 %v3843_v13, %v9987_v53  ;;  %v10184_v47 = vsel %vm8783_vm13, %v4054_v39, -1e+30  ;;  %v4447_v13 = vsel %vm2140_vm9, %v12371_v1, 0  ;;  %v12385_v1 = vld [vmem:[#allocation81_spill] sm:$0xff] }
 0x8ed   : > { %v4067_v10 = vadd.f32 %v10145_v22, %v3990_v8  ;;  %4164 = vmax.xlane.f32.xlu1 %v4163_v49  ;;  %v4130_v0 = vsel %vm1048_vm5, %v10184_v47, -inf  ;;  %v3042_v29 = vmul.f32 %v7773_v45, %v9822_v40  ;;  %v7775_v60 = vpop.eup %7774  ;;  %v12382_v8 = vld [vmem:[#allocation79_spill] sm:$0xff]  ;;  %v4450_v41 = vsel %vm2140_vm9, %v12385_v1, 0 }
 0x8ee   : > { %v3901_v37 = vpop.permute.xlu0 %3900  ;;  %v4060_v56 = vadd.f32 %v10001_v57, %v3983_v17  ;;  %4131 = vmax.xlane.f32.xlu0 %v4130_v0  ;;  %v12383_v17 = vld [vmem:[#allocation71_spill] sm:$0xff] }
 0x8ef   : > { %v3996_v51 = vsub.f32 %v3901_v37, %v10187_v7  ;;  %v10200_v34 = vsel %vm8753_vm10, %v4067_v10, -1e+30  ;;  %v3851_v33 = vpop.permute.xlu1 %3850  ;;  %v3059_v39 = vpack.c.bf16 %v3042_v29, %v3041_v63  ;;  %v3044_v10 = vmul.f32 %v7775_v60, %v12383_v17  ;;  %v12384_v29 = vld [vmem:[#allocation85_spill] sm:$0xff]  ;;  %v12387_v17 = vld [vmem:[#allocation52_spill] sm:$0xff] }
 0x8f0   : > { %v4169_v61 = vsel %vm1048_vm5, %v10200_v34, -inf  ;;  %v7777_v31 = vpop.eup %7776  ;;  %v3985_v40 = vsub.f32 %v3851_v33, %v9987_v53  ;;  %v10208_v23 = vsel %vm8759_vm11, %v4060_v56, -1e+30 }
 0x8f1   : > { %v4073_v58 = vadd.f32 %v10194_v12, %v3996_v51  ;;  %4170 = vmax.xlane.f32.xlu1 %v4169_v61  ;;  %7110 = vmatprep.mubr.msk.bf16.mxu1 %vm1048_vm5, %v3059_v39  ;;  %v4148_v49 = vsel %vm1048_vm5, %v10208_v23, -inf  ;;  %v3043_v53 = vmul.f32 %v7777_v31, %v9828_v46  ;;  %v12386_v31 = vld [vmem:[#allocation45_spill] sm:$0xff] }
 0x8f2   : > { %7123 = vmatmul.mubr.msk.bf16.vlgmr.msra.gmra.mrb[52].mxu0 %vm2140_vm9, %v12382_v8  ;;  %v3909_v45 = vpop.permute.xlu0 %3908  ;;  %v4062_v0 = vadd.f32 %v10001_v57, %v3985_v40  ;;  %4149 = vmax.xlane.f32.xlu0 %v4148_v49 }
 0x8f3   : > { %7147 = vmatpush3.bf16.xpose.msra.mxu0 %v4447_v13  ;;  %v3998_v37 = vsub.f32 %v3909_v45, %v10187_v7  ;;  %v10223_v63 = vsel %vm8730_vm7, %v4073_v58, -1e+30  ;;  %7126 = vmatprep.mubr.msk.bf16.mxu0 %vm2140_vm9, %v12384_v29  ;;  %v3862_v56 = vpop.permute.xlu1 %3861  ;;  %v3060_v46 = vpack.c.bf16 %v3044_v10, %v3043_v53 }
 0x8f4   : > { %7329 = vmatprep.subr.msk.bf16.mxu0 %vm2140_vm9, %v12385_v1  ;;  %v4187_v60 = vsel %vm1048_vm5, %v10223_v63, -inf  ;;  %v3987_v57 = vsub.f32 %v3862_v56, %v10140_v4  ;;  %v10235_v26 = vsel %vm8783_vm13, %v4062_v0, -1e+30 }
 0x8f5   : > { %v4075_v51 = vadd.f32 %v10194_v12, %v3998_v37  ;;  %4188 = vmax.xlane.f32.xlu1 %v4187_v60  ;;  %7111 = vmatmul.mubr.msk.bf16.gmra.mrb[48].mxu1 %vm1048_vm5, %v3060_v46  ;;  %v4154_v33 = vsel %vm1048_vm5, %v10235_v26, -inf  ;;  %v12389_v46 = vld [vmem:[#allocation83_spill] sm:$0xff]  ;;  %v12390_v60 = vld [vmem:[#allocation88_spill] sm:$0xff] }
 0x8f6   : > { %v3882_v39 = vpop.permute.xlu0 %3881  ;;  %v4064_v61 = vadd.f32 %v10145_v22, %v3987_v57  ;;  %4155 = vmax.xlane.f32.xlu0 %v4154_v33  ;;  %7138 = vmatprep.mubr.msk.bf16.mxu1 %vm2140_vm9, %v12386_v31  ;;  %v4552_v31 = vsel %vm2140_vm9, %v12374_v32, 0 }
 0x8f7   : > { %v3992_v40 = vsub.f32 %v3882_v39, %v10140_v4  ;;  %v10246_v58 = vsel %vm8753_vm10, %v4075_v51, -1e+30  ;;  %v3870_v8 = vpop.permute.xlu1 %3869 }
 0x8f8   : > { %v4193_v13 = vsel %vm1048_vm5, %v10246_v58, -inf  ;;  %v3989_v49 = vsub.f32 %v3870_v8, %v10140_v4  ;;  %v10254_v53 = vsel %vm8673_vm6, %v4064_v61, -1e+30  ;;  %v12391_v61 = vld [vmem:[#allocation48_spill] sm:$0xff] }
 0x8f9   : > { %v4069_v45 = vadd.f32 %v10145_v22, %v3992_v40  ;;  %4194 = vmax.xlane.f32.xlu1 %v4193_v13  ;;  %v4160_v10 = vsel %vm1048_vm5, %v10254_v53, -inf }
 0x8fa   : > { %7127 = vmatmul.mubr.msk.bf16.gmra.mrb[56].mxu0 %vm2140_vm9, %v12387_v17  ;;  %v3890_v0 = vpop.permute.xlu0 %3889  ;;  %v4066_v37 = vadd.f32 %v10145_v22, %v3989_v49  ;;  %4161 = vmax.xlane.f32.xlu0 %v4160_v10  ;;  %v12393_v17 = vld [vmem:[#allocation86_spill] sm:$0xff] }
 0x8fb   : > { %7149 = vmatpush3.bf16.xpose.msra.mxu0 %v4450_v41  ;;  %v3994_v29 = vsub.f32 %v3890_v0, %v10140_v4  ;;  %v10266_v56 = vsel %vm8777_vm12, %v4069_v45, -1e+30  ;;  %7154 = vmatprep.mubr.msk.bf16.mxu0 %vm2140_vm9, %v12390_v60  ;;  %v3897_v1 = vpop.permute.xlu1 %3896  ;;  %v12394_v41 = vld [vmem:[#allocation50_spill] sm:$0xff]  ;;  %v4453_v60 = vsel %vm2140_vm9, %v12389_v46, 0 }
 0x8fc   : > { %12388 = vst [vmem:[#allocation68_spill] sm:$0xff] %v10266_v56  ;;  %7330 = vmatprep.subr.msk.bf16.mxu0 %vm2140_vm9, %v12389_v46  ;;  %v4175_v57 = vsel %vm1048_vm5, %v10266_v56, -inf  ;;  %v3995_v51 = vsub.f32 %v3897_v1, %v10187_v7  ;;  %v10278_v39 = vsel %vm8736_vm8, %v4066_v37, -1e+30  ;;  %v4555_v19 = vsel %vm2140_vm9, %v12394_v41, 0 }
 0x8fd   : > { %v4071_v33 = vadd.f32 %v10145_v22, %v3994_v29  ;;  %4176 = vmax.xlane.f32.xlu1 %v4175_v57  ;;  %7139 = vmatmul.mubr.msk.bf16.vlgmr.msra.gmra.mrb[52].mxu1 %vm2140_vm9, %v12391_v61  ;;  %v4166_v40 = vsel %vm1048_vm5, %v10278_v39, -inf }
 0x8fe   : > { %v3917_v8 = vpop.permute.xlu0 %3916  ;;  %v4072_v13 = vadd.f32 %v10194_v12, %v3995_v51  ;;  %7163 = vmatpush3.bf16.xpose.msra.mxu1 %v4552_v31  ;;  %4167 = vmax.xlane.f32.xlu0 %v4166_v40 }
 0x8ff   : > { %v4000_v49 = vsub.f32 %v3917_v8, %v10187_v7  ;;  %v10290_v45 = vsel %vm8801_vm14, %v4071_v33, -1e+30  ;;  %7142 = vmatprep.mubr.msk.bf16.mxu1 %vm2140_vm9, %v12393_v17  ;;  %7333 = vmatprep.subr.msk.bf16.mxu1 %vm2140_vm9, %v12394_v41  ;;  %v3905_v32 = vpop.permute.xlu1 %3904 }
 0x900   : > { %12392 = vst [vmem:[#allocation101_spill] sm:$0xff] %v10290_v45  ;;  %v4181_v10 = vsel %vm1048_vm5, %v10290_v45, -inf  ;;  %v3997_v0 = vsub.f32 %v3905_v32, %v10187_v7  ;;  %v10302_v29 = vsel %vm8673_vm6, %v4072_v13, -1e+30  ;;  %vm6220_vm6 = vcmask 228352  }
 0x901   : > { %v4077_v37 = vadd.f32 %v10194_v12, %v4000_v49  ;;  %4182 = vmax.xlane.f32.xlu1 %v4181_v10  ;;  %v4184_v1 = vsel %vm1048_vm5, %v10302_v29, -inf  ;;  %v12397_v49 = vld [vmem:[#allocation87_spill] sm:$0xff] }
 0x902   : > { %v3925_v57 = vpop.permute.xlu0 %3924  ;;  %v4074_v51 = vadd.f32 %v10194_v12, %v3997_v0  ;;  %4185 = vmax.xlane.f32.xlu0 %v4184_v1  ;;  %v12400_v0 = vld [vmem:[#allocation89_spill] sm:$0xff] }
 0x903   : > { %7151 = vmatpush3.bf16.xpose.msra.mxu0 %v4453_v60  ;;  %v4002_v33 = vsub.f32 %v3925_v57, %v10187_v7  ;;  %v10312_v61 = vsel %vm8777_vm12, %v4077_v37, -1e+30  ;;  %v3878_v31 = vpop.permute.xlu1 %3877 }
 0x904   : > { %12395 = vst [vmem:[#allocation67_spill] sm:$0xff] %v10312_v61  ;;  %7331 = vmatprep.subr.msk.bf16.mxu0 %vm2140_vm9, %v12396_v54  ;;  %v4199_v46 = vsel %vm1048_vm5, %v10312_v61, -inf  ;;  %v3991_v40 = vsub.f32 %v3878_v31, %v10140_v4  ;;  %v10322_v13 = vsel %vm8736_vm8, %v4074_v51, -1e+30 }
 0x905   : > { %v4079_v8 = vadd.f32 %v10194_v12, %v4002_v33  ;;  %4200 = vmax.xlane.f32.xlu1 %v4199_v46  ;;  %7143 = vmatmul.mubr.msk.bf16.gmra.mrb[56].mxu1 %vm2140_vm9, %v12397_v49  ;;  %v4190_v17 = vsel %vm1048_vm5, %v10322_v13, -inf  ;;  %v4558_v46 = vsel %vm2140_vm9, %v12399_v21, 0 }
 0x906   : > { %v4068_v32 = vadd.f32 %v10145_v22, %v3991_v40  ;;  %7165 = vmatpush3.bf16.xpose.msra.mxu1 %v4555_v19  ;;  %4191 = vmax.xlane.f32.xlu0 %v4190_v17  ;;  %v12405_v17 = vld [vmem:[#allocation55_spill] sm:$0xff] }
 0x907   : > { %v10333_v10 = vsel %vm8801_vm14, %v4079_v8, -1e+30  ;;  %7334 = vmatprep.subr.msk.bf16.mxu1 %vm2140_vm9, %v12399_v21  ;;  %7170 = vmatprep.mubr.msk.bf16.mxu1 %vm2140_vm9, %v12400_v0  ;;  %v3886_v37 = vpop.permute.xlu1 %3885  ;;  %v12406_v0 = vld [vmem:[#allocation91_spill] sm:$0xff] }
 0x908   : > { %12398 = vst [vmem:[#allocation70_spill] sm:$0xff] %v10333_v10  ;;  %v4205_v41 = vsel %vm1048_vm5, %v10333_v10, -inf  ;;  %v3993_v60 = vsub.f32 %v3886_v37, %v10140_v4  ;;  %v10344_v1 = vsel %vm8759_vm11, %v4068_v32, -1e+30 }
 0x909   : > { %12401 = vst [vmem:[#allocation100_spill] sm:$0xff] %v10344_v1  ;;  %4206 = vmax.xlane.f32.xlu1 %v4205_v41  ;;  %v4172_v57 = vsel %vm1048_vm5, %v10344_v1, -inf  ;;  %v12407_v41 = vld [vmem:[#allocation58_spill] sm:$0xff] }
 0x90a   : > { %v4070_v51 = vadd.f32 %v10145_v22, %v3993_v60  ;;  %4173 = vmax.xlane.f32.xlu0 %v4172_v57  ;;  %v12403_v22 = vld [vmem:[#allocation54_spill] sm:$0xff]  ;;  %v12409_v60 = vld [vmem:[#allocation56_spill] sm:$0xff] }
 0x90b   : > { %7153 = vmatpush3.bf16.xpose.msra.mxu0 %v4456_v35  ;;  %v3913_v33 = vpop.permute.xlu1 %3912  ;;  %v4561_v16 = vsel %vm2140_vm9, %v12403_v22, 0  ;;  %v12411_v35 = vld [vmem:[#allocation92_spill] sm:$0xff]  ;;  %v12412_v57 = vld [vmem:[#allocation46_spill] sm:$0xff] }
 0x90c   : > { %v3999_v31 = vsub.f32 %v3913_v33, %v10187_v7  ;;  %v10354_v4 = vsel %vm8783_vm13, %v4070_v51, -1e+30  ;;  %v12413_v51 = vld [vmem:[#allocation61_spill] sm:$0xff] }
 0x90d   : > { %12402 = vst [vmem:[#allocation102_spill] sm:$0xff] %v10354_v4  ;;  %v4178_v54 = vsel %vm1048_vm5, %v10354_v4, -inf  ;;  %v12414_v33 = vld [vmem:[#allocation25_spill] sm:$0xff] }
 0x90e   : > { %v4076_v40 = vadd.f32 %v10194_v12, %v3999_v31  ;;  %7167 = vmatpush3.bf16.xpose.msra.mxu1 %v4558_v46  ;;  %4179 = vmax.xlane.f32.xlu0 %v4178_v54  ;;  %v12415_v31 = vld [vmem:[#allocation24_spill] sm:$0xff]  ;;  %v12416_v46 = vld [vmem:[#allocation27_spill] sm:$0xff]  ;;  %v12417_v54 = vld [vmem:[#allocation26_spill] sm:$0xff] }
 0x90f   : > { %7335 = vmatprep.subr.msk.bf16.mxu1 %vm2140_vm9, %v12403_v22  ;;  %v3921_v8 = vpop.permute.xlu1 %3920 }
 0x910   : > { %v4001_v49 = vsub.f32 %v3921_v8, %v10187_v7  ;;  %v10366_v19 = vsel %vm8759_vm11, %v4076_v40, -1e+30 }
 0x911   : > { %12404 = vst [vmem:[#allocation99_spill] sm:$0xff] %v10366_v19  ;;  %v4196_v32 = vsel %vm1048_vm5, %v10366_v19, -inf }
 0x912   : > { %7155 = vmatmul.mubr.msk.bf16.vlgmr.msra.gmra.mrb[60].mxu0 %vm2140_vm9, %v12405_v17  ;;  %v4078_v21 = vadd.f32 %v10194_v12, %v4001_v49  ;;  %4197 = vmax.xlane.f32.xlu0 %v4196_v32  ;;  %v12408_v12 = vld [vmem:[#allocation41_spill] sm:$0xff] }
 0x913   : > { %7158 = vmatprep.mubr.msk.bf16.mxu0 %vm2140_vm9, %v12406_v0 }
 0x914   : > { %v10377_v37 = vsel %vm8783_vm13, %v4078_v21, -1e+30 }
 0x915   : > { %v4202_v7 = vsel %vm1048_vm5, %v10377_v37, -inf }
 0x916   : > { %7169 = vmatpush3.bf16.xpose.msra.mxu1 %v4561_v16  ;;  %4203 = vmax.xlane.f32.xlu0 %v4202_v7 }
 0x91a   : > { %7159 = vmatmul.mubr.msk.bf16.gmra.mrb[64].mxu0 %vm2140_vm9, %v12407_v41  ;;  %5253 = vrot.lane.b32.xlu1 %v12408_v12, %s8147_s25 }
 0x91d   : > { %7171 = vmatmul.mubr.msk.bf16.vlgmr.msra.gmra.mrb[60].mxu1 %vm2140_vm9, %v12409_v60 }
 0x91e   : > { %5255 = vrot.lane.b32.xlu1 %v12410_v18, %s8147_s25  ;;  %7174 = vmatprep.mubr.msk.bf16.mxu1 %vm2140_vm9, %v12411_v35 }
 0x922   : > { %5257 = vrot.lane.b32.xlu1 %v12412_v57, %s8147_s25 }
 0x925   : > { %7175 = vmatmul.mubr.msk.bf16.gmra.mrb[64].mxu1 %vm2140_vm9, %v12413_v51 }
 0x926   : > { %5348 = vrot.lane.b32.xlu1 %v9865_v30, %s8147_s25  ;;  %v12418_v30 = vld [vmem:[#allocation47_spill] sm:$0xff] }
 0x92a   : > { %5350 = vrot.lane.b32.xlu1 %v9877_v25, %s8147_s25 }
 0x92c   : > { %5160 = vrot.lane.b32.xlu0 %v12414_v33, %s8147_s25 }
 0x92e   : > { %5352 = vrot.lane.b32.xlu1 %v9890_v11, %s8147_s25 }
 0x930   : > { %5162 = vrot.lane.b32.xlu0 %v12415_v31, %s8147_s25 }
 0x933   : > { %v10451_v0 = vpop.xlane.xlu0 %4116 }
 0x934   : > { %5164 = vrot.lane.b32.xlu0 %v12416_v46, %s8147_s25  ;;  %12427 = vst [vmem:[#allocation59_spill] sm:$0xff] %v10451_v0 }
 0x937   : > { %v10465_v35 = vpop.xlane.xlu0 %4119 }
 0x938   : > { %5166 = vrot.lane.b32.xlu0 %v12417_v54, %s8147_s25  ;;  %12433 = vst [vmem:[#allocation90_spill] sm:$0xff] %v10465_v35 }
 0x93b   : > { %v10469_v51 = vpop.xlane.xlu0 %4137 }
 0x93c   : > { %5259 = vrot.lane.b32.xlu0 %v12418_v30, %s8147_s25 }
 0x93f   : > { %v10489_v44 = vpop.xlane.xlu0 %4143 }
 0x940   : > { %5346 = vrot.lane.b32.xlu0 %v12337_v42, %s8147_s25 }
 0x941   : > { %v10441_v32 = vpop.xlane.xlu1 %4113 }
 0x942   : > { %v10415_v25 = vpop.f32.mrb[36].mxu0 }
 0x943   : > { %12419 = vst [vmem:[#allocation82_spill] sm:$0xff] %v10415_v25  ;;  %v10417_v40 = vpop.f32.mrb[37].mxu0 }
 0x944   : > { %12420 = vst [vmem:[#allocation7_spill] sm:$0xff] %v10417_v40  ;;  %v10419_v11 = vpop.f32.mrb[38].mxu0  ;;  %5439 = vrot.lane.b32.xlu0 %v12343_v9, %s8147_s25  ;;  %v3369_v59 = vsel %vm2140_vm9, %v10417_v40, 0.0 }
 0x945   : > { %12421 = vst [vmem:[#allocation66_spill] sm:$0xff] %v10419_v11  ;;  %v10423_v22 = vpop.f32.mrb[39].mxu0 }
 0x946   : > { %12422 = vst [vmem:[#allocation37_spill] sm:$0xff] %v10423_v22  ;;  %v3372_v21 = vsel %vm2140_vm9, %v10423_v22, 0.0 }
 0x948   : > { %5441 = vrot.lane.b32.xlu0 %v9912_v62, %s8147_s25 }
 0x94c   : > { %5443 = vrot.lane.b32.xlu0 %v9920_v14, %s8147_s25  ;;  %v10445_v14 = vpop.xlane.xlu1 %4122 }
 0x950   : > { %5445 = vrot.lane.b32.xlu0 %v9933_v52, %s8147_s25  ;;  %v3378_v52 = vsel %vm2140_vm9, %v10419_v11, 0.0  ;;  %v10453_v16 = vpop.xlane.xlu1 %4140 }
 0x951   : > { %12428 = vst [vmem:[#allocation65_spill] sm:$0xff] %v10453_v16 }
 0x952   : > { %v10431_v42 = vpop.f32.mrb[36].mxu1 }
 0x953   : > { %12423 = vst [vmem:[#allocation39_spill] sm:$0xff] %v10431_v42  ;;  %v10433_v8 = vpop.f32.mrb[37].mxu1  ;;  %v3399_v46 = vsel %vm2140_vm9, %v10431_v42, 0.0 }
 0x954   : > { %12424 = vst [vmem:[#allocation38_spill] sm:$0xff] %v10433_v8  ;;  %v10435_v49 = vpop.f32.mrb[38].mxu1  ;;  %v3393_v9 = vsel %vm2140_vm9, %v10433_v8, 0.0 }
 0x955   : > { %12425 = vst [vmem:[#allocation40_spill] sm:$0xff] %v10435_v49  ;;  %v10439_v17 = vpop.f32.mrb[39].mxu1  ;;  %3394 = vadd.xlane.f32.xlu1 %v3393_v9  ;;  %v3402_v62 = vsel %vm2140_vm9, %v10435_v49, 0.0 }
 0x956   : > { %12426 = vst [vmem:[#allocation57_spill] sm:$0xff] %v10439_v17  ;;  %v3396_v11 = vsel %vm2140_vm9, %v10439_v17, 0.0 }
 0x959   : > { %3403 = vadd.xlane.f32.xlu1 %v3402_v62 }
 0x95d   : > { %3379 = vadd.xlane.f32.xlu1 %v3378_v52 }
 0x961   : > { %3373 = vadd.xlane.f32.xlu1 %v3372_v21  ;;  %v3375_v21 = vsel %vm2140_vm9, %v10415_v25, 0.0 }
 0x962   : > { %v10455_v7 = vpop.f32.mrb[40].mxu0 }
 0x963   : > { %12429 = vst [vmem:[#allocation42_spill] sm:$0xff] %v10455_v7  ;;  %v10457_v41 = vpop.f32.mrb[41].mxu0 }
 0x964   : > { %12430 = vst [vmem:[#allocation49_spill] sm:$0xff] %v10457_v41  ;;  %v10459_v12 = vpop.f32.mrb[42].mxu0 }
 0x965   : > { %12431 = vst [vmem:[#allocation36_spill] sm:$0xff] %v10459_v12  ;;  %v10461_v60 = vpop.f32.mrb[43].mxu0 }
 0x966   : > { %12432 = vst [vmem:[#allocation69_spill] sm:$0xff] %v10461_v60  ;;  %v10463_v18 = vpop.xlane.xlu1 %4146 }
 0x96a   : > { %v10467_v57 = vpop.xlane.xlu1 %4128 }
 0x96e   : > { %v10471_v33 = vpop.f32.mrb[40].mxu1  ;;  %v10473_v31 = vpop.xlane.xlu1 %4134 }
 0x96f   : > { %12434 = vst [vmem:[#allocation93_spill] sm:$0xff] %v10471_v33  ;;  %12435 = vst [vmem:[#allocation104_spill] sm:$0xff] %v10473_v31  ;;  %v10477_v54 = vpop.f32.mrb[41].mxu1  ;;  %3400 = vadd.xlane.f32.xlu0 %v3399_v46  ;;  %v3411_v8 = vsel %vm2140_vm9, %v10471_v33, 0.0 }
 0x970   : > { %12436 = vst [vmem:[#allocation105_spill] sm:$0xff] %v10477_v54  ;;  %v10479_v30 = vpop.f32.mrb[42].mxu1 }
 0x971   : > { %12437 = vst [vmem:[#allocation94_spill] sm:$0xff] %v10479_v30  ;;  %v10481_v9 = vpop.f32.mrb[43].mxu1  ;;  %v3414_v62 = vsel %vm2140_vm9, %v10479_v30, 0.0 }
 0x972   : > { %12438 = vst [vmem:[#allocation107_spill] sm:$0xff] %v10481_v9  ;;  %v10485_v52 = vpop.xlane.xlu1 %4152  ;;  %3415 = vadd.xlane.f32.xlu1 %v3414_v62  ;;  %v3408_v50 = vsel %vm2140_vm9, %v10481_v9, 0.0 }
 0x973   : > { %3376 = vadd.xlane.f32.xlu0 %v3375_v21 }
 0x976   : > { %v10493_v46 = vpop.xlane.xlu1 %4158  ;;  %3409 = vadd.xlane.f32.xlu1 %v3408_v50 }
 0x977   : > { %3370 = vadd.xlane.f32.xlu0 %v3369_v59  ;;  %v10497_v30 = vpop.xlane.xlu0 %4125 }
 0x97a   : > { %v10499_v22 = vpop.f32.mrb[44].mxu0  ;;  %v10501_v62 = vpop.xlane.xlu1 %4164 }
 0x97b   : > { %12439 = vst [vmem:[#allocation29_spill] sm:$0xff] %v10499_v22  ;;  %v10505_v21 = vpop.f32.mrb[45].mxu0  ;;  %3397 = vadd.xlane.f32.xlu0 %v3396_v11  ;;  %v10507_v9 = vpop.xlane.xlu0 %4131  ;;  %v3423_v7 = vsel %vm2140_vm9, %v10499_v22, 0.0 }
 0x97c   : > { %12440 = vst [vmem:[#allocation62_spill] sm:$0xff] %v10505_v21  ;;  %12441 = vst [vmem:[#allocation60_spill] sm:$0xff] %v10507_v9  ;;  %v10509_v49 = vpop.f32.mrb[46].mxu0 }
 0x97d   : > { %12442 = vst [vmem:[#allocation64_spill] sm:$0xff] %v10509_v49  ;;  %v10511_v50 = vpop.f32.mrb[47].mxu0  ;;  %v3426_v59 = vsel %vm2140_vm9, %v10509_v49, 0.0  ;;  %v3405_v49 = vsel %vm2140_vm9, %v10477_v54, 0.0 }
 0x97e   : > { %12443 = vst [vmem:[#allocation30_spill] sm:$0xff] %v10511_v50  ;;  %v10513_v40 = vpop.xlane.xlu1 %4170  ;;  %3427 = vadd.xlane.f32.xlu1 %v3426_v59  ;;  %v3420_v41 = vsel %vm2140_vm9, %v10511_v50, 0.0 }
 0x97f   : > { %v10519_v25 = vpop.f32.mrb[44].mxu1  ;;  %3412 = vadd.xlane.f32.xlu0 %v3411_v8  ;;  %v10521_v17 = vpop.xlane.xlu0 %4149 }
 0x980   : > { %12444 = vst [vmem:[#allocation96_spill] sm:$0xff] %v10519_v25  ;;  %v10523_v11 = vpop.f32.mrb[45].mxu1 }
 0x981   : > { %12445 = vst [vmem:[#allocation103_spill] sm:$0xff] %v10523_v11  ;;  %v10525_v42 = vpop.f32.mrb[46].mxu1 }
 0x982   : > { %12446 = vst [vmem:[#allocation63_spill] sm:$0xff] %v10525_v42  ;;  %v10527_v12 = vpop.xlane.xlu1 %4188  ;;  %v10529_v60 = vpop.f32.mrb[47].mxu1  ;;  %v3450_v59 = vsel %vm2140_vm9, %v10525_v42, 0.0 }
 0x983   : > { %12447 = vst [vmem:[#allocation72_spill] sm:$0xff] %v10529_v60  ;;  %3406 = vadd.xlane.f32.xlu0 %v3405_v49  ;;  %v10535_v33 = vpop.xlane.xlu0 %4155  ;;  %3451 = vadd.xlane.f32.xlu1 %v3450_v59  ;;  %v3447_v49 = vsel %vm2140_vm9, %v10519_v25, 0.0  ;;  %v3444_v59 = vsel %vm2140_vm9, %v10529_v60, 0.0  ;;  %v3441_v25 = vsel %vm2140_vm9, %v10523_v11, 0.0 }
 0x986   : > { %v10537_v8 = vpop.xlane.xlu1 %4194 }
 0x987   : > { %3424 = vadd.xlane.f32.xlu0 %v3423_v7  ;;  %v10543_v61 = vpop.xlane.xlu0 %4161  ;;  %3421 = vadd.xlane.f32.xlu1 %v3420_v41  ;;  %v3417_v7 = vsel %vm2140_vm9, %v10505_v21, 0.0 }
 0x98a   : > { %v10545_v54 = vpop.xlane.xlu1 %4176 }
 0x98b   : > { %12448 = vst [vmem:[#allocation28_spill] sm:$0xff] %v10545_v54  ;;  %3448 = vadd.xlane.f32.xlu0 %v3447_v49  ;;  %v10551_v42 = vpop.xlane.xlu0 %4167  ;;  %3445 = vadd.xlane.f32.xlu1 %v3444_v59 }
 0x98e   : > { %v10553_v22 = vpop.xlane.xlu1 %4182 }
 0x98f   : > { %12449 = vst [vmem:[#allocation106_spill] sm:$0xff] %v10553_v22  ;;  %3418 = vadd.xlane.f32.xlu0 %v3417_v7  ;;  %v10557_v50 = vpop.xlane.xlu0 %4185 }
 0x992   : > { %v10559_v41 = vpop.xlane.xlu1 %4200 }
 0x993   : > { %12450 = vst [vmem:[#allocation73_spill] sm:$0xff] %v10559_v41  ;;  %3442 = vadd.xlane.f32.xlu0 %v3441_v25  ;;  %v10563_v49 = vpop.xlane.xlu0 %4191 }
 0x996   : > { %v10565_v60 = vpop.xlane.xlu1 %4206 }
 0x997   : > { %12451 = vst [vmem:[#allocation74_spill] sm:$0xff] %v10565_v60  ;;  %v10567_v10 = vpop.xlane.xlu0 %4173 }
 0x998   : > { %12452 = vst [vmem:[#allocation31_spill] sm:$0xff] %v10567_v10 }
 0x99a   : > { %v5254_v59 = vpop.permute.xlu1 %5253 }
 0x99b   : > { %7194 = vmatprep.subr.bf16.mxu1 %v5254_v59  ;;  %v10569_v45 = vpop.xlane.xlu0 %4179 }
 0x99c   : > { %7195 = vmatpush3.bf16.msra.mxu1 %v5254_v59 }
 0x99e   : > { %v5256_v7 = vpop.permute.xlu1 %5255 }
 0x99f   : > { %7196 = vmatprep.subr.bf16.mxu1 %v5256_v7  ;;  %v10571_v21 = vpop.xlane.xlu0 %4197 }
 0x9a0   : > { %12453 = vst [vmem:[#allocation43_spill] sm:$0xff] %v10571_v21  ;;  %7197 = vmatpush3.bf16.msra.mxu1 %v5256_v7 }
 0x9a2   : > { %v5258_v41 = vpop.permute.xlu1 %5257 }
 0x9a3   : > { %7198 = vmatprep.subr.bf16.mxu1 %v5258_v41  ;;  %v10573_v11 = vpop.xlane.xlu0 %4203 }
 0x9a4   : > { %12454 = vst [vmem:[#allocation75_spill] sm:$0xff] %v10573_v11  ;;  %7199 = vmatpush3.bf16.msra.mxu1 %v5258_v41 }
 0x9a7   : > { %v5161_v25 = vpop.permute.xlu0 %5160 }
 0x9a8   : > { %7178 = vmatprep.subr.bf16.mxu0 %v5161_v25 }
 0x9a9   : > { %7179 = vmatpush3.bf16.msra.mxu0 %v5161_v25 }
 0x9ab   : > { %v5163_v60 = vpop.permute.xlu0 %5162 }
 0x9ac   : > { %7180 = vmatprep.subr.bf16.mxu0 %v5163_v60 }
 0x9ad   : > { %7181 = vmatpush3.bf16.msra.mxu0 %v5163_v60 }
 0x9af   : > { %v5165_v22 = vpop.permute.xlu0 %5164 }
 0x9b0   : > { %7182 = vmatprep.subr.bf16.mxu0 %v5165_v22 }
 0x9b1   : > { %7183 = vmatpush3.bf16.msra.mxu0 %v5165_v22  ;;  %v4662_v22 = vsub.f32 %v10011_v36, %v10465_v35  ;;  %v4670_v36 = vsub.f32 %v10040_v6, %v10489_v44 }
 0x9b3   : > { %v5167_v59 = vpop.permute.xlu0 %5166  ;;  %v4712_v54 = vmul.f32 1.442695, %v4670_v36 }
 0x9b4   : > { %7184 = vmatprep.subr.bf16.mxu0 %v5167_v59 }
 0x9b5   : > { %7185 = vmatpush3.bf16.msra.mxu0 %v5167_v59 }
 0x9b7   : > { %v5260_v19 = vpop.permute.xlu0 %5259 }
 0x9b8   : > { %7200 = vmatprep.subr.bf16.mxu1 %v5260_v19 }
 0x9b9   : > { %7201 = vmatpush3.bf16.msra.mxu1 %v5260_v19 }
 0x9bb   : > { %v10575_v7 = vpop.permute.xlu0 %5346 }
 0x9bc   : > { %12455 = vst [vmem:[#allocation98_spill] sm:$0xff] %v10575_v7  ;;  %v10577_v21 = vpop.f32.mrb[48].mxu0  ;;  %7210 = vmatprep.subr.bf16.mxu0 %v10575_v7  ;;  %v4663_v7 = vsub.f32 %v10061_v20, %v10445_v14 }
 0x9bd   : > { %12456 = vst [vmem:[#allocation76_spill] sm:$0xff] %v10577_v21  ;;  %v10580_v41 = vpop.f32.mrb[49].mxu0  ;;  %v3435_v60 = vsel %vm2140_vm9, %v10577_v21, 0.0  ;;  %v4696_v21 = vmul.f32 1.442695, %v4662_v22 }
 0x9be   : > { %12457 = vst [vmem:[#allocation78_spill] sm:$0xff] %v10580_v41  ;;  %v10586_v25 = vpop.f32.mrb[50].mxu0  ;;  %3436 = vadd.xlane.f32.xlu0 %v3435_v60  ;;  %v4698_v35 = vmul.f32 1.442695, %v4663_v7  ;;  %v4671_v60 = vsub.f32 %v10104_v2, %v10463_v18 }
 0x9bf   : > { %12458 = vst [vmem:[#allocation95_spill] sm:$0xff] %v10586_v25  ;;  %v10588_v59 = vpop.f32.mrb[51].mxu0  ;;  %v10590_v19 = vpop.permute.xlu0 %5439  ;;  %v3438_v1 = vsel %vm2140_vm9, %v10586_v25, 0.0  ;;  %7778 = vpow2.f32 %v4696_v21  ;;  %v4660_v25 = vsub.f32 %v10050_v5, %v10441_v32  ;;  %v4668_v21 = vsub.f32 %v10028_v28, %v10469_v51 }
 0x9c0   : > { %12459 = vst [vmem:[#allocation108_spill] sm:$0xff] %v10588_v59  ;;  %12460 = vst [vmem:[#allocation80_spill] sm:$0xff] %v10590_v19  ;;  %3439 = vadd.xlane.f32.xlu1 %v3438_v1  ;;  %7226 = vmatprep.subr.bf16.mxu1 %v10590_v19  ;;  %v4661_v1 = vsub.f32 %v9994_v27, %v10451_v0  ;;  %7780 = vpow2.f32 %v4698_v35  ;;  %v4714_v22 = vmul.f32 1.442695, %v4671_v60 }
 0x9c1   : > { %v4692_v7 = vmul.f32 1.442695, %v4660_v25  ;;  %7782 = vpow2.f32 %v4712_v54  ;;  %v4669_v60 = vsub.f32 %v10073_v48, %v10453_v16  ;;  %v3429_v54 = vsel %vm2140_vm9, %v10580_v41, 0.0 }
 0x9c2   : > { %v4694_v35 = vmul.f32 1.442695, %v4661_v1  ;;  %7784 = vpow2.f32 %v4714_v22  ;;  %v4708_v25 = vmul.f32 1.442695, %v4668_v21  ;;  %v3432_v22 = vsel %vm2140_vm9, %v10588_v59, 0.0 }
 0x9c3   : > { %7786 = vpow2.f32 %v4692_v7  ;;  %v4667_v41 = vsub.f32 %v10122_v38, %v10473_v31  ;;  %v4674_v59 = vsub.f32 %v10235_v26, %v10535_v33 }
 0x9c4   : > { %7788 = vpow2.f32 %v4694_v35 }
 0x9c5   : > { %v7124_v10 = vpop.f32.mrb[52].mxu0  ;;  %7790 = vpow2.f32 %v4708_v25 }
 0x9c6   : > { %v4282_v56 = vpop.f32.mrb[53].mxu0 }
 0x9c7   : > { %v7125_v4 = vpop.f32.mrb[54].mxu0  ;;  %v4628_v25 = vmul.f32 0.5, %v4282_v56  ;;  %v4665_v56 = vsub.f32 %v10112_v43, %v10467_v57 }
 0x9c8   : > { %v4285_v20 = vpop.f32.mrb[55].mxu0  ;;  %v10605_v19 = vpop.f32.mrb[48].mxu1  ;;  %v4631_v1 = vmul.f32 0.5, %v7125_v4 }
 0x9c9   : > { %12461 = vst [vmem:[#allocation84_spill] sm:$0xff] %v10605_v19  ;;  %v10607_v6 = vpop.f32.mrb[49].mxu1  ;;  %v3459_v2 = vsel %vm2140_vm9, %v10605_v19, 0.0  ;;  %v4630_v19 = vmul.f32 0.5, %v7124_v10  ;;  %v7779_v10 = vpop.eup %7778 }
 0x9ca   : > { %12462 = vst [vmem:[#allocation97_spill] sm:$0xff] %v10607_v6  ;;  %v10613_v5 = vpop.f32.mrb[50].mxu1  ;;  %3460 = vadd.xlane.f32.xlu0 %v3459_v2  ;;  %v4666_v2 = vsub.f32 %v10184_v47, %v10507_v9  ;;  %v3453_v4 = vsel %vm2140_vm9, %v10607_v6, 0.0 }
 0x9cb   : > { %12463 = vst [vmem:[#allocation33_spill] sm:$0xff] %v10613_v5  ;;  %v10615_v36 = vpop.f32.mrb[51].mxu1  ;;  %v3462_v27 = vsel %vm2140_vm9, %v10613_v5, 0.0  ;;  %v10637_v7 = vmul.f32 %v7779_v10, %v4630_v19  ;;  %v4706_v10 = vmul.f32 1.442695, %v4667_v41 }
 0x9cc   : > { %12464 = vst [vmem:[#allocation35_spill] sm:$0xff] %v10615_v36  ;;  %3463 = vadd.xlane.f32.xlu1 %v3462_v27  ;;  %v4710_v27 = vmul.f32 1.442695, %v4669_v60  ;;  %v4704_v16 = vmul.f32 1.442695, %v4666_v2  ;;  %v3456_v19 = vsel %vm2140_vm9, %v10615_v36, 0.0 }
 0x9cd   : > { %v10621_v0 = vpop.f32.mrb[56].mxu0  ;;  %v4794_v26 = vsel %vm1048_vm5, %v10637_v7, 0.0 }
 0x9ce   : > { %v10623_v28 = vpop.f32.mrb[57].mxu0  ;;  %3430 = vadd.xlane.f32.xlu0 %v3429_v54  ;;  %v7781_v54 = vpop.eup %7780  ;;  %7792 = vpow2.f32 %v4710_v27 }
 0x9cf   : > { %v10629_v5 = vpop.f32.mrb[58].mxu0  ;;  %v10643_v60 = vmul.f32 %v7781_v54, %v4631_v1  ;;  %7794 = vpow2.f32 %v4704_v16  ;;  %v4720_v54 = vmul.f32 1.442695, %v4674_v59 }
 0x9d0   : > { %v10631_v48 = vpop.f32.mrb[59].mxu0  ;;  %v7140_v21 = vpop.f32.mrb[52].mxu1  ;;  %3433 = vadd.xlane.f32.xlu1 %v3432_v22  ;;  %7796 = vpow2.f32 %v4706_v10 }
 0x9d1   : > { %v4638_v47 = vmul.f32 0.5, %v7140_v21  ;;  %v4387_v9 = vpop.f32.mrb[53].mxu1  ;;  %v7783_v22 = vpop.eup %7782  ;;  %v4675_v21 = vsub.f32 %v10153_v15, %v10493_v46  ;;  %v4797_v15 = vsel %vm1048_vm5, %v10643_v60, 0.0  ;;  %7798 = vpow2.f32 %v4720_v54 }
 0x9d2   : > { %v7141_v35 = vpop.f32.mrb[54].mxu1  ;;  %3454 = vadd.xlane.f32.xlu0 %v3453_v4  ;;  %v7785_v1 = vpop.eup %7784  ;;  %v4664_v4 = vsub.f32 %v10161_v55, %v10497_v30  ;;  %v4636_v55 = vmul.f32 0.5, %v4387_v9 }
 0x9d3   : > { %v4639_v38 = vmul.f32 0.5, %v7141_v35  ;;  %v4390_v31 = vpop.f32.mrb[55].mxu1  ;;  %v10649_v2 = vmul.f32 %v7783_v22, %v4638_v47  ;;  %v4629_v35 = vmul.f32 0.5, %v4285_v20  ;;  %v7787_v41 = vpop.eup %7786  ;;  %v4722_v47 = vmul.f32 1.442695, %v4675_v21 }
 0x9d4   : > { %3457 = vadd.xlane.f32.xlu1 %v3456_v19  ;;  %v10661_v22 = vmul.f32 %v7787_v41, %v4628_v25  ;;  %v7789_v20 = vpop.eup %7788  ;;  %v4637_v10 = vmul.f32 0.5, %v4390_v31  ;;  %v4673_v41 = vsub.f32 %v10135_v24, %v10485_v52 }
 0x9d5   : > { %v10655_v27 = vmul.f32 %v7785_v1, %v4639_v38  ;;  %v4818_v59 = vsel %vm1048_vm5, %v10649_v2, 0.0  ;;  %v4700_v38 = vmul.f32 1.442695, %v4664_v4  ;;  %v10669_v43 = vmul.f32 %v7789_v20, %v4629_v35  ;;  %v7791_v25 = vpop.eup %7790 }
 0x9d6   : > { %4795 = vadd.xlane.f32.xlu0 %v4794_v26  ;;  %v4672_v26 = vsub.f32 %v10208_v23, %v10521_v17  ;;  %7800 = vpow2.f32 %v4722_v47  ;;  %v4634_v23 = vmul.f32 0.5, %v10621_v0  ;;  %v10678_v4 = vmul.f32 %v7791_v25, %v4636_v55 }
 0x9d7   : > { %v4821_v9 = vsel %vm1048_vm5, %v10655_v27, 0.0  ;;  %v4788_v54 = vsel %vm1048_vm5, %v10661_v22, 0.0  ;;  %7802 = vpow2.f32 %v4700_v38  ;;  %v4791_v24 = vsel %vm1048_vm5, %v10669_v43, 0.0 }
 0x9d8   : > { %v7144_v19 = vpop.f32.mrb[56].mxu1  ;;  %4798 = vadd.xlane.f32.xlu1 %v4797_v15  ;;  %v4702_v15 = vmul.f32 1.442695, %v4665_v56  ;;  %v7793_v31 = vpop.eup %7792  ;;  %v4716_v35 = vmul.f32 1.442695, %v4672_v26  ;;  %v4635_v56 = vmul.f32 0.5, %v10629_v5  ;;  %v4679_v55 = vsub.f32 %v10200_v34, %v10513_v40 }
 0x9d9   : > { %v10663_v16 = vpop.f32.mrb[57].mxu1  ;;  %v10685_v20 = vmul.f32 %v7793_v31, %v4637_v10  ;;  %v7795_v0 = vpop.eup %7794  ;;  %v4718_v47 = vmul.f32 1.442695, %v4673_v41  ;;  %v4642_v26 = vmul.f32 0.5, %v7144_v19  ;;  %v4686_v10 = vsub.f32 %v10322_v13, %v10563_v49 }
 0x9da   : > { %v7145_v1 = vpop.f32.mrb[58].mxu1  ;;  %4819 = vadd.xlane.f32.xlu0 %v4818_v59  ;;  %v4678_v59 = vsub.f32 %v10278_v39, %v10551_v42  ;;  %7804 = vpow2.f32 %v4702_v15  ;;  %v10691_v38 = vmul.f32 %v7795_v0, %v4634_v23  ;;  %v4812_v39 = vsel %vm1048_vm5, %v10678_v4, 0.0 }
 0x9db   : > { %v10671_v21 = vpop.f32.mrb[59].mxu1  ;;  %7806 = vpow2.f32 %v4716_v35  ;;  %v4643_v15 = vmul.f32 0.5, %v7145_v1  ;;  %v4815_v34 = vsel %vm1048_vm5, %v10685_v20, 0.0  ;;  %v4730_v23 = vmul.f32 1.442695, %v4679_v55 }
 0x9dc   : > { %4822 = vadd.xlane.f32.xlu1 %v4821_v9  ;;  %v7797_v9 = vpop.eup %7796  ;;  %v4728_v5 = vmul.f32 1.442695, %v4678_v59  ;;  %7808 = vpow2.f32 %v4718_v47  ;;  %v4687_v19 = vsub.f32 %v10246_v58, %v10537_v8  ;;  %v4632_v31 = vmul.f32 0.5, %v10623_v28 }
 0x9dd   : > { %v10697_v25 = vmul.f32 %v7797_v9, %v4635_v56  ;;  %v7799_v41 = vpop.eup %7798  ;;  %v4806_v1 = vsel %vm1048_vm5, %v10691_v38, 0.0  ;;  %v4676_v56 = vsub.f32 %v10254_v53, %v10543_v61  ;;  %v4633_v58 = vmul.f32 0.5, %v10631_v48 }
 0x9de   : > { %4789 = vadd.xlane.f32.xlu0 %v4788_v54  ;;  %v10704_v35 = vmul.f32 %v7799_v41, %v4642_v26  ;;  %7810 = vpow2.f32 %v4728_v5  ;;  %v4746_v9 = vmul.f32 1.442695, %v4687_v19  ;;  %v4640_v5 = vmul.f32 0.5, %v10663_v16 }
 0x9df   : > { %v4809_v55 = vsel %vm1048_vm5, %v10697_v25, 0.0  ;;  %7812 = vpow2.f32 %v4730_v23  ;;  %v4685_v16 = vsub.f32 %v10223_v63, %v10527_v12 }
 0x9e0   : > { %4792 = vadd.xlane.f32.xlu1 %v4791_v24  ;;  %12465 = vst [vmem:[#allocation32_spill] sm:$0xff] %v10704_v35  ;;  %v7801_v59 = vpop.eup %7800  ;;  %v4744_v24 = vmul.f32 1.442695, %v4686_v10  ;;  %v4830_v48 = vsel %vm1048_vm5, %v10704_v35, 0.0 }
 0x9e1   : > { %v10713_v47 = vmul.f32 %v7801_v59, %v4643_v15  ;;  %v7803_v26 = vpop.eup %7802  ;;  %v4724_v15 = vmul.f32 1.442695, %v4676_v56 }
 0x9e2   : > { %4813 = vadd.xlane.f32.xlu0 %v4812_v39  ;;  %v4677_v39 = vsub.f32 %v10176_v3, %v10501_v62  ;;  %v10721_v53 = vmul.f32 %v7803_v26, %v4632_v31  ;;  %7814 = vpow2.f32 %v4744_v24  ;;  %v4641_v3 = vmul.f32 0.5, %v10671_v21 }
 0x9e3   : > { %12466 = vst [vmem:[#allocation77_spill] sm:$0xff] %v10713_v47  ;;  %v4833_v23 = vsel %vm1048_vm5, %v10713_v47, 0.0  ;;  %7816 = vpow2.f32 %v4746_v9 }
 0x9e4   : > { %4816 = vadd.xlane.f32.xlu1 %v4815_v34  ;;  %v7805_v10 = vpop.eup %7804  ;;  %v4684_v34 = vsub.f32 %v10302_v29, %v10557_v50  ;;  %v4726_v31 = vmul.f32 1.442695, %v4677_v39  ;;  %v4800_v21 = vsel %vm1048_vm5, %v10721_v53, 0.0  ;;  %7818 = vpow2.f32 %v4724_v15 }
 0x9e5   : > { %v7156_v54 = vpop.f32.mrb[60].mxu0  ;;  %v10728_v41 = vmul.f32 %v7805_v10, %v4633_v58  ;;  %v7807_v19 = vpop.eup %7806  ;;  %v12469_v10 = vld [vmem:[#allocation102_spill] sm:$0xff] }
 0x9e6   : > { %v10706_v13 = vpop.f32.mrb[61].mxu0  ;;  %4807 = vadd.xlane.f32.xlu0 %v4806_v1  ;;  %v10737_v59 = vmul.f32 %v7807_v19, %v4640_v5  ;;  %v4646_v29 = vmul.f32 0.5, %v7156_v54  ;;  %v7809_v24 = vpop.eup %7808  ;;  %v4740_v58 = vmul.f32 1.442695, %v4684_v34  ;;  %7820 = vpow2.f32 %v4726_v31 }
 0x9e7   : > { %v7157_v0 = vpop.f32.mrb[62].mxu0  ;;  %v10747_v63 = vmul.f32 %v7809_v24, %v4641_v3  ;;  %v4803_v54 = vsel %vm1048_vm5, %v10728_v41, 0.0  ;;  %v4682_v15 = vsub.f32 %v12469_v10, %v10569_v45  ;;  %v12472_v24 = vld [vmem:[#allocation68_spill] sm:$0xff] }
 0x9e8   : > { %v10715_v28 = vpop.f32.mrb[63].mxu0  ;;  %4810 = vadd.xlane.f32.xlu1 %v4809_v55  ;;  %12467 = vst [vmem:[#allocation34_spill] sm:$0xff] %v10737_v59  ;;  %v4690_v55 = vsub.f32 %v10377_v37, %v10573_v11  ;;  %v4647_v39 = vmul.f32 0.5, %v7157_v0  ;;  %v7811_v5 = vpop.eup %7810  ;;  %v4824_v0 = vsel %vm1048_vm5, %v10737_v59, 0.0  ;;  %7822 = vpow2.f32 %v4740_v58 }
 0x9e9   : > { %12468 = vst [vmem:[#allocation79_spill] sm:$0xff] %v10747_v63  ;;  %v10755_v37 = vmul.f32 %v7811_v5, %v4646_v29  ;;  %v7813_v3 = vpop.eup %7812  ;;  %v4827_v29 = vsel %vm1048_vm5, %v10747_v63, 0.0  ;;  %v12474_v5 = vld [vmem:[#allocation31_spill] sm:$0xff]  ;;  %v4736_v59 = vmul.f32 1.442695, %v4682_v15 }
 0x9ea   : > { %4831 = vadd.xlane.f32.xlu0 %v4830_v48  ;;  %v4742_v48 = vmul.f32 1.442695, %v4685_v16  ;;  %v4752_v6 = vmul.f32 1.442695, %v4690_v55  ;;  %v10761_v16 = vmul.f32 %v7813_v3, %v4647_v39  ;;  %v4645_v3 = vmul.f32 0.5, %v10715_v28 }
 0x9eb   : > { %12470 = vst [vmem:[#allocation71_spill] sm:$0xff] %v10755_v37  ;;  %v4842_v55 = vsel %vm1048_vm5, %v10755_v37, 0.0 }
 0x9ec   : > { %4834 = vadd.xlane.f32.xlu1 %v4833_v23  ;;  %12473 = vst [vmem:[#allocation85_spill] sm:$0xff] %v10761_v16  ;;  %7824 = vpow2.f32 %v4742_v48  ;;  %v4845_v48 = vsel %vm1048_vm5, %v10761_v16, 0.0 }
 0x9ed   : > { %v10735_v1 = vpop.f32.mrb[64].mxu0  ;;  %7826 = vpow2.f32 %v4752_v6 }
 0x9ee   : > { %v10739_v56 = vpop.f32.mrb[65].mxu0  ;;  %4801 = vadd.xlane.f32.xlu0 %v4800_v21  ;;  %v12471_v21 = vld [vmem:[#allocation28_spill] sm:$0xff]  ;;  %7828 = vpow2.f32 %v4736_v59 }
 0x9ef   : > { %v10745_v26 = vpop.f32.mrb[66].mxu0  ;;  %v4681_v36 = vsub.f32 %v12472_v24, %v12471_v21  ;;  %v4644_v24 = vmul.f32 0.5, %v10706_v13  ;;  %v12478_v13 = vld [vmem:[#allocation43_spill] sm:$0xff] }
 0x9f0   : > { %v10749_v9 = vpop.f32.mrb[67].mxu0  ;;  %v7172_v34 = vpop.f32.mrb[60].mxu1  ;;  %4804 = vadd.xlane.f32.xlu1 %v4803_v54 }
 0x9f1   : > { %v4654_v23 = vmul.f32 0.5, %v7172_v34  ;;  %v4597_v19 = vpop.f32.mrb[61].mxu1  ;;  %v7815_v54 = vpop.eup %7814  ;;  %v12475_v34 = vld [vmem:[#allocation100_spill] sm:$0xff] }
 0x9f2   : > { %v7173_v31 = vpop.f32.mrb[62].mxu1  ;;  %4825 = vadd.xlane.f32.xlu0 %v4824_v0  ;;  %v4680_v35 = vsub.f32 %v12475_v34, %v12474_v5  ;;  %v7817_v39 = vpop.eup %7816  ;;  %v4734_v0 = vmul.f32 1.442695, %v4681_v36  ;;  %v4652_v36 = vmul.f32 0.5, %v4597_v19  ;;  %v12483_v19 = vld [vmem:[#allocation101_spill] sm:$0xff] }
 0x9f3   : > { %v4655_v10 = vmul.f32 0.5, %v7173_v31  ;;  %v4600_v11 = vpop.f32.mrb[63].mxu1  ;;  %v10768_v58 = vmul.f32 %v7815_v54, %v4654_v23  ;;  %v7819_v15 = vpop.eup %7818  ;;  %v12479_v23 = vld [vmem:[#allocation99_spill] sm:$0xff] }
 0x9f4   : > { %4828 = vadd.xlane.f32.xlu1 %v4827_v29  ;;  %v4732_v29 = vmul.f32 1.442695, %v4680_v35  ;;  %v4688_v54 = vsub.f32 %v12479_v23, %v12478_v13  ;;  %v10779_v37 = vmul.f32 %v7819_v15, %v4644_v24  ;;  %7830 = vpow2.f32 %v4734_v0  ;;  %v12482_v15 = vld [vmem:[#allocation106_spill] sm:$0xff]  ;;  %v12486_v13 = vld [vmem:[#allocation11_spill] sm:$0xff] }
 0x9f5   : > { %12476 = vst [vmem:[#allocation81_spill] sm:$0xff] %v10768_v58  ;;  %v10773_v31 = vmul.f32 %v7817_v39, %v4655_v10  ;;  %v4866_v28 = vsel %vm1048_vm5, %v10768_v58, 0.0  ;;  %v7821_v10 = vpop.eup %7820  ;;  %v4653_v35 = vmul.f32 0.5, %v4600_v11  ;;  %v4683_v23 = vsub.f32 %v12483_v19, %v12482_v15 }
 0x9f6   : > { %4843 = vadd.xlane.f32.xlu0 %v4842_v55  ;;  %12480 = vst [vmem:[#allocation52_spill] sm:$0xff] %v10779_v37  ;;  %v10785_v39 = vmul.f32 %v7821_v10, %v4645_v3  ;;  %v7823_v24 = vpop.eup %7822  ;;  %7832 = vpow2.f32 %v4732_v29  ;;  %v4748_v16 = vmul.f32 1.442695, %v4688_v54  ;;  %v4836_v3 = vsel %vm1048_vm5, %v10779_v37, 0.0 }
 0x9f7   : > { %12477 = vst [vmem:[#allocation45_spill] sm:$0xff] %v10773_v31  ;;  %v10793_v58 = vmul.f32 %v7823_v24, %v4652_v36  ;;  %v4650_v11 = vmul.f32 0.5, %v10735_v1  ;;  %v6274_v19 = vsub.f32 0.0, %v12486_v13  ;;  %v4738_v54 = vmul.f32 1.442695, %v4683_v23  ;;  %v12488_v36 = vld [vmem:[#allocation70_spill] sm:$0xff] }
 0x9f8   : > { %v7176_v34 = vpop.f32.mrb[64].mxu1  ;;  %4846 = vadd.xlane.f32.xlu1 %v4845_v48  ;;  %12481 = vst [vmem:[#allocation83_spill] sm:$0xff] %v10785_v39  ;;  %v4869_v48 = vsel %vm1048_vm5, %v10773_v31, 0.0  ;;  %v4839_v31 = vsel %vm1048_vm5, %v10785_v39, 0.0  ;;  %7834 = vpow2.f32 %v4748_v16 }
 0x9f9   : > { %v4613_v6 = vpop.f32.mrb[65].mxu1  ;;  %12484 = vst [vmem:[#allocation88_spill] sm:$0xff] %v10793_v58  ;;  %v4658_v0 = vmul.f32 0.5, %v7176_v34  ;;  %v4649_v34 = vmul.f32 0.5, %v10749_v9  ;;  %v4860_v1 = vsel %vm1048_vm5, %v10793_v58, 0.0  ;;  %7836 = vpow2.f32 %v4738_v54 }
 0x9fa   : > { %v10783_v55 = vpop.f32.mrb[66].mxu1  ;;  %4867 = vadd.xlane.f32.xlu0 %v4866_v28  ;;  %v7825_v28 = vpop.eup %7824  ;;  %v6283_v39 = vmul.f32 1.442695, %v6274_v19 }
 0x9fb   : > { %v10787_v59 = vpop.f32.mrb[67].mxu1  ;;  %v10798_v10 = vmul.f32 %v7825_v28, %v4653_v35  ;;  %v7827_v29 = vpop.eup %7826  ;;  %v4648_v28 = vmul.f32 0.5, %v10739_v56 }
 0x9fc   : > { %4870 = vadd.xlane.f32.xlu1 %v4869_v48  ;;  %v12487_v48 = vld [vmem:[#allocation74_spill] sm:$0xff]  ;;  %v10806_v37 = vmul.f32 %v7827_v29, %v4658_v0  ;;  %v7829_v35 = vpop.eup %7828  ;;  %7838 = vpow2.f32 %v6283_v39  ;;  %v10823_v19 = vpop.permute.xlu0 %5441  ;;  %v12496_v39 = vld [vmem:[#allocation49_spill] sm:$0xff] }
 0x9fd   : > { %12485 = vst [vmem:[#allocation48_spill] sm:$0xff] %v10798_v10  ;;  %v4691_v24 = vsub.f32 %v12488_v36, %v12487_v48  ;;  %v4863_v23 = vsel %vm1048_vm5, %v10798_v10, 0.0 }
 0x9fe   : > { %4837 = vadd.xlane.f32.xlu0 %v4836_v3  ;;  %12489 = vst [vmem:[#allocation86_spill] sm:$0xff] %v10806_v37  ;;  %v10810_v3 = vmul.f32 %v7829_v35, %v4650_v11  ;;  %v7831_v36 = vpop.eup %7830  ;;  %v4656_v11 = vmul.f32 0.5, %v4613_v6  ;;  %v12494_v35 = vld [vmem:[#allocation73_spill] sm:$0xff] }
 0x9ff   : > { %v4754_v16 = vmul.f32 1.442695, %v4691_v24  ;;  %v10815_v9 = vmul.f32 %v7831_v36, %v4649_v34  ;;  %v4651_v34 = vmul.f32 0.5, %v10745_v26  ;;  %v3381_v36 = vsel %vm2140_vm9, %v12496_v39, 0.0 }
 0xa00   : > { %4840 = vadd.xlane.f32.xlu1 %v4839_v31  ;;  %12490 = vst [vmem:[#allocation50_spill] sm:$0xff] %v10810_v3  ;;  %v4878_v31 = vsel %vm1048_vm5, %v10806_v37, 0.0  ;;  %v7833_v0 = vpop.eup %7832  ;;  %v4854_v56 = vsel %vm1048_vm5, %v10810_v3, 0.0  ;;  %v12499_v37 = vld [vmem:[#allocation42_spill] sm:$0xff] }
 0xa01   : > { %12491 = vst [vmem:[#allocation53_spill] sm:$0xff] %v10815_v9  ;;  %v10819_v29 = vmul.f32 %v7833_v0, %v4648_v28  ;;  %7840 = vpow2.f32 %v4754_v16  ;;  %v4851_v54 = vsel %vm1048_vm5, %v10815_v9, 0.0  ;;  %v12495_v28 = vld [vmem:[#allocation67_spill] sm:$0xff]  ;;  %v12497_v16 = vld [vmem:[#allocation9_spill] sm:$0xff]  ;;  %v3387_v3 = vsel %vm2140_vm9, %v12499_v37, 0.0 }
 0xa02   : > { %4861 = vadd.xlane.f32.xlu0 %v4860_v1  ;;  %v7835_v24 = vpop.eup %7834 }
 0xa03   : > { %12492 = vst [vmem:[#allocation87_spill] sm:$0xff] %v10819_v29  ;;  %v10828_v1 = vmul.f32 %v7835_v24, %v4656_v11  ;;  %v4848_v6 = vsel %vm1048_vm5, %v10819_v29, 0.0  ;;  %v7837_v0 = vpop.eup %7836  ;;  %v4659_v11 = vmul.f32 0.5, %v10783_v55 }
 0xa04   : > { %4864 = vadd.xlane.f32.xlu1 %v4863_v23  ;;  %v4689_v23 = vsub.f32 %v12495_v28, %v12494_v35  ;;  %v10841_v26 = vmul.f32 %v7837_v0, %v4651_v34 }
 0xa05   : > { %12493 = vst [vmem:[#allocation51_spill] sm:$0xff] %v10828_v1  ;;  %v4872_v24 = vsel %vm1048_vm5, %v10828_v1, 0.0 }
 0xa06   : > { %4879 = vadd.xlane.f32.xlu0 %v4878_v31  ;;  %v6273_v31 = vsub.f32 0.0, %v12497_v16  ;;  %12498 = vst [vmem:[#allocation89_spill] sm:$0xff] %v10841_v26  ;;  %v4750_v28 = vmul.f32 1.442695, %v4689_v23  ;;  %v4857_v34 = vsel %vm1048_vm5, %v10841_v26, 0.0 }
 0xa08   : > { %4855 = vadd.xlane.f32.xlu1 %v4854_v56  ;;  %v10837_v56 = vpop.permute.xlu1 %5348  ;;  %v6281_v9 = vmul.f32 1.442695, %v6273_v31  ;;  %7842 = vpow2.f32 %v4750_v28 }
 0xa0a   : > { %4852 = vadd.xlane.f32.xlu0 %v4851_v54  ;;  %v10839_v54 = vpop.permute.xlu0 %5443  ;;  %7844 = vpow2.f32 %v6281_v9 }
 0xa0c   : > { %4849 = vadd.xlane.f32.xlu1 %v4848_v6  ;;  %v7839_v6 = vpop.eup %7838  ;;  %v10852_v55 = vpop.permute.xlu1 %5350 }
 0xa0d   : > { %v7841_v29 = vpop.eup %7840  ;;  %v6298_v23 = vadd.f32 1.0, %v7839_v6  ;;  %v12504_v6 = vld [vmem:[#allocation36_spill] sm:$0xff] }
 0xa0e   : > { %3382 = vadd.xlane.f32.xlu0 %v3381_v36  ;;  %v10848_v36 = vmul.f32 %v7841_v29, %v4659_v11  ;;  %v10854_v0 = vpop.permute.xlu0 %5445  ;;  %v4657_v29 = vmul.f32 0.5, %v10787_v59  ;;  %v12502_v11 = vld [vmem:[#allocation69_spill] sm:$0xff] }
 0xa0f   : > { %12501 = vst [vmem:[#allocation55_spill] sm:$0xff] %v10854_v0  ;;  %7846 = vrcp.f32 %v6298_v23  ;;  %v3384_v28 = vsel %vm2140_vm9, %v12502_v11, 0.0  ;;  %v12509_v0 = vld [vmem:[#allocation82_spill] sm:$0xff] }
 0xa10   : > { %4873 = vadd.xlane.f32.xlu1 %v4872_v24  ;;  %12500 = vst [vmem:[#allocation54_spill] sm:$0xff] %v10848_v36  ;;  %v4881_v24 = vsel %vm1048_vm5, %v10848_v36, 0.0  ;;  %v3390_v36 = vsel %vm2140_vm9, %v12504_v6, 0.0 }
 0xa12   : > { %3388 = vadd.xlane.f32.xlu0 %v3387_v3  ;;  %v3401_v31 = vpop.xlane.xlu0 %3400  ;;  %v10858_v3 = vpop.permute.xlu1 %5352 }
 0xa14   : > { %4858 = vadd.xlane.f32.xlu1 %v4857_v34  ;;  %v7843_v34 = vpop.eup %7842 }
 0xa15   : > { %v7845_v1 = vpop.eup %7844  ;;  %v10863_v39 = vmul.f32 %v7843_v34, %v4657_v29 }
 0xa16   : > { %v3395_v26 = vpop.xlane.xlu1 %3394  ;;  %v3377_v9 = vpop.xlane.xlu0 %3376 }
 0xa17   : > { %12503 = vst [vmem:[#allocation91_spill] sm:$0xff] %v10863_v39  ;;  %v4875_v10 = vsel %vm1048_vm5, %v10863_v39, 0.0  ;;  %v3474_v48 = vmul.f32 0.25, %v3395_v26 }
 0xa18   : > { %4882 = vadd.xlane.f32.xlu1 %v4881_v24  ;;  %v6297_v24 = vadd.f32 1.0, %v7845_v1 }
 0xa19   : > { %v7847_v23 = vpop.eup %7846 }
 0xa1a   : > { %v3404_v59 = vpop.xlane.xlu1 %3403  ;;  %v3371_v58 = vpop.xlane.xlu0 %3370  ;;  %7848 = vrcp.f32 %v6297_v24 }
 0xa1c   : > { %3385 = vadd.xlane.f32.xlu1 %v3384_v28  ;;  %v6314_v28 = vmul.f32 %v7847_v23, %v12486_v13  ;;  %v12507_v13 = vld [vmem:[#allocation39_spill] sm:$0xff]  ;;  %v3468_v23 = vmul.f32 0.25, %v3377_v9 }
 0xa1e   : > { %v3380_v29 = vpop.xlane.xlu1 %3379  ;;  %v3398_v34 = vpop.xlane.xlu0 %3397  ;;  %v10885_v47 = vsub.f32 %v12509_v0, %v3468_v23  ;;  %v12514_v0 = vld [vmem:[#allocation7_spill] sm:$0xff] }
 0xa20   : > { %3391 = vadd.xlane.f32.xlu1 %v3390_v36  ;;  %12510 = vst [vmem:[#allocation44_spill] sm:$0xff] %v10885_v47  ;;  %v3532_v9 = vmul.f32 %v10885_v47, %v10885_v47 }
 0xa22   : > { %v3374_v37 = vpop.xlane.xlu1 %3373  ;;  %v3413_v35 = vpop.xlane.xlu0 %3412 }
 0xa23   : > { %v3480_v23 = vmul.f32 0.25, %v3413_v35  ;;  %v12519_v35 = vld [vmem:[#allocation40_spill] sm:$0xff] }
 0xa24   : > { %4876 = vadd.xlane.f32.xlu1 %v4875_v10  ;;  %v7849_v11 = vpop.eup %7848  ;;  %v3476_v10 = vmul.f32 0.25, %v3401_v31 }
 0xa25   : > { %v6313_v36 = vmul.f32 %v7849_v11, %v12497_v16 }
 0xa26   : > { %v3416_v1 = vpop.xlane.xlu1 %3415  ;;  %v10873_v6 = vpop.xlane.xlu0 %3406  ;;  %v10880_v24 = vsub.f32 %v12507_v13, %v3476_v10 }
 0xa28   : > { %6331 = vrot.lane.b32.xlu0 %v6314_v28, %s8143_s17  ;;  %12508 = vst [vmem:[#allocation56_spill] sm:$0xff] %v10880_v24  ;;  %v3540_v16 = vmul.f32 %v10880_v24, %v10880_v24  ;;  %v3568_v24 = vsel %vm2140_vm9, %v3532_v9, 0.0 }
 0xa2a   : > { %v10875_v39 = vpop.xlane.xlu1 %3409  ;;  %v10877_v63 = vpop.xlane.xlu0 %3424  ;;  %v3592_v10 = vsel %vm2140_vm9, %v3540_v16, 0.0  ;;  %v12517_v16 = vld [vmem:[#allocation93_spill] sm:$0xff] }
 0xa2b   : > { %12505 = vst [vmem:[#allocation58_spill] sm:$0xff] %v10875_v39  ;;  %12506 = vst [vmem:[#allocation41_spill] sm:$0xff] %v10877_v63  ;;  %v3466_v63 = vmul.f32 0.25, %v3371_v58  ;;  %v3477_v58 = vmul.f32 0.25, %v3404_v59 }
 0xa2d   : > { %v10902_v13 = vsub.f32 %v12514_v0, %v3466_v63  ;;  %v10918_v9 = vsub.f32 %v12519_v35, %v3477_v58  ;;  %v3469_v0 = vmul.f32 0.25, %v3380_v29  ;;  %v4919_v58 = vsub.f32 0.0, %v10445_v14  ;;  %v12526_v35 = vld [vmem:[#allocation90_spill] sm:$0xff] }
 0xa2e   : > { %v10882_v28 = vpop.xlane.xlu1 %3427  ;;  %v10889_v11 = vpop.xlane.xlu0 %3448  ;;  %v4927_v14 = vsub.f32 0.0, %v10463_v18  ;;  %v12533_v18 = vld [vmem:[#allocation59_spill] sm:$0xff] }
 0xa2f   : > { %12515 = vst [vmem:[#allocation61_spill] sm:$0xff] %v10902_v13  ;;  %v3530_v47 = vmul.f32 %v10902_v13, %v10902_v13  ;;  %12520 = vst [vmem:[#allocation27_spill] sm:$0xff] %v10918_v9  ;;  %v3475_v13 = vmul.f32 0.25, %v3398_v34 }
 0xa32   : > { %v10891_v31 = vpop.xlane.xlu1 %3451  ;;  %v10899_v26 = vpop.xlane.xlu0 %3418 }
 0xa33   : > { %12511 = vst [vmem:[#allocation92_spill] sm:$0xff] %v10891_v31 }
 0xa35   : > { %6329 = vrot.lane.b32.xlu1 %v6313_v36, %s8143_s17  ;;  %v12512_v36 = vld [vmem:[#allocation38_spill] sm:$0xff] }
 0xa36   : > { %v10894_v39 = vsub.f32 %v12512_v36, %v3474_v48  ;;  %v10907_v48 = vpop.xlane.xlu1 %3421  ;;  %v10910_v36 = vsub.f32 %v12517_v16, %v3480_v23  ;;  %v10915_v63 = vpop.xlane.xlu0 %3442 }
 0xa37   : > { %12516 = vst [vmem:[#allocation25_spill] sm:$0xff] %v10907_v48  ;;  %v3467_v48 = vmul.f32 0.25, %v3374_v37 }
 0xa38   : > { %12513 = vst [vmem:[#allocation46_spill] sm:$0xff] %v10894_v39  ;;  %v3538_v31 = vmul.f32 %v10894_v39, %v10894_v39  ;;  %12518 = vst [vmem:[#allocation24_spill] sm:$0xff] %v10910_v36  ;;  %v3544_v59 = vmul.f32 %v10910_v36, %v10910_v36 }
 0xa3a   : > { %v10920_v39 = vpop.xlane.xlu1 %3445 }
 0xa3b   : > { %12521 = vst [vmem:[#allocation26_spill] sm:$0xff] %v10920_v39  ;;  %v4918_v39 = vsub.f32 0.0, %v12526_v35 }
 0xa3d   : > { %v4952_v35 = vmul.f32 1.442695, %v4918_v39 }
 0xa47   : > { %3593 = vadd.xlane.f32.xlu0 %v3592_v10  ;;  %v3586_v10 = vsel %vm2140_vm9, %v3538_v31, 0.0  ;;  %v12523_v31 = vld [vmem:[#allocation66_spill] sm:$0xff] }
 0xa48   : > { %v10928_v16 = vsub.f32 %v12523_v31, %v3469_v0  ;;  %v4954_v31 = vmul.f32 1.442695, %v4919_v58 }
 0xa4a   : > { %12524 = vst [vmem:[#allocation102_spill] sm:$0xff] %v10928_v16  ;;  %v3533_v0 = vmul.f32 %v10928_v16, %v10928_v16  ;;  %v4917_v16 = vsub.f32 0.0, %v12533_v18  ;;  %7850 = vpow2.f32 %v4954_v31  ;;  %v4929_v18 = vsub.f32 0.0, %v10485_v52 }
 0xa4b   : > { %3569 = vadd.xlane.f32.xlu0 %v3568_v24  ;;  %v3562_v24 = vsel %vm2140_vm9, %v3530_v47, 0.0  ;;  %v10925_v23 = vpop.xlane.xlu0 %3436  ;;  %v3604_v47 = vsel %vm2140_vm9, %v3544_v59, 0.0  ;;  %v4926_v59 = vsub.f32 0.0, %v10489_v44  ;;  %7852 = vpow2.f32 %v4952_v35  ;;  %v12537_v35 = vld [vmem:[#allocation104_spill] sm:$0xff] }
 0xa4c   : > { %12522 = vst [vmem:[#allocation47_spill] sm:$0xff] %v10925_v23  ;;  %v4924_v44 = vsub.f32 0.0, %v10469_v51  ;;  %v4923_v51 = vsub.f32 0.0, %v12537_v35  ;;  %v4974_v52 = vmul.f32 1.442695, %v4929_v18 }
 0xa4d   : > { %v10933_v29 = vpop.xlane.xlu1 %3439 }
 0xa4e   : > { %12525 = vst [vmem:[#allocation28_spill] sm:$0xff] %v10933_v29  ;;  %v3571_v29 = vsel %vm2140_vm9, %v3533_v0, 0.0  ;;  %v4921_v0 = vsub.f32 0.0, %v10467_v57  ;;  %v4962_v35 = vmul.f32 1.442695, %v4923_v51 }
 0xa4f   : > { %3587 = vadd.xlane.f32.xlu0 %v3586_v10  ;;  %v3541_v10 = vmul.f32 %v10918_v9, %v10918_v9 }
 0xa51   : > { %v3595_v34 = vsel %vm2140_vm9, %v3541_v10, 0.0  ;;  %v3481_v10 = vmul.f32 0.25, %v3416_v1 }
 0xa53   : > { %3563 = vadd.xlane.f32.xlu0 %v3562_v24  ;;  %v12527_v24 = vld [vmem:[#allocation57_spill] sm:$0xff] }
 0xa54   : > { %v10940_v23 = vsub.f32 %v12527_v24, %v3475_v13  ;;  %v12531_v13 = vld [vmem:[#allocation37_spill] sm:$0xff] }
 0xa55   : > { %v10953_v24 = vsub.f32 %v12531_v13, %v3467_v48  ;;  %v12534_v48 = vld [vmem:[#allocation65_spill] sm:$0xff] }
 0xa56   : > { %12528 = vst [vmem:[#allocation68_spill] sm:$0xff] %v10940_v23  ;;  %v3539_v58 = vmul.f32 %v10940_v23, %v10940_v23  ;;  %v4925_v13 = vsub.f32 0.0, %v12534_v48  ;;  %v4920_v48 = vsub.f32 0.0, %v10497_v30 }
 0xa57   : > { %3605 = vadd.xlane.f32.xlu0 %v3604_v47  ;;  %v10937_v36 = vpop.xlane.xlu0 %3460  ;;  %v4916_v47 = vsub.f32 0.0, %v10441_v32  ;;  %12532 = vst [vmem:[#allocation99_spill] sm:$0xff] %v10953_v24  ;;  %v4968_v32 = vmul.f32 1.442695, %v4926_v59 }
 0xa58   : > { %v3589_v31 = vsel %vm2140_vm9, %v3539_v58, 0.0  ;;  %v4966_v57 = vmul.f32 1.442695, %v4925_v13  ;;  %v4958_v58 = vmul.f32 1.442695, %v4921_v0  ;;  %v7851_v13 = vpop.eup %7850  ;;  %v4930_v0 = vsub.f32 0.0, %v10535_v33 }
 0xa59   : > { %v10946_v9 = vpop.xlane.xlu1 %3463  ;;  %3596 = vadd.xlane.f32.xlu1 %v3595_v34  ;;  %v4970_v34 = vmul.f32 1.442695, %v4927_v14  ;;  %v3531_v14 = vmul.f32 %v10953_v24, %v10953_v24 }
 0xa5a   : > { %12529 = vst [vmem:[#allocation31_spill] sm:$0xff] %v10946_v9  ;;  %v4948_v9 = vmul.f32 1.442695, %v4916_v47  ;;  %v4964_v47 = vmul.f32 1.442695, %v4924_v44 }
 0xa5b   : > { %v10950_v37 = vpop.xlane.xlu0 %3430  ;;  %7854 = vpow2.f32 %v4970_v34 }
 0xa5c   : > { %12530 = vst [vmem:[#allocation100_spill] sm:$0xff] %v10950_v37  ;;  %v12535_v37 = vld [vmem:[#allocation94_spill] sm:$0xff]  ;;  %7856 = vpow2.f32 %v4968_v32 }
 0xa5d   : > { %v10959_v39 = vpop.xlane.xlu1 %3433  ;;  %3572 = vadd.xlane.f32.xlu1 %v3571_v29  ;;  %v10967_v23 = vsub.f32 %v12535_v37, %v3481_v10  ;;  %v4950_v29 = vmul.f32 1.442695, %v4917_v16  ;;  %7858 = vpow2.f32 %v4948_v9  ;;  %v4931_v37 = vsub.f32 0.0, %v10493_v46 }
 0xa5e   : > { %v3565_v16 = vsel %vm2140_vm9, %v3531_v14, 0.0  ;;  %v4933_v46 = vsub.f32 0.0, %v10501_v62 }
 0xa5f   : > { %v10963_v1 = vpop.xlane.xlu0 %3454  ;;  %12536 = vst [vmem:[#allocation106_spill] sm:$0xff] %v10967_v23  ;;  %v3545_v34 = vmul.f32 %v10967_v23, %v10967_v23  ;;  %7860 = vpow2.f32 %v4950_v29  ;;  %v4978_v30 = vmul.f32 1.442695, %v4931_v37  ;;  %v4956_v29 = vmul.f32 1.442695, %v4920_v48 }
 0xa60   : > { %7862 = vpow2.f32 %v4964_v47  ;;  %v4982_v62 = vmul.f32 1.442695, %v4933_v46 }
 0xa61   : > { %v10973_v59 = vpop.xlane.xlu1 %3457  ;;  %3590 = vadd.xlane.f32.xlu1 %v3589_v31  ;;  %v12539_v31 = vld [vmem:[#allocation60_spill] sm:$0xff]  ;;  %7864 = vpow2.f32 %v4966_v57  ;;  %v4976_v57 = vmul.f32 1.442695, %v4930_v0 }
 0xa62   : > { %12538 = vst [vmem:[#allocation101_spill] sm:$0xff] %v10973_v59  ;;  %v4922_v44 = vsub.f32 0.0, %v12539_v31  ;;  %v7853_v59 = vpop.eup %7852  ;;  %7866 = vpow2.f32 %v4958_v58  ;;  %v3607_v31 = vsel %vm2140_vm9, %v3545_v34, 0.0  ;;  %v4928_v34 = vsub.f32 0.0, %v10521_v17 }
 0xa63   : > { %v4796_v10 = vpop.xlane.xlu0 %4795  ;;  %7868 = vpow2.f32 %v4962_v35  ;;  %v4943_v17 = vsub.f32 0.0, %v10537_v8 }
 0xa64   : > { %v4886_v32 = vand.u32 2147483647, %v4796_v10  ;;  %v4960_v10 = vmul.f32 1.442695, %v4922_v44  ;;  %7870 = vpow2.f32 %v4974_v52 }
 0xa65   : > { %v4799_v24 = vpop.xlane.xlu1 %4798  ;;  %3566 = vadd.xlane.f32.xlu1 %v3565_v16  ;;  %v7855_v18 = vpop.eup %7854  ;;  %7872 = vpow2.f32 %v4978_v30 }
 0xa66   : > { %v4887_v9 = vand.u32 2147483647, %v4799_v24  ;;  %v5014_v16 = vmax.f32 %v4886_v32, %v7853_v59  ;;  %v7857_v23 = vpop.eup %7856  ;;  %7874 = vpow2.f32 %v4956_v29 }
 0xa67   : > { %v4820_v14 = vpop.xlane.xlu0 %4819  ;;  %7876 = vpow2.f32 %v4960_v10  ;;  %v4935_v10 = vsub.f32 0.0, %v10513_v40 }
 0xa68   : > { %v5015_v51 = vmax.f32 %v4887_v9, %v7851_v13  ;;  %v4894_v37 = vand.u32 2147483647, %v4820_v14  ;;  %v7859_v13 = vpop.eup %7858  ;;  %v5046_v59 = vadd.f32 1e-06, %v5014_v16  ;;  %7878 = vpow2.f32 %v4982_v62 }
 0xa69   : > { %v4823_v47 = vpop.xlane.xlu1 %4822  ;;  %3608 = vadd.xlane.f32.xlu1 %v3607_v31  ;;  %v7861_v52 = vpop.eup %7860  ;;  %7880 = vpow2.f32 %v4976_v57 }
 0xa6a   : > { %v4895_v24 = vand.u32 2147483647, %v4823_v47  ;;  %v5047_v58 = vadd.f32 1e-06, %v5015_v51  ;;  %v5022_v46 = vmax.f32 %v4894_v37, %v7857_v23  ;;  %v7863_v14 = vpop.eup %7862 }
 0xa6b   : > { %v4790_v33 = vpop.xlane.xlu0 %4789  ;;  %v7865_v47 = vpop.eup %7864 }
 0xa6c   : > { %v5023_v48 = vmax.f32 %v4895_v24, %v7855_v18  ;;  %v4884_v9 = vand.u32 2147483647, %v4790_v33  ;;  %7882 = vrcp.f32 %v5047_v58  ;;  %v4972_v24 = vmul.f32 1.442695, %v4928_v34  ;;  %v10988_v62 = vpop.eup %7866 }
 0xa6d   : > { %v4793_v35 = vpop.xlane.xlu1 %4792  ;;  %7884 = vrcp.f32 %v5046_v59  ;;  %v7869_v37 = vpop.eup %7868  ;;  %v4932_v33 = vsub.f32 0.0, %v10543_v61  ;;  %v4934_v58 = vsub.f32 0.0, %v10551_v42 }
 0xa6e   : > { %v5012_v44 = vmax.f32 %v4884_v9, %v7859_v13  ;;  %v4885_v32 = vand.u32 2147483647, %v4793_v35  ;;  %v5055_v30 = vadd.f32 1e-06, %v5023_v48  ;;  %v5054_v48 = vadd.f32 1e-06, %v5022_v46  ;;  %v10992_v40 = vpop.eup %7870 }
 0xa6f   : > { %v4814_v0 = vpop.xlane.xlu0 %4813  ;;  %v7873_v59 = vpop.eup %7872  ;;  %v4986_v35 = vmul.f32 1.442695, %v4935_v10 }
 0xa70   : > { %v5044_v29 = vadd.f32 1e-06, %v5012_v44  ;;  %v5013_v51 = vmax.f32 %v4885_v32, %v7861_v52  ;;  %v4892_v31 = vand.u32 2147483647, %v4814_v0  ;;  %v4940_v44 = vsub.f32 0.0, %v10557_v50  ;;  %v7875_v52 = vpop.eup %7874 }
 0xa71   : > { %v4817_v16 = vpop.xlane.xlu1 %4816  ;;  %v5002_v0 = vmul.f32 1.442695, %v4943_v17  ;;  %v7877_v46 = vpop.eup %7876  ;;  %v4942_v17 = vsub.f32 0.0, %v10563_v49 }
 0xa72   : > { %7886 = vrcp.f32 %v5044_v29  ;;  %v5045_v18 = vadd.f32 1e-06, %v5013_v51  ;;  %v5020_v23 = vmax.f32 %v4892_v31, %v7863_v14  ;;  %v4893_v57 = vand.u32 2147483647, %v4817_v16  ;;  %v10996_v51 = vpop.eup %7878 }
 0xa73   : > { %7888 = vrcp.f32 %v5055_v30  ;;  %v4808_v9 = vpop.xlane.xlu0 %4807  ;;  %v4941_v30 = vsub.f32 0.0, %v10527_v12  ;;  %v4980_v14 = vmul.f32 1.442695, %v4932_v33  ;;  %v4984_v31 = vmul.f32 1.442695, %v4934_v58 }
 0xa74   : > { %7890 = vrcp.f32 %v5045_v18  ;;  %v5052_v8 = vadd.f32 1e-06, %v5020_v23  ;;  %v5021_v13 = vmax.f32 %v4893_v57, %v7865_v47  ;;  %v4890_v34 = vand.u32 2147483647, %v4808_v9 }
 0xa75   : > { %7892 = vpow2.f32 %v4972_v24  ;;  %v4811_v32 = vpop.xlane.xlu1 %4810  ;;  %v7881_v24 = vpop.eup %7880  ;;  %v4996_v50 = vmul.f32 1.442695, %v4940_v44  ;;  %v10999_v33 = vmul.f32 1.442695, %v4941_v30  ;;  %v5000_v49 = vmul.f32 1.442695, %v4942_v17 }
 0xa76   : > { %7894 = vrcp.f32 %v5052_v8  ;;  %v5053_v61 = vadd.f32 1e-06, %v5021_v13  ;;  %v4891_v42 = vand.u32 2147483647, %v4811_v32  ;;  %v5018_v47 = vmax.f32 %v4890_v34, %v7877_v46  ;;  %v7883_v18 = vpop.eup %7882 }
 0xa77   : > { %7896 = vrcp.f32 %v5054_v48  ;;  %v4832_v29 = vpop.xlane.xlu0 %4831  ;;  %v7885_v12 = vpop.eup %7884  ;;  %v5111_v44 = vmul.f32 %v7883_v18, %v10643_v60 }
 0xa78   : > { %7898 = vrcp.f32 %v5053_v61  ;;  %v5019_v10 = vmax.f32 %v4891_v42, %v7869_v37  ;;  %v4898_v48 = vand.u32 2147483647, %v4832_v29  ;;  %v5050_v8 = vadd.f32 1e-06, %v5018_v47 }
 0xa79   : > { %7900 = vpow2.f32 %v4986_v35  ;;  %v4835_v16 = vpop.xlane.xlu1 %4834  ;;  %v4937_v35 = vsub.f32 0.0, %v12471_v21  ;;  %v5110_v61 = vmul.f32 %v7885_v12, %v10637_v7 }
 0xa7a   : > { %7902 = vpow2.f32 %v5002_v0  ;;  %v5051_v23 = vadd.f32 1e-06, %v5019_v10  ;;  %v4899_v57 = vand.u32 2147483647, %v4835_v16 }
 0xa7b   : > { %7904 = vpow2.f32 %v4980_v14  ;;  %v4802_v9 = vpop.xlane.xlu0 %4801  ;;  %v5026_v14 = vmax.f32 %v4898_v48, %v7881_v24  ;;  %v5141_v18 = vpack.c.bf16 %v5111_v44, %v5110_v61 }
 0xa7c   : > { %v7887_v58 = vpop.eup %7886  ;;  %7906 = vpow2.f32 %v4984_v31  ;;  %v5027_v37 = vmax.f32 %v4899_v57, %v7873_v59  ;;  %v4888_v13 = vand.u32 2147483647, %v4802_v9 }
 0xa7d   : > { %v7889_v34 = vpop.eup %7888  ;;  %7908 = vpow2.f32 %v4996_v50  ;;  %v4805_v32 = vpop.xlane.xlu1 %4804  ;;  %v5108_v59 = vmul.f32 %v7887_v58, %v10661_v22 }
 0xa7e   : > { %v7891_v0 = vpop.eup %7890  ;;  %7910 = vrcp.f32 %v5051_v23  ;;  %v5016_v42 = vmax.f32 %v4888_v13, %v7875_v52  ;;  %v4889_v46 = vand.u32 2147483647, %v4805_v32  ;;  %v5059_v29 = vadd.f32 1e-06, %v5027_v37  ;;  %v12540_v32 = vld [vmem:[#allocation98_spill] sm:$0xff] }
 0xa7f   : > { %v7893_v30 = vpop.eup %7892  ;;  %v4826_v31 = vpop.xlane.xlu0 %4825  ;;  %v5109_v47 = vmul.f32 %v7891_v0, %v10669_v43  ;;  %7912 = vrcp.f32 %v5050_v8  ;;  %v5119_v7 = vmul.f32 %v7889_v34, %v10655_v27  ;;  %v5058_v43 = vadd.f32 1e-06, %v5026_v14 }
 0xa80   : > { %v7895_v21 = vpop.eup %7894  ;;  %v5048_v10 = vadd.f32 1e-06, %v5016_v42  ;;  %v5017_v60 = vmax.f32 %v4889_v46, %v10988_v62  ;;  %v4896_v50 = vand.u32 2147483647, %v4826_v31  ;;  %7914 = vpow2.f32 %v5000_v49  ;;  %v12541_v31 = vld [vmem:[#allocation80_spill] sm:$0xff] }
 0xa81   : > { %v7897_v17 = vpop.eup %7896  ;;  %v4829_v52 = vpop.xlane.xlu1 %4828  ;;  %v5140_v16 = vpack.c.bf16 %v5109_v47, %v5108_v59  ;;  %v5116_v62 = vmul.f32 %v7895_v21, %v10678_v4  ;;  %v4936_v34 = vsub.f32 0.0, %v12474_v5  ;;  %v4938_v49 = vsub.f32 0.0, %v10569_v45 }
 0xa82   : > { %v7899_v24 = vpop.eup %7898  ;;  %7916 = vrcp.f32 %v5048_v10  ;;  %v5049_v23 = vadd.f32 1e-06, %v5017_v60  ;;  %v5024_v57 = vmax.f32 %v4896_v50, %v7893_v30  ;;  %v4897_v22 = vand.u32 2147483647, %v4829_v52 }
 0xa83   : > { %v7901_v12 = vpop.eup %7900  ;;  %7918 = vrcp.f32 %v5059_v29  ;;  %7186 = vmatprep.mubr.msk.bf16.mxu0 %vm1048_vm5, %v5140_v16  ;;  %v4844_v48 = vpop.xlane.xlu0 %4843  ;;  %v5117_v9 = vmul.f32 %v7899_v24, %v10685_v20  ;;  %v5118_v27 = vmul.f32 %v7897_v17, %v10649_v2  ;;  %v4990_v45 = vmul.f32 1.442695, %v4937_v35 }
 0xa84   : > { %v7903_v58 = vpop.eup %7902  ;;  %7920 = vrcp.f32 %v5049_v23  ;;  %v5056_v8 = vadd.f32 1e-06, %v5024_v57  ;;  %v5025_v37 = vmax.f32 %v4897_v22, %v10992_v40  ;;  %7187 = vmatmul.mubr.msk.bf16.vlgmr.msra.gmra.mrb[68].mxu0 %vm1048_vm5, %v5141_v18  ;;  %v4902_v44 = vand.u32 2147483647, %v4844_v48 }
 0xa85   : > { %v7905_v13 = vpop.eup %7904  ;;  %7211 = vmatpush3.bf16.msra.mxu0 %v12540_v32  ;;  %v4847_v4 = vpop.xlane.xlu1 %4846  ;;  %v5144_v0 = vpack.c.bf16 %v5117_v9, %v5116_v62  ;;  %v5145_v42 = vpack.c.bf16 %v5119_v7, %v5118_v27  ;;  %v4988_v14 = vmul.f32 1.442695, %v4936_v34  ;;  %v4992_v21 = vmul.f32 1.442695, %v4938_v49  ;;  %v12542_v34 = vld [vmem:[#allocation77_spill] sm:$0xff] }
 0xa86   : > { %v7907_v20 = vpop.eup %7906  ;;  %7922 = vrcp.f32 %v5056_v8  ;;  %v5057_v61 = vadd.f32 1e-06, %v5025_v37  ;;  %v4903_v2 = vand.u32 2147483647, %v4847_v4  ;;  %7212 = vmatprep.subr.bf16.mxu0 %v10837_v56  ;;  %v4939_v22 = vsub.f32 0.0, %v12482_v15  ;;  %v12543_v4 = vld [vmem:[#allocation55_spill] sm:$0xff] }
 0xa87   : > { %v11018_v40 = vpop.eup %7908  ;;  %7924 = vrcp.f32 %v5058_v43  ;;  %7202 = vmatprep.mubr.msk.bf16.mxu1 %vm1048_vm5, %v5144_v0  ;;  %v4868_v5 = vpop.xlane.xlu0 %4867  ;;  %v5030_v29 = vmax.f32 %v4902_v44, %v7907_v20  ;;  %v12544_v0 = vld [vmem:[#allocation74_spill] sm:$0xff] }
 0xa88   : > { %v7911_v46 = vpop.eup %7910  ;;  %7926 = vrcp.f32 %v5057_v61  ;;  %v5031_v30 = vmax.f32 %v4903_v2, %v7901_v12  ;;  %7203 = vmatmul.mubr.msk.bf16.vlgmr.msra.gmra.mrb[68].mxu1 %vm1048_vm5, %v5145_v42  ;;  %v4910_v60 = vand.u32 2147483647, %v4868_v5  ;;  %v4947_v20 = vsub.f32 0.0, %v12544_v0  ;;  %v12546_v42 = vld [vmem:[#allocation79_spill] sm:$0xff] }
 0xa89   : > { %7928 = vpow2.f32 %v10999_v33  ;;  %7213 = vmatpush3.bf16.msra.mxu0 %v10837_v56  ;;  %7227 = vmatpush3.bf16.msra.mxu1 %v12541_v31  ;;  %v4871_v59 = vpop.xlane.xlu1 %4870  ;;  %v7913_v47 = vpop.eup %7912  ;;  %v5115_v17 = vmul.f32 %v7911_v46, %v10697_v25  ;;  %v5062_v16 = vadd.f32 1e-06, %v5030_v29  ;;  %v12548_v29 = vld [vmem:[#allocation43_spill] sm:$0xff] }
 0xa8a   : > { %v4911_v10 = vand.u32 2147483647, %v4871_v59  ;;  %7214 = vmatprep.subr.bf16.mxu0 %v10852_v55  ;;  %7228 = vmatprep.subr.bf16.mxu1 %v10823_v19  ;;  %v7915_v35 = vpop.eup %7914  ;;  %7930 = vpow2.f32 %v4990_v45  ;;  %v5063_v7 = vadd.f32 1e-06, %v5031_v30  ;;  %v5114_v23 = vmul.f32 %v7913_v47, %v10691_v38 }
 0xa8b   : > { %v4838_v50 = vpop.xlane.xlu0 %4837  ;;  %7932 = vpow2.f32 %v4988_v14  ;;  %v5038_v43 = vmax.f32 %v4910_v60, %v7915_v35  ;;  %v4994_v14 = vmul.f32 1.442695, %v4939_v22  ;;  %v4944_v31 = vsub.f32 0.0, %v12548_v29  ;;  %v12549_v22 = vld [vmem:[#allocation75_spill] sm:$0xff]  ;;  %v12557_v29 = vld [vmem:[#allocation42_spill] sm:$0xff] }
 0xa8c   : > { %v7917_v33 = vpop.eup %7916  ;;  %v4900_v52 = vand.u32 2147483647, %v4838_v50  ;;  %v5039_v18 = vmax.f32 %v4911_v10, %v7903_v58  ;;  %7934 = vpow2.f32 %v4992_v21 }
 0xa8d   : > { %v7919_v56 = vpop.eup %7918  ;;  %7215 = vmatpush3.bf16.msra.mxu0 %v10852_v55  ;;  %7229 = vmatpush3.bf16.msra.mxu1 %v10823_v19  ;;  %v4841_v24 = vpop.xlane.xlu1 %4840  ;;  %v5112_v62 = vmul.f32 %v7917_v33, %v10721_v53  ;;  %v5143_v19 = vpack.c.bf16 %v5115_v17, %v5114_v23  ;;  %7936 = vrcp.f32 %v5063_v7  ;;  %v5070_v61 = vadd.f32 1e-06, %v5038_v43 }
 0xa8e   : > { %v7921_v57 = vpop.eup %7920  ;;  %v5028_v25 = vmax.f32 %v4900_v52, %v7905_v13  ;;  %v4901_v12 = vand.u32 2147483647, %v4841_v24  ;;  %7216 = vmatprep.subr.bf16.mxu0 %v10858_v3  ;;  %7230 = vmatprep.subr.bf16.mxu1 %v10839_v54  ;;  %7938 = vrcp.f32 %v5062_v16  ;;  %v5071_v8 = vadd.f32 1e-06, %v5039_v18 }
 0xa8f   : > { %v4862_v48 = vpop.xlane.xlu0 %4861  ;;  %v5113_v55 = vmul.f32 %v7921_v57, %v10728_v41  ;;  %v5123_v53 = vmul.f32 %v7919_v56, %v12542_v34  ;;  %v5010_v33 = vmul.f32 1.442695, %v4947_v20  ;;  %v5004_v52 = vmul.f32 1.442695, %v4944_v31 }
 0xa90   : > { %v7923_v9 = vpop.eup %7922  ;;  %v5060_v38 = vadd.f32 1e-06, %v5028_v25  ;;  %v5029_v58 = vmax.f32 %v4901_v12, %v10996_v51  ;;  %v4908_v15 = vand.u32 2147483647, %v4862_v48  ;;  %v4946_v25 = vsub.f32 0.0, %v12549_v22  ;;  %v12563_v22 = vld [vmem:[#allocation49_spill] sm:$0xff] }
 0xa91   : > { %v7925_v27 = vpop.eup %7924  ;;  %7217 = vmatpush3.bf16.msra.mxu0 %v10858_v3  ;;  %7231 = vmatpush3.bf16.msra.mxu1 %v10839_v54  ;;  %v4865_v37 = vpop.xlane.xlu1 %4864  ;;  %v5142_v13 = vpack.c.bf16 %v5113_v55, %v5112_v62  ;;  %v12545_v54 = vld [vmem:[#allocation34_spill] sm:$0xff]  ;;  %v3478_v55 = vmul.f32 0.25, %v10873_v6 }
 0xa92   : > { %v7927_v49 = vpop.eup %7926  ;;  %7940 = vrcp.f32 %v5060_v38  ;;  %v5061_v41 = vadd.f32 1e-06, %v5029_v58  ;;  %v5036_v44 = vmax.f32 %v4908_v15, %v11018_v40  ;;  %v4909_v32 = vand.u32 2147483647, %v4865_v37  ;;  %7232 = vmatprep.subr.bf16.mxu1 %v12543_v4  ;;  %v12547_v40 = vld [vmem:[#allocation32_spill] sm:$0xff] }
 0xa93   : > { %v7929_v51 = vpop.eup %7928  ;;  %7190 = vmatprep.mubr.msk.bf16.mxu0 %vm1048_vm5, %v5142_v13  ;;  %v11044_v3 = vpop.xlane.xlu0 %4879  ;;  %v5120_v2 = vmul.f32 %v7923_v9, %v12545_v54  ;;  %v5121_v5 = vmul.f32 %v7927_v49, %v12546_v42  ;;  %v5122_v30 = vmul.f32 %v7925_v27, %v12547_v40  ;;  %v5008_v37 = vmul.f32 1.442695, %v4946_v25  ;;  %v12551_v13 = vld [vmem:[#allocation71_spill] sm:$0xff]  ;;  %v12552_v49 = vld [vmem:[#allocation52_spill] sm:$0xff]  ;;  %v12556_v40 = vld [vmem:[#allocation45_spill] sm:$0xff] }
 0xa94   : > { %7942 = vrcp.f32 %v5061_v41  ;;  %v5068_v46 = vadd.f32 1e-06, %v5036_v44  ;;  %v5037_v45 = vmax.f32 %v4909_v32, %v7929_v51  ;;  %7191 = vmatmul.mubr.msk.bf16.gmra.mrb[72].mxu0 %vm1048_vm5, %v5143_v19  ;;  %v7931_v21 = vpop.eup %7930  ;;  %v12550_v19 = vld [vmem:[#allocation85_spill] sm:$0xff]  ;;  %v12553_v44 = vld [vmem:[#allocation83_spill] sm:$0xff] }
 0xa95   : > { %7944 = vrcp.f32 %v5071_v8  ;;  %7233 = vmatpush3.bf16.msra.mxu1 %v12543_v4  ;;  %v4856_v59 = vpop.xlane.xlu1 %4855  ;;  %v5146_v47 = vpack.c.bf16 %v5121_v5, %v5120_v2  ;;  %v5147_v35 = vpack.c.bf16 %v5123_v53, %v5122_v30  ;;  %v7933_v60 = vpop.eup %7932  ;;  %v12554_v51 = vld [vmem:[#allocation73_spill] sm:$0xff] }
 0xa96   : > { %7946 = vrcp.f32 %v5068_v46  ;;  %v5069_v10 = vadd.f32 1e-06, %v5037_v45  ;;  %v7935_v17 = vpop.eup %7934  ;;  %v4906_v56 = vand.u32 2147483647, %v4856_v59  ;;  %v4945_v6 = vsub.f32 0.0, %v12554_v51 }
 0xa97   : > { %7948 = vrcp.f32 %v5070_v61  ;;  %7206 = vmatprep.mubr.msk.bf16.mxu1 %vm1048_vm5, %v5146_v47  ;;  %v4853_v50 = vpop.xlane.xlu0 %4852  ;;  %v7937_v18 = vpop.eup %7936  ;;  %v12555_v61 = vld [vmem:[#allocation105_spill] sm:$0xff] }
 0xa98   : > { %7950 = vrcp.f32 %v5069_v10  ;;  %v4905_v7 = vand.u32 2147483647, %v4853_v50  ;;  %7207 = vmatmul.mubr.msk.bf16.gmra.mrb[72].mxu1 %vm1048_vm5, %v5147_v35  ;;  %v7939_v57 = vpop.eup %7938  ;;  %v5127_v9 = vmul.f32 %v7937_v18, %v12550_v19  ;;  %v5034_v38 = vmax.f32 %v4906_v56, %v7935_v17  ;;  %v12560_v35 = vld [vmem:[#allocation48_spill] sm:$0xff]  ;;  %v12561_v50 = vld [vmem:[#allocation41_spill] sm:$0xff] }
 0xa99   : > { %7952 = vpow2.f32 %v4994_v14  ;;  %v4850_v16 = vpop.xlane.xlu1 %4849  ;;  %v5126_v34 = vmul.f32 %v7939_v57, %v12551_v13  ;;  %v11064_v54 = vsub.f32 %v12555_v61, %v3478_v55  ;;  %v3484_v17 = vmul.f32 0.25, %v12561_v50  ;;  %v12565_v19 = vld [vmem:[#allocation29_spill] sm:$0xff] }
 0xa9a   : > { %v5033_v24 = vmax.f32 %v4905_v7, %v7931_v21  ;;  %v4904_v23 = vand.u32 2147483647, %v4850_v16  ;;  %7954 = vpow2.f32 %v5010_v33  ;;  %v5066_v2 = vadd.f32 1e-06, %v5034_v38  ;;  %v12559_v21 = vld [vmem:[#allocation88_spill] sm:$0xff]  ;;  %v12562_v33 = vld [vmem:[#allocation81_spill] sm:$0xff] }
 0xa9b   : > { %v3383_v12 = vpop.xlane.xlu0 %3382  ;;  %7956 = vpow2.f32 %v5004_v52  ;;  %v5149_v46 = vpack.c.bf16 %v5127_v9, %v5126_v34  ;;  %v5006_v16 = vmul.f32 1.442695, %v4945_v6  ;;  %v11086_v9 = vsub.f32 %v12565_v19, %v3484_v17  ;;  %v12578_v19 = vld [vmem:[#allocation47_spill] sm:$0xff] }
 0xa9c   : > { %v7941_v43 = vpop.eup %7940  ;;  %v5065_v48 = vadd.f32 1e-06, %v5033_v24  ;;  %v5032_v62 = vmax.f32 %v4904_v23, %v7933_v60  ;;  %v3470_v14 = vmul.f32 0.25, %v3383_v12  ;;  %v3542_v23 = vmul.f32 %v11064_v54, %v11064_v54 }
 0xa9d   : > { %v11057_v58 = vpop.xlane.xlu1 %4873  ;;  %v5124_v41 = vmul.f32 %v7941_v43, %v12552_v49  ;;  %v3492_v38 = vmul.f32 0.25, %v10889_v11  ;;  %v3548_v11 = vmul.f32 %v11086_v9, %v11086_v9 }
 0xa9e   : > { %v7943_v15 = vpop.eup %7942  ;;  %7958 = vrcp.f32 %v5065_v48  ;;  %v5064_v27 = vadd.f32 1e-06, %v5032_v62  ;;  %v11081_v25 = vsub.f32 %v12563_v22, %v3470_v14  ;;  %v3598_v13 = vsel %vm2140_vm9, %v3542_v23, 0.0 }
 0xa9f   : > { %v7945_v8 = vpop.eup %7944  ;;  %v3389_v53 = vpop.xlane.xlu0 %3388  ;;  %v5125_v32 = vmul.f32 %v7943_v15, %v12553_v44  ;;  %v12567_v44 = vld [vmem:[#allocation87_spill] sm:$0xff] }
 0xaa0   : > { %v7947_v4 = vpop.eup %7946  ;;  %7960 = vrcp.f32 %v5064_v27  ;;  %v3472_v0 = vmul.f32 0.25, %v3389_v53  ;;  %v5135_v30 = vmul.f32 %v7945_v8, %v12556_v40  ;;  %12564 = vst [vmem:[#allocation70_spill] sm:$0xff] %v11081_v25  ;;  %v3534_v34 = vmul.f32 %v11081_v25, %v11081_v25  ;;  %v12566_v53 = vld [vmem:[#allocation58_spill] sm:$0xff]  ;;  %v12570_v40 = vld [vmem:[#allocation107_spill] sm:$0xff] }
 0xaa1   : > { %v7949_v20 = vpop.eup %7948  ;;  %v4859_v42 = vpop.xlane.xlu1 %4858  ;;  %v5148_v5 = vpack.c.bf16 %v5125_v32, %v5124_v41  ;;  %7962 = vpow2.f32 %v5008_v37  ;;  %v5132_v10 = vmul.f32 %v7947_v4, %v12559_v21  ;;  %v4912_v37 = vand.u32 2147483647, %v11057_v58  ;;  %v12568_v4 = vld [vmem:[#allocation53_spill] sm:$0xff] }
 0xaa2   : > { %v7951_v45 = vpop.eup %7950  ;;  %v11068_v31 = vsub.f32 %v12557_v29, %v3472_v0  ;;  %v4907_v59 = vand.u32 2147483647, %v4859_v42  ;;  %v5134_v7 = vmul.f32 %v7949_v20, %v12562_v33  ;;  %7964 = vrcp.f32 %v5066_v2  ;;  %v12569_v0 = vld [vmem:[#allocation96_spill] sm:$0xff] }
 0xaa3   : > { %v7953_v47 = vpop.eup %7952  ;;  %7218 = vmatprep.mubr.msk.bf16.mxu0 %vm1048_vm5, %v5148_v5  ;;  %v5133_v60 = vmul.f32 %v7951_v45, %v12560_v35  ;;  %v3479_v49 = vmul.f32 0.25, %v12566_v53  ;;  %v4914_v41 = vand.u32 2147483647, %v11044_v3  ;;  %v11101_v58 = vsub.f32 %v12569_v0, %v3492_v38 }
 0xaa4   : > { %12558 = vst [vmem:[#allocation11_spill] sm:$0xff] %v11068_v31  ;;  %v5035_v52 = vmax.f32 %v4907_v59, %v7953_v47  ;;  %7219 = vmatmul.mubr.msk.bf16.vlgmr.msra.gmra.mrb[76].mxu0 %vm1048_vm5, %v5149_v46  ;;  %v3536_v56 = vmul.f32 %v11068_v31, %v11068_v31  ;;  %v7955_v57 = vpop.eup %7954  ;;  %v5153_v48 = vpack.c.bf16 %v5135_v30, %v5134_v7  ;;  %v3482_v20 = vmul.f32 0.25, %v10899_v26  ;;  %v12571_v59 = vld [vmem:[#allocation36_spill] sm:$0xff]  ;;  %v12573_v26 = vld [vmem:[#allocation62_spill] sm:$0xff] }
 0xaa5   : > { %v4883_v18 = vpop.xlane.xlu1 %4882  ;;  %v5152_v24 = vpack.c.bf16 %v5133_v60, %v5132_v10  ;;  %v7957_v62 = vpop.eup %7956  ;;  %v3574_v3 = vsel %vm2140_vm9, %v3534_v34, 0.0  ;;  %v11106_v30 = vsub.f32 %v12570_v40, %v3479_v49  ;;  %v3616_v60 = vsel %vm2140_vm9, %v3548_v11, 0.0  ;;  %v12580_v34 = vld [vmem:[#allocation92_spill] sm:$0xff] }
 0xaa6   : > { %v5067_v12 = vadd.f32 1e-06, %v5035_v52  ;;  %v3580_v43 = vsel %vm2140_vm9, %v3536_v56, 0.0  ;;  %v4915_v15 = vand.u32 2147483647, %v4883_v18  ;;  %v5040_v5 = vmax.f32 %v4912_v37, %v7957_v62  ;;  %v12581_v49 = vld [vmem:[#allocation64_spill] sm:$0xff] }
 0xaa7   : > { %7234 = vmatprep.mubr.msk.bf16.mxu1 %vm1048_vm5, %v5152_v24  ;;  %3581 = vadd.xlane.f32.xlu0 %v3580_v43  ;;  %v11113_v21 = vsub.f32 %v12573_v26, %v3482_v20  ;;  %v3556_v50 = vmul.f32 %v11101_v58, %v11101_v58  ;;  %v3490_v33 = vmul.f32 0.25, %v10915_v63  ;;  %v12574_v24 = vld [vmem:[#allocation50_spill] sm:$0xff]  ;;  %v3485_v43 = vmul.f32 0.25, %v10882_v28  ;;  %v12583_v20 = vld [vmem:[#allocation63_spill] sm:$0xff]  ;;  %v12586_v40 = vld [vmem:[#allocation100_spill] sm:$0xff] }
 0xaa8   : > { %v7959_v55 = vpop.eup %7958  ;;  %7966 = vrcp.f32 %v5067_v12  ;;  %7235 = vmatmul.mubr.msk.bf16.vlgmr.msra.gmra.mrb[76].mxu1 %vm1048_vm5, %v5153_v48  ;;  %v5043_v61 = vmax.f32 %v4915_v15, %v7955_v57  ;;  %v5072_v7 = vadd.f32 1e-06, %v5040_v5  ;;  %v12575_v57 = vld [vmem:[#allocation89_spill] sm:$0xff]  ;;  %v3543_v12 = vmul.f32 %v11106_v30, %v11106_v30 }
 0xaa9   : > { %7968 = vpow2.f32 %v5006_v16  ;;  %v3386_v27 = vpop.xlane.xlu1 %3385  ;;  %v5129_v51 = vmul.f32 %v7959_v55, %v12568_v4  ;;  %v12576_v48 = vld [vmem:[#allocation69_spill] sm:$0xff]  ;;  %v3488_v38 = vmul.f32 0.25, %v12578_v19  ;;  %v3546_v28 = vmul.f32 %v11113_v21, %v11113_v21  ;;  %v12582_v4 = vld [vmem:[#allocation76_spill] sm:$0xff] }
 0xaaa   : > { %v7961_v8 = vpop.eup %7960  ;;  %v3471_v29 = vmul.f32 0.25, %v3386_v27  ;;  %v5075_v10 = vadd.f32 1e-06, %v5043_v61  ;;  %v3640_v27 = vsel %vm2140_vm9, %v3556_v50, 0.0  ;;  %v3493_v53 = vmul.f32 0.25, %v12580_v34  ;;  %v12588_v50 = vld [vmem:[#allocation26_spill] sm:$0xff] }
 0xaab   : > { %3599 = vadd.xlane.f32.xlu0 %v3598_v13  ;;  %v5128_v32 = vmul.f32 %v7961_v8, %v12567_v44  ;;  %v7963_v6 = vpop.eup %7962  ;;  %v12579_v8 = vld [vmem:[#allocation103_spill] sm:$0xff]  ;;  %v3601_v44 = vsel %vm2140_vm9, %v3543_v12, 0.0  ;;  %v3496_v11 = vmul.f32 0.25, %v10937_v36  ;;  %v12593_v19 = vld [vmem:[#allocation72_spill] sm:$0xff]  ;;  %v12596_v34 = vld [vmem:[#allocation97_spill] sm:$0xff] }
 0xaac   : > { %v7965_v45 = vpop.eup %7964  ;;  %v5042_v14 = vmax.f32 %v4914_v41, %v7963_v6  ;;  %v11127_v62 = vsub.f32 %v12576_v48, %v3471_v29  ;;  %7970 = vrcp.f32 %v5075_v10  ;;  %v11133_v37 = vsub.f32 %v12579_v8, %v3490_v33  ;;  %v12595_v8 = vld [vmem:[#allocation86_spill] sm:$0xff] }
 0xaad   : > { %v3392_v2 = vpop.xlane.xlu1 %3391  ;;  %v5150_v42 = vpack.c.bf16 %v5129_v51, %v5128_v32  ;;  %v5130_v23 = vmul.f32 %v7965_v45, %v12574_v24  ;;  %7972 = vrcp.f32 %v5072_v7  ;;  %v11140_v41 = vsub.f32 %v12581_v49, %v3485_v43  ;;  %v12591_v43 = vld [vmem:[#allocation51_spill] sm:$0xff] }
 0xaae   : > { %v3473_v46 = vmul.f32 0.25, %v3392_v2  ;;  %v5074_v18 = vadd.f32 1e-06, %v5042_v14  ;;  %12577 = vst [vmem:[#allocation9_spill] sm:$0xff] %v11127_v62  ;;  %v3535_v32 = vmul.f32 %v11127_v62, %v11127_v62  ;;  %v11146_v51 = vsub.f32 %v12582_v4, %v3488_v38  ;;  %v12584_v2 = vld [vmem:[#allocation25_spill] sm:$0xff]  ;;  %v12597_v4 = vld [vmem:[#allocation95_spill] sm:$0xff] }
 0xaaf   : > { %7222 = vmatprep.mubr.msk.bf16.mxu0 %vm1048_vm5, %v5150_v42  ;;  %3575 = vadd.xlane.f32.xlu0 %v3574_v3  ;;  %v3610_v6 = vsel %vm2140_vm9, %v3546_v28, 0.0  ;;  %v3554_v0 = vmul.f32 %v11133_v37, %v11133_v37  ;;  %v11153_v61 = vsub.f32 %v12583_v20, %v3493_v53  ;;  %v3483_v42 = vmul.f32 0.25, %v12584_v2  ;;  %v12585_v3 = vld [vmem:[#allocation84_spill] sm:$0xff] }
 0xab0   : > { %v11110_v47 = vsub.f32 %v12571_v59, %v3473_v46  ;;  %7974 = vrcp.f32 %v5074_v18  ;;  %v3577_v5 = vsel %vm2140_vm9, %v3535_v32, 0.0  ;;  %v3549_v46 = vmul.f32 %v11140_v41, %v11140_v41 }
 0xab1   : > { %v4877_v35 = vpop.xlane.xlu1 %4876  ;;  %v3552_v36 = vmul.f32 %v11146_v51, %v11146_v51  ;;  %v11162_v45 = vsub.f32 %v12585_v3, %v3496_v11  ;;  %v3486_v14 = vmul.f32 0.25, %v12586_v40  ;;  %v3634_v29 = vsel %vm2140_vm9, %v3554_v0, 0.0 }
 0xab2   : > { %12572 = vst [vmem:[#allocation67_spill] sm:$0xff] %v11110_v47  ;;  %v7967_v17 = vpop.eup %7966  ;;  %v4913_v52 = vand.u32 2147483647, %v4877_v35  ;;  %v3537_v56 = vmul.f32 %v11110_v47, %v11110_v47  ;;  %v3557_v26 = vmul.f32 %v11153_v61, %v11153_v61  ;;  %v12587_v35 = vld [vmem:[#allocation30_spill] sm:$0xff]  ;;  %v3619_v33 = vsel %vm2140_vm9, %v3549_v46, 0.0  ;;  %v12599_v46 = vld [vmem:[#allocation33_spill] sm:$0xff] }
 0xab3   : > { %v7969_v16 = vpop.eup %7968  ;;  %3617 = vadd.xlane.f32.xlu0 %v3616_v60  ;;  %v5131_v22 = vmul.f32 %v7967_v17, %v12575_v57  ;;  %v11169_v60 = vsub.f32 %v12587_v35, %v3483_v42  ;;  %v3491_v17 = vmul.f32 0.25, %v12588_v50  ;;  %v3494_v24 = vmul.f32 0.25, %v10963_v1  ;;  %v12590_v57 = vld [vmem:[#allocation54_spill] sm:$0xff]  ;;  %v11221_v50 = vpop.permute.xlu0 %6331 }
 0xab4   : > { %v5041_v63 = vmax.f32 %v4913_v52, %v7969_v16  ;;  %v3583_v55 = vsel %vm2140_vm9, %v3537_v56, 0.0  ;;  %v3628_v52 = vsel %vm2140_vm9, %v3552_v36, 0.0  ;;  %v12589_v16 = vld [vmem:[#allocation78_spill] sm:$0xff]  ;;  %v3643_v12 = vsel %vm2140_vm9, %v3557_v26, 0.0  ;;  %12602 = vst [vmem:[#allocation39_spill] sm:$0xff] %v11221_v50 }
 0xab5   : > { %3584 = vadd.xlane.f32.xlu1 %v3583_v55  ;;  %v5151_v15 = vpack.c.bf16 %v5131_v22, %v5130_v23  ;;  %v11175_v18 = vsub.f32 %v12589_v16, %v3486_v14  ;;  %v3560_v23 = vmul.f32 %v11162_v45, %v11162_v45  ;;  %v11185_v38 = vsub.f32 %v12593_v19, %v3491_v17  ;;  %v11238_v19 = vpop.permute.xlu1 %6329 }
 0xab6   : > { %v5073_v13 = vadd.f32 1e-06, %v5041_v63  ;;  %v7971_v59 = vpop.eup %7970  ;;  %v12592_v63 = vld [vmem:[#allocation91_spill] sm:$0xff]  ;;  %v3547_v1 = vmul.f32 %v11169_v60, %v11169_v60  ;;  %v11192_v53 = vsub.f32 %v12596_v34, %v3494_v24  ;;  %v3487_v3 = vmul.f32 0.25, %v10959_v39  ;;  %12604 = vst [vmem:[#allocation82_spill] sm:$0xff] %v11238_v19 }
 0xab7   : > { %7223 = vmatmul.mubr.msk.bf16.gmra.mrb[80].mxu0 %vm1048_vm5, %v5151_v15  ;;  %3641 = vadd.xlane.f32.xlu0 %v3640_v27  ;;  %v7973_v10 = vpop.eup %7972  ;;  %v5139_v22 = vmul.f32 %v7971_v59, %v12590_v57  ;;  %v12594_v15 = vld [vmem:[#allocation28_spill] sm:$0xff]  ;;  %v3652_v49 = vsel %vm2140_vm9, %v3560_v23, 0.0  ;;  %v3550_v32 = vmul.f32 %v11175_v18, %v11175_v18  ;;  %v3555_v2 = vmul.f32 %v11185_v38, %v11185_v38 }
 0xab8   : > { %7976 = vrcp.f32 %v5073_v13  ;;  %v5136_v48 = vmul.f32 %v7973_v10, %v12591_v43  ;;  %v3489_v27 = vmul.f32 0.25, %v12594_v15  ;;  %v3613_v20 = vsel %vm2140_vm9, %v3547_v1, 0.0  ;;  %v12600_v59 = vld [vmem:[#allocation108_spill] sm:$0xff]  ;;  %v12601_v10 = vld [vmem:[#allocation101_spill] sm:$0xff] }
 0xab9   : > { %3602 = vadd.xlane.f32.xlu1 %v3601_v44  ;;  %v3622_v42 = vsel %vm2140_vm9, %v3550_v32, 0.0  ;;  %v3637_v40 = vsel %vm2140_vm9, %v3555_v2, 0.0  ;;  %v11218_v26 = vsub.f32 %v12600_v59, %v3487_v3  ;;  %v3495_v35 = vmul.f32 0.25, %v12601_v10 }
 0xaba   : > { %v7975_v7 = vpop.eup %7974  ;;  %v11199_v11 = vsub.f32 %v12597_v4, %v3489_v27  ;;  %v12606_v4 = vld [vmem:[#allocation46_spill] sm:$0xff] }
 0xabb   : > { %3611 = vadd.xlane.f32.xlu0 %v3610_v6  ;;  %v5138_v13 = vmul.f32 %v7975_v7, %v12595_v8  ;;  %v12598_v6 = vld [vmem:[#allocation31_spill] sm:$0xff]  ;;  %v3551_v16 = vmul.f32 %v11218_v26, %v11218_v26 }
 0xabc   : > { %v3497_v0 = vmul.f32 0.25, %v12598_v6  ;;  %v3553_v14 = vmul.f32 %v11199_v11, %v11199_v11 }
 0xabd   : > { %3578 = vadd.xlane.f32.xlu1 %v3577_v5  ;;  %v5155_v44 = vpack.c.bf16 %v5139_v22, %v5138_v13  ;;  %v3558_v5 = vmul.f32 %v11192_v53, %v11192_v53  ;;  %v3625_v57 = vsel %vm2140_vm9, %v3551_v16, 0.0 }
 0xabe   : > { %v11210_v36 = vsub.f32 %v12599_v46, %v3497_v0  ;;  %v3631_v17 = vsel %vm2140_vm9, %v3553_v14, 0.0  ;;  %v12607_v14 = vld [vmem:[#allocation27_spill] sm:$0xff] }
 0xabf   : > { %3635 = vadd.xlane.f32.xlu0 %v3634_v29  ;;  %v3646_v29 = vsel %vm2140_vm9, %v3558_v5, 0.0 }
 0xac0   : > { %v3561_v39 = vmul.f32 %v11210_v36, %v11210_v36 }
 0xac1   : > { %3620 = vadd.xlane.f32.xlu1 %v3619_v33  ;;  %v12603_v33 = vld [vmem:[#allocation35_spill] sm:$0xff] }
 0xac2   : > { %v7977_v56 = vpop.eup %7976  ;;  %v11227_v7 = vsub.f32 %v12603_v33, %v3495_v35 }
 0xac3   : > { %3629 = vadd.xlane.f32.xlu0 %v3628_v52  ;;  %v5137_v55 = vmul.f32 %v7977_v56, %v12592_v63  ;;  %v3655_v56 = vsel %vm2140_vm9, %v3561_v39, 0.0 }
 0xac4   : > { %v3559_v22 = vmul.f32 %v11227_v7, %v11227_v7 }
 0xac5   : > { %3644 = vadd.xlane.f32.xlu1 %v3643_v12  ;;  %v5154_v28 = vpack.c.bf16 %v5137_v55, %v5136_v48 }
 0xac6   : > { %v3649_v48 = vsel %vm2140_vm9, %v3559_v22, 0.0 }
 0xac7   : > { %7238 = vmatprep.mubr.msk.bf16.mxu1 %vm1048_vm5, %v5154_v28  ;;  %3653 = vadd.xlane.f32.xlu0 %v3652_v49 }
 0xac8   : > { %7239 = vmatmul.mubr.msk.bf16.gmra.mrb[80].mxu1 %vm1048_vm5, %v5155_v44  ;;  %v12605_v44 = vld [vmem:[#allocation56_spill] sm:$0xff] }
 0xac9   : > { %3614 = vadd.xlane.f32.xlu1 %v3613_v20 }
 0xacb   : > { %3623 = vadd.xlane.f32.xlu0 %v3622_v42 }
 0xacd   : > { %3638 = vadd.xlane.f32.xlu1 %v3637_v40 }
 0xacf   : > { %3647 = vadd.xlane.f32.xlu0 %v3646_v29 }
 0xad1   : > { %3632 = vadd.xlane.f32.xlu1 %v3631_v17  ;;  %v12608_v17 = vld [vmem:[#allocation68_spill] sm:$0xff] }
 0xad4   : > { %v3594_v52 = vpop.xlane.xlu0 %3593 }
 0xad5   : > { %3656 = vadd.xlane.f32.xlu1 %v3655_v56  ;;  %v3668_v24 = vmul.f32 0.25, %v3594_v52  ;;  %v12609_v52 = vld [vmem:[#allocation24_spill] sm:$0xff] }
 0xad7   : > { %v3700_v12 = vadd.f32 1e-05, %v3668_v24  ;;  %v12610_v24 = vld [vmem:[#allocation106_spill] sm:$0xff] }
 0xad8   : > { %v11232_v23 = vpop.xlane.xlu0 %3569 }
 0xad9   : > { %3626 = vadd.xlane.f32.xlu1 %v3625_v57  ;;  %7978 = vrsqrt.f32 %v3700_v12 }
 0xadc   : > { %v3588_v43 = vpop.xlane.xlu0 %3587 }
 0xadd   : > { %v3666_v63 = vmul.f32 0.25, %v3588_v43  ;;  %3650 = vadd.xlane.f32.xlu1 %v3649_v48 }
 0xadf   : > { %v3698_v55 = vadd.f32 1e-05, %v3666_v63 }
 0xae0   : > { %v11240_v15 = vpop.xlane.xlu0 %3563 }
 0xae1   : > { %7980 = vrsqrt.f32 %v3698_v55 }
 0xae3   : > { %v7979_v13 = vpop.eup %7978 }
 0xae4   : > { %v3606_v28 = vpop.xlane.xlu0 %3605  ;;  %v3764_v32 = vmul.f32 %v7979_v13, %v12605_v44 }
 0xae5   : > { %v3672_v0 = vmul.f32 0.25, %v3606_v28 }
 0xae6   : > { %v3597_v27 = vpop.xlane.xlu1 %3596 }
 0xae7   : > { %v3669_v8 = vmul.f32 0.25, %v3597_v27  ;;  %v3704_v42 = vadd.f32 1e-05, %v3672_v0 }
 0xae9   : > { %v3701_v1 = vadd.f32 1e-05, %v3669_v8 }
 0xaea   : > { %v11242_v34 = vpop.xlane.xlu1 %3572 }
 0xaeb   : > { %v7981_v49 = vpop.eup %7980  ;;  %7982 = vrsqrt.f32 %v3701_v1 }
 0xaec   : > { %v3762_v6 = vmul.f32 %v7981_v49, %v12606_v4 }
 0xaee   : > { %v3591_v20 = vpop.xlane.xlu1 %3590  ;;  %5956 = vrot.lane.b32.xlu1 %v3764_v32, %s8149_s26  ;;  %5952 = vrot.lane.b32.xlu0 %v3762_v6, %s8149_s26 }
 0xaef   : > { %v3667_v2 = vmul.f32 0.25, %v3591_v20 }
 0xaf1   : > { %v3699_v5 = vadd.f32 1e-05, %v3667_v2 }
 0xaf2   : > { %v11248_v46 = vpop.xlane.xlu1 %3566 }
 0xaf3   : > { %7984 = vrsqrt.f32 %v3699_v5 }
 0xaf4   : > { %7986 = vrsqrt.f32 %v3704_v42 }
 0xaf5   : > { %v7983_v3 = vpop.eup %7982 }
 0xaf6   : > { %v3609_v40 = vpop.xlane.xlu1 %3608  ;;  %v3765_v29 = vmul.f32 %v7983_v3, %v12607_v14 }
 0xaf7   : > { %v3673_v59 = vmul.f32 0.25, %v3609_v40 }
 0xaf8   : > { %5958 = vrot.lane.b32.xlu0 %v3765_v29, %s8149_s26 }
 0xaf9   : > { %v3705_v10 = vadd.f32 1e-05, %v3673_v59 }
 0xafb   : > { %7988 = vrsqrt.f32 %v3705_v10 }
 0xafd   : > { %v7985_v35 = vpop.eup %7984 }
 0xafe   : > { %v3763_v39 = vmul.f32 %v7985_v35, %v12608_v17  ;;  %v7987_v33 = vpop.eup %7986 }
 0xaff   : > { %v3768_v56 = vmul.f32 %v7987_v33, %v12609_v52 }
 0xb00   : > { %5954 = vrot.lane.b32.xlu1 %v3763_v39, %s8149_s26 }
 0xb04   : > { %5964 = vrot.lane.b32.xlu1 %v3768_v56, %s8149_s26 }
 0xb05   : > { %v7989_v16 = vpop.eup %7988 }
 0xb06   : > { %v3769_v57 = vmul.f32 %v7989_v16, %v12610_v24 }
 0xb08   : > { %5966 = vrot.lane.b32.xlu0 %v3769_v57, %s8149_s26 }
 0xb34   : > { %v11258_v22 = vpop.xlane.xlu0 %3581 }
 0xb38   : > { %v3600_v12 = vpop.xlane.xlu0 %3599 }
 0xb39   : > { %v3670_v43 = vmul.f32 0.25, %v3600_v12 }
 0xb3b   : > { %v3702_v48 = vadd.f32 1e-05, %v3670_v43 }
 0xb3c   : > { %v11260_v63 = vpop.xlane.xlu0 %3575 }
 0xb3d   : > { %7990 = vrsqrt.f32 %v3702_v48 }
 0xb40   : > { %v3618_v55 = vpop.xlane.xlu0 %3617 }
 0xb41   : > { %v3676_v27 = vmul.f32 0.25, %v3618_v55 }
 0xb42   : > { %v11262_v8 = vpop.xlane.xlu1 %3584 }
 0xb43   : > { %v3708_v13 = vadd.f32 1e-05, %v3676_v27 }
 0xb44   : > { %v3642_v1 = vpop.xlane.xlu0 %3641 }
 0xb45   : > { %7992 = vrsqrt.f32 %v3708_v13  ;;  %v3684_v28 = vmul.f32 0.25, %v3642_v1 }
 0xb46   : > { %v3603_v49 = vpop.xlane.xlu1 %3602 }
 0xb47   : > { %v7991_v44 = vpop.eup %7990  ;;  %v3716_v32 = vadd.f32 1e-05, %v3684_v28  ;;  %v3671_v4 = vmul.f32 0.25, %v3603_v49 }
 0xb48   : > { %v3612_v6 = vpop.xlane.xlu0 %3611  ;;  %v3766_v0 = vmul.f32 %v7991_v44, %v11064_v54 }
 0xb49   : > { %7994 = vrsqrt.f32 %v3716_v32  ;;  %v3703_v20 = vadd.f32 1e-05, %v3671_v4  ;;  %v3674_v2 = vmul.f32 0.25, %v3612_v6 }
 0xb4a   : > { %v11265_v42 = vpop.xlane.xlu1 %3578  ;;  %5960 = vrot.lane.b32.xlu1 %v3766_v0, %s8149_s26 }
 0xb4b   : > { %7996 = vrsqrt.f32 %v3703_v20  ;;  %v3706_v5 = vadd.f32 1e-05, %v3674_v2 }
 0xb4c   : > { %v3636_v3 = vpop.xlane.xlu0 %3635 }
 0xb4d   : > { %7998 = vrsqrt.f32 %v3706_v5  ;;  %v3682_v40 = vmul.f32 0.25, %v3636_v3 }
 0xb4e   : > { %v3621_v14 = vpop.xlane.xlu1 %3620 }
 0xb4f   : > { %v7993_v29 = vpop.eup %7992  ;;  %v3714_v59 = vadd.f32 1e-05, %v3682_v40  ;;  %v3677_v10 = vmul.f32 0.25, %v3621_v14 }
 0xb50   : > { %v3630_v35 = vpop.xlane.xlu0 %3629  ;;  %v3772_v17 = vmul.f32 %v7993_v29, %v11086_v9 }
 0xb51   : > { %8000 = vrsqrt.f32 %v3714_v59  ;;  %v3709_v54 = vadd.f32 1e-05, %v3677_v10  ;;  %v3680_v39 = vmul.f32 0.25, %v3630_v35 }
 0xb52   : > { %v3645_v33 = vpop.xlane.xlu1 %3644  ;;  %5988 = vrot.lane.b32.xlu1 %v3772_v17, %s8150_s27 }
 0xb53   : > { %v7995_v52 = vpop.eup %7994  ;;  %8002 = vrsqrt.f32 %v3709_v54  ;;  %v3712_v56 = vadd.f32 1e-05, %v3680_v39  ;;  %v3685_v16 = vmul.f32 0.25, %v3645_v33 }
 0xb54   : > { %v3654_v24 = vpop.xlane.xlu0 %3653  ;;  %v3780_v57 = vmul.f32 %v7995_v52, %v11101_v58 }
 0xb55   : > { %v7997_v12 = vpop.eup %7996  ;;  %8004 = vrsqrt.f32 %v3712_v56  ;;  %v3717_v43 = vadd.f32 1e-05, %v3685_v16  ;;  %v3688_v48 = vmul.f32 0.25, %v3654_v24 }
 0xb56   : > { %v3615_v55 = vpop.xlane.xlu1 %3614  ;;  %6020 = vrot.lane.b32.xlu1 %v3780_v57, %s8151_s28  ;;  %v3767_v9 = vmul.f32 %v7997_v12, %v11106_v30 }
 0xb57   : > { %v7999_v27 = vpop.eup %7998  ;;  %8006 = vrsqrt.f32 %v3717_v43  ;;  %v3720_v13 = vadd.f32 1e-05, %v3688_v48  ;;  %v3675_v1 = vmul.f32 0.25, %v3615_v55  ;;  %v11273_v28 = vpop.f32.mrb[68].mxu0 }
 0xb58   : > { %v11275_v49 = vpop.f32.mrb[69].mxu0  ;;  %5962 = vrot.lane.b32.xlu0 %v3767_v9, %s8149_s26  ;;  %v3624_v58 = vpop.xlane.xlu0 %3623  ;;  %v3770_v44 = vmul.f32 %v7999_v27, %v11113_v21 }
 0xb59   : > { %8008 = vrsqrt.f32 %v3720_v13  ;;  %v3707_v32 = vadd.f32 1e-05, %v3675_v1  ;;  %v3678_v4 = vmul.f32 0.25, %v3624_v58  ;;  %v11279_v6 = vpop.f32.mrb[70].mxu0 }
 0xb5a   : > { %v3639_v0 = vpop.xlane.xlu1 %3638  ;;  %v11281_v30 = vpop.f32.mrb[71].mxu0  ;;  %5984 = vrot.lane.b32.xlu1 %v3770_v44, %s8150_s27 }
 0xb5b   : > { %v8001_v20 = vpop.eup %8000  ;;  %8010 = vrsqrt.f32 %v3707_v32  ;;  %v3710_v2 = vadd.f32 1e-05, %v3678_v4  ;;  %v3683_v5 = vmul.f32 0.25, %v3639_v0  ;;  %v11284_v3 = vpop.f32.mrb[68].mxu1 }
 0xb5c   : > { %v11286_v40 = vpop.f32.mrb[69].mxu1  ;;  %v3648_v14 = vpop.xlane.xlu0 %3647  ;;  %v3778_v21 = vmul.f32 %v8001_v20, %v11133_v37 }
 0xb5d   : > { %v8003_v29 = vpop.eup %8002  ;;  %8012 = vrsqrt.f32 %v3710_v2  ;;  %v3715_v59 = vadd.f32 1e-05, %v3683_v5  ;;  %v3686_v10 = vmul.f32 0.25, %v3648_v14  ;;  %v11289_v35 = vpop.f32.mrb[70].mxu1 }
 0xb5e   : > { %v3633_v17 = vpop.xlane.xlu1 %3632  ;;  %v11291_v54 = vpop.f32.mrb[71].mxu1  ;;  %6016 = vrot.lane.b32.xlu1 %v3778_v21, %s8151_s28  ;;  %v3773_v39 = vmul.f32 %v8003_v29, %v11140_v41 }
 0xb5f   : > { %v8005_v33 = vpop.eup %8004  ;;  %8014 = vrsqrt.f32 %v3715_v59  ;;  %v3718_v52 = vadd.f32 1e-05, %v3686_v10  ;;  %v3681_v56 = vmul.f32 0.25, %v3633_v17 }
 0xb60   : > { %5990 = vrot.lane.b32.xlu0 %v3773_v39, %s8150_s27  ;;  %v3776_v37 = vmul.f32 %v8005_v33, %v11146_v51 }
 0xb61   : > { %v8007_v16 = vpop.eup %8006  ;;  %8016 = vrsqrt.f32 %v3718_v52  ;;  %v3713_v24 = vadd.f32 1e-05, %v3681_v56 }
 0xb62   : > { %v3657_v57 = vpop.xlane.xlu1 %3656  ;;  %5996 = vrot.lane.b32.xlu1 %v3776_v37, %s8150_s27  ;;  %v3781_v12 = vmul.f32 %v8007_v16, %v11153_v61 }
 0xb63   : > { %v8009_v43 = vpop.eup %8008  ;;  %8018 = vrsqrt.f32 %v3713_v24  ;;  %v3689_v48 = vmul.f32 0.25, %v3657_v57 }
 0xb64   : > { %6022 = vrot.lane.b32.xlu0 %v3781_v12, %s8151_s28  ;;  %v3784_v41 = vmul.f32 %v8009_v43, %v11162_v45 }
 0xb65   : > { %v8011_v55 = vpop.eup %8010  ;;  %v3721_v9 = vadd.f32 1e-05, %v3689_v48 }
 0xb66   : > { %v3627_v27 = vpop.xlane.xlu1 %3626  ;;  %6028 = vrot.lane.b32.xlu1 %v3784_v41, %s8151_s28  ;;  %v3771_v51 = vmul.f32 %v8011_v55, %v11169_v60 }
 0xb67   : > { %v8013_v13 = vpop.eup %8012  ;;  %8020 = vrsqrt.f32 %v3721_v9  ;;  %v3679_v1 = vmul.f32 0.25, %v3627_v27  ;;  %v11303_v58 = vpop.f32.mrb[72].mxu0  ;;  %v5561_v27 = vsel %vm2140_vm9, %v11289_v35, 0.0 }
 0xb68   : > { %v11305_v61 = vpop.f32.mrb[73].mxu0  ;;  %5986 = vrot.lane.b32.xlu0 %v3771_v51, %s8150_s27  ;;  %v3774_v44 = vmul.f32 %v8013_v13, %v11175_v18  ;;  %v5531_v51 = vsel %vm2140_vm9, %v11281_v30, 0.0  ;;  %v5534_v13 = vsel %vm2140_vm9, %v11273_v28, 0.0 }
 0xb69   : > { %v8015_v32 = vpop.eup %8014  ;;  %v3711_v45 = vadd.f32 1e-05, %v3679_v1  ;;  %v11309_v4 = vpop.f32.mrb[74].mxu0 }
 0xb6a   : > { %v3651_v0 = vpop.xlane.xlu1 %3650  ;;  %v11311_v20 = vpop.f32.mrb[75].mxu0  ;;  %5992 = vrot.lane.b32.xlu1 %v3774_v44, %s8150_s27  ;;  %v3779_v60 = vmul.f32 %v8015_v32, %v11185_v38 }
 0xb6b   : > { %v8017_v2 = vpop.eup %8016  ;;  %8022 = vrsqrt.f32 %v3711_v45  ;;  %v3687_v5 = vmul.f32 0.25, %v3651_v0  ;;  %v11315_v14 = vpop.f32.mrb[72].mxu1  ;;  %v5555_v45 = vsel %vm2140_vm9, %v11291_v54, 0.0 }
 0xb6c   : > { %v11317_v21 = vpop.f32.mrb[73].mxu1  ;;  %6018 = vrot.lane.b32.xlu0 %v3779_v60, %s8151_s28  ;;  %v3782_v18 = vmul.f32 %v8017_v2, %v11192_v53  ;;  %v5558_v60 = vsel %vm2140_vm9, %v11284_v3, 0.0  ;;  %v5549_v2 = vsel %vm2140_vm9, %v11309_v4, 0.0 }
 0xb6d   : > { %v8019_v29 = vpop.eup %8018  ;;  %v3719_v59 = vadd.f32 1e-05, %v3687_v5  ;;  %v11321_v10 = vpop.f32.mrb[74].mxu1  ;;  %v5528_v5 = vsel %vm2140_vm9, %v11275_v49, 0.0 }
 0xb6e   : > { %v11323_v17 = vpop.f32.mrb[75].mxu1  ;;  %6024 = vrot.lane.b32.xlu1 %v3782_v18, %s8151_s28  ;;  %v3777_v38 = vmul.f32 %v8019_v29, %v11199_v11  ;;  %v5573_v18 = vsel %vm2140_vm9, %v11321_v10, 0.0  ;;  %v5552_v29 = vsel %vm2140_vm9, %v11286_v40, 0.0 }
 0xb6f   : > { %8024 = vrsqrt.f32 %v3719_v59  ;;  %v5543_v59 = vsel %vm2140_vm9, %v11311_v20, 0.0 }
 0xb70   : > { %5998 = vrot.lane.b32.xlu0 %v3777_v38, %s8150_s27  ;;  %v5546_v38 = vsel %vm2140_vm9, %v11303_v58, 0.0 }
 0xb71   : > { %v8021_v39 = vpop.eup %8020 }
 0xb72   : > { %v3785_v33 = vmul.f32 %v8021_v39, %v11210_v36  ;;  %v5567_v39 = vsel %vm2140_vm9, %v11323_v17, 0.0 }
 0xb74   : > { %6030 = vrot.lane.b32.xlu0 %v3785_v33, %s8151_s28  ;;  %v5570_v33 = vsel %vm2140_vm9, %v11315_v14, 0.0 }
 0xb75   : > { %v8023_v52 = vpop.eup %8022 }
 0xb76   : > { %v3775_v53 = vmul.f32 %v8023_v52, %v11218_v26 }
 0xb77   : > { %v11331_v56 = vpop.f32.mrb[76].mxu0 }
 0xb78   : > { %v11333_v37 = vpop.f32.mrb[77].mxu0  ;;  %5994 = vrot.lane.b32.xlu0 %v3775_v53, %s8150_s27  ;;  %v5540_v53 = vsel %vm2140_vm9, %v11305_v61, 0.0 }
 0xb79   : > { %v8025_v16 = vpop.eup %8024  ;;  %v11336_v24 = vpop.f32.mrb[78].mxu0 }
 0xb7a   : > { %v11338_v11 = vpop.f32.mrb[79].mxu0  ;;  %v3783_v57 = vmul.f32 %v8025_v16, %v11227_v7  ;;  %v5537_v7 = vsel %vm2140_vm9, %v11279_v6, 0.0  ;;  %v5585_v52 = vsel %vm2140_vm9, %v11336_v24, 0.0 }
 0xb7b   : > { %v11341_v12 = vpop.f32.mrb[76].mxu1 }
 0xb7c   : > { %v11343_v36 = vpop.f32.mrb[77].mxu1  ;;  %6026 = vrot.lane.b32.xlu0 %v3783_v57, %s8151_s28  ;;  %v5564_v57 = vsel %vm2140_vm9, %v11317_v21, 0.0 }
 0xb7d   : > { %v11346_v26 = vpop.f32.mrb[78].mxu1 }
 0xb7e   : > { %v11348_v43 = vpop.f32.mrb[79].mxu1  ;;  %v5609_v16 = vsel %vm2140_vm9, %v11346_v26, 0.0 }
 0xb8a   : > { %v11350_v48 = vpop.f32.mrb[80].mxu0 }
 0xb8b   : > { %v11352_v41 = vpop.f32.mrb[81].mxu0 }
 0xb8c   : > { %v11354_v55 = vpop.f32.mrb[82].mxu0 }
 0xb8d   : > { %v11356_v9 = vpop.f32.mrb[83].mxu0 }
 0xb92   : > { %5538 = vadd.xlane.f32.xlu1 %v5537_v7  ;;  %v12611_v7 = vld [vmem:[#allocation8_spill] sm:$0xff] }
 0xb96   : > { %5562 = vadd.xlane.f32.xlu1 %v5561_v27  ;;  %v6275_v27 = vsub.f32 0.0, %v12611_v7 }
 0xb9a   : > { %5532 = vadd.xlane.f32.xlu1 %v5531_v51  ;;  %v5579_v51 = vsel %vm2140_vm9, %v11338_v11, 0.0 }
 0xb9b   : > { %v11366_v1 = vpop.f32.mrb[80].mxu1  ;;  %5535 = vadd.xlane.f32.xlu0 %v5534_v13  ;;  %v5582_v13 = vsel %vm2140_vm9, %v11331_v56, 0.0 }
 0xb9c   : > { %v11368_v44 = vpop.f32.mrb[81].mxu1 }
 0xb9d   : > { %v11370_v32 = vpop.f32.mrb[82].mxu1 }
 0xb9e   : > { %v11374_v0 = vpop.f32.mrb[83].mxu1  ;;  %5556 = vadd.xlane.f32.xlu1 %v5555_v45  ;;  %v6285_v45 = vmul.f32 1.442695, %v6275_v27 }
 0xb9f   : > { %5559 = vadd.xlane.f32.xlu0 %v5558_v60  ;;  %v5603_v60 = vsel %vm2140_vm9, %v11348_v43, 0.0  ;;  %v5615_v27 = vsel %vm2140_vm9, %v11374_v0, 0.0 }
 0xba0   : > { %8026 = vpow2.f32 %v6285_v45  ;;  %v5612_v45 = vsel %vm2140_vm9, %v11368_v44, 0.0 }
 0xba2   : > { %5550 = vadd.xlane.f32.xlu1 %v5549_v2  ;;  %v5606_v2 = vsel %vm2140_vm9, %v11341_v12, 0.0 }
 0xba3   : > { %5529 = vadd.xlane.f32.xlu0 %v5528_v5  ;;  %v5597_v5 = vsel %vm2140_vm9, %v11354_v55, 0.0 }
 0xba6   : > { %5574 = vadd.xlane.f32.xlu1 %v5573_v18  ;;  %v5576_v18 = vsel %vm2140_vm9, %v11333_v37, 0.0 }
 0xba7   : > { %5553 = vadd.xlane.f32.xlu0 %v5552_v29  ;;  %v5621_v29 = vsel %vm2140_vm9, %v11370_v32, 0.0 }
 0xbaa   : > { %5544 = vadd.xlane.f32.xlu1 %v5543_v59  ;;  %v12612_v59 = vld [vmem:[#allocation10_spill] sm:$0xff] }
 0xbab   : > { %5547 = vadd.xlane.f32.xlu0 %v5546_v38  ;;  %v6276_v38 = vsub.f32 0.0, %v12612_v59 }
 0xbae   : > { %5568 = vadd.xlane.f32.xlu1 %v5567_v39  ;;  %v5600_v39 = vsel %vm2140_vm9, %v11343_v36, 0.0 }
 0xbaf   : > { %5571 = vadd.xlane.f32.xlu0 %v5570_v33  ;;  %v8027_v33 = vpop.eup %8026 }
 0xbb2   : > { %5586 = vadd.xlane.f32.xlu1 %v5585_v52  ;;  %v5591_v52 = vsel %vm2140_vm9, %v11356_v9, 0.0 }
 0xbb3   : > { %5541 = vadd.xlane.f32.xlu0 %v5540_v53  ;;  %v6287_v53 = vmul.f32 1.442695, %v6276_v38 }
 0xbb5   : > { %8028 = vpow2.f32 %v6287_v53 }
 0xbb6   : > { %5610 = vadd.xlane.f32.xlu1 %v5609_v16  ;;  %v5594_v16 = vsel %vm2140_vm9, %v11350_v48, 0.0 }
 0xbb7   : > { %5565 = vadd.xlane.f32.xlu0 %v5564_v57  ;;  %v6299_v57 = vadd.f32 1.0, %v8027_v33 }
 0xbb9   : > { %8030 = vrcp.f32 %v6299_v57 }
 0xbba   : > { %5580 = vadd.xlane.f32.xlu1 %v5579_v51  ;;  %v5618_v51 = vsel %vm2140_vm9, %v11366_v1, 0.0 }
 0xbbb   : > { %5583 = vadd.xlane.f32.xlu0 %v5582_v13  ;;  %v5588_v13 = vsel %vm2140_vm9, %v11352_v41, 0.0 }
 0xbbe   : > { %5604 = vadd.xlane.f32.xlu1 %v5603_v60 }
 0xbbf   : > { %5607 = vadd.xlane.f32.xlu0 %v5606_v2  ;;  %v8029_v60 = vpop.eup %8028 }
 0xbc2   : > { %5598 = vadd.xlane.f32.xlu1 %v5597_v5  ;;  %v6300_v5 = vadd.f32 1.0, %v8029_v60 }
 0xbc3   : > { %5577 = vadd.xlane.f32.xlu0 %v5576_v18  ;;  %v8031_v2 = vpop.eup %8030  ;;  %v11432_v18 = vpop.permute.xlu1 %5956 }
 0xbc4   : > { %8032 = vrcp.f32 %v6300_v5 }
 0xbc6   : > { %5622 = vadd.xlane.f32.xlu1 %v5621_v29  ;;  %v6315_v29 = vmul.f32 %v8031_v2, %v12611_v7 }
 0xbc7   : > { %5601 = vadd.xlane.f32.xlu0 %v5600_v39  ;;  %v11436_v38 = vpop.permute.xlu1 %5954 }
 0xbca   : > { %5592 = vadd.xlane.f32.xlu1 %v5591_v52  ;;  %v11440_v52 = vpop.permute.xlu0 %5952 }
 0xbcb   : > { %5595 = vadd.xlane.f32.xlu0 %v5594_v16  ;;  %v11438_v33 = vpop.permute.xlu1 %5964  ;;  %12614 = vst [vmem:[#allocation7_spill] sm:$0xff] %v11440_v52 }
 0xbcc   : > { %12613 = vst [vmem:[#allocation38_spill] sm:$0xff] %v11438_v33 }
 0xbce   : > { %5616 = vadd.xlane.f32.xlu1 %v5615_v27  ;;  %v8033_v39 = vpop.eup %8032  ;;  %v11446_v57 = vpop.permute.xlu0 %5958 }
 0xbcf   : > { %5619 = vadd.xlane.f32.xlu0 %v5618_v51  ;;  %v6316_v53 = vmul.f32 %v8033_v39, %v12612_v59  ;;  %v11443_v16 = vpop.permute.xlu1 %5960 }
 0xbd0   : > { %12615 = vst [vmem:[#allocation93_spill] sm:$0xff] %v11443_v16 }
 0xbd2   : > { %v11450_v7 = vpop.permute.xlu0 %5966 }
 0xbd3   : > { %5589 = vadd.xlane.f32.xlu0 %v5588_v13  ;;  %v11448_v27 = vpop.permute.xlu1 %5988  ;;  %12616 = vst [vmem:[#allocation40_spill] sm:$0xff] %v11450_v7 }
 0xbd6   : > { %v11452_v51 = vpop.permute.xlu0 %5962 }
 0xbd7   : > { %5613 = vadd.xlane.f32.xlu0 %v5612_v45  ;;  %12617 = vst [vmem:[#allocation66_spill] sm:$0xff] %v11452_v51  ;;  %v11454_v13 = vpop.permute.xlu1 %6020 }
 0xbd8   : > { %12618 = vst [vmem:[#allocation90_spill] sm:$0xff] %v11454_v13 }
 0xbda   : > { %v11456_v45 = vpop.permute.xlu0 %5990 }
 0xbdb   : > { %v11458_v60 = vpop.permute.xlu1 %5984 }
 0xbdc   : > { %12619 = vst [vmem:[#allocation57_spill] sm:$0xff] %v11458_v60 }
 0xbde   : > { %v11460_v2 = vpop.permute.xlu0 %6022 }
 0xbdf   : > { %6333 = vrot.lane.b32.xlu1 %v6315_v29, %s8143_s17  ;;  %v11462_v59 = vpop.permute.xlu1 %6016 }
 0xbe0   : > { %12620 = vst [vmem:[#allocation37_spill] sm:$0xff] %v11462_v59 }
 0xbe2   : > { %v11464_v5 = vpop.permute.xlu0 %5986 }
 0xbe3   : > { %12621 = vst [vmem:[#allocation59_spill] sm:$0xff] %v11464_v5  ;;  %v11466_v29 = vpop.permute.xlu1 %5996 }
 0xbe4   : > { %12622 = vst [vmem:[#allocation65_spill] sm:$0xff] %v11466_v29 }
 0xbe6   : > { %v11468_v39 = vpop.permute.xlu0 %6018 }
 0xbe7   : > { %12623 = vst [vmem:[#allocation94_spill] sm:$0xff] %v11468_v39 }
 0xbea   : > { %v11472_v16 = vpop.permute.xlu0 %5998 }
 0xbeb   : > { %12625 = vst [vmem:[#allocation60_spill] sm:$0xff] %v11472_v16 }
 0xbed   : > { %6335 = vrot.lane.b32.xlu0 %v6316_v53, %s8143_s17  ;;  %v11470_v53 = vpop.permute.xlu1 %6028 }
 0xbee   : > { %12624 = vst [vmem:[#allocation104_spill] sm:$0xff] %v11470_v53  ;;  %v11476_v19 = vpop.permute.xlu0 %6030 }
 0xbef   : > { %12627 = vst [vmem:[#allocation80_spill] sm:$0xff] %v11476_v19 }
 0xbf1   : > { %v11474_v25 = vpop.permute.xlu1 %5992 }
 0xbf2   : > { %12626 = vst [vmem:[#allocation98_spill] sm:$0xff] %v11474_v25  ;;  %v11480_v7 = vpop.permute.xlu0 %5994 }
 0xbf3   : > { %12629 = vst [vmem:[#allocation55_spill] sm:$0xff] %v11480_v7 }
 0xbf5   : > { %v11478_v50 = vpop.permute.xlu1 %6024 }
 0xbf6   : > { %12628 = vst [vmem:[#allocation77_spill] sm:$0xff] %v11478_v50  ;;  %v11485_v31 = vpop.permute.xlu0 %6026 }
 0xbf7   : > { %12630 = vst [vmem:[#allocation74_spill] sm:$0xff] %v11485_v31 }
 0xc1f   : > { %v5539_v33 = vpop.xlane.xlu1 %5538 }
 0xc20   : > { %v5627_v47 = vmul.f32 0.25, %v5539_v33 }
 0xc22   : > { %v11483_v51 = vsub.f32 %v11279_v6, %v5627_v47 }
 0xc23   : > { %v5563_v29 = vpop.xlane.xlu1 %5562 }
 0xc24   : > { %v5635_v62 = vmul.f32 0.25, %v5563_v29  ;;  %v5691_v16 = vmul.f32 %v11483_v51, %v11483_v51 }
 0xc26   : > { %v11490_v25 = vsub.f32 %v11289_v35, %v5635_v62  ;;  %v5729_v19 = vsel %vm2140_vm9, %v5691_v16, 0.0 }
 0xc27   : > { %5730 = vadd.xlane.f32.xlu1 %v5729_v19  ;;  %v5533_v50 = vpop.xlane.xlu1 %5532 }
 0xc28   : > { %v5625_v53 = vmul.f32 0.25, %v5533_v50  ;;  %v5536_v7 = vpop.xlane.xlu0 %5535  ;;  %v5699_v47 = vmul.f32 %v11490_v25, %v11490_v25 }
 0xc29   : > { %v5626_v6 = vmul.f32 0.25, %v5536_v7 }
 0xc2a   : > { %v11496_v33 = vsub.f32 %v11281_v30, %v5625_v53  ;;  %v5753_v29 = vsel %vm2140_vm9, %v5699_v47, 0.0 }
 0xc2b   : > { %v11500_v31 = vsub.f32 %v11273_v28, %v5626_v6  ;;  %5754 = vadd.xlane.f32.xlu1 %v5753_v29  ;;  %v5557_v62 = vpop.xlane.xlu1 %5556 }
 0xc2c   : > { %v5633_v35 = vmul.f32 0.25, %v5557_v62  ;;  %v5560_v16 = vpop.xlane.xlu0 %5559  ;;  %v5689_v50 = vmul.f32 %v11496_v33, %v11496_v33 }
 0xc2d   : > { %v5634_v19 = vmul.f32 0.25, %v5560_v16  ;;  %v5690_v59 = vmul.f32 %v11500_v31, %v11500_v31 }
 0xc2e   : > { %v11507_v7 = vsub.f32 %v11291_v54, %v5633_v35  ;;  %v5723_v30 = vsel %vm2140_vm9, %v5689_v50, 0.0 }
 0xc2f   : > { %v11511_v53 = vsub.f32 %v11284_v3, %v5634_v19  ;;  %5724 = vadd.xlane.f32.xlu1 %v5723_v30  ;;  %v5551_v28 = vpop.xlane.xlu1 %5550  ;;  %v5726_v47 = vsel %vm2140_vm9, %v5690_v59, 0.0 }
 0xc30   : > { %v5631_v6 = vmul.f32 0.25, %v5551_v28  ;;  %5727 = vadd.xlane.f32.xlu0 %v5726_v47  ;;  %v5530_v29 = vpop.xlane.xlu0 %5529  ;;  %v5697_v62 = vmul.f32 %v11507_v7, %v11507_v7 }
 0xc31   : > { %v5624_v16 = vmul.f32 0.25, %v5530_v29  ;;  %v5698_v54 = vmul.f32 %v11511_v53, %v11511_v53 }
 0xc32   : > { %v11519_v35 = vsub.f32 %v11309_v4, %v5631_v6  ;;  %v5747_v3 = vsel %vm2140_vm9, %v5697_v62, 0.0 }
 0xc33   : > { %v11523_v50 = vsub.f32 %v11275_v49, %v5624_v16  ;;  %5748 = vadd.xlane.f32.xlu1 %v5747_v3  ;;  %v5575_v59 = vpop.xlane.xlu1 %5574  ;;  %v5750_v19 = vsel %vm2140_vm9, %v5698_v54, 0.0 }
 0xc34   : > { %v5639_v30 = vmul.f32 0.25, %v5575_v59  ;;  %5751 = vadd.xlane.f32.xlu0 %v5750_v19  ;;  %v5554_v28 = vpop.xlane.xlu0 %5553  ;;  %v5695_v47 = vmul.f32 %v11519_v35, %v11519_v35 }
 0xc35   : > { %v5632_v29 = vmul.f32 0.25, %v5554_v28  ;;  %v5688_v4 = vmul.f32 %v11523_v50, %v11523_v50 }
 0xc36   : > { %v11531_v6 = vsub.f32 %v11321_v10, %v5639_v30  ;;  %v5741_v49 = vsel %vm2140_vm9, %v5695_v47, 0.0 }
 0xc37   : > { %v11535_v62 = vsub.f32 %v11286_v40, %v5632_v29  ;;  %5742 = vadd.xlane.f32.xlu1 %v5741_v49  ;;  %v5545_v16 = vpop.xlane.xlu1 %5544  ;;  %v5720_v54 = vsel %vm2140_vm9, %v5688_v4, 0.0 }
 0xc38   : > { %v5629_v3 = vmul.f32 0.25, %v5545_v16  ;;  %5721 = vadd.xlane.f32.xlu0 %v5720_v54  ;;  %v5548_v59 = vpop.xlane.xlu0 %5547  ;;  %v5703_v19 = vmul.f32 %v11531_v6, %v11531_v6 }
 0xc39   : > { %v5630_v28 = vmul.f32 0.25, %v5548_v59  ;;  %v5696_v10 = vmul.f32 %v11535_v62, %v11535_v62 }
 0xc3a   : > { %v11543_v30 = vsub.f32 %v11311_v20, %v5629_v3  ;;  %v5765_v40 = vsel %vm2140_vm9, %v5703_v19, 0.0 }
 0xc3b   : > { %v11547_v47 = vsub.f32 %v11303_v58, %v5630_v28  ;;  %5766 = vadd.xlane.f32.xlu1 %v5765_v40  ;;  %v5569_v29 = vpop.xlane.xlu1 %5568  ;;  %v5744_v4 = vsel %vm2140_vm9, %v5696_v10, 0.0 }
 0xc3c   : > { %v5637_v49 = vmul.f32 0.25, %v5569_v29  ;;  %5745 = vadd.xlane.f32.xlu0 %v5744_v4  ;;  %v5572_v16 = vpop.xlane.xlu0 %5571  ;;  %v5693_v54 = vmul.f32 %v11543_v30, %v11543_v30 }
 0xc3d   : > { %v5638_v59 = vmul.f32 0.25, %v5572_v16  ;;  %v5694_v20 = vmul.f32 %v11547_v47, %v11547_v47 }
 0xc3e   : > { %v11555_v3 = vsub.f32 %v11323_v17, %v5637_v49  ;;  %v5735_v58 = vsel %vm2140_vm9, %v5693_v54, 0.0 }
 0xc3f   : > { %v11559_v19 = vsub.f32 %v11315_v14, %v5638_v59  ;;  %5736 = vadd.xlane.f32.xlu1 %v5735_v58  ;;  %v5587_v28 = vpop.xlane.xlu1 %5586  ;;  %v5738_v10 = vsel %vm2140_vm9, %v5694_v20, 0.0 }
 0xc40   : > { %v5643_v40 = vmul.f32 0.25, %v5587_v28  ;;  %5739 = vadd.xlane.f32.xlu0 %v5738_v10  ;;  %v5542_v29 = vpop.xlane.xlu0 %5541  ;;  %v5701_v4 = vmul.f32 %v11555_v3, %v11555_v3 }
 0xc41   : > { %v5628_v16 = vmul.f32 0.25, %v5542_v29  ;;  %v5702_v17 = vmul.f32 %v11559_v19, %v11559_v19 }
 0xc42   : > { %v11567_v49 = vsub.f32 %v11336_v24, %v5643_v40  ;;  %v5759_v14 = vsel %vm2140_vm9, %v5701_v4, 0.0 }
 0xc43   : > { %v11571_v54 = vsub.f32 %v11305_v61, %v5628_v16  ;;  %5760 = vadd.xlane.f32.xlu1 %v5759_v14  ;;  %v5611_v59 = vpop.xlane.xlu1 %5610  ;;  %v5762_v20 = vsel %vm2140_vm9, %v5702_v17, 0.0 }
 0xc44   : > { %v5651_v58 = vmul.f32 0.25, %v5611_v59  ;;  %5763 = vadd.xlane.f32.xlu0 %v5762_v20  ;;  %v5566_v28 = vpop.xlane.xlu0 %5565  ;;  %v5707_v10 = vmul.f32 %v11567_v49, %v11567_v49 }
 0xc45   : > { %v5636_v29 = vmul.f32 0.25, %v5566_v28  ;;  %v5692_v24 = vmul.f32 %v11571_v54, %v11571_v54 }
 0xc46   : > { %v11579_v40 = vsub.f32 %v11346_v26, %v5651_v58  ;;  %v5777_v61 = vsel %vm2140_vm9, %v5707_v10, 0.0 }
 0xc47   : > { %v11583_v4 = vsub.f32 %v11317_v21, %v5636_v29  ;;  %5778 = vadd.xlane.f32.xlu1 %v5777_v61  ;;  %v5581_v16 = vpop.xlane.xlu1 %5580  ;;  %v5732_v17 = vsel %vm2140_vm9, %v5692_v24, 0.0 }
 0xc48   : > { %v5641_v14 = vmul.f32 0.25, %v5581_v16  ;;  %5733 = vadd.xlane.f32.xlu0 %v5732_v17  ;;  %v5584_v59 = vpop.xlane.xlu0 %5583  ;;  %v5715_v20 = vmul.f32 %v11579_v40, %v11579_v40 }
 0xc49   : > { %v5642_v28 = vmul.f32 0.25, %v5584_v59  ;;  %v5700_v26 = vmul.f32 %v11583_v4, %v11583_v4 }
 0xc4a   : > { %v11591_v58 = vsub.f32 %v11338_v11, %v5641_v14  ;;  %v5801_v21 = vsel %vm2140_vm9, %v5715_v20, 0.0 }
 0xc4b   : > { %v11595_v10 = vsub.f32 %v11331_v56, %v5642_v28  ;;  %5802 = vadd.xlane.f32.xlu1 %v5801_v21  ;;  %v5605_v29 = vpop.xlane.xlu1 %5604  ;;  %v5756_v24 = vsel %vm2140_vm9, %v5700_v26, 0.0 }
 0xc4c   : > { %v5649_v61 = vmul.f32 0.25, %v5605_v29  ;;  %5757 = vadd.xlane.f32.xlu0 %v5756_v24  ;;  %v5608_v16 = vpop.xlane.xlu0 %5607  ;;  %v5705_v17 = vmul.f32 %v11591_v58, %v11591_v58 }
 0xc4d   : > { %v5650_v59 = vmul.f32 0.25, %v5608_v16  ;;  %v5706_v11 = vmul.f32 %v11595_v10, %v11595_v10 }
 0xc4e   : > { %v11603_v14 = vsub.f32 %v11348_v43, %v5649_v61  ;;  %v5771_v56 = vsel %vm2140_vm9, %v5705_v17, 0.0 }
 0xc4f   : > { %v11607_v20 = vsub.f32 %v11341_v12, %v5650_v59  ;;  %5772 = vadd.xlane.f32.xlu1 %v5771_v56  ;;  %v5599_v28 = vpop.xlane.xlu1 %5598  ;;  %v5774_v26 = vsel %vm2140_vm9, %v5706_v11, 0.0 }
 0xc50   : > { %v5647_v21 = vmul.f32 0.25, %v5599_v28  ;;  %5775 = vadd.xlane.f32.xlu0 %v5774_v26  ;;  %v5578_v29 = vpop.xlane.xlu0 %5577  ;;  %v5713_v24 = vmul.f32 %v11603_v14, %v11603_v14 }
 0xc51   : > { %v5640_v16 = vmul.f32 0.25, %v5578_v29  ;;  %v5714_v43 = vmul.f32 %v11607_v20, %v11607_v20 }
 0xc52   : > { %v11615_v61 = vsub.f32 %v11354_v55, %v5647_v21  ;;  %v5795_v12 = vsel %vm2140_vm9, %v5713_v24, 0.0 }
 0xc53   : > { %v11619_v17 = vsub.f32 %v11333_v37, %v5640_v16  ;;  %5796 = vadd.xlane.f32.xlu1 %v5795_v12  ;;  %v5623_v59 = vpop.xlane.xlu1 %5622  ;;  %v5798_v11 = vsel %vm2140_vm9, %v5714_v43, 0.0 }
 0xc54   : > { %v5655_v56 = vmul.f32 0.25, %v5623_v59  ;;  %5799 = vadd.xlane.f32.xlu0 %v5798_v11  ;;  %v5602_v28 = vpop.xlane.xlu0 %5601  ;;  %v5711_v26 = vmul.f32 %v11615_v61, %v11615_v61 }
 0xc55   : > { %v5648_v29 = vmul.f32 0.25, %v5602_v28  ;;  %v5704_v55 = vmul.f32 %v11619_v17, %v11619_v17 }
 0xc56   : > { %v11627_v21 = vsub.f32 %v11370_v32, %v5655_v56  ;;  %v5789_v37 = vsel %vm2140_vm9, %v5711_v26, 0.0 }
 0xc57   : > { %v11631_v24 = vsub.f32 %v11343_v36, %v5648_v29  ;;  %5790 = vadd.xlane.f32.xlu1 %v5789_v37  ;;  %v5593_v16 = vpop.xlane.xlu1 %5592  ;;  %v5768_v43 = vsel %vm2140_vm9, %v5704_v55, 0.0 }
 0xc58   : > { %v5645_v12 = vmul.f32 0.25, %v5593_v16  ;;  %5769 = vadd.xlane.f32.xlu0 %v5768_v43  ;;  %v5596_v59 = vpop.xlane.xlu0 %5595  ;;  %v5719_v11 = vmul.f32 %v11627_v21, %v11627_v21 }
 0xc59   : > { %v5646_v28 = vmul.f32 0.25, %v5596_v59  ;;  %v5712_v32 = vmul.f32 %v11631_v24, %v11631_v24 }
 0xc5a   : > { %v11639_v56 = vsub.f32 %v11356_v9, %v5645_v12  ;;  %v5813_v36 = vsel %vm2140_vm9, %v5719_v11, 0.0 }
 0xc5b   : > { %v11643_v26 = vsub.f32 %v11350_v48, %v5646_v28  ;;  %5814 = vadd.xlane.f32.xlu1 %v5813_v36  ;;  %v5617_v29 = vpop.xlane.xlu1 %5616  ;;  %v5792_v55 = vsel %vm2140_vm9, %v5712_v32, 0.0 }
 0xc5c   : > { %v5653_v37 = vmul.f32 0.25, %v5617_v29  ;;  %5793 = vadd.xlane.f32.xlu0 %v5792_v55  ;;  %v5620_v16 = vpop.xlane.xlu0 %5619  ;;  %v5709_v43 = vmul.f32 %v11639_v56, %v11639_v56 }
 0xc5d   : > { %v5654_v59 = vmul.f32 0.25, %v5620_v16  ;;  %v5710_v9 = vmul.f32 %v11643_v26, %v11643_v26 }
 0xc5e   : > { %v11651_v12 = vsub.f32 %v11374_v0, %v5653_v37  ;;  %v5783_v48 = vsel %vm2140_vm9, %v5709_v43, 0.0 }
 0xc5f   : > { %v11655_v11 = vsub.f32 %v11366_v1, %v5654_v59  ;;  %5784 = vadd.xlane.f32.xlu1 %v5783_v48  ;;  %v5786_v28 = vsel %vm2140_vm9, %v5710_v9, 0.0 }
 0xc60   : > { %5787 = vadd.xlane.f32.xlu0 %v5786_v28  ;;  %v5590_v32 = vpop.xlane.xlu0 %5589  ;;  %v5717_v36 = vmul.f32 %v11651_v12, %v11651_v12 }
 0xc61   : > { %v5644_v29 = vmul.f32 0.25, %v5590_v32  ;;  %v5718_v55 = vmul.f32 %v11655_v11, %v11655_v11  ;;  %v11676_v32 = vpop.permute.xlu1 %6333 }
 0xc62   : > { %v5807_v0 = vsel %vm2140_vm9, %v5717_v36, 0.0  ;;  %12631 = vst [vmem:[#allocation34_spill] sm:$0xff] %v11676_v32 }
 0xc63   : > { %v11664_v37 = vsub.f32 %v11352_v41, %v5644_v29  ;;  %5808 = vadd.xlane.f32.xlu1 %v5807_v0  ;;  %v5810_v1 = vsel %vm2140_vm9, %v5718_v55, 0.0 }
 0xc64   : > { %5811 = vadd.xlane.f32.xlu0 %v5810_v1  ;;  %v5614_v16 = vpop.xlane.xlu0 %5613 }
 0xc65   : > { %v5652_v43 = vmul.f32 0.25, %v5614_v16  ;;  %v5708_v59 = vmul.f32 %v11664_v37, %v11664_v37 }
 0xc67   : > { %v11670_v9 = vsub.f32 %v11368_v44, %v5652_v43  ;;  %v5780_v48 = vsel %vm2140_vm9, %v5708_v59, 0.0 }
 0xc68   : > { %5781 = vadd.xlane.f32.xlu0 %v5780_v48  ;;  %v11678_v1 = vpop.permute.xlu0 %6335 }
 0xc69   : > { %v5716_v28 = vmul.f32 %v11670_v9, %v11670_v9  ;;  %12632 = vst [vmem:[#allocation79_spill] sm:$0xff] %v11678_v1 }
 0xc6b   : > { %v5804_v41 = vsel %vm2140_vm9, %v5716_v28, 0.0 }
 0xc6c   : > { %5805 = vadd.xlane.f32.xlu0 %v5804_v41 }
 0xcb4   : > { %v5731_v36 = vpop.xlane.xlu1 %5730 }
 0xcb5   : > { %v5819_v29 = vmul.f32 0.25, %v5731_v36 }
 0xcb7   : > { %v5851_v55 = vadd.f32 1e-05, %v5819_v29 }
 0xcb8   : > { %v5755_v0 = vpop.xlane.xlu1 %5754 }
 0xcb9   : > { %8034 = vrsqrt.f32 %v5851_v55  ;;  %v5827_v44 = vmul.f32 0.25, %v5755_v0 }
 0xcbb   : > { %v5859_v16 = vadd.f32 1e-05, %v5827_v44 }
 0xcbc   : > { %v5725_v43 = vpop.xlane.xlu1 %5724 }
 0xcbd   : > { %8036 = vrsqrt.f32 %v5859_v16  ;;  %v5817_v59 = vmul.f32 0.25, %v5725_v43  ;;  %v5728_v48 = vpop.xlane.xlu0 %5727 }
 0xcbe   : > { %v5818_v60 = vmul.f32 0.25, %v5728_v48 }
 0xcbf   : > { %v5849_v52 = vadd.f32 1e-05, %v5817_v59 }
 0xcc0   : > { %v5850_v39 = vadd.f32 1e-05, %v5818_v60  ;;  %v5749_v28 = vpop.xlane.xlu1 %5748 }
 0xcc1   : > { %8038 = vrsqrt.f32 %v5849_v52  ;;  %v5825_v41 = vmul.f32 0.25, %v5749_v28  ;;  %v5752_v32 = vpop.xlane.xlu0 %5751 }
 0xcc2   : > { %8040 = vrsqrt.f32 %v5850_v39  ;;  %v5826_v36 = vmul.f32 0.25, %v5752_v32 }
 0xcc3   : > { %v8035_v29 = vpop.eup %8034  ;;  %v5857_v13 = vadd.f32 1e-05, %v5825_v41 }
 0xcc4   : > { %v5858_v5 = vadd.f32 1e-05, %v5826_v36  ;;  %v5743_v1 = vpop.xlane.xlu1 %5742  ;;  %v5915_v55 = vmul.f32 %v8035_v29, %v11483_v51 }
 0xcc5   : > { %8042 = vrsqrt.f32 %v5857_v13  ;;  %v5823_v0 = vmul.f32 0.25, %v5743_v1  ;;  %v5722_v44 = vpop.xlane.xlu0 %5721 }
 0xcc6   : > { %8044 = vrsqrt.f32 %v5858_v5  ;;  %v5816_v16 = vmul.f32 0.25, %v5722_v44  ;;  %6054 = vrot.lane.b32.xlu0 %v5915_v55, %s8152_s29 }
 0xcc7   : > { %v8037_v60 = vpop.eup %8036  ;;  %v5855_v52 = vadd.f32 1e-05, %v5823_v0 }
 0xcc8   : > { %v5848_v43 = vadd.f32 1e-05, %v5816_v16  ;;  %v5767_v59 = vpop.xlane.xlu1 %5766  ;;  %v5923_v39 = vmul.f32 %v8037_v60, %v11490_v25 }
 0xcc9   : > { %8046 = vrsqrt.f32 %v5855_v52  ;;  %v5831_v32 = vmul.f32 0.25, %v5767_v59  ;;  %v5746_v48 = vpop.xlane.xlu0 %5745 }
 0xcca   : > { %8048 = vrsqrt.f32 %v5848_v43  ;;  %v5824_v28 = vmul.f32 0.25, %v5746_v48  ;;  %6086 = vrot.lane.b32.xlu0 %v5923_v39, %s8153_s30 }
 0xccb   : > { %v8039_v51 = vpop.eup %8038  ;;  %v5863_v13 = vadd.f32 1e-05, %v5831_v32 }
 0xccc   : > { %v8041_v5 = vpop.eup %8040  ;;  %v5856_v1 = vadd.f32 1e-05, %v5824_v28  ;;  %v5737_v41 = vpop.xlane.xlu1 %5736  ;;  %v5913_v36 = vmul.f32 %v8039_v51, %v11496_v33 }
 0xccd   : > { %8050 = vrsqrt.f32 %v5863_v13  ;;  %v5821_v29 = vmul.f32 0.25, %v5737_v41  ;;  %v5740_v55 = vpop.xlane.xlu0 %5739  ;;  %v5914_v25 = vmul.f32 %v8041_v5, %v11500_v31 }
 0xcce   : > { %8052 = vrsqrt.f32 %v5856_v1  ;;  %v5822_v0 = vmul.f32 0.25, %v5740_v55  ;;  %6050 = vrot.lane.b32.xlu0 %v5913_v36, %s8152_s29 }
 0xccf   : > { %v8043_v44 = vpop.eup %8042  ;;  %v5853_v16 = vadd.f32 1e-05, %v5821_v29  ;;  %6052 = vrot.lane.b32.xlu1 %v5914_v25, %s8152_s29 }
 0xcd0   : > { %v8045_v60 = vpop.eup %8044  ;;  %v5854_v52 = vadd.f32 1e-05, %v5822_v0  ;;  %v5761_v43 = vpop.xlane.xlu1 %5760  ;;  %v5921_v59 = vmul.f32 %v8043_v44, %v11507_v7 }
 0xcd1   : > { %8054 = vrsqrt.f32 %v5853_v16  ;;  %v5829_v33 = vmul.f32 0.25, %v5761_v43  ;;  %v5764_v39 = vpop.xlane.xlu0 %5763  ;;  %v5922_v32 = vmul.f32 %v8045_v60, %v11511_v53 }
 0xcd2   : > { %8056 = vrsqrt.f32 %v5854_v52  ;;  %v5830_v31 = vmul.f32 0.25, %v5764_v39  ;;  %6082 = vrot.lane.b32.xlu0 %v5921_v59, %s8153_s30 }
 0xcd3   : > { %v8047_v48 = vpop.eup %8046  ;;  %v5861_v28 = vadd.f32 1e-05, %v5829_v33  ;;  %6084 = vrot.lane.b32.xlu1 %v5922_v32, %s8153_s30 }
 0xcd4   : > { %v8049_v51 = vpop.eup %8048  ;;  %v5862_v13 = vadd.f32 1e-05, %v5830_v31  ;;  %v5779_v5 = vpop.xlane.xlu1 %5778  ;;  %v5919_v1 = vmul.f32 %v8047_v48, %v11519_v35  ;;  %v12633_v48 = vld [vmem:[#allocation15_spill] sm:$0xff] }
 0xcd5   : > { %8058 = vrsqrt.f32 %v5861_v28  ;;  %v5835_v7 = vmul.f32 0.25, %v5779_v5  ;;  %v5734_v41 = vpop.xlane.xlu0 %5733  ;;  %v5912_v36 = vmul.f32 %v8049_v51, %v11523_v50 }
 0xcd6   : > { %8060 = vrsqrt.f32 %v5862_v13  ;;  %v5820_v53 = vmul.f32 0.25, %v5734_v41  ;;  %6062 = vrot.lane.b32.xlu0 %v5919_v1, %s8152_s29 }
 0xcd7   : > { %v8051_v29 = vpop.eup %8050  ;;  %v5867_v55 = vadd.f32 1e-05, %v5835_v7  ;;  %6048 = vrot.lane.b32.xlu1 %v5912_v36, %s8152_s29 }
 0xcd8   : > { %v8053_v25 = vpop.eup %8052  ;;  %v5852_v0 = vadd.f32 1e-05, %v5820_v53  ;;  %v5803_v44 = vpop.xlane.xlu1 %5802  ;;  %v5927_v16 = vmul.f32 %v8051_v29, %v11531_v6  ;;  %v6278_v6 = vsub.f32 0.0, %v12633_v48  ;;  %v12634_v29 = vld [vmem:[#allocation14_spill] sm:$0xff] }
 0xcd9   : > { %8062 = vrsqrt.f32 %v5867_v55  ;;  %v5843_v35 = vmul.f32 0.25, %v5803_v44  ;;  %v5758_v60 = vpop.xlane.xlu0 %5757  ;;  %v5920_v52 = vmul.f32 %v8053_v25, %v11535_v62  ;;  %v6280_v55 = vsub.f32 0.0, %v12634_v29 }
 0xcda   : > { %8064 = vrsqrt.f32 %v5852_v0  ;;  %v5828_v50 = vmul.f32 0.25, %v5758_v60  ;;  %6094 = vrot.lane.b32.xlu0 %v5927_v16, %s8153_s30  ;;  %v6291_v53 = vmul.f32 1.442695, %v6278_v6  ;;  %v12635_v6 = vld [vmem:[#allocation13_spill] sm:$0xff] }
 0xcdb   : > { %v8055_v43 = vpop.eup %8054  ;;  %v5875_v59 = vadd.f32 1e-05, %v5843_v35  ;;  %6080 = vrot.lane.b32.xlu1 %v5920_v52, %s8153_s30 }
 0xcdc   : > { %v8057_v33 = vpop.eup %8056  ;;  %v5860_v39 = vadd.f32 1e-05, %v5828_v50  ;;  %v5773_v32 = vpop.xlane.xlu1 %5772  ;;  %v5917_v31 = vmul.f32 %v8055_v43, %v11543_v30  ;;  %v6295_v43 = vmul.f32 1.442695, %v6280_v55 }
 0xcdd   : > { %8066 = vrsqrt.f32 %v5875_v59  ;;  %v5833_v28 = vmul.f32 0.25, %v5773_v32  ;;  %v5776_v51 = vpop.xlane.xlu0 %5775  ;;  %v5918_v62 = vmul.f32 %v8057_v33, %v11547_v47 }
 0xcde   : > { %8068 = vrsqrt.f32 %v5860_v39  ;;  %v5834_v13 = vmul.f32 0.25, %v5776_v51  ;;  %6058 = vrot.lane.b32.xlu0 %v5917_v31, %s8152_s29 }
 0xcdf   : > { %v8059_v5 = vpop.eup %8058  ;;  %v5865_v1 = vadd.f32 1e-05, %v5833_v28  ;;  %6060 = vrot.lane.b32.xlu1 %v5918_v62, %s8152_s29  ;;  %v6277_v28 = vsub.f32 0.0, %v12635_v6 }
 0xce0   : > { %v8061_v7 = vpop.eup %8060  ;;  %v5866_v41 = vadd.f32 1e-05, %v5834_v13  ;;  %v5797_v36 = vpop.xlane.xlu1 %5796  ;;  %v5925_v30 = vmul.f32 %v8059_v5, %v11555_v3 }
 0xce1   : > { %8070 = vrsqrt.f32 %v5865_v1  ;;  %v5841_v25 = vmul.f32 0.25, %v5797_v36  ;;  %v5800_v0 = vpop.xlane.xlu0 %5799  ;;  %v5926_v47 = vmul.f32 %v8061_v7, %v11559_v19 }
 0xce2   : > { %8072 = vrsqrt.f32 %v5866_v41  ;;  %v5842_v44 = vmul.f32 0.25, %v5800_v0  ;;  %6090 = vrot.lane.b32.xlu0 %v5925_v30, %s8153_s30  ;;  %v6289_v30 = vmul.f32 1.442695, %v6277_v28 }
 0xce3   : > { %v8063_v16 = vpop.eup %8062  ;;  %v5873_v35 = vadd.f32 1e-05, %v5841_v25  ;;  %6092 = vrot.lane.b32.xlu1 %v5926_v47, %s8153_s30  ;;  %8074 = vpow2.f32 %v6291_v53  ;;  %v12636_v53 = vld [vmem:[#allocation12_spill] sm:$0xff] }
 0xce4   : > { %v8065_v60 = vpop.eup %8064  ;;  %v5874_v52 = vadd.f32 1e-05, %v5842_v44  ;;  %v5791_v50 = vpop.xlane.xlu1 %5790  ;;  %v5931_v3 = vmul.f32 %v8063_v16, %v11567_v49  ;;  %v6279_v55 = vsub.f32 0.0, %v12636_v53 }
 0xce5   : > { %8076 = vrsqrt.f32 %v5873_v35  ;;  %v5839_v59 = vmul.f32 0.25, %v5791_v50  ;;  %v5770_v33 = vpop.xlane.xlu0 %5769  ;;  %v5916_v19 = vmul.f32 %v8065_v60, %v11571_v54 }
 0xce6   : > { %8078 = vrsqrt.f32 %v5874_v52  ;;  %v5832_v39 = vmul.f32 0.25, %v5770_v33  ;;  %6118 = vrot.lane.b32.xlu0 %v5931_v3, %s8154_s6  ;;  %v6293_v3 = vmul.f32 1.442695, %v6279_v55 }
 0xce7   : > { %v8067_v32 = vpop.eup %8066  ;;  %v5871_v31 = vadd.f32 1e-05, %v5839_v59  ;;  %6056 = vrot.lane.b32.xlu1 %v5916_v19, %s8152_s29  ;;  %8080 = vpow2.f32 %v6295_v43 }
 0xce8   : > { %v8069_v51 = vpop.eup %8068  ;;  %v5864_v49 = vadd.f32 1e-05, %v5832_v39  ;;  %v5815_v62 = vpop.xlane.xlu1 %5814  ;;  %v5939_v13 = vmul.f32 %v8067_v32, %v11579_v40 }
 0xce9   : > { %8082 = vrsqrt.f32 %v5871_v31  ;;  %v5847_v5 = vmul.f32 0.25, %v5815_v62  ;;  %v5794_v54 = vpop.xlane.xlu0 %5793  ;;  %v5924_v1 = vmul.f32 %v8069_v51, %v11583_v4 }
 0xcea   : > { %8084 = vrsqrt.f32 %v5864_v49  ;;  %v5840_v7 = vmul.f32 0.25, %v5794_v54  ;;  %6150 = vrot.lane.b32.xlu0 %v5939_v13, %s8155_s7 }
 0xceb   : > { %v8071_v41 = vpop.eup %8070  ;;  %v5879_v36 = vadd.f32 1e-05, %v5847_v5  ;;  %6088 = vrot.lane.b32.xlu1 %v5924_v1, %s8153_s30  ;;  %v7505_v1 = vld [vmem:[%s11976_s2 + $0x18] sm:$0xff]  }
 0xcec   : > { %v8073_v25 = vpop.eup %8072  ;;  %v5872_v40 = vadd.f32 1e-05, %v5840_v7  ;;  %v5785_v0 = vpop.xlane.xlu1 %5784  ;;  %v5929_v47 = vmul.f32 %v8071_v41, %v11591_v58  ;;  %v7504_v58 = vld [vmem:[%s11976_s2 + $0x10] sm:$0xff]  }
 0xced   : > { %8086 = vrsqrt.f32 %v5879_v36  ;;  %v5837_v44 = vmul.f32 0.25, %v5785_v0  ;;  %v5788_v4 = vpop.xlane.xlu0 %5787  ;;  %v5930_v16 = vmul.f32 %v8073_v25, %v11595_v10  ;;  %v8075_v35 = vpop.eup %8074  ;;  %7242 = vmatprep.subr.bf16.mxu0 %v7504_v58 }
 0xcee   : > { %8088 = vrsqrt.f32 %v5872_v40  ;;  %v5838_v60 = vmul.f32 0.25, %v5788_v4  ;;  %6114 = vrot.lane.b32.xlu0 %v5929_v47, %s8154_s6  ;;  %7243 = vmatpush3.bf16.msra.mxu0 %v7504_v58  ;;  %v6302_v62 = vadd.f32 1.0, %v8075_v35 }
 0xcef   : > { %v8077_v52 = vpop.eup %8076  ;;  %v5869_v50 = vadd.f32 1e-05, %v5837_v44  ;;  %6116 = vrot.lane.b32.xlu1 %v5930_v16, %s8154_s6  ;;  %8090 = vpow2.f32 %v6289_v30  ;;  %7244 = vmatprep.subr.bf16.mxu0 %v7505_v1 }
 0xcf0   : > { %v8079_v43 = vpop.eup %8078  ;;  %v5870_v59 = vadd.f32 1e-05, %v5838_v60  ;;  %v5809_v33 = vpop.xlane.xlu1 %5808  ;;  %v5937_v10 = vmul.f32 %v8077_v52, %v11603_v14 }
 0xcf1   : > { %8092 = vrsqrt.f32 %v5869_v50  ;;  %v5845_v19 = vmul.f32 0.25, %v5809_v33  ;;  %v5812_v39 = vpop.xlane.xlu0 %5811  ;;  %v5938_v32 = vmul.f32 %v8079_v43, %v11607_v20  ;;  %v8081_v31 = vpop.eup %8080 }
 0xcf2   : > { %8094 = vrsqrt.f32 %v5870_v59  ;;  %v5846_v28 = vmul.f32 0.25, %v5812_v39  ;;  %6146 = vrot.lane.b32.xlu0 %v5937_v10, %s8155_s7  ;;  %v6304_v36 = vadd.f32 1.0, %v8081_v31  ;;  %7245 = vmatpush3.bf16.msra.mxu0 %v7505_v1 }
 0xcf3   : > { %v8083_v51 = vpop.eup %8082  ;;  %v5877_v49 = vadd.f32 1e-05, %v5845_v19  ;;  %6148 = vrot.lane.b32.xlu1 %v5938_v32, %s8155_s7  ;;  %8096 = vpow2.f32 %v6293_v3 }
 0xcf4   : > { %v8085_v13 = vpop.eup %8084  ;;  %v5878_v14 = vadd.f32 1e-05, %v5846_v28  ;;  %v5935_v5 = vmul.f32 %v8083_v51, %v11615_v61 }
 0xcf5   : > { %8098 = vrsqrt.f32 %v5877_v49  ;;  %v5782_v54 = vpop.xlane.xlu0 %5781  ;;  %v5928_v20 = vmul.f32 %v8085_v13, %v11619_v17 }
 0xcf6   : > { %8100 = vrsqrt.f32 %v5878_v14  ;;  %v5836_v7 = vmul.f32 0.25, %v5782_v54  ;;  %6126 = vrot.lane.b32.xlu0 %v5935_v5, %s8154_s6 }
 0xcf7   : > { %v8087_v41 = vpop.eup %8086  ;;  %6112 = vrot.lane.b32.xlu1 %v5928_v20, %s8154_s6  ;;  %8102 = vrcp.f32 %v6302_v62 }
 0xcf8   : > { %v8089_v30 = vpop.eup %8088  ;;  %v5868_v61 = vadd.f32 1e-05, %v5836_v7  ;;  %v5943_v55 = vmul.f32 %v8087_v41, %v11627_v21  ;;  %v3658_v7 = vmul.f32 0.25, %v11240_v15 }
 0xcf9   : > { %v8091_v17 = vpop.eup %8090  ;;  %v5806_v25 = vpop.xlane.xlu0 %5805  ;;  %v5936_v40 = vmul.f32 %v8089_v30, %v11631_v24 }
 0xcfa   : > { %8104 = vrsqrt.f32 %v5868_v61  ;;  %v5844_v0 = vmul.f32 0.25, %v5806_v25  ;;  %6158 = vrot.lane.b32.xlu0 %v5943_v55, %s8155_s7  ;;  %v6301_v35 = vadd.f32 1.0, %v8091_v17  ;;  %v12637_v61 = vld [vmem:[#allocation102_spill] sm:$0xff]  ;;  %v3663_v17 = vmul.f32 0.25, %v11265_v42 }
 0xcfb   : > { %v8093_v47 = vpop.eup %8092  ;;  %6144 = vrot.lane.b32.xlu1 %v5936_v40, %s8155_s7  ;;  %8106 = vrcp.f32 %v6304_v36  ;;  %v3664_v42 = vmul.f32 0.25, %v11258_v22 }
 0xcfc   : > { %v8095_v44 = vpop.eup %8094  ;;  %v5876_v4 = vadd.f32 1e-05, %v5844_v0  ;;  %v5933_v16 = vmul.f32 %v8093_v47, %v11639_v56 }
 0xcfd   : > { %v8097_v60 = vpop.eup %8096  ;;  %v5934_v21 = vmul.f32 %v8095_v44, %v11643_v26 }
 0xcfe   : > { %8108 = vrsqrt.f32 %v5876_v4  ;;  %6122 = vrot.lane.b32.xlu0 %v5933_v16, %s8154_s6  ;;  %v6303_v3 = vadd.f32 1.0, %v8097_v60  ;;  %v3665_v16 = vmul.f32 0.25, %v11262_v8 }
 0xcff   : > { %v8099_v24 = vpop.eup %8098  ;;  %6124 = vrot.lane.b32.xlu1 %v5934_v21, %s8154_s6  ;;  %8110 = vrcp.f32 %v6301_v35  ;;  %v3695_v35 = vadd.f32 1e-05, %v3663_v17 }
 0xd00   : > { %v8101_v52 = vpop.eup %8100  ;;  %v5941_v50 = vmul.f32 %v8099_v24, %v11651_v12  ;;  %8112 = vrcp.f32 %v6303_v3  ;;  %v8130_v24 = vld [vmem:[%s11978_s4] sm:$0xff]  ;;  %v12640_v3 = vld [vmem:[#allocation44_spill] sm:$0xff] }
 0xd01   : > { %v8103_v58 = vpop.eup %8102  ;;  %v5942_v43 = vmul.f32 %v8101_v52, %v11655_v11 }
 0xd02   : > { %6154 = vrot.lane.b32.xlu0 %v5941_v50, %s8155_s7  ;;  %v6318_v26 = vmul.f32 %v8103_v58, %v12633_v48 }
 0xd03   : > { %6156 = vrot.lane.b32.xlu1 %v5942_v43, %s8155_s7  ;;  %v12641_v43 = vld [vmem:[#allocation99_spill] sm:$0xff] }
 0xd04   : > { %v8105_v56 = vpop.eup %8104 }
 0xd05   : > { %v8107_v59 = vpop.eup %8106  ;;  %v5932_v33 = vmul.f32 %v8105_v56, %v11664_v37 }
 0xd06   : > { %6339 = vrot.lane.b32.xlu0 %v6318_v26, %s8143_s17  ;;  %v6320_v10 = vmul.f32 %v8107_v59, %v12634_v29  ;;  %v3696_v26 = vadd.f32 1e-05, %v3664_v42  ;;  %v3662_v59 = vmul.f32 0.25, %v11260_v63  ;;  %v12643_v63 = vld [vmem:[#allocation4_spill] sm:$0xff] }
 0xd07   : > { %6120 = vrot.lane.b32.xlu1 %v5932_v33, %s8154_s6  ;;  %v3697_v33 = vadd.f32 1e-05, %v3665_v16  ;;  %v12650_v16 = vld [vmem:[#allocation18_spill] sm:$0xff] }
 0xd08   : > { %v8109_v12 = vpop.eup %8108 }
 0xd09   : > { %v5940_v11 = vmul.f32 %v8109_v12, %v11670_v9  ;;  %v8111_v19 = vpop.eup %8110  ;;  %v3661_v9 = vmul.f32 0.25, %v11242_v34 }
 0xd0a   : > { %6343 = vrot.lane.b32.xlu0 %v6320_v10, %s8143_s17  ;;  %v6317_v48 = vmul.f32 %v8111_v19, %v12635_v6  ;;  %v8113_v39 = vpop.eup %8112  ;;  %v3660_v6 = vmul.f32 0.25, %v11232_v23 }
 0xd0b   : > { %6152 = vrot.lane.b32.xlu1 %v5940_v11, %s8155_s7  ;;  %v6319_v37 = vmul.f32 %v8113_v39, %v12636_v53  ;;  %v3693_v49 = vadd.f32 1e-05, %v3661_v9  ;;  %v3659_v53 = vmul.f32 0.25, %v11248_v46  ;;  %v3690_v46 = vadd.f32 1e-05, %v3658_v7 }
 0xd0c   : > { %v3692_v5 = vadd.f32 1e-05, %v3660_v6 }
 0xd0d   : > { %8114 = vrsqrt.f32 %v3693_v49  ;;  %v3691_v34 = vadd.f32 1e-05, %v3659_v53  ;;  %v12645_v49 = vld [vmem:[#allocation94_spill] sm:$0xff] }
 0xd0e   : > { %8116 = vrsqrt.f32 %v3692_v5 }
 0xd0f   : > { %6337 = vrot.lane.b32.xlu1 %v6317_v48, %s8143_s17  ;;  %8118 = vrsqrt.f32 %v3691_v34  ;;  %v12642_v48 = vld [vmem:[#allocation59_spill] sm:$0xff]  ;;  %v12646_v34 = vld [vmem:[#allocation5_spill] sm:$0xff] }
 0xd10   : > { %8120 = vrsqrt.f32 %v3690_v46 }
 0xd11   : > { %8122 = vrsqrt.f32 %v3695_v35 }
 0xd12   : > { %8124 = vrsqrt.f32 %v3696_v26 }
 0xd13   : > { %6341 = vrot.lane.b32.xlu1 %v6319_v37, %s8143_s17  ;;  %v11829_v37 = vld [vmem:[%s11978_s4 + $0x8] sm:$0x7f]  ;;  %8126 = vrsqrt.f32 %v3697_v33 }
 0xd14   : > { %v11846_v7 = vrot.slane %v11829_v37, %v12646_v34  ;;  %v12658_v34 = vld [vmem:[#allocation66_spill] sm:$0xff] }
 0xd16   : > { %v6259_v35 = vmul.f32 %v11846_v7, %v12650_v16 }
 0xd17   : > { %v8115_v41 = vpop.eup %8114 }
 0xd18   : > { %v3757_v55 = vmul.f32 %v8115_v41, %v12637_v61  ;;  %v8117_v47 = vpop.eup %8116  ;;  %v3694_v41 = vadd.f32 1e-05, %v3662_v59 }
 0xd19   : > { %v8119_v4 = vpop.eup %8118  ;;  %v3756_v58 = vmul.f32 %v8117_v47, %v12640_v3 }
 0xd1a   : > { %v6171_v25 = vsel %vm2140_vm9, %v3757_v55, %v11446_v57  ;;  %v3755_v8 = vmul.f32 %v8119_v4, %v12641_v43  ;;  %v8121_v6 = vpop.eup %8120  ;;  %v12648_v4 = vld [vmem:[#allocation19_spill] sm:$0xff]  ;;  %8128 = vrsqrt.f32 %v3694_v41  ;;  %v12652_v43 = vld [vmem:[#allocation37_spill] sm:$0xff] }
 0xd1b   : > { %v6180_v15 = vsel %vm6176_vm15, %v6171_v25, %v11456_v45  ;;  %v6170_v12 = vsel %vm2140_vm9, %v3756_v58, %v11432_v18  ;;  %v8123_v58 = vpop.eup %8122 }
 0xd1c   : > { %v6189_v44 = vsel %vm6185_vm2, %v6180_v15, %v11460_v2  ;;  %v12638_v2 = vld [vmem:[#allocation3_spill] sm:$0xff]  ;;  %v6169_v10 = vsel %vm2140_vm9, %v3755_v8, %v11436_v38  ;;  %v6179_v19 = vsel %vm6176_vm15, %v6170_v12, %v11448_v27  ;;  %v12644_v38 = vld [vmem:[#allocation90_spill] sm:$0xff]  ;;  %v8125_v12 = vpop.eup %8124 }
 0xd1d   : > { %v12639_v52 = vsub.s32 7, %v12638_v2  ;;  %v6178_v39 = vsel %vm6176_vm15, %v6169_v10, %v12642_v48  ;;  %v6188_v9 = vsel %vm6185_vm2, %v6179_v19, %v12644_v38  ;;  %v12653_v10 = vld [vmem:[#allocation79_spill] sm:$0xff]  ;;  %v12654_v48 = vld [vmem:[#allocation34_spill] sm:$0xff]  ;;  %v12655_v38 = vld [vmem:[#allocation9_spill] sm:$0xff] }
 0xd1e   : > { %v6187_v27 = vsel %vm6185_vm2, %v6178_v39, %v12645_v49  ;;  %v12656_v49 = vld [vmem:[#allocation17_spill] sm:$0xff] }
 0xd1f   : > { %v11810_v50 = vrot.slane %v8130_v24, %v12639_v52 }
 0xd38   : > { %v6055_v32 = vpop.permute.xlu0 %6054 }
 0xd39   : > { %v6197_v57 = vsel %vm288_vm0, %v6189_v44, %v6055_v32  ;;  %v11833_v32 = vrot.slane %v11829_v37, %v12643_v63 }
 0xd3c   : > { %v6087_v31 = vpop.permute.xlu0 %6086 }
 0xd3d   : > { %v6206_v60 = vsel %vm6202_vm3, %v6197_v57, %v6087_v31 }
 0xd40   : > { %v11762_v28 = vpop.permute.xlu0 %6050 }
 0xd41   : > { %v11765_v29 = vpop.permute.xlu1 %6052  ;;  %v6195_v53 = vsel %vm288_vm0, %v6187_v27, %v11762_v28  ;;  %v6258_v27 = vmul.f32 %v11846_v7, %v12656_v49 }
 0xd42   : > { %v6196_v5 = vsel %vm288_vm0, %v6188_v9, %v11765_v29  ;;  %v3759_v9 = vmul.f32 %v8123_v58, %v12655_v38 }
 0xd44   : > { %v11767_v51 = vpop.permute.xlu0 %6082  ;;  %v6173_v41 = vsel %vm2140_vm9, %v3759_v9, %v12658_v34 }
 0xd45   : > { %v11769_v62 = vpop.permute.xlu1 %6084  ;;  %v6204_v46 = vsel %vm6202_vm3, %v6195_v53, %v11767_v51  ;;  %v6260_v51 = vmul.f32 %v11846_v7, %v12648_v4  ;;  %v12657_v53 = vld [vmem:[#allocation11_spill] sm:$0xff]  ;;  %v12662_v4 = vld [vmem:[#allocation38_spill] sm:$0xff] }
 0xd46   : > { %v6205_v61 = vsel %vm6202_vm3, %v6196_v5, %v11769_v62  ;;  %v12649_v62 = vld [vmem:[#allocation7_spill] sm:$0xff]  ;;  %v3760_v5 = vmul.f32 %v8125_v12, %v12657_v53 }
 0xd48   : > { %v11772_v13 = vpop.permute.xlu0 %6062 }
 0xd49   : > { %v11775_v14 = vpop.permute.xlu1 %6048 }
 0xd4c   : > { %v11777_v54 = vpop.permute.xlu0 %6094 }
 0xd4d   : > { %v11779_v20 = vpop.permute.xlu1 %6080 }
 0xd50   : > { %v11781_v1 = vpop.permute.xlu0 %6058 }
 0xd51   : > { %v11784_v23 = vpop.permute.xlu1 %6060 }
 0xd54   : > { %v11786_v36 = vpop.permute.xlu0 %6090 }
 0xd55   : > { %v11788_v30 = vpop.permute.xlu1 %6092 }
 0xd58   : > { %v6119_v40 = vpop.permute.xlu0 %6118 }
 0xd59   : > { %v11796_v0 = vpop.permute.xlu1 %6056  ;;  %v6215_v21 = vsel %vm6211_vm4, %v6206_v60, %v6119_v40  ;;  %v12647_v40 = vld [vmem:[#allocation61_spill] sm:$0xff] }
 0xd5a   : > { %v3754_v15 = vmul.f32 %v8121_v6, %v12647_v40 }
 0xd5c   : > { %v6151_v45 = vpop.permute.xlu0 %6150  ;;  %v6168_v57 = vsel %vm2140_vm9, %v3754_v15, %v12649_v62 }
 0xd5d   : > { %v11812_v22 = vpop.permute.xlu1 %6088  ;;  %v6224_v56 = vsel %vm6220_vm6, %v6215_v21, %v6151_v45  ;;  %v12651_v45 = vld [vmem:[#allocation57_spill] sm:$0xff] }
 0xd5e   : > { %v6236_v18 = vmul.f32 %v11810_v50, %v6224_v56  ;;  %v6177_v21 = vsel %vm6176_vm15, %v6168_v57, %v12651_v45  ;;  %v12664_v57 = vld [vmem:[#allocation40_spill] sm:$0xff] }
 0xd5f   : > { %v6186_v8 = vsel %vm6185_vm2, %v6177_v21, %v12652_v43 }
 0xd60   : > { %v6115_v11 = vpop.permute.xlu0 %6114  ;;  %v6248_v17 = vadd.f32 %v11833_v32, %v6236_v18  ;;  %v6194_v56 = vsel %vm288_vm0, %v6186_v8, %v11775_v14 }
 0xd61   : > { %v6117_v31 = vpop.permute.xlu1 %6116  ;;  %v6213_v28 = vsel %vm6211_vm4, %v6204_v46, %v6115_v11  ;;  %v6203_v59 = vsel %vm6202_vm3, %v6194_v56, %v11779_v20  ;;  %v12659_v46 = vld [vmem:[#allocation16_spill] sm:$0xff] }
 0xd62   : > { %v6214_v25 = vsel %vm6211_vm4, %v6205_v61, %v6117_v31  ;;  %v6268_v24 = vadd.f32 %v6260_v51, %v6248_v17  ;;  %v8127_v31 = vpop.eup %8126  ;;  %v6257_v61 = vmul.f32 %v11846_v7, %v12659_v46  ;;  %v12660_v17 = vld [vmem:[#allocation67_spill] sm:$0xff]  ;;  %v6174_v51 = vsel %vm2140_vm9, %v3760_v5, %v12662_v4  ;;  %v12668_v56 = vld [vmem:[#allocation80_spill] sm:$0xff] }
 0xd63   : > { %v12676_v4 = vld [vmem:[#allocation20_spill] sm:$0xff] }
 0xd64   : > { %v6147_v55 = vpop.permute.xlu0 %6146  ;;  %v6356_v11 = vmul.f32 %v12653_v10, %v6268_v24  ;;  %v12670_v10 = vld [vmem:[#allocation82_spill] sm:$0xff] }
 0xd65   : > { %v6149_v29 = vpop.permute.xlu1 %6148  ;;  %v6222_v47 = vsel %vm6220_vm6, %v6213_v28, %v6147_v55  ;;  %v3761_v28 = vmul.f32 %v8127_v31, %v12660_v17 }
 0xd66   : > { %v6223_v44 = vsel %vm6220_vm6, %v6214_v25, %v6149_v29  ;;  %v6234_v2 = vmul.f32 %v11810_v50, %v6222_v47  ;;  %v12661_v25 = vld [vmem:[#allocation55_spill] sm:$0xff] }
 0xd67   : > { %v6235_v42 = vmul.f32 %v11810_v50, %v6223_v44  ;;  %v6182_v29 = vsel %vm6176_vm15, %v6173_v41, %v12661_v25  ;;  %v8129_v44 = vpop.eup %8128  ;;  %v6175_v16 = vsel %vm2140_vm9, %v3761_v28, %v12664_v57 }
 0xd68   : > { %v6127_v60 = vpop.permute.xlu0 %6126  ;;  %v6246_v19 = vadd.f32 %v11833_v32, %v6234_v2  ;;  %v12666_v2 = vld [vmem:[#allocation104_spill] sm:$0xff] }
 0xd69   : > { %v6247_v52 = vadd.f32 %v11833_v32, %v6235_v42  ;;  %v6113_v3 = vpop.permute.xlu1 %6112  ;;  %v12663_v42 = vld [vmem:[#allocation74_spill] sm:$0xff] }
 0xd6a   : > { %v6212_v63 = vsel %vm6211_vm4, %v6203_v59, %v6113_v3  ;;  %v6266_v40 = vadd.f32 %v6258_v27, %v6246_v19  ;;  %v6191_v62 = vsel %vm6185_vm2, %v6182_v29, %v12663_v42  ;;  %v12667_v3 = vld [vmem:[#allocation60_spill] sm:$0xff]  ;;  %v12669_v59 = vld [vmem:[#allocation39_spill] sm:$0xff] }
 0xd6b   : > { %v6267_v26 = vadd.f32 %v6259_v35, %v6247_v52  ;;  %v12665_v35 = vld [vmem:[#allocation65_spill] sm:$0xff]  ;;  %v6199_v21 = vsel %vm288_vm0, %v6191_v62, %v11781_v1  ;;  %v6184_v58 = vsel %vm6176_vm15, %v6175_v16, %v12667_v3  ;;  %v12677_v62 = vld [vmem:[#allocation23_spill] sm:$0xff]  ;;  %v12678_v16 = vld [vmem:[#allocation22_spill] sm:$0xff] }
 0xd6c   : > { %v6159_v33 = vpop.permute.xlu0 %6158  ;;  %v6183_v45 = vsel %vm6176_vm15, %v6174_v51, %v12665_v35  ;;  %v6208_v43 = vsel %vm6202_vm3, %v6199_v21, %v11786_v36  ;;  %v6354_v12 = vmul.f32 %v12669_v59, %v6266_v40  ;;  %v12675_v40 = vld [vmem:[#allocation21_spill] sm:$0xff]  ;;  %v6261_v51 = vmul.f32 %v11846_v7, %v12676_v4 }
 0xd6d   : > { %v6355_v39 = vmul.f32 %v12654_v48, %v6267_v26  ;;  %v6145_v18 = vpop.permute.xlu1 %6144  ;;  %v6192_v52 = vsel %vm6185_vm2, %v6183_v45, %v12666_v2  ;;  %v6193_v26 = vsel %vm6185_vm2, %v6184_v58, %v12668_v56  ;;  %v12671_v48 = vld [vmem:[#allocation70_spill] sm:$0xff]  ;;  %v6264_v57 = vmul.f32 %v11846_v7, %v12677_v62 }
 0xd6e   : > { %v6221_v14 = vsel %vm6220_vm6, %v6212_v63, %v6145_v18  ;;  %v6201_v63 = vsel %vm288_vm0, %v6193_v26, %v11772_v13  ;;  %v6200_v18 = vsel %vm288_vm0, %v6192_v52, %v11784_v23  ;;  %v12673_v13 = vld [vmem:[#allocation98_spill] sm:$0xff]  ;;  %v6263_v35 = vmul.f32 %v11846_v7, %v12678_v16 }
 0xd6f   : > { %v6362_v20 = vpack.c.bf16 %v6356_v11, %v6355_v39  ;;  %v6233_v6 = vmul.f32 %v11810_v50, %v6221_v14  ;;  %v3758_v39 = vmul.f32 %v8129_v44, %v12671_v48  ;;  %v6210_v31 = vsel %vm6202_vm3, %v6201_v63, %v11777_v54  ;;  %v12672_v14 = vld [vmem:[#allocation93_spill] sm:$0xff]  ;;  %v12679_v56 = vld [vmem:[#allocation6_spill] sm:$0xff] }
 0xd70   : > { %v6123_v55 = vpop.permute.xlu0 %6122  ;;  %v6209_v38 = vsel %vm6202_vm3, %v6200_v18, %v11788_v30  ;;  %v6219_v27 = vsel %vm6211_vm4, %v6210_v31, %v6127_v60  ;;  %v12674_v30 = vld [vmem:[#allocation77_spill] sm:$0xff]  ;;  %v6368_v26 = vrot.slane %v11829_v37, %v12679_v56 }
 0xd71   : > { %v6245_v15 = vadd.f32 %v11833_v32, %v6233_v6  ;;  %v6125_v47 = vpop.permute.xlu1 %6124  ;;  %v6217_v1 = vsel %vm6211_vm4, %v6208_v43, %v6123_v55  ;;  %v6172_v49 = vsel %vm2140_vm9, %v3758_v39, %v12672_v14  ;;  %v6228_v23 = vsel %vm6220_vm6, %v6219_v27, %v6159_v33 }
 0xd72   : > { %v6218_v6 = vsel %vm6211_vm4, %v6209_v38, %v6125_v47  ;;  %v6181_v53 = vsel %vm6176_vm15, %v6172_v49, %v12673_v13  ;;  %v6240_v33 = vmul.f32 %v11810_v50, %v6228_v23  ;;  %v8132_v49 = vld [vmem:[%s8202_s23] sm:$0xff] }
 0xd73   : > { %v6265_v24 = vadd.f32 %v6257_v61, %v6245_v15  ;;  %v6190_v41 = vsel %vm6185_vm2, %v6181_v53, %v12674_v30  ;;  %v12680_v13 = vld [vmem:[#allocation2_spill] sm:$0xff] }
 0xd74   : > { %v6155_v8 = vpop.permute.xlu0 %6154  ;;  %v6198_v60 = vsel %vm288_vm0, %v6190_v41, %v11796_v0  ;;  %v6252_v15 = vadd.f32 %v11833_v32, %v6240_v33 }
 0xd75   : > { %v6353_v11 = vmul.f32 %v12670_v10, %v6265_v24  ;;  %v6157_v19 = vpop.permute.xlu1 %6156  ;;  %v6226_v36 = vsel %vm6220_vm6, %v6217_v1, %v6155_v8  ;;  %v6207_v46 = vsel %vm6202_vm3, %v6198_v60, %v11812_v22 }
 0xd76   : > { %v6238_v5 = vmul.f32 %v11810_v50, %v6226_v36  ;;  %v6227_v54 = vsel %vm6220_vm6, %v6218_v6, %v6157_v19 }
 0xd77   : > { %v6361_v9 = vpack.c.bf16 %v6354_v12, %v6353_v11  ;;  %v6239_v61 = vmul.f32 %v11810_v50, %v6227_v54 }
 0xd78   : > { %v6250_v55 = vadd.f32 %v11833_v32, %v6238_v5  ;;  %v6340_v17 = vpop.permute.xlu0 %6339 }
 0xd79   : > { %v6121_v34 = vpop.permute.xlu1 %6120  ;;  %7246 = vmatprep.mubr.msk.bf16.mxu0 %vm744_vm1, %v6361_v9  ;;  %v6251_v22 = vadd.f32 %v11833_v32, %v6239_v61 }
 0xd7a   : > { %7247 = vmatmul.mubr.msk.bf16.vlgmr.msra.gmra.mrb[84].mxu0 %vm744_vm1, %v6362_v20  ;;  %v6216_v28 = vsel %vm6211_vm4, %v6207_v46, %v6121_v34  ;;  %v6262_v20 = vmul.f32 %v11846_v7, %v12675_v40 }
 0xd7b   : > { %v6271_v24 = vadd.f32 %v6263_v35, %v6251_v22 }
 0xd7c   : > { %v6270_v47 = vadd.f32 %v6262_v20, %v6250_v55  ;;  %v6344_v45 = vpop.permute.xlu0 %6343 }
 0xd7d   : > { %v6153_v25 = vpop.permute.xlu1 %6152 }
 0xd7e   : > { %v6225_v29 = vsel %vm6220_vm6, %v6216_v28, %v6153_v25  ;;  %v6358_v2 = vmul.f32 %v6340_v17, %v6270_v47 }
 0xd7f   : > { %v6237_v0 = vmul.f32 %v11810_v50, %v6225_v29  ;;  %v6272_v50 = vadd.f32 %v6264_v57, %v6252_v15 }
 0xd81   : > { %v6249_v44 = vadd.f32 %v11833_v32, %v6237_v0  ;;  %v6338_v42 = vpop.permute.xlu1 %6337  ;;  %v6360_v58 = vmul.f32 %v6344_v45, %v6272_v50 }
 0xd83   : > { %v6269_v21 = vadd.f32 %v6261_v51, %v6249_v44 }
 0xd85   : > { %v6357_v52 = vmul.f32 %v6338_v42, %v6269_v21  ;;  %v6342_v3 = vpop.permute.xlu1 %6341 }
 0xd86   : > { %v6359_v43 = vmul.f32 %v6342_v3, %v6271_v24 }
 0xd87   : > { %v6363_v32 = vpack.c.bf16 %v6358_v2, %v6357_v52 }
 0xd88   : > { %v6364_v8 = vpack.c.bf16 %v6360_v58, %v6359_v43 }
 0xd89   : > { %7250 = vmatprep.mubr.msk.bf16.mxu0 %vm744_vm1, %v6363_v32 }
 0xd8a   : > { %7251 = vmatmul.mubr.msk.bf16.gmra.mrb[88].mxu0 %vm744_vm1, %v6364_v8 }
 0xe4d   : > { %v7248_v59 = vpop.f32.mrb[84].mxu0 }
 0xe4e   : > { %v6427_v7 = vpop.f32.mrb[85].mxu0  ;;  %v6436_v19 = vadd.f32 %v7248_v59, %v6368_v26 }
 0xe4f   : > { %v6428_v12 = vadd.f32 %v6427_v7, %v6368_v26  ;;  %v7249_v10 = vpop.f32.mrb[86].mxu0 }
 0xe50   : > { %v6430_v11 = vpop.f32.mrb[87].mxu0  ;;  %v6439_v48 = vadd.f32 %v7249_v10, %v6368_v26 }
 0xe51   : > { %6458 = vxpose.xlu1.b32.start [1/8] (short) (narrow) %v6428_v12, 16  ;;  %v6431_v1 = vadd.f32 %v6430_v11, %v6368_v26 }
 0xe55   : > { %6459 = vxpose.xlu1.b32.cont [2/8] (short) (narrow) %v6431_v1, 16 }
 0xe59   : > { %6460 = vxpose.xlu1.b32.cont [3/8] (short) (narrow) %v6436_v19, 16 }
 0xe5d   : > { %6461 = vxpose.xlu1.b32.cont [4/8] (short) (narrow) %v6439_v48, 16  ;;  %v7252_v39 = vpop.f32.mrb[88].mxu0 }
 0xe5e   : > { %v6443_v63 = vpop.f32.mrb[89].mxu0  ;;  %v6452_v38 = vadd.f32 %v7252_v39, %v6368_v26 }
 0xe5f   : > { %v6444_v18 = vadd.f32 %v6443_v63, %v6368_v26  ;;  %v7253_v36 = vpop.f32.mrb[90].mxu0 }
 0xe60   : > { %v6446_v31 = vpop.f32.mrb[91].mxu0  ;;  %v6455_v9 = vadd.f32 %v7253_v36, %v6368_v26 }
 0xe61   : > { %6462 = vxpose.xlu1.b32.cont [5/8] (short) (narrow) %v6444_v18, 16  ;;  %v6447_v37 = vadd.f32 %v6446_v31, %v6368_v26 }
 0xe65   : > { %6463 = vxpose.xlu1.b32.cont [6/8] (short) (narrow) %v6447_v37, 16 }
 0xe69   : > { %6464 = vxpose.xlu1.b32.cont [7/8] (short) (narrow) %v6452_v38, 16 }
 0xe6d   : > { %6465 = vxpose.xlu1.b32.end [8/8] (short) (narrow) %v6455_v9, 16 }
 0xed1   : > { %v6474_v14 = vpop.trf.xlu1 }
 0xed2   : > { %v6490_v27 = vadd.f32 %v8132_v49, %v6474_v14 }
 0xed4   : > { %6492 = vst.msk [vmem:[%s224_s21] sm:$0xff] %vm1048_vm5, %v6490_v27 }
 0xed5   : > { %v6475_v6 = vpop.trf.xlu1 }
 0xed6   : > { %v6491_v53 = vadd.f32 %v6475_v6, %v12680_v13 }
 0xed8   : > { %6493 = vst.msk [vmem:[%s224_s21 + $0x8] sm:$0xff] %vm1048_vm5, %v6491_v53 }
 0xed9 PF: > { %s15_s18 = sadd.s32 1, %s8139_s18  }
 0xeda   : > { %p12_p4 = scmp.ge.s32.totalorder %s15_s18, 4  }
 0xedc   :  { %14 = sbr.rel (!%p12_p4) target bundleno = 1 (0x1), region = 70 }

</bundles_post_ra>
